<compile_context>
chip_gen: v7x
topology: tpu7x:2x2x1
jax: 0.10.0
libtpu: 0.0.40
codegen_flags: <defaults>
</compile_context>

<pallas_src>
import math

import numpy as np
import jax
import jax.numpy as jnp
from jax.experimental import pallas as pl
from jax.experimental.pallas import tpu as pltpu


# ----------------------------------------------------------------------------
# In-kernel helpers
# ----------------------------------------------------------------------------
def _edge_masks(n):
    """(1, n) f32 masks that zero the first / last lane column (conv pad=1 zeros)."""
    col = jax.lax.broadcasted_iota(jnp.int32, (1, n), 1)
    first = (col != 0).astype(jnp.float32)
    last = (col != n - 1).astype(jnp.float32)
    return first, last


def _shift_taps(a, mask_first, mask_last):
    """(x[t-1], x[t], x[t+1]) along the lane axis, zero-padded at the edges."""
    prev = jnp.roll(a, 1, axis=1) * mask_first     # a[:, l-1], 0 at l == 0
    nxt = jnp.roll(a, -1, axis=1) * mask_last      # a[:, l+1], 0 at l == n-1
    return prev, a, nxt


def _conv3tap(w, b, taps, relu=True):
    """k=3 conv (BN folded) as three accumulated MXU dots: w[k] pairs with taps[k]."""
    w0, w1, w2 = w[0], w[1], w[2]
    wd = w0.dtype
    acc = jnp.dot(w0, taps[0].astype(wd), preferred_element_type=jnp.float32)
    acc = acc + jnp.dot(w1, taps[1].astype(wd), preferred_element_type=jnp.float32)
    acc = acc + jnp.dot(w2, taps[2].astype(wd), preferred_element_type=jnp.float32)
    acc = acc + b[...]
    return jnp.maximum(acc, 0.0) if relu else acc


# ----------------------------------------------------------------------------
# The fused kernel: one grid step == one batch element
# ----------------------------------------------------------------------------
def seqnet_kernel(x_ref, ha_ref, hb_ref, w1_ref, b1_ref, p8_ref,
                  w2_ref, b2_ref, pl8_ref, w3_ref, b3_ref,
                  rw_ref, rb_ref, pc_ref, w4_ref, b4_ref, o_ref):
    f32 = jnp.float32
    x0 = x_ref[...]                                   # (32, nl), x0[s,l] = x[l*32+s]
    nl = x0.shape[1]
    mfirst, mlast = _edge_masks(nl)

    # -- Stage 0: Conv1d(1->F, k=3, pad=1) + AvgPool1d(4), folded into three
    #    host-built (8F, 32) matrices acting on prev/cur/next 32-sample columns.
    #    Output P[f*8+s, l] = pooled feature f at time l*8+s.
    taps = _shift_taps(x0, mfirst, mlast)
    P = _conv3tap(ha_ref, hb_ref, taps, relu=False)   # (8F, nl) f32

    # -- Stage 1: StandardConv1d(F->2F) on the stacked layout: three banded
    #    (16F, 8F) matrices (MXU) instead of the old VPU broadcast-FMA path.
    taps = _shift_taps(P, mfirst, mlast)
    Y = _conv3tap(w1_ref, b1_ref, taps)               # (16F, nl) f32

    # -- Stage 2: AvgPool1d(8) == mean over the 8 stacked time-phases (tiny matmul).
    z = jnp.dot(p8_ref[...], Y.astype(p8_ref.dtype),
                preferred_element_type=f32)           # (2F, nl)

    # -- Stage 3: StandardConv1d(2F->4F), channel-major, three accumulated dots.
    taps = _shift_taps(z, mfirst, mlast)
    y2 = _conv3tap(w2_ref, b2_ref, taps)              # (4F, nl)

    # -- Stage 4: AvgPool1d(8) along lanes via a resident block-diagonal matrix
    #    (host-built bf16, ~67 MFLOP at L=2**16, << the conv1 stage).
    # TODO(synk): switch to a per-128-lane-block pool for in_length >= 2**18, where
    #             this dense matrix becomes O(L^2) bytes/FLOPs and threatens v7x VMEM.
    q = jnp.dot(y2.astype(pl8_ref.dtype), pl8_ref[...],
                preferred_element_type=f32)           # (4F, nl//8)

    # -- Stage 5: StandardConv1d(4F->8F) (cheap lane rolls on the pooled length).
    nq = q.shape[1]
    mfirst_q, mlast_q = _edge_masks(nq)
    taps = _shift_taps(q, mfirst_q, mlast_q)
    r = _conv3tap(w3_ref, b3_ref, taps)               # (8F, nl//8)

    # -- Stage 6: 5 x ResBlock1d(8F): x + StandardConv1d(x); residual kept in f32.
    for k in range(5):
        taps = _shift_taps(r, mfirst_q, mlast_q)
        r = r + _conv3tap(rw_ref[k], rb_ref[k], taps)

    # -- Stage 7: AvgPool1d(8) + StandardConv1d(8F->16F); the conv's +/-1 taps are
    #    folded into three tiny shifted pooling matrices (no lane rolls here).
    r16 = r.astype(pc_ref.dtype)
    taps = tuple(jnp.dot(r16, pc_ref[k], preferred_element_type=f32)
                 for k in range(3))
    y4 = _conv3tap(w4_ref, b4_ref, taps)              # (16F, L/2048)

    o_ref[...] = y4.astype(o_ref.dtype)


# ----------------------------------------------------------------------------
# Wrapper (pallas_call plumbing + tiny plain-JAX tail)
# ----------------------------------------------------------------------------
def seqnet_conv_forward(x, params):
    B, _, L = x.shape
    if L % 65536 != 0:
        raise ValueError("in_length must be a multiple of 2**16")
    nl = L // 32                      # lanes of the column-major tile (multiple of 128)
    lf = L // 2048                    # sequence length entering conv_avg
    c_out = params["b4"].shape[0]     # 16F

    # Sequence-on-sublanes layout for the long stages: x_cm[b, s, l] = x[b, 0, l*32 + s].
    x_cm = x.reshape(B, nl, 32).transpose(0, 2, 1)    # (B, 32, nl)

    weight_names = ["ha", "hb", "w1", "b1", "p8", "w2", "b2", "pl8",
                    "w3", "b3", "rw", "rb", "pc", "w4", "b4"]
    weights = [params[n] for n in weight_names]

    def resident(a):  # whole array resident in VMEM across the batch grid
        return pl.BlockSpec(a.shape, lambda b, _nd=a.ndim: (0,) * _nd)

    feat_map = pl.pallas_call(
        seqnet_kernel,
        out_shape=jax.ShapeDtypeStruct((B, c_out, lf), jnp.float32),
        grid=(B,),
        in_specs=[pl.BlockSpec((None, 32, nl), lambda b: (b, 0, 0))] +
                 [resident(a) for a in weights],
        out_specs=pl.BlockSpec((None, c_out, lf), lambda b: (b, 0, 0)),
        compiler_params=pltpu.CompilerParams(
            dimension_semantics=("parallel",),
            vmem_limit_bytes=48 * 1024 * 1024),
    )(x_cm, *weights)

    # Tail: AvgPool1d(32) -> Flatten -> Linear -> Softmax (eval mode), in plain JAX.
    pooled = feat_map.reshape(B, c_out, lf // 32, 32).mean(axis=-1)
    flat = pooled.reshape(B, -1)
    logits = flat @ params["fc_w"].T + params["fc_b"]
    return jax.nn.softmax(logits, axis=-1)


# ----------------------------------------------------------------------------
# Host-side parameter preparation (BN folding + matrix folding), deterministic.
# ----------------------------------------------------------------------------
def fold_bn(w, b, gamma=None, beta=None, mean=None, var=None, eps=1e-5):
    """Fold eval-mode BatchNorm1d into conv weight (Cout, Cin, 3) / bias (Cout,)."""
    cout = w.shape[0]
    gamma = np.ones(cout, np.float32) if gamma is None else gamma
    beta = np.zeros(cout, np.float32) if beta is None else beta
    mean = np.zeros(cout, np.float32) if mean is None else mean
    var = np.ones(cout, np.float32) if var is None else var
    s = gamma / np.sqrt(var + eps)
    return w * s[:, None, None], (b - mean) * s + beta


def _head_pool_matrices(wh):
    """Fold Conv1d(1->F, k=3, pad=1) + AvgPool1d(4) into (3, 8F, 32) matrices that
    multiply the previous / current / next 32-sample column of the input tile."""
    F = wh.shape[0]
    A = np.zeros((3, 8 * F, 32), np.float32)
    for f in range(F):
        w0, w1, w2 = wh[f]
        coeff = {-1: w0, 0: w0 + w1, 1: w0 + w1 + w2,
                 2: w0 + w1 + w2, 3: w1 + w2, 4: w2}
        for s in range(8):
            row = f * 8 + s
            for d, v in coeff.items():
                col = 4 * s + d
                if col < 0:
                    A[0, row, 32 + col] += v / 4.0       # previous column
                elif col > 31:
                    A[2, row, col - 32] += v / 4.0       # next column
                else:
                    A[1, row, col] += v / 4.0            # current column
    return A


def _stacked_conv_matrices(w):
    """Fold Conv1d(Cin->Cout, k=3, pad=1) acting on the 8-phase stacked layout into
    banded matrices (3, 8*Cout, 8*Cin) for the previous / current / next lane column."""
    cout, cin, _ = w.shape
    W = np.zeros((3, 8 * cout, 8 * cin), np.float32)
    for o in range(cout):
        for i in range(cin):
            w0, w1, w2 = w[o, i]
            for s in range(8):
                W[1, o * 8 + s, i * 8 + s] += w1
                if s >= 1:
                    W[1, o * 8 + s, i * 8 + s - 1] += w0
                else:
                    W[0, o * 8 + 0, i * 8 + 7] += w0
                if s <= 6:
                    W[1, o * 8 + s, i * 8 + s + 1] += w2
                else:
                    W[2, o * 8 + 7, i * 8 + 0] += w2
    return W


def _taps_form(w):  # (Cout, Cin, 3) -> (3, Cout, Cin), tap order [t-1 | t | t+1]
    return np.stack([w[:, :, 0], w[:, :, 1], w[:, :, 2]])


def init_params(key, feat_num, num_class, in_length):
    F = feat_num
    nl = in_length // 32
    nq = nl // 8
    lf = nl // 64
    keys = iter(jax.random.split(key, 32))

    def unif(shape, fan_in):
        bound = 1.0 / math.sqrt(fan_in)
        return np.asarray(
            jax.random.uniform(next(keys), shape, jnp.float32, -bound, bound))

    def conv_wb(cout, cin):
        return unif((cout, cin, 3), cin * 3), unif((cout,), cin * 3)

    p = {}

    # head conv (1 -> F, no BN/act) + AvgPool1d(4) folded; kept in f32 (small).
    wh, bh = conv_wb(F, 1)
    p["ha"] = jnp.asarray(_head_pool_matrices(wh.reshape(F, 3)), jnp.float32)
    p["hb"] = jnp.asarray(np.repeat(bh, 8)[:, None], jnp.float32)        # (8F, 1)

    # conv1 (F -> 2F) on the stacked layout: banded matrices, bf16.
    w, b = fold_bn(*conv_wb(2 * F, F))
    p["w1"] = jnp.asarray(_stacked_conv_matrices(w), jnp.bfloat16)       # (3, 16F, 8F)
    p["b1"] = jnp.asarray(np.repeat(b, 8)[:, None], jnp.float32)         # (16F, 1)

    # AvgPool1d(8) over the 8 stacked phases: (2F, 16F).
    p8 = np.zeros((2 * F, 16 * F), np.float32)
    for i in range(2 * F):
        p8[i, i * 8:(i + 1) * 8] = 1.0 / 8.0
    p["p8"] = jnp.asarray(p8, jnp.bfloat16)

    # conv2 (2F -> 4F), channel-major taps.
    w, b = fold_bn(*conv_wb(4 * F, 2 * F))
    p["w2"] = jnp.asarray(_taps_form(w), jnp.bfloat16)
    p["b2"] = jnp.asarray(b[:, None], jnp.float32)

    # AvgPool1d(8) along lanes: block-diagonal (nl, nl//8), resident bf16 constant.
    mpool = (np.arange(nl)[:, None] // 8 == np.arange(nq)[None, :])
    p["pl8"] = jnp.asarray(mpool.astype(np.float32) / 8.0, jnp.bfloat16)

    # conv3 (4F -> 8F).
    w, b = fold_bn(*conv_wb(8 * F, 4 * F))
    p["w3"] = jnp.asarray(_taps_form(w), jnp.bfloat16)
    p["b3"] = jnp.asarray(b[:, None], jnp.float32)

    # 5 x ResBlock1d(8F).
    rws, rbs = [], []
    for _ in range(5):
        w, b = fold_bn(*conv_wb(8 * F, 8 * F))
        rws.append(_taps_form(w))
        rbs.append(b[:, None])
    p["rw"] = jnp.asarray(np.stack(rws), jnp.bfloat16)                   # (5, 3, 8F, 8F)
    p["rb"] = jnp.asarray(np.stack(rbs), jnp.float32)                    # (5, 8F, 1)

    # AvgPool1d(8) + conv4 (8F -> 16F): three shifted (nl//8, lf) pooling matrices.
    pcs = []
    for k in range(3):
        d = k - 1
        mk = (np.arange(nq)[:, None] // 8) == (np.arange(lf)[None, :] + d)
        pcs.append(mk.astype(np.float32) / 8.0)
    p["pc"] = jnp.asarray(np.stack(pcs), jnp.bfloat16)                   # (3, nl//8, lf)
    w, b = fold_bn(*conv_wb(16 * F, 8 * F))
    p["w4"] = jnp.asarray(_taps_form(w), jnp.bfloat16)
    p["b4"] = jnp.asarray(b[:, None], jnp.float32)

    # classifier tail
    lin_in = in_length * feat_num * 16 // (2 ** 16)
    p["fc_w"] = jnp.asarray(unif((num_class, lin_in), lin_in))
    p["fc_b"] = jnp.asarray(unif((num_class,), lin_in))
    return p


# ----------------------------------------------------------------------------
if __name__ == "__main__":
    IN_LENGTH = 65536      # smallest in_length the architecture supports (2**16)
    FEAT = 4               # small feat_num for the smoke test (module default is 16)
    NUM_CLASS = 2
    B = 2

    key = jax.random.PRNGKey(0)
    kx, kp = jax.random.split(key)
    x = jax.random.normal(kx, (B, 1, IN_LENGTH), dtype=jnp.float32)
    params = init_params(kp, FEAT, NUM_CLASS, IN_LENGTH)

    fwd = jax.jit(seqnet_conv_forward)
    out = jax.block_until_ready(fwd(x, params))

    assert out.shape == (B, NUM_CLASS)
    assert bool(jnp.all(jnp.isfinite(out)))
    # eval-mode softmax: rows must sum to 1
    assert bool(jnp.all(jnp.abs(jnp.sum(out, axis=1) - 1.0) < 1e-3))
    print("KERNEL_OK")
</pallas_src>

<mosaic_0001>
module attributes {stable_mosaic.version = 11 : i64} {
  func.func @seqnet_kernel(%arg0: i32, %arg1: memref<1x32x2048xf32, #tpu.memory_space<vmem>>, %arg2: memref<3x32x32xf32, #tpu.memory_space<vmem>>, %arg3: memref<32x1xf32, #tpu.memory_space<vmem>>, %arg4: memref<3x64x32xbf16, #tpu.memory_space<vmem>>, %arg5: memref<64x1xf32, #tpu.memory_space<vmem>>, %arg6: memref<8x64xbf16, #tpu.memory_space<vmem>>, %arg7: memref<3x16x8xbf16, #tpu.memory_space<vmem>>, %arg8: memref<16x1xf32, #tpu.memory_space<vmem>>, %arg9: memref<2048x256xbf16, #tpu.memory_space<vmem>>, %arg10: memref<3x32x16xbf16, #tpu.memory_space<vmem>>, %arg11: memref<32x1xf32, #tpu.memory_space<vmem>>, %arg12: memref<5x3x32x32xbf16, #tpu.memory_space<vmem>>, %arg13: memref<5x32x1xf32, #tpu.memory_space<vmem>>, %arg14: memref<3x256x32xbf16, #tpu.memory_space<vmem>>, %arg15: memref<3x64x32xbf16, #tpu.memory_space<vmem>>, %arg16: memref<64x1xf32, #tpu.memory_space<vmem>>, %arg17: memref<1x64x32xf32, #tpu.memory_space<vmem>>) attributes {dimension_semantics = [#tpu.dimension_semantics<parallel>], iteration_bounds = array<i64: 2>, scalar_prefetch = 0 : i64, scratch_operands = 0 : i64, tpu.core_type = #tpu.core_type<tc>, window_params = [{transform_indices = @transform_0, window_bounds = array<i64: 1, 32, 2048>}, {pipeline_mode = #tpu.pipeline_mode<synchronous>, transform_indices = @transform_1, window_bounds = array<i64: 3, 32, 32>}, {pipeline_mode = #tpu.pipeline_mode<synchronous>, transform_indices = @transform_2, window_bounds = array<i64: 32, 1>}, {pipeline_mode = #tpu.pipeline_mode<synchronous>, transform_indices = @transform_3, window_bounds = array<i64: 3, 64, 32>}, {pipeline_mode = #tpu.pipeline_mode<synchronous>, transform_indices = @transform_4, window_bounds = array<i64: 64, 1>}, {pipeline_mode = #tpu.pipeline_mode<synchronous>, transform_indices = @transform_5, window_bounds = array<i64: 8, 64>}, {pipeline_mode = #tpu.pipeline_mode<synchronous>, transform_indices = @transform_6, window_bounds = array<i64: 3, 16, 8>}, {pipeline_mode = #tpu.pipeline_mode<synchronous>, transform_indices = @transform_7, window_bounds = array<i64: 16, 1>}, {pipeline_mode = #tpu.pipeline_mode<synchronous>, transform_indices = @transform_8, window_bounds = array<i64: 2048, 256>}, {pipeline_mode = #tpu.pipeline_mode<synchronous>, transform_indices = @transform_9, window_bounds = array<i64: 3, 32, 16>}, {pipeline_mode = #tpu.pipeline_mode<synchronous>, transform_indices = @transform_10, window_bounds = array<i64: 32, 1>}, {pipeline_mode = #tpu.pipeline_mode<synchronous>, transform_indices = @transform_11, window_bounds = array<i64: 5, 3, 32, 32>}, {pipeline_mode = #tpu.pipeline_mode<synchronous>, transform_indices = @transform_12, window_bounds = array<i64: 5, 32, 1>}, {pipeline_mode = #tpu.pipeline_mode<synchronous>, transform_indices = @transform_13, window_bounds = array<i64: 3, 256, 32>}, {pipeline_mode = #tpu.pipeline_mode<synchronous>, transform_indices = @transform_14, window_bounds = array<i64: 3, 64, 32>}, {pipeline_mode = #tpu.pipeline_mode<synchronous>, transform_indices = @transform_15, window_bounds = array<i64: 64, 1>}, {transform_indices = @transform_16, window_bounds = array<i64: 1, 64, 32>}]} {
    %c0 = arith.constant 0 : index
    %c0_0 = arith.constant 0 : index
    %c0_1 = arith.constant 0 : index
    %0 = vector.load %arg1[%c0, %c0_0, %c0_1] : memref<1x32x2048xf32, #tpu.memory_space<vmem>>, vector<1x32x2048xf32>
    %1 = vector.shape_cast %0 : vector<1x32x2048xf32> to vector<32x2048xf32>
    %2 = tpu.iota {dimensions = array<i32: 1>} : vector<1x2048xi32>
    %c0_i32 = arith.constant 0 : i32
    %3 = vector.broadcast %c0_i32 : i32 to vector<1x2048xi32>
    %4 = arith.cmpi ne, %2, %3 : vector<1x2048xi32>
    %5 = arith.extui %4 : vector<1x2048xi1> to vector<1x2048xi32>
    %6 = arith.sitofp %5 : vector<1x2048xi32> to vector<1x2048xf32>
    %c2047_i32 = arith.constant 2047 : i32
    %7 = vector.broadcast %c2047_i32 : i32 to vector<1x2048xi32>
    %8 = arith.cmpi ne, %2, %7 : vector<1x2048xi32>
    %9 = arith.extui %8 : vector<1x2048xi1> to vector<1x2048xi32>
    %10 = arith.sitofp %9 : vector<1x2048xi32> to vector<1x2048xf32>
    %11 = vector.extract_strided_slice %1 {offsets = [0, 2047], sizes = [32, 1], strides = [1, 1]} : vector<32x2048xf32> to vector<32x1xf32>
    %12 = vector.extract_strided_slice %1 {offsets = [0, 0], sizes = [32, 2047], strides = [1, 1]} : vector<32x2048xf32> to vector<32x2047xf32>
    %13 = tpu.concatenate %11, %12 in 1 : vector<32x1xf32>, vector<32x2047xf32> -> vector<32x2048xf32>
    %14 = vector.broadcast %6 : vector<1x2048xf32> to vector<32x2048xf32>
    %15 = arith.mulf %13, %14 : vector<32x2048xf32>
    %16 = vector.extract_strided_slice %1 {offsets = [0, 1], sizes = [32, 2047], strides = [1, 1]} : vector<32x2048xf32> to vector<32x2047xf32>
    %17 = vector.extract_strided_slice %1 {offsets = [0, 0], sizes = [32, 1], strides = [1, 1]} : vector<32x2048xf32> to vector<32x1xf32>
    %18 = tpu.concatenate %16, %17 in 1 : vector<32x2047xf32>, vector<32x1xf32> -> vector<32x2048xf32>
    %19 = vector.broadcast %10 : vector<1x2048xf32> to vector<32x2048xf32>
    %20 = arith.mulf %18, %19 : vector<32x2048xf32>
    %c0_2 = arith.constant 0 : index
    %c0_3 = arith.constant 0 : index
    %c0_4 = arith.constant 0 : index
    %21 = vector.load %arg2[%c0_2, %c0_3, %c0_4] : memref<3x32x32xf32, #tpu.memory_space<vmem>>, vector<1x32x32xf32>
    %22 = vector.shape_cast %21 : vector<1x32x32xf32> to vector<32x32xf32>
    %c1 = arith.constant 1 : index
    %c0_5 = arith.constant 0 : index
    %c0_6 = arith.constant 0 : index
    %23 = vector.load %arg2[%c1, %c0_5, %c0_6] : memref<3x32x32xf32, #tpu.memory_space<vmem>>, vector<1x32x32xf32>
    %24 = vector.shape_cast %23 : vector<1x32x32xf32> to vector<32x32xf32>
    %c2 = arith.constant 2 : index
    %c0_7 = arith.constant 0 : index
    %c0_8 = arith.constant 0 : index
    %25 = vector.load %arg2[%c2, %c0_7, %c0_8] : memref<3x32x32xf32, #tpu.memory_space<vmem>>, vector<1x32x32xf32>
    %26 = vector.shape_cast %25 : vector<1x32x32xf32> to vector<32x32xf32>
    %cst = arith.constant dense<0.000000e+00> : vector<32x2048xf32>
    %27 = tpu.matmul %22, %15, %cst {dimension_numbers = #tpu.dot_dimension_numbers<[1], [0], [0], [1], [0, 0, 1, 1], [], []>} : vector<32x32xf32>, vector<32x2048xf32>, vector<32x2048xf32> -> vector<32x2048xf32>
    %cst_9 = arith.constant dense<0.000000e+00> : vector<32x2048xf32>
    %28 = tpu.matmul %24, %1, %cst_9 {dimension_numbers = #tpu.dot_dimension_numbers<[1], [0], [0], [1], [0, 0, 1, 1], [], []>} : vector<32x32xf32>, vector<32x2048xf32>, vector<32x2048xf32> -> vector<32x2048xf32>
    %29 = arith.addf %27, %28 : vector<32x2048xf32>
    %cst_10 = arith.constant dense<0.000000e+00> : vector<32x2048xf32>
    %30 = tpu.matmul %26, %20, %cst_10 {dimension_numbers = #tpu.dot_dimension_numbers<[1], [0], [0], [1], [0, 0, 1, 1], [], []>} : vector<32x32xf32>, vector<32x2048xf32>, vector<32x2048xf32> -> vector<32x2048xf32>
    %31 = arith.addf %29, %30 : vector<32x2048xf32>
    %c0_11 = arith.constant 0 : index
    %c0_12 = arith.constant 0 : index
    %32 = vector.load %arg3[%c0_11, %c0_12] : memref<32x1xf32, #tpu.memory_space<vmem>>, vector<32x1xf32>
    %33 = vector.broadcast %32 : vector<32x1xf32> to vector<32x2048xf32>
    %34 = arith.addf %31, %33 : vector<32x2048xf32>
    %35 = vector.extract_strided_slice %34 {offsets = [0, 2047], sizes = [32, 1], strides = [1, 1]} : vector<32x2048xf32> to vector<32x1xf32>
    %36 = vector.extract_strided_slice %34 {offsets = [0, 0], sizes = [32, 2047], strides = [1, 1]} : vector<32x2048xf32> to vector<32x2047xf32>
    %37 = tpu.concatenate %35, %36 in 1 : vector<32x1xf32>, vector<32x2047xf32> -> vector<32x2048xf32>
    %38 = vector.broadcast %6 : vector<1x2048xf32> to vector<32x2048xf32>
    %39 = arith.mulf %37, %38 : vector<32x2048xf32>
    %40 = vector.extract_strided_slice %34 {offsets = [0, 1], sizes = [32, 2047], strides = [1, 1]} : vector<32x2048xf32> to vector<32x2047xf32>
    %41 = vector.extract_strided_slice %34 {offsets = [0, 0], sizes = [32, 1], strides = [1, 1]} : vector<32x2048xf32> to vector<32x1xf32>
    %42 = tpu.concatenate %40, %41 in 1 : vector<32x2047xf32>, vector<32x1xf32> -> vector<32x2048xf32>
    %43 = vector.broadcast %10 : vector<1x2048xf32> to vector<32x2048xf32>
    %44 = arith.mulf %42, %43 : vector<32x2048xf32>
    %c0_13 = arith.constant 0 : index
    %c0_14 = arith.constant 0 : index
    %c0_15 = arith.constant 0 : index
    %45 = vector.load %arg4[%c0_13, %c0_14, %c0_15] : memref<3x64x32xbf16, #tpu.memory_space<vmem>>, vector<1x64x32xbf16>
    %46 = vector.shape_cast %45 : vector<1x64x32xbf16> to vector<64x32xbf16>
    %c1_16 = arith.constant 1 : index
    %c0_17 = arith.constant 0 : index
    %c0_18 = arith.constant 0 : index
    %47 = vector.load %arg4[%c1_16, %c0_17, %c0_18] : memref<3x64x32xbf16, #tpu.memory_space<vmem>>, vector<1x64x32xbf16>
    %48 = vector.shape_cast %47 : vector<1x64x32xbf16> to vector<64x32xbf16>
    %c2_19 = arith.constant 2 : index
    %c0_20 = arith.constant 0 : index
    %c0_21 = arith.constant 0 : index
    %49 = vector.load %arg4[%c2_19, %c0_20, %c0_21] : memref<3x64x32xbf16, #tpu.memory_space<vmem>>, vector<1x64x32xbf16>
    %50 = vector.shape_cast %49 : vector<1x64x32xbf16> to vector<64x32xbf16>
    %51 = arith.truncf %39 : vector<32x2048xf32> to vector<32x2048xbf16>
    %cst_22 = arith.constant dense<0.000000e+00> : vector<64x2048xf32>
    %52 = tpu.matmul %46, %51, %cst_22 {dimension_numbers = #tpu.dot_dimension_numbers<[1], [0], [0], [1], [0, 0, 1, 1], [], []>} : vector<64x32xbf16>, vector<32x2048xbf16>, vector<64x2048xf32> -> vector<64x2048xf32>
    %53 = arith.truncf %34 : vector<32x2048xf32> to vector<32x2048xbf16>
    %cst_23 = arith.constant dense<0.000000e+00> : vector<64x2048xf32>
    %54 = tpu.matmul %48, %53, %cst_23 {dimension_numbers = #tpu.dot_dimension_numbers<[1], [0], [0], [1], [0, 0, 1, 1], [], []>} : vector<64x32xbf16>, vector<32x2048xbf16>, vector<64x2048xf32> -> vector<64x2048xf32>
    %55 = arith.addf %52, %54 : vector<64x2048xf32>
    %56 = arith.truncf %44 : vector<32x2048xf32> to vector<32x2048xbf16>
    %cst_24 = arith.constant dense<0.000000e+00> : vector<64x2048xf32>
    %57 = tpu.matmul %50, %56, %cst_24 {dimension_numbers = #tpu.dot_dimension_numbers<[1], [0], [0], [1], [0, 0, 1, 1], [], []>} : vector<64x32xbf16>, vector<32x2048xbf16>, vector<64x2048xf32> -> vector<64x2048xf32>
    %58 = arith.addf %55, %57 : vector<64x2048xf32>
    %c0_25 = arith.constant 0 : index
    %c0_26 = arith.constant 0 : index
    %59 = vector.load %arg5[%c0_25, %c0_26] : memref<64x1xf32, #tpu.memory_space<vmem>>, vector<64x1xf32>
    %60 = vector.broadcast %59 : vector<64x1xf32> to vector<64x2048xf32>
    %61 = arith.addf %58, %60 : vector<64x2048xf32>
    %cst_27 = arith.constant 0.000000e+00 : f32
    %62 = vector.broadcast %cst_27 : f32 to vector<64x2048xf32>
    %63 = arith.maximumf %61, %62 : vector<64x2048xf32>
    %c0_28 = arith.constant 0 : index
    %c0_29 = arith.constant 0 : index
    %64 = vector.load %arg6[%c0_28, %c0_29] : memref<8x64xbf16, #tpu.memory_space<vmem>>, vector<8x64xbf16>
    %65 = arith.truncf %63 : vector<64x2048xf32> to vector<64x2048xbf16>
    %cst_30 = arith.constant dense<0.000000e+00> : vector<8x2048xf32>
    %66 = tpu.matmul %64, %65, %cst_30 {dimension_numbers = #tpu.dot_dimension_numbers<[1], [0], [0], [1], [0, 0, 1, 1], [], []>} : vector<8x64xbf16>, vector<64x2048xbf16>, vector<8x2048xf32> -> vector<8x2048xf32>
    %67 = vector.extract_strided_slice %66 {offsets = [0, 2047], sizes = [8, 1], strides = [1, 1]} : vector<8x2048xf32> to vector<8x1xf32>
    %68 = vector.extract_strided_slice %66 {offsets = [0, 0], sizes = [8, 2047], strides = [1, 1]} : vector<8x2048xf32> to vector<8x2047xf32>
    %69 = tpu.concatenate %67, %68 in 1 : vector<8x1xf32>, vector<8x2047xf32> -> vector<8x2048xf32>
    %70 = vector.broadcast %6 : vector<1x2048xf32> to vector<8x2048xf32>
    %71 = arith.mulf %69, %70 : vector<8x2048xf32>
    %72 = vector.extract_strided_slice %66 {offsets = [0, 1], sizes = [8, 2047], strides = [1, 1]} : vector<8x2048xf32> to vector<8x2047xf32>
    %73 = vector.extract_strided_slice %66 {offsets = [0, 0], sizes = [8, 1], strides = [1, 1]} : vector<8x2048xf32> to vector<8x1xf32>
    %74 = tpu.concatenate %72, %73 in 1 : vector<8x2047xf32>, vector<8x1xf32> -> vector<8x2048xf32>
    %75 = vector.broadcast %10 : vector<1x2048xf32> to vector<8x2048xf32>
    %76 = arith.mulf %74, %75 : vector<8x2048xf32>
    %c0_31 = arith.constant 0 : index
    %c0_32 = arith.constant 0 : index
    %c0_33 = arith.constant 0 : index
    %77 = vector.load %arg7[%c0_31, %c0_32, %c0_33] : memref<3x16x8xbf16, #tpu.memory_space<vmem>>, vector<1x16x8xbf16>
    %78 = vector.shape_cast %77 : vector<1x16x8xbf16> to vector<16x8xbf16>
    %c1_34 = arith.constant 1 : index
    %c0_35 = arith.constant 0 : index
    %c0_36 = arith.constant 0 : index
    %79 = vector.load %arg7[%c1_34, %c0_35, %c0_36] : memref<3x16x8xbf16, #tpu.memory_space<vmem>>, vector<1x16x8xbf16>
    %80 = vector.shape_cast %79 : vector<1x16x8xbf16> to vector<16x8xbf16>
    %c2_37 = arith.constant 2 : index
    %c0_38 = arith.constant 0 : index
    %c0_39 = arith.constant 0 : index
    %81 = vector.load %arg7[%c2_37, %c0_38, %c0_39] : memref<3x16x8xbf16, #tpu.memory_space<vmem>>, vector<1x16x8xbf16>
    %82 = vector.shape_cast %81 : vector<1x16x8xbf16> to vector<16x8xbf16>
    %83 = arith.truncf %71 : vector<8x2048xf32> to vector<8x2048xbf16>
    %cst_40 = arith.constant dense<0.000000e+00> : vector<16x2048xf32>
    %84 = tpu.matmul %78, %83, %cst_40 {dimension_numbers = #tpu.dot_dimension_numbers<[1], [0], [0], [1], [0, 0, 1, 1], [], []>} : vector<16x8xbf16>, vector<8x2048xbf16>, vector<16x2048xf32> -> vector<16x2048xf32>
    %85 = arith.truncf %66 : vector<8x2048xf32> to vector<8x2048xbf16>
    %cst_41 = arith.constant dense<0.000000e+00> : vector<16x2048xf32>
    %86 = tpu.matmul %80, %85, %cst_41 {dimension_numbers = #tpu.dot_dimension_numbers<[1], [0], [0], [1], [0, 0, 1, 1], [], []>} : vector<16x8xbf16>, vector<8x2048xbf16>, vector<16x2048xf32> -> vector<16x2048xf32>
    %87 = arith.addf %84, %86 : vector<16x2048xf32>
    %88 = arith.truncf %76 : vector<8x2048xf32> to vector<8x2048xbf16>
    %cst_42 = arith.constant dense<0.000000e+00> : vector<16x2048xf32>
    %89 = tpu.matmul %82, %88, %cst_42 {dimension_numbers = #tpu.dot_dimension_numbers<[1], [0], [0], [1], [0, 0, 1, 1], [], []>} : vector<16x8xbf16>, vector<8x2048xbf16>, vector<16x2048xf32> -> vector<16x2048xf32>
    %90 = arith.addf %87, %89 : vector<16x2048xf32>
    %c0_43 = arith.constant 0 : index
    %c0_44 = arith.constant 0 : index
    %91 = vector.load %arg8[%c0_43, %c0_44] : memref<16x1xf32, #tpu.memory_space<vmem>>, vector<16x1xf32>
    %92 = vector.broadcast %91 : vector<16x1xf32> to vector<16x2048xf32>
    %93 = arith.addf %90, %92 : vector<16x2048xf32>
    %cst_45 = arith.constant 0.000000e+00 : f32
    %94 = vector.broadcast %cst_45 : f32 to vector<16x2048xf32>
    %95 = arith.maximumf %93, %94 : vector<16x2048xf32>
    %96 = arith.truncf %95 : vector<16x2048xf32> to vector<16x2048xbf16>
    %c0_46 = arith.constant 0 : index
    %c0_47 = arith.constant 0 : index
    %97 = vector.load %arg9[%c0_46, %c0_47] : memref<2048x256xbf16, #tpu.memory_space<vmem>>, vector<2048x256xbf16>
    %cst_48 = arith.constant dense<0.000000e+00> : vector<16x256xf32>
    %98 = tpu.matmul %96, %97, %cst_48 {dimension_numbers = #tpu.dot_dimension_numbers<[1], [0], [0], [1], [0, 0, 1, 1], [], []>} : vector<16x2048xbf16>, vector<2048x256xbf16>, vector<16x256xf32> -> vector<16x256xf32>
    %99 = tpu.iota {dimensions = array<i32: 1>} : vector<1x256xi32>
    %c0_i32_49 = arith.constant 0 : i32
    %100 = vector.broadcast %c0_i32_49 : i32 to vector<1x256xi32>
    %101 = arith.cmpi ne, %99, %100 : vector<1x256xi32>
    %102 = arith.extui %101 : vector<1x256xi1> to vector<1x256xi32>
    %103 = arith.sitofp %102 : vector<1x256xi32> to vector<1x256xf32>
    %c255_i32 = arith.constant 255 : i32
    %104 = vector.broadcast %c255_i32 : i32 to vector<1x256xi32>
    %105 = arith.cmpi ne, %99, %104 : vector<1x256xi32>
    %106 = arith.extui %105 : vector<1x256xi1> to vector<1x256xi32>
    %107 = arith.sitofp %106 : vector<1x256xi32> to vector<1x256xf32>
    %108 = vector.extract_strided_slice %98 {offsets = [0, 255], sizes = [16, 1], strides = [1, 1]} : vector<16x256xf32> to vector<16x1xf32>
    %109 = vector.extract_strided_slice %98 {offsets = [0, 0], sizes = [16, 255], strides = [1, 1]} : vector<16x256xf32> to vector<16x255xf32>
    %110 = tpu.concatenate %108, %109 in 1 : vector<16x1xf32>, vector<16x255xf32> -> vector<16x256xf32>
    %111 = vector.broadcast %103 : vector<1x256xf32> to vector<16x256xf32>
    %112 = arith.mulf %110, %111 : vector<16x256xf32>
    %113 = vector.extract_strided_slice %98 {offsets = [0, 1], sizes = [16, 255], strides = [1, 1]} : vector<16x256xf32> to vector<16x255xf32>
    %114 = vector.extract_strided_slice %98 {offsets = [0, 0], sizes = [16, 1], strides = [1, 1]} : vector<16x256xf32> to vector<16x1xf32>
    %115 = tpu.concatenate %113, %114 in 1 : vector<16x255xf32>, vector<16x1xf32> -> vector<16x256xf32>
    %116 = vector.broadcast %107 : vector<1x256xf32> to vector<16x256xf32>
    %117 = arith.mulf %115, %116 : vector<16x256xf32>
    %c0_50 = arith.constant 0 : index
    %c0_51 = arith.constant 0 : index
    %c0_52 = arith.constant 0 : index
    %118 = vector.load %arg10[%c0_50, %c0_51, %c0_52] : memref<3x32x16xbf16, #tpu.memory_space<vmem>>, vector<1x32x16xbf16>
    %119 = vector.shape_cast %118 : vector<1x32x16xbf16> to vector<32x16xbf16>
    %c1_53 = arith.constant 1 : index
    %c0_54 = arith.constant 0 : index
    %c0_55 = arith.constant 0 : index
    %120 = vector.load %arg10[%c1_53, %c0_54, %c0_55] : memref<3x32x16xbf16, #tpu.memory_space<vmem>>, vector<1x32x16xbf16>
    %121 = vector.shape_cast %120 : vector<1x32x16xbf16> to vector<32x16xbf16>
    %c2_56 = arith.constant 2 : index
    %c0_57 = arith.constant 0 : index
    %c0_58 = arith.constant 0 : index
    %122 = vector.load %arg10[%c2_56, %c0_57, %c0_58] : memref<3x32x16xbf16, #tpu.memory_space<vmem>>, vector<1x32x16xbf16>
    %123 = vector.shape_cast %122 : vector<1x32x16xbf16> to vector<32x16xbf16>
    %124 = arith.truncf %112 : vector<16x256xf32> to vector<16x256xbf16>
    %cst_59 = arith.constant dense<0.000000e+00> : vector<32x256xf32>
    %125 = tpu.matmul %119, %124, %cst_59 {dimension_numbers = #tpu.dot_dimension_numbers<[1], [0], [0], [1], [0, 0, 1, 1], [], []>} : vector<32x16xbf16>, vector<16x256xbf16>, vector<32x256xf32> -> vector<32x256xf32>
    %126 = arith.truncf %98 : vector<16x256xf32> to vector<16x256xbf16>
    %cst_60 = arith.constant dense<0.000000e+00> : vector<32x256xf32>
    %127 = tpu.matmul %121, %126, %cst_60 {dimension_numbers = #tpu.dot_dimension_numbers<[1], [0], [0], [1], [0, 0, 1, 1], [], []>} : vector<32x16xbf16>, vector<16x256xbf16>, vector<32x256xf32> -> vector<32x256xf32>
    %128 = arith.addf %125, %127 : vector<32x256xf32>
    %129 = arith.truncf %117 : vector<16x256xf32> to vector<16x256xbf16>
    %cst_61 = arith.constant dense<0.000000e+00> : vector<32x256xf32>
    %130 = tpu.matmul %123, %129, %cst_61 {dimension_numbers = #tpu.dot_dimension_numbers<[1], [0], [0], [1], [0, 0, 1, 1], [], []>} : vector<32x16xbf16>, vector<16x256xbf16>, vector<32x256xf32> -> vector<32x256xf32>
    %131 = arith.addf %128, %130 : vector<32x256xf32>
    %c0_62 = arith.constant 0 : index
    %c0_63 = arith.constant 0 : index
    %132 = vector.load %arg11[%c0_62, %c0_63] : memref<32x1xf32, #tpu.memory_space<vmem>>, vector<32x1xf32>
    %133 = vector.broadcast %132 : vector<32x1xf32> to vector<32x256xf32>
    %134 = arith.addf %131, %133 : vector<32x256xf32>
    %cst_64 = arith.constant 0.000000e+00 : f32
    %135 = vector.broadcast %cst_64 : f32 to vector<32x256xf32>
    %136 = arith.maximumf %134, %135 : vector<32x256xf32>
    %137 = vector.extract_strided_slice %136 {offsets = [0, 255], sizes = [32, 1], strides = [1, 1]} : vector<32x256xf32> to vector<32x1xf32>
    %138 = vector.extract_strided_slice %136 {offsets = [0, 0], sizes = [32, 255], strides = [1, 1]} : vector<32x256xf32> to vector<32x255xf32>
    %139 = tpu.concatenate %137, %138 in 1 : vector<32x1xf32>, vector<32x255xf32> -> vector<32x256xf32>
    %140 = vector.broadcast %103 : vector<1x256xf32> to vector<32x256xf32>
    %141 = arith.mulf %139, %140 : vector<32x256xf32>
    %142 = vector.extract_strided_slice %136 {offsets = [0, 1], sizes = [32, 255], strides = [1, 1]} : vector<32x256xf32> to vector<32x255xf32>
    %143 = vector.extract_strided_slice %136 {offsets = [0, 0], sizes = [32, 1], strides = [1, 1]} : vector<32x256xf32> to vector<32x1xf32>
    %144 = tpu.concatenate %142, %143 in 1 : vector<32x255xf32>, vector<32x1xf32> -> vector<32x256xf32>
    %145 = vector.broadcast %107 : vector<1x256xf32> to vector<32x256xf32>
    %146 = arith.mulf %144, %145 : vector<32x256xf32>
    %c0_65 = arith.constant 0 : index
    %c0_66 = arith.constant 0 : index
    %c0_67 = arith.constant 0 : index
    %c0_68 = arith.constant 0 : index
    %147 = vector.load %arg12[%c0_65, %c0_66, %c0_67, %c0_68] : memref<5x3x32x32xbf16, #tpu.memory_space<vmem>>, vector<1x3x32x32xbf16>
    %148 = vector.shape_cast %147 : vector<1x3x32x32xbf16> to vector<3x32x32xbf16>
    %c0_69 = arith.constant 0 : index
    %c0_70 = arith.constant 0 : index
    %c0_71 = arith.constant 0 : index
    %149 = vector.load %arg13[%c0_69, %c0_70, %c0_71] : memref<5x32x1xf32, #tpu.memory_space<vmem>>, vector<1x32x1xf32>
    %150 = vector.shape_cast %149 : vector<1x32x1xf32> to vector<32x1xf32>
    %151 = vector.extract_strided_slice %148 {offsets = [0, 0, 0], sizes = [1, 32, 32], strides = [1, 1, 1]} : vector<3x32x32xbf16> to vector<1x32x32xbf16>
    %152 = vector.shape_cast %151 : vector<1x32x32xbf16> to vector<32x32xbf16>
    %153 = vector.extract_strided_slice %148 {offsets = [1, 0, 0], sizes = [1, 32, 32], strides = [1, 1, 1]} : vector<3x32x32xbf16> to vector<1x32x32xbf16>
    %154 = vector.shape_cast %153 : vector<1x32x32xbf16> to vector<32x32xbf16>
    %155 = vector.extract_strided_slice %148 {offsets = [2, 0, 0], sizes = [1, 32, 32], strides = [1, 1, 1]} : vector<3x32x32xbf16> to vector<1x32x32xbf16>
    %156 = vector.shape_cast %155 : vector<1x32x32xbf16> to vector<32x32xbf16>
    %157 = arith.truncf %141 : vector<32x256xf32> to vector<32x256xbf16>
    %cst_72 = arith.constant dense<0.000000e+00> : vector<32x256xf32>
    %158 = tpu.matmul %152, %157, %cst_72 {dimension_numbers = #tpu.dot_dimension_numbers<[1], [0], [0], [1], [0, 0, 1, 1], [], []>} : vector<32x32xbf16>, vector<32x256xbf16>, vector<32x256xf32> -> vector<32x256xf32>
    %159 = arith.truncf %136 : vector<32x256xf32> to vector<32x256xbf16>
    %cst_73 = arith.constant dense<0.000000e+00> : vector<32x256xf32>
    %160 = tpu.matmul %154, %159, %cst_73 {dimension_numbers = #tpu.dot_dimension_numbers<[1], [0], [0], [1], [0, 0, 1, 1], [], []>} : vector<32x32xbf16>, vector<32x256xbf16>, vector<32x256xf32> -> vector<32x256xf32>
    %161 = arith.addf %158, %160 : vector<32x256xf32>
    %162 = arith.truncf %146 : vector<32x256xf32> to vector<32x256xbf16>
    %cst_74 = arith.constant dense<0.000000e+00> : vector<32x256xf32>
    %163 = tpu.matmul %156, %162, %cst_74 {dimension_numbers = #tpu.dot_dimension_numbers<[1], [0], [0], [1], [0, 0, 1, 1], [], []>} : vector<32x32xbf16>, vector<32x256xbf16>, vector<32x256xf32> -> vector<32x256xf32>
    %164 = arith.addf %161, %163 : vector<32x256xf32>
    %165 = vector.broadcast %150 : vector<32x1xf32> to vector<32x256xf32>
    %166 = arith.addf %164, %165 : vector<32x256xf32>
    %cst_75 = arith.constant 0.000000e+00 : f32
    %167 = vector.broadcast %cst_75 : f32 to vector<32x256xf32>
    %168 = arith.maximumf %166, %167 : vector<32x256xf32>
    %169 = arith.addf %136, %168 : vector<32x256xf32>
    %170 = vector.extract_strided_slice %169 {offsets = [0, 255], sizes = [32, 1], strides = [1, 1]} : vector<32x256xf32> to vector<32x1xf32>
    %171 = vector.extract_strided_slice %169 {offsets = [0, 0], sizes = [32, 255], strides = [1, 1]} : vector<32x256xf32> to vector<32x255xf32>
    %172 = tpu.concatenate %170, %171 in 1 : vector<32x1xf32>, vector<32x255xf32> -> vector<32x256xf32>
    %173 = vector.broadcast %103 : vector<1x256xf32> to vector<32x256xf32>
    %174 = arith.mulf %172, %173 : vector<32x256xf32>
    %175 = vector.extract_strided_slice %169 {offsets = [0, 1], sizes = [32, 255], strides = [1, 1]} : vector<32x256xf32> to vector<32x255xf32>
    %176 = vector.extract_strided_slice %169 {offsets = [0, 0], sizes = [32, 1], strides = [1, 1]} : vector<32x256xf32> to vector<32x1xf32>
    %177 = tpu.concatenate %175, %176 in 1 : vector<32x255xf32>, vector<32x1xf32> -> vector<32x256xf32>
    %178 = vector.broadcast %107 : vector<1x256xf32> to vector<32x256xf32>
    %179 = arith.mulf %177, %178 : vector<32x256xf32>
    %c1_76 = arith.constant 1 : index
    %c0_77 = arith.constant 0 : index
    %c0_78 = arith.constant 0 : index
    %c0_79 = arith.constant 0 : index
    %180 = vector.load %arg12[%c1_76, %c0_77, %c0_78, %c0_79] : memref<5x3x32x32xbf16, #tpu.memory_space<vmem>>, vector<1x3x32x32xbf16>
    %181 = vector.shape_cast %180 : vector<1x3x32x32xbf16> to vector<3x32x32xbf16>
    %c1_80 = arith.constant 1 : index
    %c0_81 = arith.constant 0 : index
    %c0_82 = arith.constant 0 : index
    %182 = vector.load %arg13[%c1_80, %c0_81, %c0_82] : memref<5x32x1xf32, #tpu.memory_space<vmem>>, vector<1x32x1xf32>
    %183 = vector.shape_cast %182 : vector<1x32x1xf32> to vector<32x1xf32>
    %184 = vector.extract_strided_slice %181 {offsets = [0, 0, 0], sizes = [1, 32, 32], strides = [1, 1, 1]} : vector<3x32x32xbf16> to vector<1x32x32xbf16>
    %185 = vector.shape_cast %184 : vector<1x32x32xbf16> to vector<32x32xbf16>
    %186 = vector.extract_strided_slice %181 {offsets = [1, 0, 0], sizes = [1, 32, 32], strides = [1, 1, 1]} : vector<3x32x32xbf16> to vector<1x32x32xbf16>
    %187 = vector.shape_cast %186 : vector<1x32x32xbf16> to vector<32x32xbf16>
    %188 = vector.extract_strided_slice %181 {offsets = [2, 0, 0], sizes = [1, 32, 32], strides = [1, 1, 1]} : vector<3x32x32xbf16> to vector<1x32x32xbf16>
    %189 = vector.shape_cast %188 : vector<1x32x32xbf16> to vector<32x32xbf16>
    %190 = arith.truncf %174 : vector<32x256xf32> to vector<32x256xbf16>
    %cst_83 = arith.constant dense<0.000000e+00> : vector<32x256xf32>
    %191 = tpu.matmul %185, %190, %cst_83 {dimension_numbers = #tpu.dot_dimension_numbers<[1], [0], [0], [1], [0, 0, 1, 1], [], []>} : vector<32x32xbf16>, vector<32x256xbf16>, vector<32x256xf32> -> vector<32x256xf32>
    %192 = arith.truncf %169 : vector<32x256xf32> to vector<32x256xbf16>
    %cst_84 = arith.constant dense<0.000000e+00> : vector<32x256xf32>
    %193 = tpu.matmul %187, %192, %cst_84 {dimension_numbers = #tpu.dot_dimension_numbers<[1], [0], [0], [1], [0, 0, 1, 1], [], []>} : vector<32x32xbf16>, vector<32x256xbf16>, vector<32x256xf32> -> vector<32x256xf32>
    %194 = arith.addf %191, %193 : vector<32x256xf32>
    %195 = arith.truncf %179 : vector<32x256xf32> to vector<32x256xbf16>
    %cst_85 = arith.constant dense<0.000000e+00> : vector<32x256xf32>
    %196 = tpu.matmul %189, %195, %cst_85 {dimension_numbers = #tpu.dot_dimension_numbers<[1], [0], [0], [1], [0, 0, 1, 1], [], []>} : vector<32x32xbf16>, vector<32x256xbf16>, vector<32x256xf32> -> vector<32x256xf32>
    %197 = arith.addf %194, %196 : vector<32x256xf32>
    %198 = vector.broadcast %183 : vector<32x1xf32> to vector<32x256xf32>
    %199 = arith.addf %197, %198 : vector<32x256xf32>
    %cst_86 = arith.constant 0.000000e+00 : f32
    %200 = vector.broadcast %cst_86 : f32 to vector<32x256xf32>
    %201 = arith.maximumf %199, %200 : vector<32x256xf32>
    %202 = arith.addf %169, %201 : vector<32x256xf32>
    %203 = vector.extract_strided_slice %202 {offsets = [0, 255], sizes = [32, 1], strides = [1, 1]} : vector<32x256xf32> to vector<32x1xf32>
    %204 = vector.extract_strided_slice %202 {offsets = [0, 0], sizes = [32, 255], strides = [1, 1]} : vector<32x256xf32> to vector<32x255xf32>
    %205 = tpu.concatenate %203, %204 in 1 : vector<32x1xf32>, vector<32x255xf32> -> vector<32x256xf32>
    %206 = vector.broadcast %103 : vector<1x256xf32> to vector<32x256xf32>
    %207 = arith.mulf %205, %206 : vector<32x256xf32>
    %208 = vector.extract_strided_slice %202 {offsets = [0, 1], sizes = [32, 255], strides = [1, 1]} : vector<32x256xf32> to vector<32x255xf32>
    %209 = vector.extract_strided_slice %202 {offsets = [0, 0], sizes = [32, 1], strides = [1, 1]} : vector<32x256xf32> to vector<32x1xf32>
    %210 = tpu.concatenate %208, %209 in 1 : vector<32x255xf32>, vector<32x1xf32> -> vector<32x256xf32>
    %211 = vector.broadcast %107 : vector<1x256xf32> to vector<32x256xf32>
    %212 = arith.mulf %210, %211 : vector<32x256xf32>
    %c2_87 = arith.constant 2 : index
    %c0_88 = arith.constant 0 : index
    %c0_89 = arith.constant 0 : index
    %c0_90 = arith.constant 0 : index
    %213 = vector.load %arg12[%c2_87, %c0_88, %c0_89, %c0_90] : memref<5x3x32x32xbf16, #tpu.memory_space<vmem>>, vector<1x3x32x32xbf16>
    %214 = vector.shape_cast %213 : vector<1x3x32x32xbf16> to vector<3x32x32xbf16>
    %c2_91 = arith.constant 2 : index
    %c0_92 = arith.constant 0 : index
    %c0_93 = arith.constant 0 : index
    %215 = vector.load %arg13[%c2_91, %c0_92, %c0_93] : memref<5x32x1xf32, #tpu.memory_space<vmem>>, vector<1x32x1xf32>
    %216 = vector.shape_cast %215 : vector<1x32x1xf32> to vector<32x1xf32>
    %217 = vector.extract_strided_slice %214 {offsets = [0, 0, 0], sizes = [1, 32, 32], strides = [1, 1, 1]} : vector<3x32x32xbf16> to vector<1x32x32xbf16>
    %218 = vector.shape_cast %217 : vector<1x32x32xbf16> to vector<32x32xbf16>
    %219 = vector.extract_strided_slice %214 {offsets = [1, 0, 0], sizes = [1, 32, 32], strides = [1, 1, 1]} : vector<3x32x32xbf16> to vector<1x32x32xbf16>
    %220 = vector.shape_cast %219 : vector<1x32x32xbf16> to vector<32x32xbf16>
    %221 = vector.extract_strided_slice %214 {offsets = [2, 0, 0], sizes = [1, 32, 32], strides = [1, 1, 1]} : vector<3x32x32xbf16> to vector<1x32x32xbf16>
    %222 = vector.shape_cast %221 : vector<1x32x32xbf16> to vector<32x32xbf16>
    %223 = arith.truncf %207 : vector<32x256xf32> to vector<32x256xbf16>
    %cst_94 = arith.constant dense<0.000000e+00> : vector<32x256xf32>
    %224 = tpu.matmul %218, %223, %cst_94 {dimension_numbers = #tpu.dot_dimension_numbers<[1], [0], [0], [1], [0, 0, 1, 1], [], []>} : vector<32x32xbf16>, vector<32x256xbf16>, vector<32x256xf32> -> vector<32x256xf32>
    %225 = arith.truncf %202 : vector<32x256xf32> to vector<32x256xbf16>
    %cst_95 = arith.constant dense<0.000000e+00> : vector<32x256xf32>
    %226 = tpu.matmul %220, %225, %cst_95 {dimension_numbers = #tpu.dot_dimension_numbers<[1], [0], [0], [1], [0, 0, 1, 1], [], []>} : vector<32x32xbf16>, vector<32x256xbf16>, vector<32x256xf32> -> vector<32x256xf32>
    %227 = arith.addf %224, %226 : vector<32x256xf32>
    %228 = arith.truncf %212 : vector<32x256xf32> to vector<32x256xbf16>
    %cst_96 = arith.constant dense<0.000000e+00> : vector<32x256xf32>
    %229 = tpu.matmul %222, %228, %cst_96 {dimension_numbers = #tpu.dot_dimension_numbers<[1], [0], [0], [1], [0, 0, 1, 1], [], []>} : vector<32x32xbf16>, vector<32x256xbf16>, vector<32x256xf32> -> vector<32x256xf32>
    %230 = arith.addf %227, %229 : vector<32x256xf32>
    %231 = vector.broadcast %216 : vector<32x1xf32> to vector<32x256xf32>
    %232 = arith.addf %230, %231 : vector<32x256xf32>
    %cst_97 = arith.constant 0.000000e+00 : f32
    %233 = vector.broadcast %cst_97 : f32 to vector<32x256xf32>
    %234 = arith.maximumf %232, %233 : vector<32x256xf32>
    %235 = arith.addf %202, %234 : vector<32x256xf32>
    %236 = vector.extract_strided_slice %235 {offsets = [0, 255], sizes = [32, 1], strides = [1, 1]} : vector<32x256xf32> to vector<32x1xf32>
    %237 = vector.extract_strided_slice %235 {offsets = [0, 0], sizes = [32, 255], strides = [1, 1]} : vector<32x256xf32> to vector<32x255xf32>
    %238 = tpu.concatenate %236, %237 in 1 : vector<32x1xf32>, vector<32x255xf32> -> vector<32x256xf32>
    %239 = vector.broadcast %103 : vector<1x256xf32> to vector<32x256xf32>
    %240 = arith.mulf %238, %239 : vector<32x256xf32>
    %241 = vector.extract_strided_slice %235 {offsets = [0, 1], sizes = [32, 255], strides = [1, 1]} : vector<32x256xf32> to vector<32x255xf32>
    %242 = vector.extract_strided_slice %235 {offsets = [0, 0], sizes = [32, 1], strides = [1, 1]} : vector<32x256xf32> to vector<32x1xf32>
    %243 = tpu.concatenate %241, %242 in 1 : vector<32x255xf32>, vector<32x1xf32> -> vector<32x256xf32>
    %244 = vector.broadcast %107 : vector<1x256xf32> to vector<32x256xf32>
    %245 = arith.mulf %243, %244 : vector<32x256xf32>
    %c3 = arith.constant 3 : index
    %c0_98 = arith.constant 0 : index
    %c0_99 = arith.constant 0 : index
    %c0_100 = arith.constant 0 : index
    %246 = vector.load %arg12[%c3, %c0_98, %c0_99, %c0_100] : memref<5x3x32x32xbf16, #tpu.memory_space<vmem>>, vector<1x3x32x32xbf16>
    %247 = vector.shape_cast %246 : vector<1x3x32x32xbf16> to vector<3x32x32xbf16>
    %c3_101 = arith.constant 3 : index
    %c0_102 = arith.constant 0 : index
    %c0_103 = arith.constant 0 : index
    %248 = vector.load %arg13[%c3_101, %c0_102, %c0_103] : memref<5x32x1xf32, #tpu.memory_space<vmem>>, vector<1x32x1xf32>
    %249 = vector.shape_cast %248 : vector<1x32x1xf32> to vector<32x1xf32>
    %250 = vector.extract_strided_slice %247 {offsets = [0, 0, 0], sizes = [1, 32, 32], strides = [1, 1, 1]} : vector<3x32x32xbf16> to vector<1x32x32xbf16>
    %251 = vector.shape_cast %250 : vector<1x32x32xbf16> to vector<32x32xbf16>
    %252 = vector.extract_strided_slice %247 {offsets = [1, 0, 0], sizes = [1, 32, 32], strides = [1, 1, 1]} : vector<3x32x32xbf16> to vector<1x32x32xbf16>
    %253 = vector.shape_cast %252 : vector<1x32x32xbf16> to vector<32x32xbf16>
    %254 = vector.extract_strided_slice %247 {offsets = [2, 0, 0], sizes = [1, 32, 32], strides = [1, 1, 1]} : vector<3x32x32xbf16> to vector<1x32x32xbf16>
    %255 = vector.shape_cast %254 : vector<1x32x32xbf16> to vector<32x32xbf16>
    %256 = arith.truncf %240 : vector<32x256xf32> to vector<32x256xbf16>
    %cst_104 = arith.constant dense<0.000000e+00> : vector<32x256xf32>
    %257 = tpu.matmul %251, %256, %cst_104 {dimension_numbers = #tpu.dot_dimension_numbers<[1], [0], [0], [1], [0, 0, 1, 1], [], []>} : vector<32x32xbf16>, vector<32x256xbf16>, vector<32x256xf32> -> vector<32x256xf32>
    %258 = arith.truncf %235 : vector<32x256xf32> to vector<32x256xbf16>
    %cst_105 = arith.constant dense<0.000000e+00> : vector<32x256xf32>
    %259 = tpu.matmul %253, %258, %cst_105 {dimension_numbers = #tpu.dot_dimension_numbers<[1], [0], [0], [1], [0, 0, 1, 1], [], []>} : vector<32x32xbf16>, vector<32x256xbf16>, vector<32x256xf32> -> vector<32x256xf32>
    %260 = arith.addf %257, %259 : vector<32x256xf32>
    %261 = arith.truncf %245 : vector<32x256xf32> to vector<32x256xbf16>
    %cst_106 = arith.constant dense<0.000000e+00> : vector<32x256xf32>
    %262 = tpu.matmul %255, %261, %cst_106 {dimension_numbers = #tpu.dot_dimension_numbers<[1], [0], [0], [1], [0, 0, 1, 1], [], []>} : vector<32x32xbf16>, vector<32x256xbf16>, vector<32x256xf32> -> vector<32x256xf32>
    %263 = arith.addf %260, %262 : vector<32x256xf32>
    %264 = vector.broadcast %249 : vector<32x1xf32> to vector<32x256xf32>
    %265 = arith.addf %263, %264 : vector<32x256xf32>
    %cst_107 = arith.constant 0.000000e+00 : f32
    %266 = vector.broadcast %cst_107 : f32 to vector<32x256xf32>
    %267 = arith.maximumf %265, %266 : vector<32x256xf32>
    %268 = arith.addf %235, %267 : vector<32x256xf32>
    %269 = vector.extract_strided_slice %268 {offsets = [0, 255], sizes = [32, 1], strides = [1, 1]} : vector<32x256xf32> to vector<32x1xf32>
    %270 = vector.extract_strided_slice %268 {offsets = [0, 0], sizes = [32, 255], strides = [1, 1]} : vector<32x256xf32> to vector<32x255xf32>
    %271 = tpu.concatenate %269, %270 in 1 : vector<32x1xf32>, vector<32x255xf32> -> vector<32x256xf32>
    %272 = vector.broadcast %103 : vector<1x256xf32> to vector<32x256xf32>
    %273 = arith.mulf %271, %272 : vector<32x256xf32>
    %274 = vector.extract_strided_slice %268 {offsets = [0, 1], sizes = [32, 255], strides = [1, 1]} : vector<32x256xf32> to vector<32x255xf32>
    %275 = vector.extract_strided_slice %268 {offsets = [0, 0], sizes = [32, 1], strides = [1, 1]} : vector<32x256xf32> to vector<32x1xf32>
    %276 = tpu.concatenate %274, %275 in 1 : vector<32x255xf32>, vector<32x1xf32> -> vector<32x256xf32>
    %277 = vector.broadcast %107 : vector<1x256xf32> to vector<32x256xf32>
    %278 = arith.mulf %276, %277 : vector<32x256xf32>
    %c4 = arith.constant 4 : index
    %c0_108 = arith.constant 0 : index
    %c0_109 = arith.constant 0 : index
    %c0_110 = arith.constant 0 : index
    %279 = vector.load %arg12[%c4, %c0_108, %c0_109, %c0_110] : memref<5x3x32x32xbf16, #tpu.memory_space<vmem>>, vector<1x3x32x32xbf16>
    %280 = vector.shape_cast %279 : vector<1x3x32x32xbf16> to vector<3x32x32xbf16>
    %c4_111 = arith.constant 4 : index
    %c0_112 = arith.constant 0 : index
    %c0_113 = arith.constant 0 : index
    %281 = vector.load %arg13[%c4_111, %c0_112, %c0_113] : memref<5x32x1xf32, #tpu.memory_space<vmem>>, vector<1x32x1xf32>
    %282 = vector.shape_cast %281 : vector<1x32x1xf32> to vector<32x1xf32>
    %283 = vector.extract_strided_slice %280 {offsets = [0, 0, 0], sizes = [1, 32, 32], strides = [1, 1, 1]} : vector<3x32x32xbf16> to vector<1x32x32xbf16>
    %284 = vector.shape_cast %283 : vector<1x32x32xbf16> to vector<32x32xbf16>
    %285 = vector.extract_strided_slice %280 {offsets = [1, 0, 0], sizes = [1, 32, 32], strides = [1, 1, 1]} : vector<3x32x32xbf16> to vector<1x32x32xbf16>
    %286 = vector.shape_cast %285 : vector<1x32x32xbf16> to vector<32x32xbf16>
    %287 = vector.extract_strided_slice %280 {offsets = [2, 0, 0], sizes = [1, 32, 32], strides = [1, 1, 1]} : vector<3x32x32xbf16> to vector<1x32x32xbf16>
    %288 = vector.shape_cast %287 : vector<1x32x32xbf16> to vector<32x32xbf16>
    %289 = arith.truncf %273 : vector<32x256xf32> to vector<32x256xbf16>
    %cst_114 = arith.constant dense<0.000000e+00> : vector<32x256xf32>
    %290 = tpu.matmul %284, %289, %cst_114 {dimension_numbers = #tpu.dot_dimension_numbers<[1], [0], [0], [1], [0, 0, 1, 1], [], []>} : vector<32x32xbf16>, vector<32x256xbf16>, vector<32x256xf32> -> vector<32x256xf32>
    %291 = arith.truncf %268 : vector<32x256xf32> to vector<32x256xbf16>
    %cst_115 = arith.constant dense<0.000000e+00> : vector<32x256xf32>
    %292 = tpu.matmul %286, %291, %cst_115 {dimension_numbers = #tpu.dot_dimension_numbers<[1], [0], [0], [1], [0, 0, 1, 1], [], []>} : vector<32x32xbf16>, vector<32x256xbf16>, vector<32x256xf32> -> vector<32x256xf32>
    %293 = arith.addf %290, %292 : vector<32x256xf32>
    %294 = arith.truncf %278 : vector<32x256xf32> to vector<32x256xbf16>
    %cst_116 = arith.constant dense<0.000000e+00> : vector<32x256xf32>
    %295 = tpu.matmul %288, %294, %cst_116 {dimension_numbers = #tpu.dot_dimension_numbers<[1], [0], [0], [1], [0, 0, 1, 1], [], []>} : vector<32x32xbf16>, vector<32x256xbf16>, vector<32x256xf32> -> vector<32x256xf32>
    %296 = arith.addf %293, %295 : vector<32x256xf32>
    %297 = vector.broadcast %282 : vector<32x1xf32> to vector<32x256xf32>
    %298 = arith.addf %296, %297 : vector<32x256xf32>
    %cst_117 = arith.constant 0.000000e+00 : f32
    %299 = vector.broadcast %cst_117 : f32 to vector<32x256xf32>
    %300 = arith.maximumf %298, %299 : vector<32x256xf32>
    %301 = arith.addf %268, %300 : vector<32x256xf32>
    %302 = arith.truncf %301 : vector<32x256xf32> to vector<32x256xbf16>
    %c0_118 = arith.constant 0 : index
    %c0_119 = arith.constant 0 : index
    %c0_120 = arith.constant 0 : index
    %303 = vector.load %arg14[%c0_118, %c0_119, %c0_120] : memref<3x256x32xbf16, #tpu.memory_space<vmem>>, vector<1x256x32xbf16>
    %304 = vector.shape_cast %303 : vector<1x256x32xbf16> to vector<256x32xbf16>
    %cst_121 = arith.constant dense<0.000000e+00> : vector<32x32xf32>
    %305 = tpu.matmul %302, %304, %cst_121 {dimension_numbers = #tpu.dot_dimension_numbers<[1], [0], [0], [1], [0, 0, 1, 1], [], []>} : vector<32x256xbf16>, vector<256x32xbf16>, vector<32x32xf32> -> vector<32x32xf32>
    %c1_122 = arith.constant 1 : index
    %c0_123 = arith.constant 0 : index
    %c0_124 = arith.constant 0 : index
    %306 = vector.load %arg14[%c1_122, %c0_123, %c0_124] : memref<3x256x32xbf16, #tpu.memory_space<vmem>>, vector<1x256x32xbf16>
    %307 = vector.shape_cast %306 : vector<1x256x32xbf16> to vector<256x32xbf16>
    %cst_125 = arith.constant dense<0.000000e+00> : vector<32x32xf32>
    %308 = tpu.matmul %302, %307, %cst_125 {dimension_numbers = #tpu.dot_dimension_numbers<[1], [0], [0], [1], [0, 0, 1, 1], [], []>} : vector<32x256xbf16>, vector<256x32xbf16>, vector<32x32xf32> -> vector<32x32xf32>
    %c2_126 = arith.constant 2 : index
    %c0_127 = arith.constant 0 : index
    %c0_128 = arith.constant 0 : index
    %309 = vector.load %arg14[%c2_126, %c0_127, %c0_128] : memref<3x256x32xbf16, #tpu.memory_space<vmem>>, vector<1x256x32xbf16>
    %310 = vector.shape_cast %309 : vector<1x256x32xbf16> to vector<256x32xbf16>
    %cst_129 = arith.constant dense<0.000000e+00> : vector<32x32xf32>
    %311 = tpu.matmul %302, %310, %cst_129 {dimension_numbers = #tpu.dot_dimension_numbers<[1], [0], [0], [1], [0, 0, 1, 1], [], []>} : vector<32x256xbf16>, vector<256x32xbf16>, vector<32x32xf32> -> vector<32x32xf32>
    %c0_130 = arith.constant 0 : index
    %c0_131 = arith.constant 0 : index
    %c0_132 = arith.constant 0 : index
    %312 = vector.load %arg15[%c0_130, %c0_131, %c0_132] : memref<3x64x32xbf16, #tpu.memory_space<vmem>>, vector<1x64x32xbf16>
    %313 = vector.shape_cast %312 : vector<1x64x32xbf16> to vector<64x32xbf16>
    %c1_133 = arith.constant 1 : index
    %c0_134 = arith.constant 0 : index
    %c0_135 = arith.constant 0 : index
    %314 = vector.load %arg15[%c1_133, %c0_134, %c0_135] : memref<3x64x32xbf16, #tpu.memory_space<vmem>>, vector<1x64x32xbf16>
    %315 = vector.shape_cast %314 : vector<1x64x32xbf16> to vector<64x32xbf16>
    %c2_136 = arith.constant 2 : index
    %c0_137 = arith.constant 0 : index
    %c0_138 = arith.constant 0 : index
    %316 = vector.load %arg15[%c2_136, %c0_137, %c0_138] : memref<3x64x32xbf16, #tpu.memory_space<vmem>>, vector<1x64x32xbf16>
    %317 = vector.shape_cast %316 : vector<1x64x32xbf16> to vector<64x32xbf16>
    %318 = arith.truncf %305 : vector<32x32xf32> to vector<32x32xbf16>
    %cst_139 = arith.constant dense<0.000000e+00> : vector<64x32xf32>
    %319 = tpu.matmul %313, %318, %cst_139 {dimension_numbers = #tpu.dot_dimension_numbers<[1], [0], [0], [1], [0, 0, 1, 1], [], []>} : vector<64x32xbf16>, vector<32x32xbf16>, vector<64x32xf32> -> vector<64x32xf32>
    %320 = arith.truncf %308 : vector<32x32xf32> to vector<32x32xbf16>
    %cst_140 = arith.constant dense<0.000000e+00> : vector<64x32xf32>
    %321 = tpu.matmul %315, %320, %cst_140 {dimension_numbers = #tpu.dot_dimension_numbers<[1], [0], [0], [1], [0, 0, 1, 1], [], []>} : vector<64x32xbf16>, vector<32x32xbf16>, vector<64x32xf32> -> vector<64x32xf32>
    %322 = arith.addf %319, %321 : vector<64x32xf32>
    %323 = arith.truncf %311 : vector<32x32xf32> to vector<32x32xbf16>
    %cst_141 = arith.constant dense<0.000000e+00> : vector<64x32xf32>
    %324 = tpu.matmul %317, %323, %cst_141 {dimension_numbers = #tpu.dot_dimension_numbers<[1], [0], [0], [1], [0, 0, 1, 1], [], []>} : vector<64x32xbf16>, vector<32x32xbf16>, vector<64x32xf32> -> vector<64x32xf32>
    %325 = arith.addf %322, %324 : vector<64x32xf32>
    %c0_142 = arith.constant 0 : index
    %c0_143 = arith.constant 0 : index
    %326 = vector.load %arg16[%c0_142, %c0_143] : memref<64x1xf32, #tpu.memory_space<vmem>>, vector<64x1xf32>
    %327 = vector.broadcast %326 : vector<64x1xf32> to vector<64x32xf32>
    %328 = arith.addf %325, %327 : vector<64x32xf32>
    %cst_144 = arith.constant 0.000000e+00 : f32
    %329 = vector.broadcast %cst_144 : f32 to vector<64x32xf32>
    %330 = arith.maximumf %328, %329 : vector<64x32xf32>
    %c0_145 = arith.constant 0 : index
    %c0_146 = arith.constant 0 : index
    %c0_147 = arith.constant 0 : index
    %331 = vector.load %arg17[%c0_145, %c0_146, %c0_147] : memref<1x64x32xf32, #tpu.memory_space<vmem>>, vector<1x64x32xf32>
    %332 = vector.shape_cast %331 : vector<1x64x32xf32> to vector<64x32xf32>
    %333 = vector.shape_cast %330 : vector<64x32xf32> to vector<1x64x32xf32>
    tpu.vector_store %arg17[%c0_145, %c0_146, %c0_147], %333 {strides = array<i32>} : memref<1x64x32xf32, #tpu.memory_space<vmem>>, vector<1x64x32xf32>,
    return
  }
  func.func @transform_0(%arg0: i32) -> (i32, i32, i32) {
    %c0_i32 = arith.constant 0 : i32
    %c0_i32_0 = arith.constant 0 : i32
    %c0_i32_1 = arith.constant 0 : i32
    return %arg0, %c0_i32, %c0_i32_0 : i32, i32, i32
  }
  func.func @transform_1(%arg0: i32) -> (i32, i32, i32) {
    %c0_i32 = arith.constant 0 : i32
    %c0_i32_0 = arith.constant 0 : i32
    %c0_i32_1 = arith.constant 0 : i32
    %c0_i32_2 = arith.constant 0 : i32
    return %c0_i32, %c0_i32_0, %c0_i32_1 : i32, i32, i32
  }
  func.func @transform_2(%arg0: i32) -> (i32, i32) {
    %c0_i32 = arith.constant 0 : i32
    %c0_i32_0 = arith.constant 0 : i32
    %c0_i32_1 = arith.constant 0 : i32
    return %c0_i32, %c0_i32_0 : i32, i32
  }
  func.func @transform_3(%arg0: i32) -> (i32, i32, i32) {
    %c0_i32 = arith.constant 0 : i32
    %c0_i32_0 = arith.constant 0 : i32
    %c0_i32_1 = arith.constant 0 : i32
    %c0_i32_2 = arith.constant 0 : i32
    return %c0_i32, %c0_i32_0, %c0_i32_1 : i32, i32, i32
  }
  func.func @transform_4(%arg0: i32) -> (i32, i32) {
    %c0_i32 = arith.constant 0 : i32
    %c0_i32_0 = arith.constant 0 : i32
    %c0_i32_1 = arith.constant 0 : i32
    return %c0_i32, %c0_i32_0 : i32, i32
  }
  func.func @transform_5(%arg0: i32) -> (i32, i32) {
    %c0_i32 = arith.constant 0 : i32
    %c0_i32_0 = arith.constant 0 : i32
    %c0_i32_1 = arith.constant 0 : i32
    return %c0_i32, %c0_i32_0 : i32, i32
  }
  func.func @transform_6(%arg0: i32) -> (i32, i32, i32) {
    %c0_i32 = arith.constant 0 : i32
    %c0_i32_0 = arith.constant 0 : i32
    %c0_i32_1 = arith.constant 0 : i32
    %c0_i32_2 = arith.constant 0 : i32
    return %c0_i32, %c0_i32_0, %c0_i32_1 : i32, i32, i32
  }
  func.func @transform_7(%arg0: i32) -> (i32, i32) {
    %c0_i32 = arith.constant 0 : i32
    %c0_i32_0 = arith.constant 0 : i32
    %c0_i32_1 = arith.constant 0 : i32
    return %c0_i32, %c0_i32_0 : i32, i32
  }
  func.func @transform_8(%arg0: i32) -> (i32, i32) {
    %c0_i32 = arith.constant 0 : i32
    %c0_i32_0 = arith.constant 0 : i32
    %c0_i32_1 = arith.constant 0 : i32
    return %c0_i32, %c0_i32_0 : i32, i32
  }
  func.func @transform_9(%arg0: i32) -> (i32, i32, i32) {
    %c0_i32 = arith.constant 0 : i32
    %c0_i32_0 = arith.constant 0 : i32
    %c0_i32_1 = arith.constant 0 : i32
    %c0_i32_2 = arith.constant 0 : i32
    return %c0_i32, %c0_i32_0, %c0_i32_1 : i32, i32, i32
  }
  func.func @transform_10(%arg0: i32) -> (i32, i32) {
    %c0_i32 = arith.constant 0 : i32
    %c0_i32_0 = arith.constant 0 : i32
    %c0_i32_1 = arith.constant 0 : i32
    return %c0_i32, %c0_i32_0 : i32, i32
  }
  func.func @transform_11(%arg0: i32) -> (i32, i32, i32, i32) {
    %c0_i32 = arith.constant 0 : i32
    %c0_i32_0 = arith.constant 0 : i32
    %c0_i32_1 = arith.constant 0 : i32
    %c0_i32_2 = arith.constant 0 : i32
    %c0_i32_3 = arith.constant 0 : i32
    return %c0_i32, %c0_i32_0, %c0_i32_1, %c0_i32_2 : i32, i32, i32, i32
  }
  func.func @transform_12(%arg0: i32) -> (i32, i32, i32) {
    %c0_i32 = arith.constant 0 : i32
    %c0_i32_0 = arith.constant 0 : i32
    %c0_i32_1 = arith.constant 0 : i32
    %c0_i32_2 = arith.constant 0 : i32
    return %c0_i32, %c0_i32_0, %c0_i32_1 : i32, i32, i32
  }
  func.func @transform_13(%arg0: i32) -> (i32, i32, i32) {
    %c0_i32 = arith.constant 0 : i32
    %c0_i32_0 = arith.constant 0 : i32
    %c0_i32_1 = arith.constant 0 : i32
    %c0_i32_2 = arith.constant 0 : i32
    return %c0_i32, %c0_i32_0, %c0_i32_1 : i32, i32, i32
  }
  func.func @transform_14(%arg0: i32) -> (i32, i32, i32) {
    %c0_i32 = arith.constant 0 : i32
    %c0_i32_0 = arith.constant 0 : i32
    %c0_i32_1 = arith.constant 0 : i32
    %c0_i32_2 = arith.constant 0 : i32
    return %c0_i32, %c0_i32_0, %c0_i32_1 : i32, i32, i32
  }
  func.func @transform_15(%arg0: i32) -> (i32, i32) {
    %c0_i32 = arith.constant 0 : i32
    %c0_i32_0 = arith.constant 0 : i32
    %c0_i32_1 = arith.constant 0 : i32
    return %c0_i32, %c0_i32_0 : i32, i32
  }
  func.func @transform_16(%arg0: i32) -> (i32, i32, i32) {
    %c0_i32 = arith.constant 0 : i32
    %c0_i32_0 = arith.constant 0 : i32
    %c0_i32_1 = arith.constant 0 : i32
    return %arg0, %c0_i32, %c0_i32_0 : i32, i32, i32
  }
}

</mosaic_0001>

<bundles_post_ra>
// kernel: seqnet_conv_forward.1
= control target key start
LH: loop header
LB: loop body
LE: loop exit
PB: predicated region body
PF: predicated region fallthrough
CT: control target
= control target key end

     0   :  { %s16943_s21 = smov 0   ;;  %s22097_s0 = inlined_call_operand.vmem [shape: f32[2,32,2048], index: 0, kind: input, shape index: {}]   ;;  %s22098_s1 = inlined_call_operand.vmem [shape: f32[3,32,32], index: 1, kind: input, shape index: {}]   ;;  %s22099_s2 = inlined_call_operand.vmem [shape: f32[32,1], index: 2, kind: input, shape index: {}]   ;;  %s22100_s3 = inlined_call_operand.vmem [shape: bf16[3,64,32], index: 3, kind: input, shape index: {}]   ;;  %s22101_s4 = inlined_call_operand.vmem [shape: f32[64,1], index: 4, kind: input, shape index: {}]   ;;  %s22102_s5 = inlined_call_operand.vmem [shape: bf16[8,64], index: 5, kind: input, shape index: {}]   ;;  %s22103_s6 = inlined_call_operand.vmem [shape: bf16[3,16,8], index: 6, kind: input, shape index: {}]   ;;  %s22104_s7 = inlined_call_operand.vmem [shape: f32[16,1], index: 7, kind: input, shape index: {}]   ;;  %s22105_s8 = inlined_call_operand.vmem [shape: bf16[2048,256], index: 8, kind: input, shape index: {}]   ;;  %s22106_s9 = inlined_call_operand.vmem [shape: bf16[3,32,16], index: 9, kind: input, shape index: {}]   ;;  %s22107_s10 = inlined_call_operand.vmem [shape: f32[32,1], index: 10, kind: input, shape index: {}]   ;;  %s22108_s11 = inlined_call_operand.vmem [shape: bf16[5,3,32,32], index: 11, kind: input, shape index: {}]   ;;  %s22109_s12 = inlined_call_operand.vmem [shape: f32[5,32,1], index: 12, kind: input, shape index: {}]   ;;  %s22110_s13 = inlined_call_operand.vmem [shape: bf16[3,256,32], index: 13, kind: input, shape index: {}]   ;;  %s22111_s14 = inlined_call_operand.vmem [shape: bf16[3,64,32], index: 14, kind: input, shape index: {}]   ;;  %s22112_s15 = inlined_call_operand.vmem [shape: f32[64,1], index: 15, kind: input, shape index: {}]   ;;  %s22113_s16 = inlined_call_operand.vmem [shape: f32[2,64,32], index: 16, kind: output, shape index: {}]  }
   0x1   :  { %22156 = sst [smem:[#allocation15_spill]] %s22097_s0 }
   0x2 LB: > { %s13952_s22 = sadd.s32 4294967295, %s16852_s21   ;;  %p13956_p0 = scmp.ge.s32.totalorder %s16852_s21, 1  ;;  %s16852_s21 = sphi %s16943_s21, %s26_s21  }
   0x3   : > { %p462_p1 = scmp.lt.s32.totalorder %s16852_s21, 3 }
   0x5   : > { %p463_p2 = pnand %p13956_p0, %p462_p1 }
   0x7   : > { %466 = sbr.rel (%p463_p2) target bundleno = 5111 (0x13f7), region = 84 }
   0xe   : > { %p512_p3 = scmp.lt.s32.totalorder %s13952_s22, 1  ;;  %v22115_v0 = vmov 0.0   ;;  %s22157_s26 = sld [smem:[#allocation15_spill]]  ;;  %v17081_v40 = vld [vmem:[%s22098_s1 + $0x20] sm:$0xff]  ;;  %vm1428_vm0 = vcmask 261120   ;;  %v17100_v47 = vld [vmem:[%s22098_s1 + $0x30] sm:$0xff] }
   0xf   : > { %1505 = vmatprep.mubr.f32.mxu0 %v22115_v0  ;;  %1517 = vmatprep.mubr.f32.mxu1 %v22115_v0  ;;  %s16855_s28 = smov 1   ;;  %v17122_v52 = vld [vmem:[%s22098_s1 + $0x28] sm:$0xff]  ;;  %s16856_s24 = smov 127   ;;  %vm896_vm2 = vcmask 7168   ;;  %vm1217_vm3 = vcmask 1039360   ;;  %vm6932_vm5 = vcmask 523264  }
  0x10   : > { %s22273_s22 = smov (!%p512_p3, %s13952_s22), 1  ;;  %vm7491_vm6 = vcmask 1043456   ;;  %vm7487_vm7 = vcmask 64512   ;;  %vm10786_vm8 = vcmask 130048  }
  0x11   : > { %s14809_s23 = sshll.u32 %s22273_s22, 9  ;;  %s14810_s18 = sshll.u32 %s22273_s22, 6 }
  0x12   : > { %s22076_s20 = scalar_lea.vmem %s22113_s16, %s14810_s18 }
  0x14   : > { %s16959_s27 = scalar_lea.vmem %s22157_s26, %s14809_s23 }
  0x15   : > { %v16962_v1 = vld [vmem:[%s16959_s27 + $0x78] sm:$0xff]  ;;  %v16965_v2 = vld [vmem:[%s16959_s27] sm:$0xff]  ;;  %v16978_v5 = vld [vmem:[%s16959_s27 + $0x8] sm:$0xff] }
  0x16   : > { %704 = vrot.lane.b32.xlu0 %v16962_v1, %s16855_s28  ;;  %776 = vrot.lane.b32.xlu1 %v16965_v2, %s16855_s28  ;;  %v16972_v3 = vld [vmem:[%s16959_s27 + $0xf8] sm:$0xff]  ;;  %v16975_v4 = vld [vmem:[%s16959_s27 + $0x80] sm:$0xff] }
  0x17   : > { %v16981_v6 = vld [vmem:[%s16959_s27 + $0x88] sm:$0xff]  ;;  %v14951_v8 = vpack.c.bf16 %v16975_v4, %v16965_v2  ;;  %v16988_v9 = vld [vmem:[%s16959_s27 + $0x178] sm:$0xff]  ;;  %v16991_v10 = vld [vmem:[%s16959_s27 + $0x100] sm:$0xff] }
  0x18   : > { %v14949_v7 = vpack.c.bf16 %v16981_v6, %v16978_v5  ;;  %v16994_v11 = vld [vmem:[%s16959_s27 + $0x108] sm:$0xff]  ;;  %v15745_v13 = vpack.i.bf16 %v16981_v6, %v16978_v5  ;;  %v17006_v14 = vld [vmem:[%s16959_s27 + $0x180] sm:$0xff]  ;;  %v17017_v18 = vld [vmem:[%s16959_s27 + $0x18] sm:$0xff] }
  0x19   : > { %v16997_v12 = vld [vmem:[%s16959_s27 + $0x188] sm:$0xff]  ;;  %v17009_v15 = vld [vmem:[%s16959_s27 + $0x20] sm:$0xff]  ;;  %v17020_v19 = vld [vmem:[%s16959_s27 + $0x98] sm:$0xff]  ;;  %v14955_v23 = vpack.c.bf16 %v17006_v14, %v16991_v10 }
  0x1a   : > { %706 = vrot.lane.b32.xlu0 %v16972_v3, %s16855_s28  ;;  %806 = vrot.lane.b32.xlu1 %v16975_v4, %s16855_s28  ;;  %v14953_v16 = vpack.c.bf16 %v16997_v12, %v16994_v11  ;;  %v17014_v17 = vld [vmem:[%s16959_s27 + $0xa0] sm:$0xff]  ;;  %22159 = vst [vmem:[#allocation3_spill] sm:$0xff] %v17020_v19  ;;  %v17023_v20 = vld [vmem:[%s16959_s27 + $0x28] sm:$0xff]  ;;  %v14957_v37 = vpack.c.bf16 %v17020_v19, %v17017_v18 }
  0x1b   : > { %22158 = vst [vmem:[#allocation2_spill] sm:$0xff] %v17014_v17  ;;  %14950 = vmatprep.subr.bf16.mxu0 %v14949_v7  ;;  %15141 = vmatprep.subr.bf16.mxu1 %v14949_v7  ;;  %22160 = vst [vmem:[#allocation4_spill] sm:$0xff] %v17023_v20  ;;  %v17026_v21 = vld [vmem:[%s16959_s27 + $0xa8] sm:$0xff]  ;;  %v17029_v22 = vld [vmem:[%s16959_s27 + $0x120] sm:$0xff]  ;;  %v14967_v41 = vpack.c.bf16 %v17014_v17, %v17009_v15  ;;  %v15750_v48 = vpack.i.bf16 %v16997_v12, %v16994_v11 }
  0x1c   : > { %22161 = vst [vmem:[#allocation5_spill] sm:$0xff] %v17026_v21  ;;  %22162 = vst [vmem:[#allocation6_spill] sm:$0xff] %v17029_v22  ;;  %14952 = vmatpush1.bf16.msra.mxu0 %v14951_v8  ;;  %15143 = vmatpush1.bf16.msra.mxu1 %v14951_v8  ;;  %v17038_v26 = vld [vmem:[%s16959_s27 + $0x1a0] sm:$0xff]  ;;  %v17041_v27 = vld [vmem:[%s16959_s27 + $0x118] sm:$0xff]  ;;  %v14965_v29 = vpack.c.bf16 %v17026_v21, %v17023_v20  ;;  %v15755_v61 = vpack.i.bf16 %v17023_v20, %v17009_v15 }
  0x1d   : > { %22163 = vst [vmem:[#allocation7_spill] sm:$0xff] %v17038_v26  ;;  %22164 = vst [vmem:[#allocation8_spill] sm:$0xff] %v17041_v27  ;;  %v17044_v28 = vld [vmem:[%s16959_s27 + $0x198] sm:$0xff]  ;;  %14954 = vmatprep.subr.bf16.mxu0 %v14953_v16  ;;  %v17055_v31 = vld [vmem:[%s16959_s27 + $0x40] sm:$0xff]  ;;  %15142 = vmatprep.subr.bf16.mxu1 %v14953_v16  ;;  %v14971_v58 = vpack.c.bf16 %v17038_v26, %v17029_v22  ;;  %v15760_v62 = vpack.i.bf16 %v17026_v21, %v17014_v17 }
  0x1e   : > { %22165 = vst [vmem:[#allocation9_spill] sm:$0xff] %v17044_v28  ;;  %15746 = vrot.lane.b32.xlu0 %v15745_v13, %s16855_s28  ;;  %708 = vrot.lane.b32.xlu1 %v16988_v9, %s16855_s28  ;;  %v17052_v30 = vld [vmem:[%s16959_s27 + $0x1f8] sm:$0xff]  ;;  %v17062_v34 = vld [vmem:[%s16959_s27 + $0xc0] sm:$0xff] }
  0x1f   : > { %v17065_v35 = vld [vmem:[%s16959_s27 + $0x38] sm:$0xff]  ;;  %v17073_v38 = vld [vmem:[%s16959_s27 + $0x128] sm:$0xff]  ;;  %v17090_v44 = vld [vmem:[%s16959_s27 + $0x10] sm:$0xff] }
  0x20   : > { %v17068_v36 = vld [vmem:[%s16959_s27 + $0xb8] sm:$0xff]  ;;  %22166 = vst [vmem:[#allocation10_spill] sm:$0xff] %v17073_v38  ;;  %v17076_v39 = vld [vmem:[%s16959_s27 + $0x1a8] sm:$0xff]  ;;  %14956 = vmatpush1.bf16.msra.mxu0 %v14955_v23  ;;  %v17093_v45 = vld [vmem:[%s16959_s27 + $0x90] sm:$0xff]  ;;  %15144 = vmatpush1.bf16.msra.mxu1 %v14955_v23 }
  0x21   : > { %22167 = vst [vmem:[#allocation11_spill] sm:$0xff] %v17076_v39  ;;  %14966 = vmatprep.subr.bf16.mxu0 %v14965_v29  ;;  %v14969_v46 = vpack.c.bf16 %v17076_v39, %v17073_v38  ;;  %v17109_v49 = vld [vmem:[%s16959_s27 + $0x140] sm:$0xff]  ;;  %v17112_v50 = vld [vmem:[%s16959_s27 + $0x138] sm:$0xff]  ;;  %v17115_v51 = vld [vmem:[%s16959_s27 + $0x48] sm:$0xff]  ;;  %14958 = vmatprep.subr.bf16.mxu1 %v14957_v37  ;;  %v14959_v54 = vpack.c.bf16 %v17093_v45, %v17090_v44 }
  0x22   : > { %710 = vrot.lane.b32.xlu0 %v17052_v30, %s16855_s28  ;;  %836 = vrot.lane.b32.xlu1 %v16991_v10, %s16855_s28  ;;  %22168 = vst [vmem:[#allocation12_spill] sm:$0xff] %v17115_v51  ;;  %v17129_v55 = vld [vmem:[%s16959_s27 + $0xc8] sm:$0xff]  ;;  %v17132_v56 = vld [vmem:[%s16959_s27 + $0x1c0] sm:$0xff] }
  0x23   : > { %13971 = vmatmul.mubr.msk.f32.vlgmr.msra.gmra.mrb[0].mxu0 %vm1428_vm0, %v17081_v40  ;;  %v17135_v57 = vld [vmem:[%s16959_s27 + $0x1b8] sm:$0xff]  ;;  %13973 = vmatmul.mubr.msk.f32.vlgmr.msra.gmra.mrb[0].mxu1 %vm1428_vm0, %v17100_v47  ;;  %v14981_v59 = vpack.c.bf16 %v17129_v55, %v17115_v51  ;;  %v17154_v63 = vld [vmem:[%s16959_s27 + $0x30] sm:$0xff]  ;;  %v17160_v8 = vld [vmem:[%s16959_s27 + $0x148] sm:$0xff]  ;;  %v14987_v24 = vpack.c.bf16 %v17132_v56, %v17109_v49 }
  0x24   : > { %14968 = vmatpush1.bf16.msra.mxu0 %v14967_v41  ;;  %1511 = vmatprep.mubr.f32.mxu0 %v22115_v0  ;;  %v17157_v7 = vld [vmem:[%s16959_s27 + $0xb0] sm:$0xff]  ;;  %22169 = vst [vmem:[#allocation13_spill] sm:$0xff] %v17160_v8  ;;  %v17163_v13 = vld [vmem:[%s16959_s27 + $0x1c8] sm:$0xff]  ;;  %v17174_v23 = vld [vmem:[%s22098_s1 + $0x38] sm:$0xff] }
  0x25   : > { %14970 = vmatprep.subr.bf16.mxu0 %v14969_v46  ;;  %v17169_v16 = vpack.i.bf16 %v17157_v7, %v17154_v63  ;;  %14960 = vmatpush1.bf16.msra.mxu1 %v14959_v54  ;;  %v17177_v29 = vld [vmem:[%s16959_s27 + $0x110] sm:$0xff]  ;;  %v17180_v37 = vld [vmem:[%s16959_s27 + $0x60] sm:$0xff]  ;;  %v17183_v41 = vld [vmem:[%s16959_s27 + $0x58] sm:$0xff]  ;;  %v14983_v46 = vpack.c.bf16 %v17062_v34, %v17055_v31  ;;  %v15770_v54 = vpack.i.bf16 %v17073_v38, %v17029_v22 }
  0x26   : > { %866 = vrot.lane.b32.xlu0 %v17006_v14, %s16855_s28  ;;  %15751 = vrot.lane.b32.xlu1 %v15750_v48, %s16855_s28  ;;  %v14961_v48 = vpack.c.bf16 %v17044_v28, %v17041_v27  ;;  %v17193_v60 = vld [vmem:[%s16959_s27 + $0x190] sm:$0xff]  ;;  %v17196_v53 = vld [vmem:[%s16959_s27 + $0xe0] sm:$0xff] }
  0x27   : > { %13972 = vmatmul.mubr.msk.f32.gmra.mrb[2].mxu0 %vm1428_vm0, %v17122_v52  ;;  %v17199_v43 = vld [vmem:[%s16959_s27 + $0xd8] sm:$0xff]  ;;  %1523 = vmatprep.mubr.f32.mxu1 %v22115_v0  ;;  %v17215_v32 = vld [vmem:[%s16959_s27 + $0x50] sm:$0xff]  ;;  %v17233_v42 = vld [vmem:[%s16959_s27 + $0x1e0] sm:$0xff] }
  0x28   : > { %14972 = vmatpush1.bf16.msra.mxu0 %v14971_v58  ;;  %1683 = vmatprep.mubr.f32.mxu0 %v22115_v0  ;;  %v14985_v58 = vpack.c.bf16 %v17163_v13, %v17160_v8  ;;  %v17218_v25 = vld [vmem:[%s16959_s27 + $0xd0] sm:$0xff]  ;;  %v17239_v38 = vld [vmem:[%s16959_s27 + $0x1d8] sm:$0xff]  ;;  %v17250_v20 = vld [vmem:[%s16959_s27 + $0x68] sm:$0xff] }
  0x29   : > { %14982 = vmatprep.subr.bf16.mxu0 %v14981_v59  ;;  %v15765_v59 = vpack.i.bf16 %v17020_v19, %v17017_v18  ;;  %13974 = vmatmul.mubr.msk.f32.gmra.mrb[2].mxu1 %vm1428_vm0, %v17174_v23  ;;  %v17230_v33 = vpack.i.bf16 %v17218_v25, %v17215_v32  ;;  %v17253_v21 = vld [vmem:[%s16959_s27 + $0xe8] sm:$0xff] }
  0x2a   : > { %15756 = vrot.lane.b32.xlu0 %v15755_v61, %s16855_s28  ;;  %15761 = vrot.lane.b32.xlu1 %v15760_v62, %s16855_s28  ;;  %v14963_v61 = vpack.c.bf16 %v17193_v60, %v17177_v29  ;;  %v14973_v62 = vpack.c.bf16 %v17068_v36, %v17065_v35  ;;  %v14997_v19 = vpack.c.bf16 %v17253_v21, %v17250_v20 }
  0x2b   : > { %13979 = vmatmul.mubr.msk.f32.vlgmr.msra.gmra.mrb[4].mxu0 %vm1428_vm0, %v17081_v40  ;;  %14962 = vmatprep.subr.bf16.mxu1 %v14961_v48  ;;  %v17256_v48 = vld [vmem:[%s16959_s27 + $0x70] sm:$0xff] }
  0x2c   : > { %1689 = vmatprep.mubr.f32.mxu0 %v22115_v0  ;;  %14984 = vmatpush1.bf16.msra.mxu0 %v14983_v46  ;;  %v15775_v46 = vpack.i.bf16 %v17076_v39, %v17038_v26  ;;  %v15780_v0 = vpack.i.bf16 %v17044_v28, %v17041_v27  ;;  %v17272_v39 = vld [vmem:[%s16959_s27 + $0x168] sm:$0xff]  ;;  %v22170_v26 = vmov 0.0   ;;  %v15810_v27 = vpack.i.bf16 %v17163_v13, %v17132_v56 }
  0x2d   : > { %14986 = vmatprep.subr.bf16.mxu0 %v14985_v58  ;;  %v17259_v58 = vld [vmem:[%s16959_s27 + $0xf0] sm:$0xff]  ;;  %14964 = vmatpush1.bf16.msra.mxu1 %v14963_v61  ;;  %v17275_v28 = vld [vmem:[%s16959_s27 + $0x1e8] sm:$0xff]  ;;  %v14975_v61 = vpack.c.bf16 %v17157_v7, %v17154_v63  ;;  %v14977_v7 = vpack.c.bf16 %v17135_v57, %v17112_v50  ;;  %v15805_v63 = vpack.i.bf16 %v17160_v8, %v17109_v49 }
  0x2e   : > { %15766 = vrot.lane.b32.xlu0 %v15765_v59, %s16855_s28  ;;  %15771 = vrot.lane.b32.xlu1 %v15770_v54, %s16855_s28  ;;  %v17264_v59 = vld [vmem:[%s16959_s27 + $0x170] sm:$0xff]  ;;  %v17289_v17 = vpack.i.bf16 %v17259_v58, %v17256_v48  ;;  %v15820_v8 = vpack.i.bf16 %v17193_v60, %v17177_v29 }
  0x2f   : > { %v17267_v54 = vld [vmem:[%s16959_s27 + $0x1f0] sm:$0xff]  ;;  %13980 = vmatmul.mubr.msk.f32.gmra.mrb[6].mxu0 %vm1428_vm0, %v17122_v52  ;;  %1594 = vmatprep.mubr.f32.mxu1 %v22170_v26 }
  0x30   : > { %1695 = vmatprep.mubr.f32.mxu0 %v22170_v26  ;;  %14988 = vmatpush1.bf16.msra.mxu0 %v14987_v24  ;;  %v15785_v24 = vpack.i.bf16 %v17115_v51, %v17055_v31  ;;  %v17299_v22 = vpack.i.bf16 %v17267_v54, %v17264_v59  ;;  %v17342_v51 = vld [vmem:[%s16959_s27 + $0x160] sm:$0xff] }
  0x31   : > { %14974 = vmatprep.subr.bf16.mxu1 %v14973_v62  ;;  %v15790_v62 = vpack.i.bf16 %v17129_v55, %v17062_v34  ;;  %13975 = vmatmul.mubr.msk.f32.vlgmr.msra.gmra.mrb[4].mxu1 %vm1428_vm0, %v17081_v40 }
  0x32   : > { %15776 = vrot.lane.b32.xlu0 %v15775_v46, %s16855_s28  ;;  %15781 = vrot.lane.b32.xlu1 %v15780_v0, %s16855_s28  ;;  %v15795_v46 = vpack.i.bf16 %v17068_v36, %v17065_v35  ;;  %v15800_v0 = vpack.i.bf16 %v17093_v45, %v17090_v44 }
  0x33   : > { %13981 = vmatmul.mubr.msk.f32.gmra.mrb[8].mxu0 %vm1428_vm0, %v17100_v47  ;;  %1600 = vmatprep.mubr.f32.mxu1 %v22170_v26 }
  0x34   : > { %1701 = vmatprep.mubr.f32.mxu0 %v22170_v26  ;;  %14998 = vmatprep.subr.bf16.mxu0 %v14997_v19  ;;  %v14999_v19 = vpack.c.bf16 %v17196_v53, %v17180_v37 }
  0x35   : > { %14976 = vmatpush1.bf16.msra.mxu1 %v14975_v61  ;;  %v17328_v61 = vld [vmem:[%s16959_s27 + $0x130] sm:$0xff] }
  0x36   : > { %15786 = vrot.lane.b32.xlu0 %v15785_v24, %s16855_s28  ;;  %15791 = vrot.lane.b32.xlu1 %v15790_v62, %s16855_s28  ;;  %v17331_v24 = vld [vmem:[%s16959_s27 + $0x1b0] sm:$0xff]  ;;  %v15001_v62 = vpack.c.bf16 %v17275_v28, %v17272_v39 }
  0x37   : > { %13982 = vmatmul.mubr.msk.f32.gmra.mrb[10].mxu0 %vm1428_vm0, %v17174_v23  ;;  %13976 = vmatmul.mubr.msk.f32.gmra.mrb[6].mxu1 %vm1428_vm0, %v17122_v52 }
  0x38   : > { %1861 = vmatprep.mubr.f32.mxu0 %v22170_v26  ;;  %1606 = vmatprep.mubr.f32.mxu1 %v22170_v26 }
  0x39   : > { %14978 = vmatprep.subr.bf16.mxu1 %v14977_v7  ;;  %v15003_v7 = vpack.c.bf16 %v17233_v42, %v17342_v51 }
  0x3a   : > { %15796 = vrot.lane.b32.xlu0 %v15795_v46, %s16855_s28  ;;  %15801 = vrot.lane.b32.xlu1 %v15800_v0, %s16855_s28  ;;  %v14979_v0 = vpack.c.bf16 %v17331_v24, %v17328_v61  ;;  %v15815_v46 = vpack.i.bf16 %v17135_v57, %v17112_v50 }
  0x3b   : > { %13987 = vmatmul.mubr.msk.f32.vlgmr.msra.gmra.mrb[12].mxu0 %vm1428_vm0, %v17081_v40  ;;  %13977 = vmatmul.mubr.msk.f32.gmra.mrb[8].mxu1 %vm1428_vm0, %v17100_v47 }
  0x3c   : > { %1867 = vmatprep.mubr.f32.mxu0 %v22170_v26  ;;  %15000 = vmatpush1.bf16.msra.mxu0 %v14999_v19  ;;  %v15830_v19 = vpack.i.bf16 %v17253_v21, %v17196_v53 }
  0x3d   : > { %1612 = vmatprep.mubr.f32.mxu1 %v22170_v26  ;;  %15002 = vmatprep.subr.bf16.mxu0 %v15001_v62  ;;  %v15835_v62 = vpack.i.bf16 %v17199_v43, %v17183_v41 }
  0x3e   : > { %15806 = vrot.lane.b32.xlu0 %v15805_v63, %s16855_s28  ;;  %15811 = vrot.lane.b32.xlu1 %v15810_v27, %s16855_s28  ;;  %v14989_v27 = vpack.c.bf16 %v17199_v43, %v17183_v41  ;;  %v15825_v63 = vpack.i.bf16 %v17250_v20, %v17180_v37 }
  0x3f   : > { %13988 = vmatmul.mubr.msk.f32.gmra.mrb[14].mxu0 %vm1428_vm0, %v17122_v52  ;;  %13978 = vmatmul.mubr.msk.f32.gmra.mrb[10].mxu1 %vm1428_vm0, %v17174_v23 }
  0x40   : > { %1873 = vmatprep.mubr.f32.mxu0 %v22170_v26  ;;  %14980 = vmatpush1.bf16.msra.mxu1 %v14979_v0  ;;  %v17387_v0 = vld [vmem:[%s16959_s27 + $0x158] sm:$0xff] }
  0x41   : > { %15004 = vmatpush1.bf16.msra.mxu0 %v15003_v7  ;;  %1772 = vmatprep.mubr.f32.mxu1 %v22170_v26  ;;  %v14993_v7 = vpack.c.bf16 %v17239_v38, %v17387_v0 }
  0x42   : > { %15816 = vrot.lane.b32.xlu0 %v15815_v46, %s16855_s28  ;;  %15821 = vrot.lane.b32.xlu1 %v15820_v8, %s16855_s28  ;;  %v14991_v8 = vpack.c.bf16 %v17218_v25, %v17215_v32  ;;  %v565_v25 = vld [vmem:[%s16959_s27 + $0x150] sm:$0xff]  ;;  %v15845_v46 = vpack.i.bf16 %v17272_v39, %v17342_v51 }
  0x43   : > { %13989 = vmatmul.mubr.msk.f32.gmra.mrb[16].mxu0 %vm1428_vm0, %v17100_v47  ;;  %13983 = vmatmul.mubr.msk.f32.vlgmr.msra.gmra.mrb[12].mxu1 %vm1428_vm0, %v17081_v40  ;;  %v581_v32 = vld [vmem:[%s16959_s27 + $0x1d0] sm:$0xff] }
  0x44   : > { %1879 = vmatprep.mubr.f32.mxu0 %v22170_v26  ;;  %1778 = vmatprep.mubr.f32.mxu1 %v22170_v26 }
  0x45   : > { %14990 = vmatprep.subr.bf16.mxu1 %v14989_v27  ;;  %v15850_v27 = vpack.i.bf16 %v17275_v28, %v17233_v42 }
  0x46   : > { %15826 = vrot.lane.b32.xlu0 %v15825_v63, %s16855_s28  ;;  %15831 = vrot.lane.b32.xlu1 %v15830_v19, %s16855_s28  ;;  %v14995_v63 = vpack.c.bf16 %v581_v32, %v565_v25  ;;  %v15005_v19 = vpack.c.bf16 %v16972_v3, %v16962_v1  ;;  %v15007_v1 = vpack.c.bf16 %v17259_v58, %v17256_v48 }
  0x47   : > { %13990 = vmatmul.mubr.msk.f32.gmra.mrb[18].mxu0 %vm1428_vm0, %v17174_v23  ;;  %13984 = vmatmul.mubr.msk.f32.gmra.mrb[14].mxu1 %vm1428_vm0, %v17122_v52  ;;  %v15865_v3 = vpack.i.bf16 %v17090_v44, %v16978_v5  ;;  %v15009_v48 = vpack.c.bf16 %v17052_v30, %v16988_v9  ;;  %v15011_v5 = vpack.c.bf16 %v17267_v54, %v17264_v59  ;;  %v22176_v30 = vld [vmem:[#allocation8_spill] sm:$0xff]  ;;  %v22178_v44 = vld [vmem:[#allocation7_spill] sm:$0xff] }
  0x48   : > { %2039 = vmatprep.mubr.f32.mxu0 %v22170_v26  ;;  %1784 = vmatprep.mubr.f32.mxu1 %v22170_v26  ;;  %v22171_v9 = vpack.i.bf16 %v17009_v15, %v17017_v18  ;;  %v22181_v18 = vpack.i.bf16 %v17055_v31, %v17065_v35  ;;  %v22185_v31 = vld [vmem:[#allocation5_spill] sm:$0xff]  ;;  %v22186_v35 = vld [vmem:[#allocation4_spill] sm:$0xff] }
  0x49   : > { %14992 = vmatpush1.bf16.msra.mxu1 %v14991_v8  ;;  %v15855_v8 = vpack.i.bf16 %v17239_v38, %v17387_v0 }
  0x4a   : > { %15836 = vrot.lane.b32.xlu0 %v15835_v62, %s16855_s28  ;;  %15841 = vrot.lane.b32.xlu1 %v17169_v16, %s16855_s28  ;;  %v15860_v62 = vpack.i.bf16 %v17331_v24, %v17328_v61  ;;  %v15870_v61 = vpack.i.bf16 %v17093_v45, %v16981_v6  ;;  %v15880_v6 = vpack.i.bf16 %v17177_v29, %v16994_v11  ;;  %v22173_v11 = vld [vmem:[#allocation3_spill] sm:$0xff]  ;;  %v22179_v45 = vld [vmem:[#allocation9_spill] sm:$0xff] }
  0x4b   : > { %13995 = vmatmul.mubr.msk.f32.vlgmr.msra.gmra.mrb[20].mxu0 %vm1428_vm0, %v17081_v40  ;;  %13985 = vmatmul.mubr.msk.f32.gmra.mrb[16].mxu1 %vm1428_vm0, %v17100_v47  ;;  %v22180_v15 = vpack.i.bf16 %v22178_v44, %v22179_v45 }
  0x4c   : > { %2045 = vmatprep.mubr.f32.mxu0 %v22170_v26  ;;  %1790 = vmatprep.mubr.f32.mxu1 %v22170_v26 }
  0x4d   : > { %14994 = vmatprep.subr.bf16.mxu1 %v14993_v7  ;;  %v16842_v7 = vld [vmem:[%s16959_s27 + $0x78] sm:$0xff] }
  0x4e   : > { %15846 = vrot.lane.b32.xlu0 %v15845_v46, %s16855_s28  ;;  %15851 = vrot.lane.b32.xlu1 %v15850_v27, %s16855_s28 }
  0x4f   : > { %13996 = vmatmul.mubr.msk.f32.gmra.mrb[22].mxu0 %vm1428_vm0, %v17122_v52  ;;  %13986 = vmatmul.mubr.msk.f32.gmra.mrb[18].mxu1 %vm1428_vm0, %v17174_v23 }
  0x50   : > { %2051 = vmatprep.mubr.f32.mxu0 %v22170_v26  ;;  %14996 = vmatpush1.bf16.msra.mxu1 %v14995_v63 }
  0x51   : > { %1950 = vmatprep.mubr.f32.mxu1 %v22170_v26  ;;  %15006 = vmatprep.subr.bf16.mxu1 %v15005_v19 }
  0x52   : > { %15856 = vrot.lane.b32.xlu0 %v15855_v8, %s16855_s28  ;;  %15861 = vrot.lane.b32.xlu1 %v15860_v62, %s16855_s28 }
  0x53   : > { %13997 = vmatmul.mubr.msk.f32.gmra.mrb[24].mxu0 %vm1428_vm0, %v17100_v47  ;;  %13991 = vmatmul.mubr.msk.f32.vlgmr.msra.gmra.mrb[20].mxu1 %vm1428_vm0, %v17081_v40 }
  0x54   : > { %2057 = vmatprep.mubr.f32.mxu0 %v22170_v26  ;;  %1956 = vmatprep.mubr.f32.mxu1 %v22170_v26 }
  0x55   : > { %15008 = vmatpush1.bf16.msra.mxu1 %v15007_v1  ;;  %v16843_v1 = vld [vmem:[%s16959_s27 + $0xf8] sm:$0xff] }
  0x56   : > { %15866 = vrot.lane.b32.xlu0 %v15865_v3, %s16856_s24  ;;  %15871 = vrot.lane.b32.xlu1 %v15870_v61, %s16856_s24  ;;  %v22198_v3 = vld [vmem:[#allocation13_spill] sm:$0xff] }
  0x57   : > { %13998 = vmatmul.mubr.msk.f32.gmra.mrb[26].mxu0 %vm1428_vm0, %v17174_v23  ;;  %13992 = vmatmul.mubr.msk.f32.gmra.mrb[22].mxu1 %vm1428_vm0, %v17122_v52  ;;  %v22199_v61 = vpack.i.bf16 %v17163_v13, %v22198_v3 }
  0x58   : > { %2229 = vmatprep.mubr.f32.mxu0 %v22170_v26  ;;  %1962 = vmatprep.mubr.f32.mxu1 %v22170_v26 }
  0x59   : > { %15010 = vmatprep.subr.bf16.mxu1 %v15009_v48 }
  0x5a   : > { %1089 = vrot.lane.b32.xlu0 %v16965_v2, %s16856_s24  ;;  %1121 = vrot.lane.b32.xlu1 %v16975_v4, %s16856_s24  ;;  %v15885_v2 = vpack.i.bf16 %v17193_v60, %v16997_v12  ;;  %v15890_v4 = vpack.i.bf16 %v581_v32, %v565_v25  ;;  %v22184_v60 = vpack.i.bf16 %v17132_v56, %v17135_v57  ;;  %v587_v56 = vlaneseq  ;;  %v22196_v25 = vld [vmem:[#allocation12_spill] sm:$0xff] }
  0x5b   : > { %13993 = vmatmul.mubr.msk.f32.gmra.mrb[24].mxu1 %vm1428_vm0, %v17100_v47  ;;  %v15980_v57 = vpack.i.bf16 %v17342_v51, %v17387_v0  ;;  %v22197_v32 = vpack.i.bf16 %v17129_v55, %v22196_v25 }
  0x5c   : > { %1968 = vmatprep.mubr.f32.mxu1 %v22170_v26  ;;  %15012 = vmatpush1.bf16.msra.mxu1 %v15011_v5  ;;  %v17546_v59 = vand.u32 127, %v587_v56 }
  0x5e   : > { %15876 = vrot.lane.b32.xlu0 %v17230_v33, %s16855_s28  ;;  %15881 = vrot.lane.b32.xlu1 %v15880_v6, %s16856_s24  ;;  %vm604_vm1 = vcmp.ne.s32.totalorder %v17546_v59, 0 }
  0x5f   : > { %13994 = vmatmul.mubr.msk.f32.gmra.mrb[26].mxu1 %vm1428_vm0, %v17174_v23  ;;  %v17566_v54 = vsel %vm604_vm1, 1.0, %v22170_v26 }
  0x60   : > { %2128 = vmatprep.mubr.f32.mxu1 %v22170_v26  ;;  %22195 = vst [vmem:[#allocation3_spill] sm:$0xff] %v17566_v54 }
  0x62   : > { %15886 = vrot.lane.b32.xlu0 %v15885_v2, %s16856_s24  ;;  %1153 = vrot.lane.b32.xlu1 %v16991_v10, %s16856_s24  ;;  %v22172_v10 = vld [vmem:[#allocation2_spill] sm:$0xff] }
  0x63   : > { %13999 = vmatmul.mubr.msk.f32.vlgmr.msra.gmra.mrb[28].mxu1 %vm1428_vm0, %v17081_v40  ;;  %v22174_v12 = vpack.i.bf16 %v22172_v10, %v22173_v11  ;;  %22193 = vst [vmem:[#allocation2_spill] sm:$0xff] %v17546_v59  ;;  %v16844_v11 = vld [vmem:[%s16959_s27 + $0x178] sm:$0xff] }
  0x64   : > { %2134 = vmatprep.mubr.f32.mxu1 %v22170_v26 }
  0x66   : > { %1185 = vrot.lane.b32.xlu0 %v17006_v14, %s16856_s24  ;;  %15891 = vrot.lane.b32.xlu1 %v15890_v4, %s16855_s28  ;;  %v22175_v14 = vld [vmem:[#allocation6_spill] sm:$0xff] }
  0x67   : > { %14000 = vmatmul.mubr.msk.f32.gmra.mrb[30].mxu1 %vm1428_vm0, %v17122_v52  ;;  %v22177_v40 = vpack.i.bf16 %v22175_v14, %v22176_v30  ;;  %v22183_v52 = vpack.i.bf16 %v17109_v49, %v17112_v50  ;;  %v22191_v49 = vpack.i.bf16 %v17180_v37, %v17183_v41  ;;  %v22192_v50 = vpack.i.bf16 %v17196_v53, %v17199_v43 }
  0x68   : > { %2140 = vmatprep.mubr.f32.mxu1 %v22170_v26  ;;  %v22194_v43 = vpack.i.bf16 %v17233_v42, %v17239_v38 }
  0x6a   : > { %15896 = vrot.lane.b32.xlu0 %v17289_v17, %s16855_s28  ;;  %15901 = vrot.lane.b32.xlu1 %v17299_v22, %s16855_s28 }
  0x6b   : > { %14001 = vmatmul.mubr.msk.f32.gmra.mrb[32].mxu1 %vm1428_vm0, %v17100_v47  ;;  %v22182_v47 = vpack.i.bf16 %v17062_v34, %v17068_v36  ;;  %v22187_v34 = vpack.i.bf16 %v22185_v31, %v22186_v35  ;;  %v22188_v36 = vld [vmem:[#allocation11_spill] sm:$0xff] }
  0x6c   : > { %2146 = vmatprep.mubr.f32.mxu1 %v22170_v26 }
  0x6e   : > { %15906 = vrot.lane.b32.xlu0 %v22171_v9, %s16856_s24  ;;  %15911 = vrot.lane.b32.xlu1 %v22174_v12, %s16856_s24 }
  0x6f   : > { %14002 = vmatmul.mubr.msk.f32.gmra.mrb[34].mxu1 %vm1428_vm0, %v17174_v23 }
  0x70   : > { %2318 = vmatprep.mubr.f32.mxu1 %v22170_v26 }
  0x72   : > { %15916 = vrot.lane.b32.xlu0 %v22177_v40, %s16856_s24  ;;  %15921 = vrot.lane.b32.xlu1 %v22180_v15, %s16856_s24 }
  0x76   : > { %15926 = vrot.lane.b32.xlu0 %v22181_v18, %s16856_s24  ;;  %15931 = vrot.lane.b32.xlu1 %v22182_v47, %s16856_s24 }
  0x7a   : > { %15936 = vrot.lane.b32.xlu0 %v17169_v16, %s16856_s24  ;;  %15941 = vrot.lane.b32.xlu1 %v22183_v52, %s16856_s24  ;;  %v22189_v16 = vld [vmem:[#allocation10_spill] sm:$0xff] }
  0x7b   : > { %v22190_v23 = vpack.i.bf16 %v22188_v36, %v22189_v16  ;;  %v17625_v52 = vld [vmem:[%s22098_s1] sm:$0xff] }
  0x7e   : > { %15946 = vrot.lane.b32.xlu0 %v22184_v60, %s16856_s24  ;;  %15951 = vrot.lane.b32.xlu1 %v15860_v62, %s16856_s24  ;;  %v16845_v60 = vld [vmem:[%s16959_s27 + $0x1f8] sm:$0xff] }
  0x82   : > { %15956 = vrot.lane.b32.xlu0 %v22187_v34, %s16856_s24  ;;  %15961 = vrot.lane.b32.xlu1 %v22190_v23, %s16856_s24 }
  0x86   : > { %15966 = vrot.lane.b32.xlu0 %v22191_v49, %s16856_s24  ;;  %15971 = vrot.lane.b32.xlu1 %v22192_v50, %s16856_s24 }
  0x88   : > { %v17544_v29 = vpop.permute.xlu0 %704  ;;  %v777_v58 = vpop.permute.xlu1 %776 }
  0x89   : > { %v1021_v24 = vsel %vm896_vm2, %v17544_v29, %v777_v58 }
  0x8a   : > { %15976 = vrot.lane.b32.xlu0 %v17230_v33, %s16856_s24  ;;  %15981 = vrot.lane.b32.xlu1 %v15980_v57, %s16856_s24  ;;  %v1025_v63 = vmul.f32 %v17566_v54, %v1021_v24  ;;  %v22200_v57 = vpack.i.bf16 %v17253_v21, %v17250_v20 }
  0x8c   : > { %v17551_v37 = vpop.permute.xlu0 %706  ;;  %v807_v41 = vpop.permute.xlu1 %806 }
  0x8d   : > { %v1022_v51 = vsel %vm896_vm2, %v17551_v37, %v807_v41 }
  0x8e   : > { %15986 = vrot.lane.b32.xlu0 %v22194_v43, %s16856_s24  ;;  %15991 = vrot.lane.b32.xlu1 %v15890_v4, %s16856_s24  ;;  %v1041_v42 = vmul.f32 %v17566_v54, %v1022_v51  ;;  %v22201_v43 = vpack.i.bf16 %v17275_v28, %v17272_v39  ;;  %v17674_v28 = vld [vmem:[%s22098_s1 + $0x10] sm:$0xff] }
  0x90   : > { %v17561_v33 = vpop.permute.xlu0 %15746  ;;  %v17563_v53 = vpop.permute.xlu1 %708  ;;  %v15015_v55 = vpack.c.bf16 %v1041_v42, %v1025_v63 }
  0x91   : > { %v15749_v0 = vunpack.i.h.bf16 %v17561_v33  ;;  %v15748_v38 = vunpack.i.l.bf16 %v17561_v33 }
  0x92   : > { %15996 = vrot.lane.b32.xlu0 %v22197_v32, %s16856_s24  ;;  %1119 = vrot.lane.b32.xlu1 %v16842_v7, %s16856_s24 }
  0x93   : > { %v897_v46 = vsel %vm896_vm2, %v777_v58, %v15748_v38  ;;  %v912_v27 = vsel %vm896_vm2, %v807_v41, %v15749_v0 }
  0x94   : > { %v17586_v19 = vpop.permute.xlu0 %710  ;;  %v837_v8 = vpop.permute.xlu1 %836  ;;  %v15013_v62 = vpack.c.bf16 %v912_v27, %v897_v46 }
  0x95   : > { %v1023_v48 = vsel %vm896_vm2, %v17563_v53, %v837_v8 }
  0x96   : > { %1151 = vrot.lane.b32.xlu0 %v16843_v1, %s16856_s24  ;;  %16001 = vrot.lane.b32.xlu1 %v22199_v61, %s16856_s24  ;;  %v1057_v10 = vmul.f32 %v17566_v54, %v1023_v48 }
  0x97   : > { %15014 = vmatprep.subr.bf16.mxu0 %v15013_v62 }
  0x98   : > { %15016 = vmatpush1.bf16.msra.mxu0 %v15015_v55  ;;  %v867_v5 = vpop.permute.xlu0 %866  ;;  %v17596_v6 = vpop.permute.xlu1 %15751 }
  0x99   : > { %v1024_v2 = vsel %vm896_vm2, %v17586_v19, %v867_v5  ;;  %v15754_v4 = vunpack.i.h.bf16 %v17596_v6  ;;  %v15753_v9 = vunpack.i.l.bf16 %v17596_v6 }
  0x9a   : > { %v1073_v13 = vmul.f32 %v17566_v54, %v1024_v2  ;;  %16006 = vrot.lane.b32.xlu0 %v17289_v17, %s16856_s24  ;;  %1183 = vrot.lane.b32.xlu1 %v16844_v11, %s16856_s24 }
  0x9b   : > { %v927_v12 = vsel %vm896_vm2, %v837_v8, %v15753_v9  ;;  %v942_v14 = vsel %vm896_vm2, %v867_v5, %v15754_v4  ;;  %v17702_v5 = vld [vmem:[%s22098_s1 + $0x18] sm:$0xff] }
  0x9c   : > { %v15019_v30 = vpack.c.bf16 %v1073_v13, %v1057_v10  ;;  %v17614_v40 = vpop.permute.xlu0 %15756  ;;  %v17616_v44 = vpop.permute.xlu1 %15761  ;;  %v15017_v45 = vpack.c.bf16 %v942_v14, %v927_v12 }
  0x9d   : > { %v15759_v15 = vunpack.i.h.bf16 %v17614_v40  ;;  %v15758_v17 = vunpack.i.l.bf16 %v17614_v40  ;;  %v15764_v18 = vunpack.i.h.bf16 %v17616_v44  ;;  %v15763_v47 = vunpack.i.l.bf16 %v17616_v44 }
  0x9e   : > { %1215 = vrot.lane.b32.xlu0 %v16845_v60, %s16856_s24  ;;  %15018 = vmatprep.subr.bf16.mxu0 %v15017_v45 }
  0x9f   : > { %16011 = vrot.lane.b32.xlu1 %v17299_v22, %s16856_s24  ;;  %15020 = vmatpush1.bf16.msra.mxu0 %v15019_v30  ;;  %v901_v31 = vsel %vm896_vm2, %v15758_v17, %v15759_v15  ;;  %v916_v35 = vsel %vm896_vm2, %v15763_v47, %v15764_v18  ;;  %v17646_v22 = vld [vmem:[%s22098_s1 + $0x8] sm:$0xff] }
  0xa0   : > { %v17637_v34 = vpop.permute.xlu0 %15766  ;;  %v17639_v36 = vpop.permute.xlu1 %15771  ;;  %v15029_v16 = vpack.c.bf16 %v916_v35, %v901_v31 }
  0xa1   : > { %v15769_v23 = vunpack.i.h.bf16 %v17637_v34  ;;  %v15768_v49 = vunpack.i.l.bf16 %v17637_v34  ;;  %v15774_v50 = vunpack.i.h.bf16 %v17639_v36  ;;  %v15773_v56 = vunpack.i.l.bf16 %v17639_v36 }
  0xa2   : > { %16016 = vrot.lane.b32.xlu0 %v22200_v57, %s16856_s24  ;;  %14003 = vmatmul.mubr.msk.f32.vlgmr.msra.gmra.mrb[0].mxu0 %vm1428_vm0, %v17625_v52 }
  0xa3   : > { %v900_v58 = vsel %vm896_vm2, %v15768_v49, %v15758_v17  ;;  %v915_v41 = vsel %vm896_vm2, %v15769_v23, %v15763_v47  ;;  %15030 = vmatprep.subr.bf16.mxu0 %v15029_v16  ;;  %16021 = vrot.lane.b32.xlu1 %v22201_v43, %s16856_s24  ;;  %v931_v39 = vsel %vm896_vm2, %v15773_v56, %v15774_v50 }
  0xa4   : > { %v17662_v51 = vpop.permute.xlu0 %15776  ;;  %v17664_v24 = vpop.permute.xlu1 %15781  ;;  %2235 = vmatprep.mubr.f32.mxu0 %v22170_v26  ;;  %v15031_v20 = vpack.c.bf16 %v915_v41, %v900_v58 }
  0xa5   : > { %v15779_v21 = vunpack.i.h.bf16 %v17662_v51  ;;  %v15778_v42 = vunpack.i.l.bf16 %v17662_v51  ;;  %v15784_v25 = vunpack.i.h.bf16 %v17664_v24  ;;  %v15783_v32 = vunpack.i.l.bf16 %v17664_v24 }
  0xa6   : > { %14004 = vmatmul.mubr.msk.f32.gmra.mrb[2].mxu0 %vm1428_vm0, %v17646_v22 }
  0xa7   : > { %v945_v7 = vsel %vm896_vm2, %v15784_v25, %v15778_v42  ;;  %v930_v46 = vsel %vm896_vm2, %v15783_v32, %v15773_v56  ;;  %15032 = vmatpush1.bf16.msra.mxu0 %v15031_v20  ;;  %2241 = vmatprep.mubr.f32.mxu0 %v22170_v26  ;;  %v946_v27 = vsel %vm896_vm2, %v15778_v42, %v15779_v21 }
  0xa8   : > { %v17691_v63 = vpop.permute.xlu0 %15786  ;;  %v17693_v8 = vpop.permute.xlu1 %15791  ;;  %v15033_v62 = vpack.c.bf16 %v946_v27, %v931_v39  ;;  %v15035_v55 = vpack.c.bf16 %v945_v7, %v930_v46 }
  0xa9   : > { %v15789_v1 = vunpack.i.h.bf16 %v17691_v63  ;;  %v15788_v3 = vunpack.i.l.bf16 %v17691_v63  ;;  %v15794_v61 = vunpack.i.h.bf16 %v17693_v8  ;;  %v15793_v48 = vunpack.i.l.bf16 %v17693_v8 }
  0xaa   : > { %14005 = vmatmul.mubr.msk.f32.gmra.mrb[28].mxu0 %vm1428_vm0, %v17674_v28  ;;  %15034 = vmatprep.subr.bf16.mxu0 %v15033_v62 }
  0xab   : > { %15036 = vmatpush1.bf16.msra.mxu0 %v15035_v55  ;;  %2247 = vmatprep.mubr.f32.mxu0 %v22170_v26  ;;  %v905_v2 = vsel %vm896_vm2, %v15788_v3, %v15789_v1  ;;  %v920_v10 = vsel %vm896_vm2, %v15793_v48, %v15794_v61 }
  0xac   : > { %v17713_v13 = vpop.permute.xlu0 %15796  ;;  %v15802_v11 = vpop.permute.xlu1 %15801  ;;  %v15045_v12 = vpack.c.bf16 %v920_v10, %v905_v2 }
  0xad   : > { %v15799_v14 = vunpack.i.h.bf16 %v17713_v13  ;;  %v15798_v30 = vunpack.i.l.bf16 %v17713_v13  ;;  %v15804_v45 = vunpack.i.h.bf16 %v15802_v11  ;;  %v15803_v17 = vunpack.i.l.bf16 %v15802_v11 }
  0xae   : > { %14006 = vmatmul.mubr.msk.f32.gmra.mrb[30].mxu0 %vm1428_vm0, %v17702_v5  ;;  %15046 = vmatprep.subr.bf16.mxu0 %v15045_v12 }
  0xaf   : > { %v904_v47 = vsel %vm896_vm2, %v15798_v30, %v15788_v3  ;;  %v919_v60 = vsel %vm896_vm2, %v15799_v14, %v15793_v48  ;;  %v913_v31 = vsel %vm896_vm2, %v15749_v0, %v15804_v45  ;;  %v898_v35 = vsel %vm896_vm2, %v15748_v38, %v15803_v17  ;;  %2407 = vmatprep.mubr.f32.mxu0 %v22170_v26  ;;  %v3665_v48 = vld [vmem:[%s22099_s2] sm:$0xff] }
  0xb0   : > { %v17732_v34 = vpop.permute.xlu0 %15806  ;;  %v17734_v16 = vpop.permute.xlu1 %15811  ;;  %v899_v56 = vsel %vm896_vm2, %v15803_v17, %v15768_v49  ;;  %v914_v57 = vsel %vm896_vm2, %v15804_v45, %v15769_v23  ;;  %v15047_v58 = vpack.c.bf16 %v919_v60, %v904_v47  ;;  %v15023_v41 = vpack.c.bf16 %v913_v31, %v898_v35 }
  0xb1   : > { %v15809_v43 = vunpack.i.h.bf16 %v17732_v34  ;;  %v15808_v0 = vunpack.i.l.bf16 %v17732_v34  ;;  %v15814_v33 = vunpack.i.h.bf16 %v17734_v16  ;;  %v15813_v38 = vunpack.i.l.bf16 %v17734_v16 }
  0xb2   : > { %v15021_v20 = vpack.c.bf16 %v914_v57, %v899_v56  ;;  %14011 = vmatmul.mubr.msk.f32.vlgmr.msra.gmra.mrb[4].mxu0 %vm1428_vm0, %v17625_v52  ;;  %v22128_v3 = vmov 0  }
  0xb3   : > { %15048 = vmatpush1.bf16.msra.mxu0 %v15047_v58  ;;  %2413 = vmatprep.mubr.f32.mxu0 %v22170_v26  ;;  %v935_v23 = vsel %vm896_vm2, %v15808_v0, %v15809_v43  ;;  %v950_v49 = vsel %vm896_vm2, %v15813_v38, %v15814_v33 }
  0xb4   : > { %15022 = vmatprep.subr.bf16.mxu1 %v15021_v20  ;;  %v17751_v42 = vpop.permute.xlu0 %15816  ;;  %v15822_v39 = vpop.permute.xlu1 %15821  ;;  %v15049_v7 = vpack.c.bf16 %v950_v49, %v935_v23  ;;  %16025 = vset.pattern.permute.xlu0 %v22128_v3 }
  0xb5   : > { %15024 = vmatpush1.bf16.msra.mxu1 %v15023_v41  ;;  %v15819_v46 = vunpack.i.h.bf16 %v17751_v42  ;;  %v15818_v27 = vunpack.i.l.bf16 %v17751_v42  ;;  %v15824_v62 = vunpack.i.h.bf16 %v15822_v39  ;;  %v15823_v55 = vunpack.i.l.bf16 %v15822_v39  ;;  %3671 = vperm.xlu0 %16025, %v3665_v48  }
  0xb6   : > { %14012 = vmatmul.mubr.msk.f32.gmra.mrb[6].mxu0 %vm1428_vm0, %v17646_v22  ;;  %15050 = vmatprep.subr.bf16.mxu0 %v15049_v7 }
  0xb7   : > { %v934_v2 = vsel %vm896_vm2, %v15818_v27, %v15808_v0  ;;  %v949_v10 = vsel %vm896_vm2, %v15819_v46, %v15813_v38  ;;  %v928_v11 = vsel %vm896_vm2, %v15753_v9, %v15823_v55  ;;  %v943_v12 = vsel %vm896_vm2, %v15754_v4, %v15824_v62  ;;  %2419 = vmatprep.mubr.f32.mxu0 %v22170_v26 }
  0xb8   : > { %v17774_v45 = vpop.permute.xlu0 %15826  ;;  %v17776_v17 = vpop.permute.xlu1 %15831  ;;  %v929_v47 = vsel %vm896_vm2, %v15823_v55, %v15783_v32  ;;  %v944_v60 = vsel %vm896_vm2, %v15824_v62, %v15784_v25  ;;  %v15051_v31 = vpack.c.bf16 %v949_v10, %v934_v2  ;;  %v15027_v9 = vpack.c.bf16 %v943_v12, %v928_v11  ;;  %16026 = vset.pattern.permute.xlu1 %v22128_v3  ;;  %v3666_v32 = vld [vmem:[%s22099_s2 + $0x8] sm:$0xff]  ;;  %v3668_v11 = vld [vmem:[%s22099_s2 + $0x18] sm:$0xff] }
  0xb9   : > { %v15829_v6 = vunpack.i.h.bf16 %v17774_v45  ;;  %v15828_v4 = vunpack.i.l.bf16 %v17774_v45  ;;  %v15834_v35 = vunpack.i.h.bf16 %v17776_v17  ;;  %v15833_v56 = vunpack.i.l.bf16 %v17776_v17  ;;  %3676 = vperm.xlu1 %16026, %v3666_v32   ;;  %3686 = vperm.xlu0 %16025, %v3668_v11  }
  0xba   : > { %v15025_v24 = vpack.c.bf16 %v944_v60, %v929_v47  ;;  %14013 = vmatmul.mubr.msk.f32.gmra.mrb[8].mxu0 %vm1428_vm0, %v17674_v28 }
  0xbb   : > { %15052 = vmatpush1.bf16.msra.mxu0 %v15051_v31  ;;  %2425 = vmatprep.mubr.f32.mxu0 %v22170_v26  ;;  %v909_v25 = vsel %vm896_vm2, %v15828_v4, %v15829_v6  ;;  %v924_v57 = vsel %vm896_vm2, %v15833_v56, %v15834_v35 }
  0xbc   : > { %15026 = vmatprep.subr.bf16.mxu1 %v15025_v24  ;;  %v17801_v58 = vpop.permute.xlu0 %15836  ;;  %v15842_v41 = vpop.permute.xlu1 %15841  ;;  %v15061_v0 = vpack.c.bf16 %v924_v57, %v909_v25 }
  0xbd   : > { %15028 = vmatpush1.bf16.msra.mxu1 %v15027_v9  ;;  %v15839_v38 = vunpack.i.h.bf16 %v17801_v58  ;;  %v15838_v20 = vunpack.i.l.bf16 %v17801_v58  ;;  %v15844_v23 = vunpack.i.h.bf16 %v15842_v41  ;;  %v15843_v49 = vunpack.i.l.bf16 %v15842_v41 }
  0xbe   : > { %14014 = vmatmul.mubr.msk.f32.gmra.mrb[10].mxu0 %vm1428_vm0, %v17702_v5  ;;  %15062 = vmatprep.subr.bf16.mxu0 %v15061_v0 }
  0xbf   : > { %v908_v39 = vsel %vm896_vm2, %v15838_v20, %v15828_v4  ;;  %v923_v7 = vsel %vm896_vm2, %v15839_v38, %v15833_v56  ;;  %v902_v62 = vsel %vm896_vm2, %v15759_v15, %v15843_v49  ;;  %v917_v55 = vsel %vm896_vm2, %v15764_v18, %v15844_v23  ;;  %2585 = vmatprep.mubr.f32.mxu0 %v22170_v26  ;;  %v3667_v18 = vld [vmem:[%s22099_s2 + $0x10] sm:$0xff] }
  0xc0   : > { %v17820_v48 = vpop.permute.xlu0 %15846  ;;  %v17822_v2 = vpop.permute.xlu1 %15851  ;;  %14007 = vmatmul.mubr.msk.f32.vlgmr.msra.gmra.mrb[4].mxu1 %vm1428_vm0, %v17625_v52  ;;  %v903_v10 = vsel %vm896_vm2, %v15843_v49, %v15798_v30  ;;  %v918_v40 = vsel %vm896_vm2, %v15844_v23, %v15799_v14  ;;  %v15063_v44 = vpack.c.bf16 %v923_v7, %v908_v39  ;;  %v15039_v15 = vpack.c.bf16 %v917_v55, %v902_v62 }
  0xc1   : > { %v15849_v12 = vunpack.i.h.bf16 %v17820_v48  ;;  %v15848_v47 = vunpack.i.l.bf16 %v17820_v48  ;;  %v15854_v30 = vunpack.i.h.bf16 %v17822_v2  ;;  %v15853_v13 = vunpack.i.l.bf16 %v17822_v2  ;;  %2324 = vmatprep.mubr.f32.mxu1 %v22170_v26  ;;  %3681 = vperm.xlu1 %16026, %v3667_v18  }
  0xc2   : > { %v15037_v14 = vpack.c.bf16 %v918_v40, %v903_v10  ;;  %14019 = vmatmul.mubr.msk.f32.vlgmr.msra.gmra.mrb[12].mxu0 %vm1428_vm0, %v17625_v52 }
  0xc3   : > { %15064 = vmatpush1.bf16.msra.mxu0 %v15063_v44  ;;  %2591 = vmatprep.mubr.f32.mxu0 %v22170_v26  ;;  %v939_v60 = vsel %vm896_vm2, %v15848_v47, %v15849_v12  ;;  %v954_v31 = vsel %vm896_vm2, %v15853_v13, %v15854_v30 }
  0xc4   : > { %15038 = vmatprep.subr.bf16.mxu1 %v15037_v14  ;;  %v17852_v9 = vpop.permute.xlu0 %15856  ;;  %v15862_v4 = vpop.permute.xlu1 %15861  ;;  %14008 = vmatmul.mubr.msk.f32.gmra.mrb[6].mxu1 %vm1428_vm0, %v17646_v22  ;;  %v15065_v56 = vpack.c.bf16 %v954_v31, %v939_v60 }
  0xc5   : > { %15040 = vmatpush1.bf16.msra.mxu1 %v15039_v15  ;;  %v15859_v32 = vunpack.i.h.bf16 %v17852_v9  ;;  %v15858_v24 = vunpack.i.l.bf16 %v17852_v9  ;;  %v15864_v25 = vunpack.i.h.bf16 %v15862_v4  ;;  %v15863_v57 = vunpack.i.l.bf16 %v15862_v4  ;;  %2330 = vmatprep.mubr.f32.mxu1 %v22170_v26 }
  0xc6   : > { %14020 = vmatmul.mubr.msk.f32.gmra.mrb[14].mxu0 %vm1428_vm0, %v17646_v22  ;;  %15066 = vmatprep.subr.bf16.mxu0 %v15065_v56 }
  0xc7   : > { %v938_v41 = vsel %vm896_vm2, %v15858_v24, %v15848_v47  ;;  %v953_v0 = vsel %vm896_vm2, %v15859_v32, %v15853_v13  ;;  %v947_v23 = vsel %vm896_vm2, %v15779_v21, %v15864_v25  ;;  %v932_v49 = vsel %vm896_vm2, %v15774_v50, %v15863_v57  ;;  %2597 = vmatprep.mubr.f32.mxu0 %v22170_v26 }
  0xc8   : > { %v17874_v39 = vpop.permute.xlu0 %15866  ;;  %v17876_v7 = vpop.permute.xlu1 %15871  ;;  %14009 = vmatmul.mubr.msk.f32.gmra.mrb[8].mxu1 %vm1428_vm0, %v17674_v28  ;;  %v933_v62 = vsel %vm896_vm2, %v15863_v57, %v15818_v27  ;;  %v948_v51 = vsel %vm896_vm2, %v15864_v25, %v15819_v46  ;;  %v15067_v36 = vpack.c.bf16 %v953_v0, %v938_v41  ;;  %v15043_v21 = vpack.c.bf16 %v947_v23, %v932_v49 }
  0xc9   : > { %v15869_v50 = vunpack.i.h.bf16 %v17874_v39  ;;  %v15868_v55 = vunpack.i.l.bf16 %v17874_v39  ;;  %v15874_v10 = vunpack.i.h.bf16 %v17876_v7  ;;  %v15873_v40 = vunpack.i.l.bf16 %v17876_v7  ;;  %2336 = vmatprep.mubr.f32.mxu1 %v22170_v26 }
  0xca   : > { %v15041_v44 = vpack.c.bf16 %v948_v51, %v933_v62  ;;  %14021 = vmatmul.mubr.msk.f32.gmra.mrb[16].mxu0 %vm1428_vm0, %v17674_v28 }
  0xcb   : > { %15068 = vmatpush1.bf16.msra.mxu0 %v15067_v36  ;;  %2603 = vmatprep.mubr.f32.mxu0 %v22170_v26  ;;  %v1219_v42 = vsel %vm1217_vm3, %v15868_v55, %v15869_v50  ;;  %v1234_v46 = vsel %vm1217_vm3, %v15873_v40, %v15874_v10 }
  0xcc   : > { %15042 = vmatprep.subr.bf16.mxu1 %v15041_v44  ;;  %v17900_v27 = vpop.permute.xlu0 %1089  ;;  %v17902_v15 = vpop.permute.xlu1 %1121  ;;  %14010 = vmatmul.mubr.msk.f32.gmra.mrb[10].mxu1 %vm1428_vm0, %v17702_v5  ;;  %v15077_v18 = vpack.c.bf16 %v1234_v46, %v1219_v42 }
  0xcd   : > { %15044 = vmatpush1.bf16.msra.mxu1 %v15043_v21  ;;  %2496 = vmatprep.mubr.f32.mxu1 %v22170_v26  ;;  %v1218_v11 = vsel %vm1217_vm3, %v17900_v27, %v15868_v55  ;;  %v1233_v47 = vsel %vm1217_vm3, %v17902_v15, %v15873_v40 }
  0xce   : > { %14022 = vmatmul.mubr.msk.f32.gmra.mrb[18].mxu0 %vm1428_vm0, %v17702_v5  ;;  %15078 = vmatprep.subr.bf16.mxu0 %v15077_v18  ;;  %v15079_v60 = vpack.c.bf16 %v1233_v47, %v1218_v11 }
  0xcf   : > { %2763 = vmatprep.mubr.f32.mxu0 %v22170_v26 }
  0xd0   : > { %v15877_v13 = vpop.permute.xlu0 %15876  ;;  %v17914_v14 = vpop.permute.xlu1 %15881  ;;  %14015 = vmatmul.mubr.msk.f32.vlgmr.msra.gmra.mrb[12].mxu1 %vm1428_vm0, %v17625_v52 }
  0xd1   : > { %v15879_v31 = vunpack.i.h.bf16 %v15877_v13  ;;  %v15878_v4 = vunpack.i.l.bf16 %v15877_v13  ;;  %2502 = vmatprep.mubr.f32.mxu1 %v22170_v26  ;;  %v15884_v56 = vunpack.i.h.bf16 %v17914_v14  ;;  %v15883_v41 = vunpack.i.l.bf16 %v17914_v14 }
  0xd2   : > { %14027 = vmatmul.mubr.msk.f32.vlgmr.msra.gmra.mrb[20].mxu0 %vm1428_vm0, %v17625_v52 }
  0xd3   : > { %v906_v25 = vsel %vm896_vm2, %v15789_v1, %v15878_v4  ;;  %v921_v57 = vsel %vm896_vm2, %v15794_v61, %v15879_v31  ;;  %15080 = vmatpush1.bf16.msra.mxu0 %v15079_v60  ;;  %2769 = vmatprep.mubr.f32.mxu0 %v22170_v26  ;;  %v907_v0 = vsel %vm896_vm2, %v15878_v4, %v15838_v20 }
  0xd4   : > { %v17933_v23 = vpop.permute.xlu0 %15886  ;;  %v17935_v49 = vpop.permute.xlu1 %1153  ;;  %14016 = vmatmul.mubr.msk.f32.gmra.mrb[14].mxu1 %vm1428_vm0, %v17646_v22  ;;  %v922_v63 = vsel %vm896_vm2, %v15879_v31, %v15839_v38  ;;  %v15055_v8 = vpack.c.bf16 %v921_v57, %v906_v25  ;;  %v1249_v58 = vsel %vm1217_vm3, %v15883_v41, %v15884_v56 }
  0xd5   : > { %v15889_v1 = vunpack.i.h.bf16 %v17933_v23  ;;  %v15888_v61 = vunpack.i.l.bf16 %v17933_v23  ;;  %v15053_v62 = vpack.c.bf16 %v922_v63, %v907_v0  ;;  %2508 = vmatprep.mubr.f32.mxu1 %v22170_v26  ;;  %v1248_v21 = vsel %vm1217_vm3, %v17935_v49, %v15883_v41 }
  0xd6   : > { %14028 = vmatmul.mubr.msk.f32.gmra.mrb[22].mxu0 %vm1428_vm0, %v17646_v22 }
  0xd7   : > { %15054 = vmatprep.subr.bf16.mxu1 %v15053_v62  ;;  %2775 = vmatprep.mubr.f32.mxu0 %v22170_v26  ;;  %v1264_v38 = vsel %vm1217_vm3, %v15888_v61, %v15889_v1  ;;  %v18020_v62 = vld [vmem:[%s22098_s1 + $0x48] sm:$0xff] }
  0xd8   : > { %15056 = vmatpush1.bf16.msra.mxu1 %v15055_v8  ;;  %v17954_v20 = vpop.permute.xlu0 %1185  ;;  %v15892_v51 = vpop.permute.xlu1 %15891  ;;  %v15081_v36 = vpack.c.bf16 %v1264_v38, %v1249_v58 }
  0xd9   : > { %v1263_v55 = vsel %vm1217_vm3, %v17954_v20, %v15888_v61  ;;  %v15894_v40 = vunpack.i.h.bf16 %v15892_v51  ;;  %v15893_v44 = vunpack.i.l.bf16 %v15892_v51  ;;  %14017 = vmatmul.mubr.msk.f32.gmra.mrb[16].mxu1 %vm1428_vm0, %v17674_v28  ;;  %v18044_v51 = vld [vmem:[%s22098_s1 + $0x50] sm:$0xff] }
  0xda   : > { %v15083_v42 = vpack.c.bf16 %v1263_v55, %v1248_v21  ;;  %14029 = vmatmul.mubr.msk.f32.gmra.mrb[24].mxu0 %vm1428_vm0, %v17674_v28  ;;  %15082 = vmatprep.subr.bf16.mxu0 %v15081_v36 }
  0xdb   : > { %v936_v46 = vsel %vm896_vm2, %v15809_v43, %v15893_v44  ;;  %v951_v18 = vsel %vm896_vm2, %v15814_v33, %v15894_v40  ;;  %2514 = vmatprep.mubr.f32.mxu1 %v22170_v26  ;;  %2781 = vmatprep.mubr.f32.mxu0 %v22170_v26  ;;  %v937_v11 = vsel %vm896_vm2, %v15893_v44, %v15858_v24  ;;  %v17993_v24 = vld [vmem:[%s22098_s1 + $0x40] sm:$0xff]  ;;  %v18061_v44 = vld [vmem:[%s22098_s1 + $0x58] sm:$0xff] }
  0xdc   : > { %v15897_v47 = vpop.permute.xlu0 %15896  ;;  %v15902_v13 = vpop.permute.xlu1 %15901  ;;  %15084 = vmatpush1.bf16.msra.mxu0 %v15083_v42  ;;  %v952_v34 = vsel %vm896_vm2, %v15894_v40, %v15859_v32  ;;  %v15059_v33 = vpack.c.bf16 %v951_v18, %v936_v46 }
  0xdd   : > { %v15899_v43 = vunpack.i.h.bf16 %v15897_v47  ;;  %v15898_v60 = vunpack.i.l.bf16 %v15897_v47  ;;  %v15903_v16 = vunpack.i.l.bf16 %v15902_v13  ;;  %14018 = vmatmul.mubr.msk.f32.gmra.mrb[18].mxu1 %vm1428_vm0, %v17702_v5  ;;  %v15904_v31 = vunpack.i.h.bf16 %v15902_v13 }
  0xde   : > { %v15057_v4 = vpack.c.bf16 %v952_v34, %v937_v11  ;;  %14030 = vmatmul.mubr.msk.f32.gmra.mrb[26].mxu0 %vm1428_vm0, %v17702_v5  ;;  %2674 = vmatprep.mubr.f32.mxu1 %v22170_v26 }
  0xdf   : > { %v910_v9 = vsel %vm896_vm2, %v15829_v6, %v15898_v60  ;;  %v925_v32 = vsel %vm896_vm2, %v15834_v35, %v15899_v43  ;;  %2953 = vmatprep.mubr.f32.mxu0 %v22170_v26  ;;  %v911_v45 = vsel %vm896_vm2, %v15898_v60, %v17544_v29  ;;  %v926_v17 = vsel %vm896_vm2, %v15899_v43, %v17551_v37 }
  0xe0   : > { %15058 = vmatprep.subr.bf16.mxu1 %v15057_v4  ;;  %v17995_v25 = vpop.permute.xlu0 %15906  ;;  %v17997_v57 = vpop.permute.xlu1 %15911  ;;  %v15071_v6 = vpack.c.bf16 %v925_v32, %v910_v9  ;;  %v941_v63 = vsel %vm896_vm2, %v15903_v16, %v17563_v53  ;;  %v15069_v61 = vpack.c.bf16 %v926_v17, %v911_v45  ;;  %v956_v29 = vsel %vm896_vm2, %v15904_v31, %v17586_v19 }
  0xe1   : > { %15060 = vmatpush1.bf16.msra.mxu1 %v15059_v33  ;;  %v15909_v35 = vunpack.i.h.bf16 %v17995_v25  ;;  %v15908_v41 = vunpack.i.l.bf16 %v17995_v25  ;;  %v15914_v0 = vunpack.i.h.bf16 %v17997_v57  ;;  %v15913_v8 = vunpack.i.l.bf16 %v17997_v57 }
  0xe2   : > { %14035 = vmatmul.mubr.msk.f32.vlgmr.msra.gmra.mrb[0].mxu0 %vm1428_vm0, %v17993_v24  ;;  %v940_v37 = vsel %vm896_vm2, %v15849_v12, %v15903_v16  ;;  %v955_v58 = vsel %vm896_vm2, %v15854_v30, %v15904_v31  ;;  %15070 = vmatprep.subr.bf16.mxu1 %v15069_v61  ;;  %v15073_v12 = vpack.c.bf16 %v956_v29, %v941_v63 }
  0xe3   : > { %2959 = vmatprep.mubr.f32.mxu0 %v22170_v26  ;;  %v1221_v53 = vsel %vm1217_vm3, %v15908_v41, %v15909_v35  ;;  %v1236_v38 = vsel %vm1217_vm3, %v15913_v8, %v15914_v0  ;;  %v15075_v30 = vpack.c.bf16 %v955_v58, %v940_v37  ;;  %v1220_v33 = vsel %vm1217_vm3, %v15869_v50, %v15908_v41 }
  0xe4   : > { %14023 = vmatmul.mubr.msk.f32.vlgmr.msra.gmra.mrb[20].mxu1 %vm1428_vm0, %v17625_v52  ;;  %v18030_v19 = vpop.permute.xlu0 %15916  ;;  %v18032_v48 = vpop.permute.xlu1 %15921  ;;  %v15085_v2 = vpack.c.bf16 %v1236_v38, %v1221_v53  ;;  %v1235_v31 = vsel %vm1217_vm3, %v15874_v10, %v15913_v8 }
  0xe5   : > { %15072 = vmatpush1.bf16.msra.mxu1 %v15071_v6  ;;  %2680 = vmatprep.mubr.f32.mxu1 %v22170_v26  ;;  %v15919_v55 = vunpack.i.h.bf16 %v18030_v19  ;;  %v15924_v40 = vunpack.i.h.bf16 %v18032_v48  ;;  %v15918_v42 = vunpack.i.l.bf16 %v18030_v19  ;;  %v15923_v46 = vunpack.i.l.bf16 %v18032_v48 }
  0xe6   : > { %15074 = vmatprep.subr.bf16.mxu1 %v15073_v12  ;;  %14036 = vmatmul.mubr.msk.f32.gmra.mrb[2].mxu0 %vm1428_vm0, %v18020_v62  ;;  %v15087_v45 = vpack.c.bf16 %v1235_v31, %v1220_v33 }
  0xe7   : > { %2965 = vmatprep.mubr.f32.mxu0 %v22170_v26  ;;  %v1251_v47 = vsel %vm1217_vm3, %v15918_v42, %v15919_v55  ;;  %v1266_v13 = vsel %vm1217_vm3, %v15923_v46, %v15924_v40  ;;  %v1250_v39 = vsel %vm1217_vm3, %v15884_v56, %v15918_v42  ;;  %v1265_v10 = vsel %vm1217_vm3, %v15889_v1, %v15923_v46 }
  0xe8   : > { %14024 = vmatmul.mubr.msk.f32.gmra.mrb[22].mxu1 %vm1428_vm0, %v17646_v22  ;;  %v18048_v36 = vpop.permute.xlu0 %15926  ;;  %v18050_v21 = vpop.permute.xlu1 %15931  ;;  %v15089_v32 = vpack.c.bf16 %v1266_v13, %v1251_v47  ;;  %v15091_v53 = vpack.c.bf16 %v1265_v10, %v1250_v39 }
  0xe9   : > { %15076 = vmatpush1.bf16.msra.mxu1 %v15075_v30  ;;  %2686 = vmatprep.mubr.f32.mxu1 %v22170_v26  ;;  %v15929_v34 = vunpack.i.h.bf16 %v18048_v36  ;;  %v15928_v43 = vunpack.i.l.bf16 %v18048_v36  ;;  %v15934_v60 = vunpack.i.h.bf16 %v18050_v21  ;;  %v15933_v16 = vunpack.i.l.bf16 %v18050_v21 }
  0xea   : > { %14037 = vmatmul.mubr.msk.f32.gmra.mrb[28].mxu0 %vm1428_vm0, %v18044_v51  ;;  %15086 = vmatprep.subr.bf16.mxu1 %v15085_v2 }
  0xeb   : > { %2971 = vmatprep.mubr.f32.mxu0 %v22170_v26  ;;  %v1225_v7 = vsel %vm1217_vm3, %v15928_v43, %v15929_v34  ;;  %v1240_v50 = vsel %vm1217_vm3, %v15933_v16, %v15934_v60 }
  0xec   : > { %14025 = vmatmul.mubr.msk.f32.gmra.mrb[24].mxu1 %vm1428_vm0, %v17674_v28  ;;  %v18067_v18 = vpop.permute.xlu0 %15936  ;;  %v18069_v11 = vpop.permute.xlu1 %15941  ;;  %v15101_v29 = vpack.c.bf16 %v1240_v50, %v1225_v7 }
  0xed   : > { %2692 = vmatprep.mubr.f32.mxu1 %v22170_v26  ;;  %v15939_v17 = vunpack.i.h.bf16 %v18067_v18  ;;  %v15938_v14 = vunpack.i.l.bf16 %v18067_v18  ;;  %v15944_v46 = vunpack.i.h.bf16 %v18069_v11  ;;  %v15943_v18 = vunpack.i.l.bf16 %v18069_v11 }
  0xee   : > { %14038 = vmatmul.mubr.msk.f32.gmra.mrb[30].mxu0 %vm1428_vm0, %v18061_v44 }
  0xef   : > { %3131 = vmatprep.mubr.f32.mxu0 %v22170_v26  ;;  %v1224_v31 = vsel %vm1217_vm3, %v15938_v14, %v15928_v43  ;;  %v1255_v7 = vsel %vm1217_vm3, %v15943_v18, %v15944_v46 }
  0xf0   : > { %14026 = vmatmul.mubr.msk.f32.gmra.mrb[26].mxu1 %vm1428_vm0, %v17702_v5  ;;  %v18089_v4 = vpop.permute.xlu0 %15946  ;;  %v18091_v9 = vpop.permute.xlu1 %15951 }
  0xf1   : > { %2852 = vmatprep.mubr.f32.mxu1 %v22170_v26  ;;  %v15953_v56 = vunpack.i.l.bf16 %v18091_v9  ;;  %v15954_v23 = vunpack.i.h.bf16 %v18091_v9  ;;  %v15949_v47 = vunpack.i.h.bf16 %v18089_v4  ;;  %v15948_v13 = vunpack.i.l.bf16 %v18089_v4 }
  0xf2   : > { %v1239_v9 = vsel %vm1217_vm3, %v15939_v17, %v15933_v16 }
  0xf3   : > { %v1270_v43 = vsel %vm1217_vm3, %v15948_v13, %v15949_v47  ;;  %v1269_v16 = vsel %vm1217_vm3, %v15954_v23, %v15948_v13  ;;  %v1254_v50 = vsel %vm1217_vm3, %v15953_v56, %v15943_v18 }
  0xf4   : > { %14031 = vmatmul.mubr.msk.f32.vlgmr.msra.gmra.mrb[28].mxu1 %vm1428_vm0, %v17625_v52  ;;  %v15957_v6 = vpop.permute.xlu0 %15956  ;;  %v15962_v41 = vpop.permute.xlu1 %15961 }
  0xf5   : > { %15088 = vmatpush1.bf16.msra.mxu1 %v15087_v45  ;;  %v15959_v63 = vunpack.i.h.bf16 %v15957_v6  ;;  %v15958_v8 = vunpack.i.l.bf16 %v15957_v6  ;;  %v15963_v61 = vunpack.i.l.bf16 %v15962_v41  ;;  %2858 = vmatprep.mubr.f32.mxu1 %v22170_v26  ;;  %v15964_v1 = vunpack.i.h.bf16 %v15962_v41 }
  0xf6   : > { %15090 = vmatprep.subr.bf16.mxu1 %v15089_v32 }
  0xf7   : > { %v1222_v37 = vsel %vm1217_vm3, %v15909_v35, %v15958_v8  ;;  %v1237_v52 = vsel %vm1217_vm3, %v15914_v0, %v15959_v63  ;;  %v1223_v48 = vsel %vm1217_vm3, %v15958_v8, %v15938_v14  ;;  %v1238_v12 = vsel %vm1217_vm3, %v15959_v63, %v15939_v17  ;;  %v18131_v35 = vpop.f32.mrb[0].mxu1 }
  0xf8   : > { %14032 = vmatmul.mubr.msk.f32.gmra.mrb[30].mxu1 %vm1428_vm0, %v17646_v22  ;;  %v18123_v58 = vpop.permute.xlu0 %15966  ;;  %v18125_v19 = vpop.permute.xlu1 %15971  ;;  %v1253_v25 = vsel %vm1217_vm3, %v15963_v61, %v15953_v56  ;;  %v15095_v57 = vpack.c.bf16 %v1237_v52, %v1222_v37  ;;  %v1252_v0 = vsel %vm1217_vm3, %v15919_v55, %v15963_v61  ;;  %v1267_v22 = vsel %vm1217_vm3, %v15924_v40, %v15964_v1 }
  0xf9   : > { %15092 = vmatpush1.bf16.msra.mxu1 %v15091_v53  ;;  %2864 = vmatprep.mubr.f32.mxu1 %v22170_v26  ;;  %v15093_v38 = vpack.c.bf16 %v1238_v12, %v1223_v48  ;;  %v1268_v2 = vsel %vm1217_vm3, %v15964_v1, %v15954_v23  ;;  %v18136_v30 = vpop.f32.mrb[1].mxu1  ;;  %v15099_v33 = vpack.c.bf16 %v1267_v22, %v1252_v0  ;;  %v15969_v10 = vunpack.i.h.bf16 %v18123_v58 }
  0xfa   : > { %15102 = vmatprep.subr.bf16.mxu1 %v15101_v29  ;;  %v15097_v42 = vpack.c.bf16 %v1268_v2, %v1253_v25  ;;  %v15968_v17 = vunpack.i.l.bf16 %v18123_v58  ;;  %v15974_v14 = vunpack.i.h.bf16 %v18125_v19  ;;  %v15973_v6 = vunpack.i.l.bf16 %v18125_v19 }
  0xfb   : > { %15094 = vmatprep.subr.bf16.mxu0 %v15093_v38  ;;  %v15105_v8 = vpack.c.bf16 %v1270_v43, %v1255_v7  ;;  %v15107_v29 = vpack.c.bf16 %v1269_v16, %v1254_v50  ;;  %v603_v7 = vadd.s32 1920, %v17546_v59 }
  0xfc   : > { %14033 = vmatmul.mubr.msk.f32.gmra.mrb[32].mxu1 %vm1428_vm0, %v17674_v28  ;;  %v18144_v55 = vpop.permute.xlu0 %15976  ;;  %v18146_v40 = vpop.permute.xlu1 %15981  ;;  %15096 = vmatpush1.bf16.msra.mxu0 %v15095_v57  ;;  %v1229_v53 = vsel %vm1217_vm3, %v15968_v17, %v15969_v10  ;;  %v1244_v48 = vsel %vm1217_vm3, %v15973_v6, %v15974_v14 }
  0xfd   : > { %2870 = vmatprep.mubr.f32.mxu1 %v22170_v26  ;;  %15098 = vmatprep.subr.bf16.mxu0 %v15097_v42  ;;  %v18153_v32 = vpop.f32.mrb[2].mxu1  ;;  %v15979_v41 = vunpack.i.h.bf16 %v18144_v55  ;;  %v15978_v63 = vunpack.i.l.bf16 %v18144_v55  ;;  %v15984_v42 = vunpack.i.h.bf16 %v18146_v40  ;;  %v15983_v18 = vunpack.i.l.bf16 %v18146_v40 }
  0xfe   : > { %v18155_v39 = vpop.f32.mrb[3].mxu1  ;;  %vm667_vm4 = vcmp.ne.s32.totalorder %v603_v7, 2047 }
  0xff   : > { %v1243_v16 = vsel %vm1217_vm3, %v15979_v41, %v15973_v6  ;;  %v1259_v50 = vsel %vm1217_vm3, %v15983_v18, %v15984_v42 }
 0x100   : > { %14034 = vmatmul.mubr.msk.f32.gmra.mrb[34].mxu1 %vm1428_vm0, %v17702_v5  ;;  %v18159_v28 = vpop.permute.xlu0 %15986  ;;  %v18161_v45 = vpop.permute.xlu1 %15991  ;;  %15100 = vmatpush1.bf16.msra.mxu0 %v15099_v33  ;;  %v15103_v5 = vpack.c.bf16 %v1239_v9, %v1224_v31 }
 0x101   : > { %3042 = vmatprep.mubr.f32.mxu1 %v22170_v26  ;;  %v15994_v37 = vunpack.i.h.bf16 %v18161_v45  ;;  %v15993_v52 = vunpack.i.l.bf16 %v18161_v45  ;;  %v15989_v13 = vunpack.i.h.bf16 %v18159_v28  ;;  %v15988_v55 = vunpack.i.l.bf16 %v18159_v28 }
 0x103   : > { %14043 = vmatmul.mubr.msk.f32.vlgmr.msra.gmra.mrb[4].mxu0 %vm1428_vm0, %v17993_v24 }
 0x104   : > { %14039 = vmatmul.mubr.msk.f32.vlgmr.msra.gmra.mrb[4].mxu1 %vm1428_vm0, %v17993_v24  ;;  %v15997_v56 = vpop.permute.xlu0 %15996  ;;  %v18182_v61 = vpop.permute.xlu1 %1119  ;;  %3137 = vmatprep.mubr.f32.mxu0 %v22170_v26 }
 0x105   : > { %v15999_v23 = vunpack.i.h.bf16 %v15997_v56  ;;  %v15998_v1 = vunpack.i.l.bf16 %v15997_v56  ;;  %3048 = vmatprep.mubr.f32.mxu1 %v22170_v26  ;;  %15104 = vmatpush1.bf16.msra.mxu1 %v15103_v5  ;;  %v1274_v5 = vsel %vm1217_vm3, %v15988_v55, %v15989_v13 }
 0x106   : > { %15106 = vmatprep.subr.bf16.mxu1 %v15105_v8 }
 0x107   : > { %v1226_v12 = vsel %vm1217_vm3, %v15929_v34, %v15998_v1  ;;  %v1241_v25 = vsel %vm1217_vm3, %v15934_v60, %v15999_v23  ;;  %v1227_v57 = vsel %vm1217_vm3, %v15998_v1, %v15978_v63  ;;  %v1242_v0 = vsel %vm1217_vm3, %v15999_v23, %v15979_v41  ;;  %14044 = vmatmul.mubr.msk.f32.gmra.mrb[6].mxu0 %vm1428_vm0, %v18020_v62 }
 0x108   : > { %14040 = vmatmul.mubr.msk.f32.gmra.mrb[6].mxu1 %vm1428_vm0, %v18020_v62  ;;  %v18206_v22 = vpop.permute.xlu0 %1151  ;;  %v16002_v36 = vpop.permute.xlu1 %16001  ;;  %v15109_v38 = vpack.c.bf16 %v1242_v0, %v1227_v57  ;;  %v15111_v34 = vpack.c.bf16 %v1241_v25, %v1226_v12  ;;  %3143 = vmatprep.mubr.f32.mxu0 %v22170_v26  ;;  %v15117_v60 = vpack.c.bf16 %v1244_v48, %v1229_v53  ;;  %v18257_v1 = vsel %vm667_vm4, 1.0, %v22170_v26 }
 0x109   : > { %v16004_v2 = vunpack.i.h.bf16 %v16002_v36  ;;  %v16003_v21 = vunpack.i.l.bf16 %v16002_v36  ;;  %3054 = vmatprep.mubr.f32.mxu1 %v22170_v26  ;;  %15108 = vmatpush1.bf16.msra.mxu1 %v15107_v29  ;;  %v1273_v41 = vsel %vm1217_vm3, %v15994_v37, %v15988_v55  ;;  %v1347_v8 = vsel %vm1217_vm3, %v18206_v22, %v17902_v15  ;;  %22202 = vst [vmem:[#allocation6_spill] sm:$0xff] %v18257_v1 }
 0x10a   : > { %15110 = vmatprep.subr.bf16.mxu0 %v15109_v38  ;;  %15118 = vmatprep.subr.bf16.mxu1 %v15117_v60  ;;  %v15121_v23 = vpack.c.bf16 %v1274_v5, %v1259_v50  ;;  %v1346_v29 = vsel %vm1217_vm3, %v18182_v61, %v17900_v27  ;;  %v1381_v15 = vmul.f32 %v18257_v1, %v1347_v8 }
 0x10b   : > { %v1271_v33 = vsel %vm1217_vm3, %v15949_v47, %v16004_v2  ;;  %v1256_v31 = vsel %vm1217_vm3, %v15944_v46, %v16003_v21  ;;  %15112 = vmatpush1.bf16.msra.mxu0 %v15111_v34  ;;  %v1257_v9 = vsel %vm1217_vm3, %v16003_v21, %v15993_v52  ;;  %v1272_v45 = vsel %vm1217_vm3, %v16004_v2, %v15994_v37 }
 0x10c   : > { %14041 = vmatmul.mubr.msk.f32.gmra.mrb[8].mxu1 %vm1428_vm0, %v18044_v51  ;;  %14045 = vmatmul.mubr.msk.f32.gmra.mrb[8].mxu0 %vm1428_vm0, %v18044_v51  ;;  %v18227_v4 = vpop.permute.xlu0 %16006  ;;  %v18229_v47 = vpop.permute.xlu1 %1183  ;;  %v15113_v11 = vpack.c.bf16 %v1272_v45, %v1257_v9  ;;  %v15115_v43 = vpack.c.bf16 %v1271_v33, %v1256_v31  ;;  %v1228_v46 = vsel %vm1217_vm3, %v15978_v63, %v15968_v17 }
 0x10d   : > { %3060 = vmatprep.mubr.f32.mxu1 %v22170_v26  ;;  %3149 = vmatprep.mubr.f32.mxu0 %v22170_v26  ;;  %v15119_v6 = vpack.c.bf16 %v1243_v16, %v1228_v46  ;;  %v1258_v63 = vsel %vm1217_vm3, %v15993_v52, %v15983_v18  ;;  %v16009_v37 = vunpack.i.h.bf16 %v18227_v4  ;;  %v16008_v52 = vunpack.i.l.bf16 %v18227_v4 }
 0x10e   : > { %15114 = vmatprep.subr.bf16.mxu0 %v15113_v11  ;;  %v15123_v48 = vpack.c.bf16 %v1273_v41, %v1258_v63  ;;  %v1365_v36 = vmul.f32 %v18257_v1, %v1346_v29 }
 0x10f   : > { %15116 = vmatpush1.bf16.msra.mxu0 %v15115_v43  ;;  %v1247_v28 = vsel %vm1217_vm3, %v16009_v37, %v18206_v22  ;;  %v1232_v40 = vsel %vm1217_vm3, %v16008_v52, %v18182_v61 }
 0x110   : > { %14042 = vmatmul.mubr.msk.f32.gmra.mrb[10].mxu1 %vm1428_vm0, %v18061_v44  ;;  %14046 = vmatmul.mubr.msk.f32.gmra.mrb[10].mxu0 %vm1428_vm0, %v18061_v44  ;;  %v18245_v17 = vpop.permute.xlu0 %1215  ;;  %v15133_v55 = vpack.c.bf16 %v1381_v15, %v1365_v36 }
 0x111   : > { %v18252_v56 = vpop.permute.xlu1 %16011  ;;  %3220 = vmatprep.mubr.f32.mxu1 %v22170_v26  ;;  %3309 = vmatprep.mubr.f32.mxu0 %v22170_v26  ;;  %v1349_v45 = vsel %vm1217_vm3, %v18245_v17, %v17954_v20  ;;  %v15135_v20 = vpack.c.bf16 %v1247_v28, %v1232_v40 }
 0x112   : > { %v16014_v12 = vunpack.i.h.bf16 %v18252_v56  ;;  %v16013_v25 = vunpack.i.l.bf16 %v18252_v56  ;;  %v1413_v7 = vmul.f32 %v18257_v1, %v1349_v45 }
 0x114   : > { %14047 = vmatmul.mubr.msk.f32.vlgmr.msra.gmra.mrb[12].mxu1 %vm1428_vm0, %v17993_v24  ;;  %14051 = vmatmul.mubr.msk.f32.vlgmr.msra.gmra.mrb[12].mxu0 %vm1428_vm0, %v17993_v24  ;;  %v16017_v53 = vpop.permute.xlu0 %16016  ;;  %v1262_v22 = vsel %vm1217_vm3, %v16013_v25, %v18229_v47 }
 0x115   : > { %15120 = vmatpush1.bf16.msra.mxu1 %v15119_v6  ;;  %v16019_v27 = vunpack.i.h.bf16 %v16017_v53  ;;  %v16018_v57 = vunpack.i.l.bf16 %v16017_v53  ;;  %v16022_v0 = vpop.permute.xlu1 %16021  ;;  %3226 = vmatprep.mubr.f32.mxu1 %v22170_v26 }
 0x116   : > { %v16024_v38 = vunpack.i.h.bf16 %v16022_v0  ;;  %v16023_v34 = vunpack.i.l.bf16 %v16022_v0  ;;  %3315 = vmatprep.mubr.f32.mxu0 %v22170_v26  ;;  %15122 = vmatprep.subr.bf16.mxu1 %v15121_v23 }
 0x117   : > { %v1230_v2 = vsel %vm1217_vm3, %v15969_v10, %v16018_v57  ;;  %v1245_v21 = vsel %vm1217_vm3, %v15974_v14, %v16019_v27  ;;  %v1231_v60 = vsel %vm1217_vm3, %v16018_v57, %v16008_v52  ;;  %v1246_v18 = vsel %vm1217_vm3, %v16019_v27, %v16009_v37 }
 0x118   : > { %14048 = vmatmul.mubr.msk.f32.gmra.mrb[14].mxu1 %vm1428_vm0, %v18020_v62  ;;  %14052 = vmatmul.mubr.msk.f32.gmra.mrb[14].mxu0 %vm1428_vm0, %v18020_v62  ;;  %v15125_v33 = vpack.c.bf16 %v1246_v18, %v1231_v60  ;;  %v15127_v58 = vpack.c.bf16 %v1245_v21, %v1230_v2  ;;  %v1261_v19 = vsel %vm1217_vm3, %v16023_v34, %v16013_v25 }
 0x119   : > { %15124 = vmatpush1.bf16.msra.mxu1 %v15123_v48  ;;  %3232 = vmatprep.mubr.f32.mxu1 %v22170_v26  ;;  %v1276_v10 = vsel %vm1217_vm3, %v16024_v38, %v16014_v12  ;;  %v1275_v31 = vsel %vm1217_vm3, %v15989_v13, %v16024_v38  ;;  %v1260_v9 = vsel %vm1217_vm3, %v15984_v42, %v16023_v34 }
 0x11a   : > { %15134 = vmatprep.subr.bf16.mxu1 %v15133_v55  ;;  %3321 = vmatprep.mubr.f32.mxu0 %v22170_v26  ;;  %v15129_v14 = vpack.c.bf16 %v1276_v10, %v1261_v19  ;;  %v1348_v42 = vsel %vm1217_vm3, %v18229_v47, %v17935_v49  ;;  %v15131_v13 = vpack.c.bf16 %v1275_v31, %v1260_v9  ;;  %v18424_v55 = vld [vmem:[%s22100_s3 + $0x30] sm:$0xff]  }
 0x11b   : > { %15126 = vmatprep.subr.bf16.mxu0 %v15125_v33  ;;  %v1397_v61 = vmul.f32 %v18257_v1, %v1348_v42  ;;  %v1277_v49 = vsel %vm1217_vm3, %v16014_v12, %v18245_v17 }
 0x11c   : > { %14049 = vmatmul.mubr.msk.f32.gmra.mrb[16].mxu1 %vm1428_vm0, %v18044_v51  ;;  %14053 = vmatmul.mubr.msk.f32.gmra.mrb[16].mxu0 %vm1428_vm0, %v18044_v51  ;;  %v15139_v11 = vpack.c.bf16 %v1277_v49, %v1262_v22 }
 0x11d   : > { %15128 = vmatpush1.bf16.msra.mxu0 %v15127_v58  ;;  %3238 = vmatprep.mubr.f32.mxu1 %v22170_v26  ;;  %v15137_v4 = vpack.c.bf16 %v1413_v7, %v1397_v61 }
 0x11e   : > { %3327 = vmatprep.mubr.f32.mxu0 %v22170_v26  ;;  %15130 = vmatprep.subr.bf16.mxu0 %v15129_v14 }
 0x120   : > { %14050 = vmatmul.mubr.msk.f32.gmra.mrb[18].mxu1 %vm1428_vm0, %v18061_v44  ;;  %14054 = vmatmul.mubr.msk.f32.gmra.mrb[18].mxu0 %vm1428_vm0, %v18061_v44 }
 0x121   : > { %15132 = vmatpush1.bf16.msra.mxu0 %v15131_v13  ;;  %3398 = vmatprep.mubr.f32.mxu1 %v22170_v26 }
 0x122   : > { %3487 = vmatprep.mubr.f32.mxu0 %v22170_v26 }
 0x124   : > { %14055 = vmatmul.mubr.msk.f32.vlgmr.msra.gmra.mrb[20].mxu1 %vm1428_vm0, %v17993_v24  ;;  %14059 = vmatmul.mubr.msk.f32.vlgmr.msra.gmra.mrb[20].mxu0 %vm1428_vm0, %v17993_v24 }
 0x125   : > { %15136 = vmatpush1.bf16.msra.mxu1 %v15135_v20  ;;  %3404 = vmatprep.mubr.f32.mxu1 %v22170_v26 }
 0x126   : > { %15138 = vmatprep.subr.bf16.mxu1 %v15137_v4  ;;  %3493 = vmatprep.mubr.f32.mxu0 %v22170_v26 }
 0x128   : > { %14056 = vmatmul.mubr.msk.f32.gmra.mrb[22].mxu1 %vm1428_vm0, %v18020_v62  ;;  %14060 = vmatmul.mubr.msk.f32.gmra.mrb[22].mxu0 %vm1428_vm0, %v18020_v62 }
 0x129   : > { %3410 = vmatprep.mubr.f32.mxu1 %v22170_v26  ;;  %3499 = vmatprep.mubr.f32.mxu0 %v22170_v26 }
 0x12a   : > { %15140 = vmatpush1.bf16.msra.mxu1 %v15139_v11 }
 0x12c   : > { %14057 = vmatmul.mubr.msk.f32.gmra.mrb[24].mxu1 %vm1428_vm0, %v18044_v51  ;;  %14061 = vmatmul.mubr.msk.f32.gmra.mrb[24].mxu0 %vm1428_vm0, %v18044_v51 }
 0x12d   : > { %3416 = vmatprep.mubr.f32.mxu1 %v22170_v26  ;;  %3505 = vmatprep.mubr.f32.mxu0 %v22170_v26 }
 0x130   : > { %14058 = vmatmul.mubr.msk.f32.gmra.mrb[26].mxu1 %vm1428_vm0, %v18061_v44  ;;  %14062 = vmatmul.mubr.msk.f32.gmra.mrb[26].mxu0 %vm1428_vm0, %v18061_v44 }
 0x131   : > { %3576 = vmatprep.mubr.f32.mxu1 %v22170_v26  ;;  %4765 = vmatprep.mubr.bf16.mxu0 %v22128_v3 }
 0x134   : > { %14063 = vmatmul.mubr.msk.f32.vlgmr.msra.gmra.mrb[28].mxu1 %vm1428_vm0, %v17993_v24  ;;  %v18362_v46 = vpop.permute.xlu0 %3671 }
 0x135   : > { %3582 = vmatprep.mubr.f32.mxu1 %v22170_v26 }
 0x138   : > { %14064 = vmatmul.mubr.msk.f32.gmra.mrb[30].mxu1 %vm1428_vm0, %v18020_v62  ;;  %v18360_v24 = vpop.permute.xlu1 %3676  ;;  %v18378_v37 = vpop.permute.xlu0 %3686 }
 0x139   : > { %3588 = vmatprep.mubr.f32.mxu1 %v22170_v26 }
 0x13c   : > { %14065 = vmatmul.mubr.msk.f32.gmra.mrb[32].mxu1 %vm1428_vm0, %v18044_v51 }
 0x13d   : > { %3594 = vmatprep.mubr.f32.mxu1 %v22170_v26 }
 0x140   : > { %14066 = vmatmul.mubr.msk.f32.gmra.mrb[34].mxu1 %vm1428_vm0, %v18061_v44  ;;  %v18380_v52 = vpop.permute.xlu1 %3681 }
 0x141   : > { %4619 = vmatprep.mubr.bf16.mxu1 %v22128_v3 }
 0x1b5   : > { %v2955_v47 = vpop.f32.mrb[0].mxu0 }
 0x1b6   : > { %v2957_v43 = vpop.f32.mrb[1].mxu0  ;;  %v18370_v17 = vadd.f32 %v18362_v46, %v2955_v47 }
 0x1b7   : > { %v3690_v51 = vadd.f32 %v18362_v46, %v2957_v43 }
 0x1b8   : > { %22204 = vst [vmem:[#allocation7_spill] sm:$0xff] %v18370_v17 }
 0x1b9   : > { %v2961_v16 = vpop.f32.mrb[2].mxu0 }
 0x1ba   : > { %v18365_v62 = vadd.f32 %v18360_v24, %v2961_v16  ;;  %v2963_v50 = vpop.f32.mrb[3].mxu0 }
 0x1bb   : > { %v3706_v5 = vadd.f32 %v18360_v24, %v2963_v50 }
 0x1bc   : > { %22203 = vst [vmem:[#allocation8_spill] sm:$0xff] %v18365_v62  ;;  %v4523_v63 = vpack.c.bf16 %v18365_v62, %v18370_v17 }
 0x1bd   : > { %v18372_v44 = vpack.i.bf16 %v3706_v5, %v3690_v51  ;;  %v2967_v6 = vpop.f32.mrb[28].mxu0  ;;  %v4524_v41 = vpack.c.bf16 %v3706_v5, %v3690_v51 }
 0x1be   : > { %v15145_v8 = vadd.f32 %v2967_v6, %v18131_v35  ;;  %v2969_v56 = vpop.f32.mrb[29].mxu0 }
 0x1bf   : > { %v15146_v23 = vadd.f32 %v2969_v56, %v18136_v30  ;;  %4587 = vmatprep.subr.bf16.mxu1 %v4524_v41 }
 0x1c0   : > { %4588 = vmatpush1.bf16.msra.mxu1 %v4523_v63  ;;  %v18390_v30 = vadd.f32 %v15145_v8, %v18380_v52  ;;  %v18476_v63 = vld [vmem:[%s22100_s3 + $0x38] sm:$0xff]  }
 0x1c1   : > { %v2973_v29 = vpop.f32.mrb[30].mxu0  ;;  %v3722_v35 = vadd.f32 %v15146_v23, %v18380_v52 }
 0x1c2   : > { %v15147_v15 = vadd.f32 %v2973_v29, %v18153_v32  ;;  %v2975_v53 = vpop.f32.mrb[31].mxu0  ;;  %22206 = vst [vmem:[#allocation5_spill] sm:$0xff] %v18390_v30  ;;  %v18399_v32 = vld [vmem:[%s22100_s3 + $0x20] sm:$0xff]  }
 0x1c3   : > { %v15148_v48 = vadd.f32 %v2975_v53, %v18155_v39  ;;  %v18407_v39 = vld [vmem:[%s22100_s3 + $0x28] sm:$0xff]  }
 0x1c4   : > { %v18385_v12 = vadd.f32 %v15147_v15, %v18378_v37 }
 0x1c5   : > { %v3738_v25 = vadd.f32 %v15148_v48, %v18378_v37 }
 0x1c6   : > { %22205 = vst [vmem:[#allocation9_spill] sm:$0xff] %v18385_v12  ;;  %v4539_v0 = vpack.c.bf16 %v18385_v12, %v18390_v30 }
 0x1c7   : > { %v4540_v27 = vpack.c.bf16 %v3738_v25, %v3722_v35  ;;  %v18392_v57 = vpack.i.bf16 %v3738_v25, %v3722_v35 }
 0x1c9   : > { %22207 = vst [vmem:[#allocation4_spill] sm:$0xff] %v18392_v57  ;;  %4589 = vmatprep.subr.bf16.mxu1 %v4540_v27 }
 0x1ca   : > { %4590 = vmatpush1.bf16.msra.mxu1 %v4539_v0 }
 0x1cd   : > { %14087 = vmatmul.mubr.msk.bf16.vlgmr.msra.gmra.mrb[36].mxu1 %vm1428_vm0, %v18399_v32 }
 0x1ce   : > { %4629 = vmatprep.mubr.bf16.mxu1 %v22128_v3 }
 0x1d5   : > { %14088 = vmatmul.mubr.msk.bf16.gmra.mrb[40].mxu1 %vm1428_vm0, %v18407_v39 }
 0x1d6   : > { %4639 = vmatprep.mubr.bf16.mxu1 %v22128_v3  ;;  %v3133_v38 = vpop.f32.mrb[4].mxu0 }
 0x1d7   : > { %v3044_v36 = vpop.f32.mrb[4].mxu1  ;;  %v18416_v2 = vadd.f32 %v18362_v46, %v3133_v38  ;;  %v3135_v60 = vpop.f32.mrb[5].mxu0 }
 0x1d8   : > { %v18413_v34 = vadd.f32 %v18362_v46, %v3044_v36  ;;  %v3046_v21 = vpop.f32.mrb[5].mxu1  ;;  %v3694_v28 = vadd.f32 %v18362_v46, %v3135_v60 }
 0x1d9   : > { %v18419_v18 = vadd.f32 %v18362_v46, %v3046_v21 }
 0x1da   : > { %v3139_v19 = vpop.f32.mrb[6].mxu0 }
 0x1db   : > { %v3050_v58 = vpop.f32.mrb[6].mxu1  ;;  %v16027_v10 = vpack.i.bf16 %v18419_v18, %v18413_v34  ;;  %v18434_v31 = vadd.f32 %v18360_v24, %v3139_v19  ;;  %v3141_v45 = vpop.f32.mrb[7].mxu0 }
 0x1dc   : > { %v18431_v14 = vadd.f32 %v18360_v24, %v3050_v58  ;;  %v3052_v9 = vpop.f32.mrb[7].mxu1  ;;  %v3710_v42 = vadd.f32 %v18360_v24, %v3141_v45 }
 0x1dd   : > { %v18438_v40 = vadd.f32 %v18360_v24, %v3052_v9  ;;  %16028 = vrot.lane.b32.xlu1 %v16027_v10, %s16855_s28  ;;  %14089 = vmatmul.mubr.msk.bf16.gmra.mrb[44].mxu1 %vm1428_vm0, %v18424_v55  ;;  %v4527_v20 = vpack.c.bf16 %v18434_v31, %v18416_v2 }
 0x1de   : > { %v4525_v7 = vpack.c.bf16 %v18431_v14, %v18413_v34  ;;  %4649 = vmatprep.mubr.bf16.mxu1 %v22128_v3  ;;  %v18455_v22 = vpack.i.bf16 %v3710_v42, %v3694_v28  ;;  %v4528_v6 = vpack.c.bf16 %v3710_v42, %v3694_v28 }
 0x1df   : > { %v3056_v4 = vpop.f32.mrb[8].mxu1  ;;  %v3145_v11 = vpop.f32.mrb[8].mxu0  ;;  %v16032_v47 = vpack.i.bf16 %v18438_v40, %v18431_v14  ;;  %v4526_v43 = vpack.c.bf16 %v18438_v40, %v18419_v18 }
 0x1e0   : > { %v18462_v16 = vadd.f32 %v18380_v52, %v3056_v4  ;;  %v18465_v50 = vadd.f32 %v18380_v52, %v3145_v11  ;;  %v3058_v51 = vpop.f32.mrb[9].mxu1  ;;  %v3147_v5 = vpop.f32.mrb[9].mxu0  ;;  %4733 = vmatprep.subr.bf16.mxu0 %v4528_v6 }
 0x1e1   : > { %v18468_v41 = vadd.f32 %v18380_v52, %v3058_v51  ;;  %16033 = vrot.lane.b32.xlu0 %v16032_v47, %s16855_s28  ;;  %16038 = vrot.lane.b32.xlu1 %v18372_v44, %s16855_s28  ;;  %v3726_v25 = vadd.f32 %v18380_v52, %v3147_v5 }
 0x1e2   : > { %22208 = vst [vmem:[#allocation11_spill] sm:$0xff] %v18462_v16  ;;  %4660 = vmatprep.subr.bf16.mxu1 %v4526_v43  ;;  %4734 = vmatpush1.bf16.msra.mxu0 %v4527_v20 }
 0x1e3   : > { %4661 = vmatpush1.bf16.msra.mxu1 %v4525_v7  ;;  %v3062_v56 = vpop.f32.mrb[10].mxu1  ;;  %v3151_v23 = vpop.f32.mrb[10].mxu0  ;;  %v16042_v29 = vpack.i.bf16 %v18468_v41, %v18462_v16 }
 0x1e4   : > { %v18483_v15 = vadd.f32 %v18378_v37, %v3062_v56  ;;  %v18486_v53 = vadd.f32 %v18378_v37, %v3151_v23  ;;  %v3064_v48 = vpop.f32.mrb[11].mxu1  ;;  %v3153_v35 = vpop.f32.mrb[11].mxu0 }
 0x1e5   : > { %v18490_v27 = vadd.f32 %v18378_v37, %v3064_v48  ;;  %v3742_v0 = vadd.f32 %v18378_v37, %v3153_v35  ;;  %16043 = vrot.lane.b32.xlu0 %v16042_v29, %s16855_s28  ;;  %14090 = vmatmul.mubr.msk.bf16.gmra.mrb[48].mxu1 %vm1428_vm0, %v18476_v63 }
 0x1e6   : > { %v4541_v38 = vpack.c.bf16 %v18483_v15, %v18462_v16  ;;  %v4543_v21 = vpack.c.bf16 %v18486_v53, %v18465_v50  ;;  %4692 = vmatprep.mubr.bf16.mxu1 %v22128_v3 }
 0x1e7   : > { %v18507_v19 = vpack.i.bf16 %v3742_v0, %v3726_v25  ;;  %v3222_v10 = vpop.f32.mrb[12].mxu1  ;;  %v3311_v9 = vpop.f32.mrb[12].mxu0  ;;  %v16047_v45 = vpack.i.bf16 %v18490_v27, %v18483_v15  ;;  %v4542_v28 = vpack.c.bf16 %v18490_v27, %v18468_v41  ;;  %v4544_v11 = vpack.c.bf16 %v3742_v0, %v3726_v25 }
 0x1e8   : > { %v18514_v42 = vadd.f32 %v18362_v46, %v3222_v10  ;;  %v18517_v7 = vadd.f32 %v18362_v46, %v3311_v9  ;;  %v3224_v20 = vpop.f32.mrb[13].mxu1  ;;  %v3313_v4 = vpop.f32.mrb[13].mxu0 }
 0x1e9   : > { %v18520_v47 = vadd.f32 %v18362_v46, %v3224_v20  ;;  %16048 = vrot.lane.b32.xlu1 %v16047_v45, %s16855_s28  ;;  %16053 = vrot.lane.b32.xlu0 %v18392_v57, %s16855_s28  ;;  %v3698_v35 = vadd.f32 %v18362_v46, %v3313_v4 }
 0x1ea   : > { %22209 = vst [vmem:[#allocation10_spill] sm:$0xff] %v18514_v42  ;;  %4662 = vmatprep.subr.bf16.mxu1 %v4542_v28  ;;  %4735 = vmatprep.subr.bf16.mxu0 %v4544_v11 }
 0x1eb   : > { %22210 = vst [vmem:[#allocation12_spill] sm:$0xff] %v18520_v47  ;;  %4663 = vmatpush1.bf16.msra.mxu1 %v4541_v38  ;;  %4736 = vmatpush1.bf16.msra.mxu0 %v4543_v21  ;;  %v3228_v51 = vpop.f32.mrb[14].mxu1  ;;  %v3317_v5 = vpop.f32.mrb[14].mxu0  ;;  %v16057_v6 = vpack.i.bf16 %v18520_v47, %v18514_v42 }
 0x1ec   : > { %v18530_v56 = vadd.f32 %v18360_v24, %v3228_v51  ;;  %v18533_v23 = vadd.f32 %v18360_v24, %v3317_v5  ;;  %v3230_v29 = vpop.f32.mrb[15].mxu1  ;;  %v3319_v48 = vpop.f32.mrb[15].mxu0 }
 0x1ed   : > { %v18537_v25 = vadd.f32 %v18360_v24, %v3230_v29  ;;  %v3714_v0 = vadd.f32 %v18360_v24, %v3319_v48  ;;  %3829 = vrot.lane.b32.xlu1 %v18370_v17, %s16855_s28  ;;  %3859 = vrot.lane.b32.xlu0 %v18365_v62, %s16855_s28 }
 0x1ee   : > { %22211 = vst [vmem:[#allocation13_spill] sm:$0xff] %v18530_v56  ;;  %v4529_v21 = vpack.c.bf16 %v18530_v56, %v18514_v42  ;;  %v4531_v9 = vpack.c.bf16 %v18533_v23, %v18517_v7  ;;  %14095 = vmatmul.mubr.msk.bf16.vlgmr.msra.gmra.mrb[32].mxu0 %vm1428_vm0, %v18399_v32  ;;  %14091 = vmatmul.mubr.msk.bf16.vlgmr.msra.gmra.mrb[52].mxu1 %vm1428_vm0, %v18399_v32 }
 0x1ef   : > { %22212 = vst [vmem:[#allocation14_spill] sm:$0xff] %v18537_v25  ;;  %v18556_v28 = vpack.i.bf16 %v3714_v0, %v3698_v35  ;;  %v3234_v20 = vpop.f32.mrb[16].mxu1  ;;  %v3323_v4 = vpop.f32.mrb[16].mxu0  ;;  %v4530_v11 = vpack.c.bf16 %v18537_v25, %v18520_v47  ;;  %v4532_v38 = vpack.c.bf16 %v3714_v0, %v3698_v35  ;;  %4775 = vmatprep.mubr.bf16.mxu0 %v22128_v3 }
 0x1f0   : > { %v18563_v51 = vadd.f32 %v18380_v52, %v3234_v20  ;;  %v18566_v5 = vadd.f32 %v18380_v52, %v3323_v4  ;;  %v3236_v29 = vpop.f32.mrb[17].mxu1  ;;  %v3325_v48 = vpop.f32.mrb[17].mxu0  ;;  %v16062_v45 = vpack.i.bf16 %v18537_v25, %v18530_v56  ;;  %4702 = vmatprep.mubr.bf16.mxu1 %v22128_v3 }
 0x1f1   : > { %v18572_v43 = vadd.f32 %v18380_v52, %v3236_v29  ;;  %3889 = vrot.lane.b32.xlu1 %v18390_v30, %s16855_s28  ;;  %3919 = vrot.lane.b32.xlu0 %v18385_v12, %s16855_s28 }
 0x1f2   : > { %4806 = vmatprep.subr.bf16.mxu1 %v4530_v11  ;;  %4879 = vmatprep.subr.bf16.mxu0 %v4532_v38  ;;  %v3730_v38 = vadd.f32 %v18380_v52, %v3325_v48 }
 0x1f3   : > { %4807 = vmatpush1.bf16.msra.mxu1 %v4529_v21  ;;  %4880 = vmatpush1.bf16.msra.mxu0 %v4531_v9  ;;  %v3240_v35 = vpop.f32.mrb[18].mxu1  ;;  %v3329_v0 = vpop.f32.mrb[18].mxu0 }
 0x1f4   : > { %v18583_v29 = vadd.f32 %v18378_v37, %v3240_v35  ;;  %v18586_v36 = vadd.f32 %v18378_v37, %v3329_v0  ;;  %v3242_v8 = vpop.f32.mrb[19].mxu1  ;;  %v3331_v58 = vpop.f32.mrb[19].mxu0 }
 0x1f5   : > { %v18591_v21 = vadd.f32 %v18378_v37, %v3242_v8  ;;  %v3746_v9 = vadd.f32 %v18378_v37, %v3331_v58  ;;  %16058 = vrot.lane.b32.xlu1 %v16057_v6, %s16855_s28  ;;  %16063 = vrot.lane.b32.xlu0 %v16062_v45, %s16855_s28 }
 0x1f6   : > { %v4545_v35 = vpack.c.bf16 %v18583_v29, %v18563_v51  ;;  %v4547_v48 = vpack.c.bf16 %v18586_v36, %v18566_v5  ;;  %14096 = vmatmul.mubr.msk.bf16.gmra.mrb[36].mxu0 %vm1428_vm0, %v18407_v39  ;;  %14092 = vmatmul.mubr.msk.bf16.gmra.mrb[56].mxu1 %vm1428_vm0, %v18407_v39 }
 0x1f7   : > { %v18608_v58 = vpack.i.bf16 %v3746_v9, %v3730_v38  ;;  %v3400_v6 = vpop.f32.mrb[20].mxu1  ;;  %v3489_v45 = vpop.f32.mrb[20].mxu0  ;;  %v4546_v11 = vpack.c.bf16 %v18591_v21, %v18572_v43  ;;  %v4548_v0 = vpack.c.bf16 %v3746_v9, %v3730_v38  ;;  %4785 = vmatprep.mubr.bf16.mxu0 %v22128_v3  ;;  %4712 = vmatprep.mubr.bf16.mxu1 %v22128_v3 }
 0x1f8   : > { %v18615_v20 = vadd.f32 %v18362_v46, %v3400_v6  ;;  %v18618_v49 = vadd.f32 %v18362_v46, %v3489_v45  ;;  %v3402_v13 = vpop.f32.mrb[21].mxu1  ;;  %v3491_v33 = vpop.f32.mrb[21].mxu0 }
 0x1f9   : > { %v18623_v8 = vadd.f32 %v18362_v46, %v3402_v13  ;;  %4808 = vmatprep.subr.bf16.mxu1 %v4546_v11  ;;  %4881 = vmatprep.subr.bf16.mxu0 %v4548_v0  ;;  %v3702_v0 = vadd.f32 %v18362_v46, %v3491_v33 }
 0x1fa   : > { %4809 = vmatpush1.bf16.msra.mxu1 %v4545_v35  ;;  %4882 = vmatpush1.bf16.msra.mxu0 %v4547_v48 }
 0x1fb   : > { %v3406_v38 = vpop.f32.mrb[22].mxu1  ;;  %v3495_v9 = vpop.f32.mrb[22].mxu0 }
 0x1fc   : > { %v18632_v60 = vadd.f32 %v18360_v24, %v3406_v38  ;;  %v18635_v13 = vadd.f32 %v18360_v24, %v3495_v9  ;;  %v3408_v11 = vpop.f32.mrb[23].mxu1  ;;  %v3497_v61 = vpop.f32.mrb[23].mxu0 }
 0x1fd   : > { %v18639_v35 = vadd.f32 %v18360_v24, %v3408_v11  ;;  %v3718_v6 = vadd.f32 %v18360_v24, %v3497_v61  ;;  %v22213_v61 = vmov 0  }
 0x1fe   : > { %v4533_v45 = vpack.c.bf16 %v18632_v60, %v18615_v20  ;;  %v4535_v9 = vpack.c.bf16 %v18635_v13, %v18618_v49  ;;  %14097 = vmatmul.mubr.msk.bf16.gmra.mrb[40].mxu0 %vm1428_vm0, %v18424_v55  ;;  %14093 = vmatmul.mubr.msk.bf16.gmra.mrb[60].mxu1 %vm1428_vm0, %v18424_v55 }
 0x1ff   : > { %v18656_v11 = vpack.i.bf16 %v3718_v6, %v3702_v0  ;;  %v3412_v48 = vpop.f32.mrb[24].mxu1  ;;  %v3501_v10 = vpop.f32.mrb[24].mxu0  ;;  %v4534_v33 = vpack.c.bf16 %v18639_v35, %v18623_v8  ;;  %v4536_v59 = vpack.c.bf16 %v3718_v6, %v3702_v0  ;;  %4795 = vmatprep.mubr.bf16.mxu0 %v22213_v61  ;;  %4722 = vmatprep.mubr.bf16.mxu1 %v22213_v61 }
 0x200   : > { %v18661_v38 = vadd.f32 %v18380_v52, %v3412_v48  ;;  %v18664_v4 = vadd.f32 %v18380_v52, %v3501_v10  ;;  %v3414_v3 = vpop.f32.mrb[25].mxu1  ;;  %v3503_v26 = vpop.f32.mrb[25].mxu0 }
 0x201   : > { %v18670_v1 = vadd.f32 %v18380_v52, %v3414_v3  ;;  %4952 = vmatprep.subr.bf16.mxu1 %v4534_v33  ;;  %5025 = vmatprep.subr.bf16.mxu0 %v4536_v59  ;;  %v3734_v56 = vadd.f32 %v18380_v52, %v3503_v26 }
 0x203   : > { %v3418_v54 = vpop.f32.mrb[26].mxu1  ;;  %v3507_v25 = vpop.f32.mrb[26].mxu0 }
 0x204   : > { %v18678_v42 = vadd.f32 %v18378_v37, %v3418_v54  ;;  %v18681_v6 = vadd.f32 %v18378_v37, %v3507_v25  ;;  %v3420_v3 = vpop.f32.mrb[27].mxu1  ;;  %v3509_v0 = vpop.f32.mrb[27].mxu0 }
 0x205   : > { %v18685_v59 = vadd.f32 %v18378_v37, %v3420_v3  ;;  %v3750_v33 = vadd.f32 %v18378_v37, %v3509_v0 }
 0x206   : > { %v4549_v48 = vpack.c.bf16 %v18678_v42, %v18661_v38  ;;  %v4551_v25 = vpack.c.bf16 %v18681_v6, %v18664_v4  ;;  %14098 = vmatmul.mubr.msk.bf16.gmra.mrb[44].mxu0 %vm1428_vm0, %v18476_v63  ;;  %14094 = vmatmul.mubr.msk.bf16.gmra.mrb[64].mxu1 %vm1428_vm0, %v18476_v63 }
 0x207   : > { %v18702_v0 = vpack.i.bf16 %v3750_v33, %v3734_v56  ;;  %v3578_v10 = vpop.f32.mrb[28].mxu1  ;;  %4911 = vmatprep.mubr.bf16.mxu0 %v22213_v61  ;;  %4838 = vmatprep.mubr.bf16.mxu1 %v22213_v61  ;;  %v4552_v54 = vpack.c.bf16 %v3750_v33, %v3734_v56  ;;  %v4550_v47 = vpack.c.bf16 %v18685_v59, %v18670_v1 }
 0x208   : > { %v3580_v12 = vpop.f32.mrb[29].mxu1  ;;  %v3703_v3 = vadd.f32 %v18362_v46, %v3578_v10 }
 0x209   : > { %v18711_v26 = vadd.f32 %v18362_v46, %v3580_v12 }
 0x20b   : > { %v3584_v57 = vpop.f32.mrb[30].mxu1  ;;  %3757 = vrot.lane.b32.xlu1 %v18711_v26, %s16855_s28 }
 0x20c   : > { %v3719_v30 = vadd.f32 %v18360_v24, %v3584_v57  ;;  %v3586_v17 = vpop.f32.mrb[31].mxu1 }
 0x20d   : > { %v18718_v62 = vadd.f32 %v18360_v24, %v3586_v17 }
 0x20e   : > { %v18720_v16 = vpack.i.bf16 %v3719_v30, %v3703_v3  ;;  %v4537_v56 = vpack.c.bf16 %v3719_v30, %v3703_v3  ;;  %14103 = vmatmul.mubr.msk.bf16.vlgmr.msra.gmra.mrb[48].mxu0 %vm1428_vm0, %v18399_v32  ;;  %14099 = vmatmul.mubr.msk.bf16.vlgmr.msra.gmra.mrb[68].mxu1 %vm1428_vm0, %v18399_v32  ;;  %v22219_v3 = vpack.i.bf16 %v18639_v35, %v18632_v60 }
 0x20f   : > { %5026 = vmatpush1.bf16.msra.mxu0 %v4535_v9  ;;  %v3590_v12 = vpop.f32.mrb[32].mxu1  ;;  %3759 = vrot.lane.b32.xlu0 %v18718_v62, %s16855_s28 }
 0x210   : > { %5027 = vmatprep.subr.bf16.mxu0 %v4552_v54  ;;  %v3592_v46 = vpop.f32.mrb[33].mxu1  ;;  %4953 = vmatpush1.bf16.msra.mxu1 %v4533_v45  ;;  %v3735_v30 = vadd.f32 %v18380_v52, %v3590_v12  ;;  %v4538_v45 = vpack.c.bf16 %v18718_v62, %v18711_v26  ;;  %v22217_v54 = vpack.i.bf16 %v18623_v8, %v18615_v20 }
 0x211   : > { %v18729_v24 = vadd.f32 %v18380_v52, %v3592_v46  ;;  %4848 = vmatprep.mubr.bf16.mxu1 %v22213_v61  ;;  %4954 = vmatprep.subr.bf16.mxu1 %v4550_v47  ;;  %v22215_v52 = vpack.i.bf16 %v18591_v21, %v18583_v29  ;;  %v22220_v12 = vpack.i.bf16 %v18670_v1, %v18661_v38 }
 0x212   : > { %4921 = vmatprep.mubr.bf16.mxu0 %v22213_v61  ;;  %v22221_v46 = vpack.i.bf16 %v18685_v59, %v18678_v42 }
 0x213   : > { %5028 = vmatpush1.bf16.msra.mxu0 %v4551_v25  ;;  %v3596_v17 = vpop.f32.mrb[34].mxu1  ;;  %3761 = vrot.lane.b32.xlu1 %v18729_v24, %s16855_s28  ;;  %v22218_v25 = vpack.i.bf16 %v18486_v53, %v18465_v50 }
 0x214   : > { %v3751_v57 = vadd.f32 %v18378_v37, %v3596_v17  ;;  %v3598_v9 = vpop.f32.mrb[35].mxu1  ;;  %4955 = vmatpush1.bf16.msra.mxu1 %v4549_v48  ;;  %v22216_v48 = vpack.i.bf16 %v18434_v31, %v18416_v2  ;;  %v22222_v17 = vpack.i.bf16 %v18533_v23, %v18517_v7 }
 0x215   : > { %v18740_v10 = vadd.f32 %v18378_v37, %v3598_v9  ;;  %5098 = vmatprep.subr.bf16.mxu1 %v4538_v45  ;;  %v22214_v37 = vpack.i.bf16 %v18572_v43, %v18563_v51  ;;  %v22225_v9 = vpack.i.bf16 %v18416_v2, %v18419_v18  ;;  %v22226_v45 = vpack.i.bf16 %v18681_v6, %v18664_v4 }
 0x216   : > { %v18742_v47 = vpack.i.bf16 %v3751_v57, %v3735_v30  ;;  %v4553_v33 = vpack.c.bf16 %v3751_v57, %v3735_v30  ;;  %14104 = vmatmul.mubr.msk.bf16.gmra.mrb[52].mxu0 %vm1428_vm0, %v18407_v39  ;;  %14100 = vmatmul.mubr.msk.bf16.gmra.mrb[72].mxu1 %vm1428_vm0, %v18407_v39  ;;  %v22223_v57 = vpack.i.bf16 %v18586_v36, %v18566_v5 }
 0x217   : > { %3763 = vrot.lane.b32.xlu0 %v18740_v10, %s16855_s28  ;;  %16068 = vrot.lane.b32.xlu1 %v18455_v22, %s16855_s28  ;;  %v4554_v30 = vpack.c.bf16 %v18740_v10, %v18729_v24  ;;  %v22228_v2 = vpack.i.bf16 %v18434_v31, %v18438_v40  ;;  %v22229_v18 = vpack.i.bf16 %v18486_v53, %v18490_v27  ;;  %v22233_v40 = vld [vmem:[#allocation8_spill] sm:$0xff]  ;;  %v22235_v27 = vld [vmem:[#allocation5_spill] sm:$0xff] }
 0x218   : > { %4931 = vmatprep.mubr.bf16.mxu0 %v22213_v61  ;;  %4858 = vmatprep.mubr.bf16.mxu1 %v22213_v61 }
 0x21b   : > { %16073 = vrot.lane.b32.xlu0 %v22214_v37, %s16855_s28  ;;  %16078 = vrot.lane.b32.xlu1 %v22215_v52, %s16855_s28  ;;  %v22230_v37 = vpack.i.bf16 %v18465_v50, %v18468_v41  ;;  %v22234_v50 = vld [vmem:[#allocation7_spill] sm:$0xff]  ;;  %v22236_v52 = vld [vmem:[#allocation4_spill] sm:$0xff] }
 0x21e   : > { %14105 = vmatmul.mubr.msk.bf16.gmra.mrb[56].mxu0 %vm1428_vm0, %v18424_v55  ;;  %14101 = vmatmul.mubr.msk.bf16.gmra.mrb[76].mxu1 %vm1428_vm0, %v18424_v55 }
 0x21f   : > { %16088 = vrot.lane.b32.xlu1 %v22216_v48, %s16855_s28  ;;  %16083 = vrot.lane.b32.xlu0 %v18507_v19, %s16855_s28 }
 0x220   : > { %4941 = vmatprep.mubr.bf16.mxu0 %v22213_v61  ;;  %4868 = vmatprep.mubr.bf16.mxu1 %v22213_v61 }
 0x223   : > { %16098 = vrot.lane.b32.xlu1 %v22217_v54, %s16855_s28  ;;  %16093 = vrot.lane.b32.xlu0 %v22218_v25, %s16855_s28 }
 0x226   : > { %14106 = vmatmul.mubr.msk.bf16.gmra.mrb[60].mxu0 %vm1428_vm0, %v18476_v63  ;;  %14102 = vmatmul.mubr.msk.bf16.gmra.mrb[80].mxu1 %vm1428_vm0, %v18476_v63 }
 0x227   : > { %16103 = vrot.lane.b32.xlu0 %v22219_v3, %s16855_s28  ;;  %16108 = vrot.lane.b32.xlu1 %v18556_v28, %s16855_s28 }
 0x228   : > { %5057 = vmatprep.mubr.bf16.mxu0 %v22213_v61  ;;  %4984 = vmatprep.mubr.bf16.mxu1 %v22213_v61 }
 0x22b   : > { %16113 = vrot.lane.b32.xlu0 %v22220_v12, %s16855_s28  ;;  %16118 = vrot.lane.b32.xlu1 %v22221_v46, %s16855_s28 }
 0x22e   : > { %14111 = vmatmul.mubr.msk.bf16.vlgmr.msra.gmra.mrb[64].mxu0 %vm1428_vm0, %v18399_v32  ;;  %14107 = vmatmul.mubr.msk.bf16.vlgmr.msra.gmra.mrb[84].mxu1 %vm1428_vm0, %v18399_v32 }
 0x22f   : > { %16128 = vrot.lane.b32.xlu1 %v22222_v17, %s16855_s28  ;;  %16123 = vrot.lane.b32.xlu0 %v18608_v58, %s16855_s28 }
 0x230   : > { %5067 = vmatprep.mubr.bf16.mxu0 %v22213_v61  ;;  %5099 = vmatpush1.bf16.msra.mxu1 %v4537_v56  ;;  %v22224_v56 = vpack.i.bf16 %v18635_v13, %v18618_v49 }
 0x231   : > { %4994 = vmatprep.mubr.bf16.mxu1 %v22213_v61  ;;  %5100 = vmatprep.subr.bf16.mxu1 %v4554_v30 }
 0x233   : > { %16138 = vrot.lane.b32.xlu1 %v18720_v16, %s16855_s28  ;;  %16133 = vrot.lane.b32.xlu0 %v22223_v57, %s16855_s28  ;;  %v22237_v57 = vld [vmem:[#allocation12_spill] sm:$0xff] }
 0x234   : > { %5101 = vmatpush1.bf16.msra.mxu1 %v4553_v33  ;;  %v22227_v33 = vpack.i.bf16 %v18431_v14, %v18413_v34  ;;  %v22231_v34 = vld [vmem:[#allocation11_spill] sm:$0xff] }
 0x235   : > { %v22232_v14 = vpack.i.bf16 %v18483_v15, %v22231_v34  ;;  %v22240_v34 = vld [vmem:[#allocation13_spill] sm:$0xff] }
 0x236   : > { %14112 = vmatmul.mubr.msk.bf16.gmra.mrb[68].mxu0 %vm1428_vm0, %v18407_v39  ;;  %14108 = vmatmul.mubr.msk.bf16.gmra.mrb[88].mxu1 %vm1428_vm0, %v18407_v39 }
 0x237   : > { %16148 = vrot.lane.b32.xlu1 %v18742_v47, %s16855_s28  ;;  %16143 = vrot.lane.b32.xlu0 %v18656_v11, %s16855_s28 }
 0x238   : > { %5077 = vmatprep.mubr.bf16.mxu0 %v22213_v61  ;;  %5004 = vmatprep.mubr.bf16.mxu1 %v22213_v61 }
 0x23b   : > { %16158 = vrot.lane.b32.xlu1 %v22224_v56, %s16855_s28  ;;  %16153 = vrot.lane.b32.xlu0 %v18702_v0, %s16855_s28  ;;  %v22238_v56 = vpack.i.bf16 %v18517_v7, %v22237_v57  ;;  %v22245_v57 = vpack.i.bf16 %v18586_v36, %v18591_v21 }
 0x23e   : > { %14113 = vmatmul.mubr.msk.bf16.gmra.mrb[72].mxu0 %vm1428_vm0, %v18424_v55  ;;  %14109 = vmatmul.mubr.msk.bf16.gmra.mrb[92].mxu1 %vm1428_vm0, %v18424_v55 }
 0x23f   : > { %16168 = vrot.lane.b32.xlu1 %v22225_v9, %s16856_s24  ;;  %16163 = vrot.lane.b32.xlu0 %v22226_v45, %s16855_s28  ;;  %v22239_v9 = vld [vmem:[#allocation9_spill] sm:$0xff] }
 0x240   : > { %5087 = vmatprep.mubr.bf16.mxu0 %v22213_v61  ;;  %5014 = vmatprep.mubr.bf16.mxu1 %v22213_v61 }
 0x243   : > { %16178 = vrot.lane.b32.xlu1 %v22227_v33, %s16856_s24  ;;  %16173 = vrot.lane.b32.xlu0 %v22228_v2, %s16856_s24 }
 0x246   : > { %14114 = vmatmul.mubr.msk.bf16.gmra.mrb[76].mxu0 %vm1428_vm0, %v18476_v63  ;;  %14110 = vmatmul.mubr.msk.bf16.gmra.mrb[96].mxu1 %vm1428_vm0, %v18476_v63 }
 0x247   : > { %16188 = vrot.lane.b32.xlu1 %v22229_v18, %s16856_s24  ;;  %16183 = vrot.lane.b32.xlu0 %v22230_v37, %s16856_s24 }
 0x248   : > { %5235 = vmatprep.mubr.bf16.mxu0 %v22213_v61  ;;  %5130 = vmatprep.mubr.bf16.mxu1 %v22213_v61 }
 0x24b   : > { %16198 = vrot.lane.b32.xlu1 %v18372_v44, %s16856_s24  ;;  %16193 = vrot.lane.b32.xlu0 %v22232_v14, %s16856_s24  ;;  %v22241_v14 = vld [vmem:[#allocation10_spill] sm:$0xff] }
 0x24e   : > { %14115 = vmatmul.mubr.msk.bf16.vlgmr.msra.gmra.mrb[100].mxu1 %vm1428_vm0, %v18399_v32 }
 0x24f   : > { %v18880_v31 = vpop.permute.xlu1 %16028  ;;  %4173 = vrot.lane.b32.xlu1 %v22233_v40, %s16856_s24  ;;  %4141 = vrot.lane.b32.xlu0 %v22234_v50, %s16856_s24  ;;  %v22242_v40 = vpack.i.bf16 %v22240_v34, %v22241_v14 }
 0x250   : > { %5140 = vmatprep.mubr.bf16.mxu1 %v22213_v61  ;;  %v16031_v44 = vunpack.i.h.bf16 %v18880_v31  ;;  %v16030_v41 = vunpack.i.l.bf16 %v18880_v31  ;;  %v6570_v31 = vld [vmem:[%s22101_s4 + $0x38] sm:$0xff] }
 0x252   : > { %v3951_v46 = vsel %vm896_vm2, %v16030_v41, %v16031_v44 }
 0x253   : > { %v18891_v53 = vpop.permute.xlu0 %16033  ;;  %v16039_v15 = vpop.permute.xlu1 %16038  ;;  %4205 = vrot.lane.b32.xlu1 %v22235_v27, %s16856_s24  ;;  %16203 = vrot.lane.b32.xlu0 %v22236_v52, %s16856_s24 }
 0x254   : > { %v16036_v48 = vunpack.i.h.bf16 %v18891_v53  ;;  %v16035_v54 = vunpack.i.l.bf16 %v18891_v53  ;;  %v16041_v32 = vunpack.i.h.bf16 %v16039_v15  ;;  %v16040_v25 = vunpack.i.l.bf16 %v16039_v15 }
 0x256   : > { %v3965_v3 = vsel %vm896_vm2, %v16041_v32, %v16035_v54  ;;  %v3950_v12 = vsel %vm896_vm2, %v16040_v25, %v16030_v41  ;;  %v3966_v17 = vsel %vm896_vm2, %v16035_v54, %v16036_v48  ;;  %14116 = vmatmul.mubr.msk.bf16.gmra.mrb[104].mxu1 %vm1428_vm0, %v18407_v39  ;;  %v22243_v39 = vld [vmem:[#allocation14_spill] sm:$0xff] }
 0x257   : > { %v18907_v30 = vpop.permute.xlu0 %16043  ;;  %16208 = vrot.lane.b32.xlu1 %v22238_v56, %s16856_s24  ;;  %4237 = vrot.lane.b32.xlu0 %v22239_v9, %s16856_s24  ;;  %v4494_v45 = vpack.c.bf16 %v3966_v17, %v3951_v46  ;;  %v4493_v33 = vpack.c.bf16 %v3965_v3, %v3950_v12  ;;  %v22244_v50 = vpack.i.bf16 %v18533_v23, %v22243_v39 }
 0x258   : > { %5150 = vmatprep.mubr.bf16.mxu1 %v22213_v61  ;;  %v16046_v2 = vunpack.i.h.bf16 %v18907_v30  ;;  %v16045_v18 = vunpack.i.l.bf16 %v18907_v30  ;;  %v22246_v56 = vpack.i.bf16 %v18566_v5, %v18572_v43  ;;  %v22247_v43 = vpack.i.bf16 %v18583_v29, %v18563_v51 }
 0x259   : > { %5276 = vmatprep.subr.bf16.mxu1 %v4494_v45  ;;  %v22251_v39 = vpack.i.bf16 %v18681_v6, %v18685_v59  ;;  %v6563_v59 = vld [vmem:[%s22101_s4] sm:$0xff] }
 0x25a   : > { %5277 = vmatpush1.bf16.msra.mxu1 %v4493_v33  ;;  %v3981_v23 = vsel %vm896_vm2, %v16045_v18, %v16046_v2 }
 0x25b   : > { %v18920_v37 = vpop.permute.xlu1 %16048  ;;  %v18922_v7 = vpop.permute.xlu0 %16053  ;;  %16218 = vrot.lane.b32.xlu1 %v22242_v40, %s16856_s24  ;;  %16213 = vrot.lane.b32.xlu0 %v22244_v50, %s16856_s24  ;;  %v19005_v40 = vld [vmem:[%s22100_s3] sm:$0xff]   ;;  %v6564_v50 = vld [vmem:[%s22101_s4 + $0x8] sm:$0xff] }
 0x25c   : > { %v16051_v41 = vunpack.i.h.bf16 %v18920_v37  ;;  %v16050_v15 = vunpack.i.l.bf16 %v18920_v37  ;;  %v16056_v27 = vunpack.i.h.bf16 %v18922_v7  ;;  %v16055_v52 = vunpack.i.l.bf16 %v18922_v7  ;;  %v6565_v7 = vld [vmem:[%s22101_s4 + $0x10] sm:$0xff] }
 0x25e   : > { %v3995_v54 = vsel %vm896_vm2, %v16056_v27, %v16050_v15  ;;  %v3980_v3 = vsel %vm896_vm2, %v16055_v52, %v16045_v18  ;;  %v3996_v12 = vsel %vm896_vm2, %v16050_v15, %v16051_v41  ;;  %14117 = vmatmul.mubr.msk.bf16.gmra.mrb[108].mxu1 %vm1428_vm0, %v18424_v55 }
 0x25f   : > { %v3830_v46 = vpop.permute.xlu1 %3829  ;;  %v3860_v17 = vpop.permute.xlu0 %3859  ;;  %16228 = vrot.lane.b32.xlu1 %v22245_v57, %s16856_s24  ;;  %16223 = vrot.lane.b32.xlu0 %v22246_v56, %s16856_s24  ;;  %v4510_v9 = vpack.c.bf16 %v3996_v12, %v3981_v23  ;;  %v4509_v45 = vpack.c.bf16 %v3995_v54, %v3980_v3 }
 0x260   : > { %v3949_v33 = vsel %vm896_vm2, %v3830_v46, %v16040_v25  ;;  %v3964_v18 = vsel %vm896_vm2, %v3860_v17, %v16041_v32  ;;  %5160 = vmatprep.mubr.bf16.mxu1 %v22213_v61  ;;  %v22248_v32 = vpack.i.bf16 %v18618_v49, %v18623_v8  ;;  %v22249_v8 = vpack.i.bf16 %v18632_v60, %v18615_v20 }
 0x261   : > { %5278 = vmatprep.subr.bf16.mxu1 %v4510_v9  ;;  %v4492_v34 = vpack.c.bf16 %v3964_v18, %v3949_v33  ;;  %v22252_v60 = vpack.i.bf16 %v18664_v4, %v18670_v1  ;;  %v22253_v20 = vpack.i.bf16 %v18678_v42, %v18661_v38  ;;  %v19043_v1 = vld [vmem:[%s22100_s3 + $0x10] sm:$0xff]   ;;  %v22254_v4 = vld [vmem:[#allocation3_spill] sm:$0xff]  ;;  %v6566_v33 = vld [vmem:[%s22101_s4 + $0x18] sm:$0xff] }
 0x262   : > { %5279 = vmatpush1.bf16.msra.mxu1 %v4509_v45 }
 0x263   : > { %v3890_v36 = vpop.permute.xlu1 %3889  ;;  %v18961_v21 = vpop.permute.xlu0 %3919  ;;  %16238 = vrot.lane.b32.xlu1 %v18455_v22, %s16856_s24  ;;  %16233 = vrot.lane.b32.xlu0 %v22247_v43, %s16856_s24 }
 0x264   : > { %5203 = vmatprep.subr.bf16.mxu0 %v4492_v34  ;;  %v3979_v38 = vsel %vm896_vm2, %v3890_v36, %v16055_v52  ;;  %v3994_v6 = vsel %vm896_vm2, %v18961_v21, %v16056_v27 }
 0x266   : > { %14118 = vmatmul.mubr.msk.bf16.gmra.mrb[112].mxu1 %vm1428_vm0, %v18476_v63  ;;  %v22250_v63 = vpack.i.bf16 %v18635_v13, %v18639_v35  ;;  %v19027_v13 = vld [vmem:[%s22100_s3 + $0x8] sm:$0xff]  }
 0x267   : > { %v18969_v5 = vpop.permute.xlu1 %16058  ;;  %v18971_v55 = vpop.permute.xlu0 %16063  ;;  %16248 = vrot.lane.b32.xlu1 %v22248_v32, %s16856_s24  ;;  %16243 = vrot.lane.b32.xlu0 %v18507_v19, %s16856_s24 }
 0x268   : > { %v16061_v22 = vunpack.i.h.bf16 %v18969_v5  ;;  %v16060_v25 = vunpack.i.l.bf16 %v18969_v5  ;;  %v16066_v51 = vunpack.i.h.bf16 %v18971_v55  ;;  %v16065_v29 = vunpack.i.l.bf16 %v18971_v55  ;;  %5308 = vmatprep.mubr.bf16.mxu1 %v22213_v61 }
 0x26a   : > { %v3955_v49 = vsel %vm896_vm2, %v16060_v25, %v16061_v22  ;;  %v3970_v19 = vsel %vm896_vm2, %v16065_v29, %v16066_v51 }
 0x26b   : > { %16258 = vrot.lane.b32.xlu1 %v22249_v8, %s16856_s24  ;;  %16253 = vrot.lane.b32.xlu0 %v22250_v63, %s16856_s24  ;;  %v4498_v14 = vpack.c.bf16 %v3970_v19, %v3955_v49  ;;  %v6569_v19 = vld [vmem:[%s22101_s4 + $0x30] sm:$0xff] }
 0x26d   : > { %5422 = vmatprep.subr.bf16.mxu1 %v4498_v14 }
 0x26e   : > { %14127 = vmatmul.mubr.msk.bf16.vlgmr.msra.gmra.mrb[52].mxu1 %vm1428_vm0, %v19005_v40 }
 0x26f   : > { %16268 = vrot.lane.b32.xlu1 %v22251_v39, %s16856_s24  ;;  %16263 = vrot.lane.b32.xlu0 %v22252_v60, %s16856_s24  ;;  %v6568_v60 = vld [vmem:[%s22101_s4 + $0x28] sm:$0xff] }
 0x270   : > { %5318 = vmatprep.mubr.bf16.mxu1 %v22213_v61 }
 0x273   : > { %16278 = vrot.lane.b32.xlu1 %v18556_v28, %s16856_s24  ;;  %16273 = vrot.lane.b32.xlu0 %v22253_v20, %s16856_s24 }
 0x276   : > { %14128 = vmatmul.mubr.msk.bf16.gmra.mrb[56].mxu1 %vm1428_vm0, %v19027_v13 }
 0x277   : > { %4203 = vrot.lane.b32.xlu1 %v18718_v62, %s16856_s24  ;;  %4171 = vrot.lane.b32.xlu0 %v18711_v26, %s16856_s24 }
 0x278   : > { %5328 = vmatprep.mubr.bf16.mxu1 %v22213_v61 }
 0x27b   : > { %16288 = vrot.lane.b32.xlu1 %v18720_v16, %s16856_s24  ;;  %16283 = vrot.lane.b32.xlu0 %v18608_v58, %s16856_s24 }
 0x27d   : > { %v19045_v62 = vpop.permute.xlu1 %3757 }
 0x27e   : > { %v4073_v42 = vsel %vm896_vm2, %v19045_v62, %v3830_v46  ;;  %14129 = vmatmul.mubr.msk.bf16.gmra.mrb[60].mxu1 %vm1428_vm0, %v19043_v1 }
 0x27f   : > { %4267 = vrot.lane.b32.xlu1 %v18740_v10, %s16856_s24  ;;  %4235 = vrot.lane.b32.xlu0 %v18729_v24, %s16856_s24  ;;  %v4077_v58 = vmul.f32 %v22254_v4, %v4073_v42  ;;  %v4508_v10 = vpack.c.bf16 %v3994_v6, %v3979_v38 }
 0x280   : > { %5338 = vmatprep.mubr.bf16.mxu1 %v22213_v61 }
 0x281   : > { %v19055_v16 = vpop.permute.xlu0 %3759 }
 0x282   : > { %v4074_v28 = vsel %vm896_vm2, %v19055_v16, %v3860_v17  ;;  %v6567_v17 = vld [vmem:[%s22101_s4 + $0x20] sm:$0xff] }
 0x283   : > { %v4093_v35 = vmul.f32 %v22254_v4, %v4074_v28  ;;  %16298 = vrot.lane.b32.xlu1 %v18656_v11, %s16856_s24  ;;  %16293 = vrot.lane.b32.xlu0 %v18742_v47, %s16856_s24  ;;  %v19079_v11 = vld [vmem:[%s22100_s3 + $0x18] sm:$0xff]  }
 0x285   : > { %v4491_v26 = vpack.c.bf16 %v4093_v35, %v4077_v58  ;;  %v19081_v24 = vpop.permute.xlu1 %3761 }
 0x286   : > { %v4075_v47 = vsel %vm896_vm2, %v19081_v24, %v3890_v36  ;;  %14130 = vmatmul.mubr.msk.bf16.gmra.mrb[64].mxu1 %vm1428_vm0, %v19079_v11 }
 0x287   : > { %6573 = vperm.xlu1 %16026, %v6563_v59   ;;  %16303 = vrot.lane.b32.xlu0 %v18702_v0, %s16856_s24  ;;  %v4109_v3 = vmul.f32 %v22254_v4, %v4075_v47 }
 0x288   : > { %5204 = vmatpush1.bf16.msra.mxu0 %v4491_v26  ;;  %5454 = vmatprep.mubr.bf16.mxu1 %v22213_v61 }
 0x289   : > { %5205 = vmatprep.subr.bf16.mxu0 %v4508_v10  ;;  %v19095_v15 = vpop.permute.xlu0 %3763  ;;  %v16069_v0 = vpop.permute.xlu1 %16068 }
 0x28a   : > { %v4076_v27 = vsel %vm896_vm2, %v19095_v15, %v18961_v21  ;;  %v16071_v52 = vunpack.i.h.bf16 %v16069_v0  ;;  %v16070_v54 = vunpack.i.l.bf16 %v16069_v0 }
 0x28b   : > { %v4125_v23 = vmul.f32 %v22254_v4, %v4076_v27  ;;  %6583 = vperm.xlu1 %16026, %v6565_v7   ;;  %6578 = vperm.xlu0 %16025, %v6564_v50  }
 0x28c   : > { %v3969_v12 = vsel %vm896_vm2, %v16071_v52, %v16065_v29  ;;  %v3954_v46 = vsel %vm896_vm2, %v16070_v54, %v16060_v25 }
 0x28d   : > { %v4507_v57 = vpack.c.bf16 %v4125_v23, %v4109_v3  ;;  %v19110_v56 = vpop.permute.xlu0 %16073  ;;  %v19112_v9 = vpop.permute.xlu1 %16078  ;;  %v4497_v45 = vpack.c.bf16 %v3969_v12, %v3954_v46 }
 0x28e   : > { %v16076_v18 = vunpack.i.h.bf16 %v19110_v56  ;;  %v16075_v34 = vunpack.i.l.bf16 %v19110_v56  ;;  %v16081_v36 = vunpack.i.h.bf16 %v19112_v9  ;;  %v16080_v21 = vunpack.i.l.bf16 %v19112_v9 }
 0x28f   : > { %5423 = vmatpush1.bf16.msra.mxu1 %v4497_v45  ;;  %6593 = vperm.xlu1 %16026, %v6567_v17  }
 0x290   : > { %6588 = vperm.xlu0 %16025, %v6566_v33   ;;  %5206 = vmatpush1.bf16.msra.mxu0 %v4507_v57  ;;  %v3985_v43 = vsel %vm896_vm2, %v16075_v34, %v16076_v18  ;;  %v4000_v32 = vsel %vm896_vm2, %v16080_v21, %v16081_v36 }
 0x291   : > { %v16089_v25 = vpop.permute.xlu1 %16088  ;;  %v16084_v29 = vpop.permute.xlu0 %16083  ;;  %v4514_v49 = vpack.c.bf16 %v4000_v32, %v3985_v43 }
 0x292   : > { %v16091_v8 = vunpack.i.h.bf16 %v16089_v25  ;;  %v16090_v63 = vunpack.i.l.bf16 %v16089_v25  ;;  %v16086_v14 = vunpack.i.h.bf16 %v16084_v29  ;;  %v16085_v39 = vunpack.i.l.bf16 %v16084_v29 }
 0x293   : > { %14123 = vmatmul.mubr.msk.bf16.vlgmr.msra.gmra.mrb[80].mxu0 %vm1428_vm0, %v19005_v40  ;;  %5424 = vmatprep.subr.bf16.mxu1 %v4514_v49 }
 0x294   : > { %v3967_v20 = vsel %vm896_vm2, %v16036_v48, %v16091_v8  ;;  %v3952_v42 = vsel %vm896_vm2, %v16031_v44, %v16090_v63  ;;  %v3999_v28 = vsel %vm896_vm2, %v16086_v14, %v16080_v21  ;;  %v3984_v58 = vsel %vm896_vm2, %v16085_v39, %v16075_v34  ;;  %6603 = vperm.xlu1 %16026, %v6569_v19  }
 0x295   : > { %6598 = vperm.xlu0 %16025, %v6568_v60   ;;  %v19143_v35 = vpop.permute.xlu1 %16098  ;;  %v16094_v38 = vpop.permute.xlu0 %16093  ;;  %v4513_v6 = vpack.c.bf16 %v3999_v28, %v3984_v58  ;;  %v3953_v59 = vsel %vm896_vm2, %v16090_v63, %v16070_v54  ;;  %v3968_v53 = vsel %vm896_vm2, %v16091_v8, %v16071_v52  ;;  %v4495_v44 = vpack.c.bf16 %v3967_v20, %v3952_v42 }
 0x296   : > { %v16096_v26 = vunpack.i.h.bf16 %v16094_v38  ;;  %v16095_v48 = vunpack.i.l.bf16 %v16094_v38  ;;  %5245 = vmatprep.mubr.bf16.mxu0 %v22213_v61  ;;  %v16101_v10 = vunpack.i.h.bf16 %v19143_v35  ;;  %v16100_v47 = vunpack.i.l.bf16 %v19143_v35 }
 0x297   : > { %5425 = vmatpush1.bf16.msra.mxu1 %v4513_v6  ;;  %v4496_v7 = vpack.c.bf16 %v3968_v53, %v3953_v59 }
 0x298   : > { %v3997_v50 = vsel %vm896_vm2, %v16051_v41, %v16096_v26  ;;  %v3982_v0 = vsel %vm896_vm2, %v16046_v2, %v16095_v48  ;;  %v3983_v27 = vsel %vm896_vm2, %v16095_v48, %v16085_v39  ;;  %v3998_v52 = vsel %vm896_vm2, %v16096_v26, %v16086_v14 }
 0x299   : > { %6608 = vperm.xlu0 %16025, %v6570_v31   ;;  %5349 = vmatprep.subr.bf16.mxu0 %v4496_v7  ;;  %v19161_v54 = vpop.permute.xlu0 %16103  ;;  %v16109_v3 = vpop.permute.xlu1 %16108  ;;  %v4512_v23 = vpack.c.bf16 %v3998_v52, %v3983_v27  ;;  %v4511_v12 = vpack.c.bf16 %v3997_v50, %v3982_v0  ;;  %v3959_v2 = vsel %vm896_vm2, %v16100_v47, %v16101_v10 }
 0x29a   : > { %5350 = vmatpush1.bf16.msra.mxu0 %v4495_v44  ;;  %v16106_v37 = vunpack.i.h.bf16 %v19161_v54  ;;  %v16105_v41 = vunpack.i.l.bf16 %v19161_v54  ;;  %v16111_v46 = vunpack.i.h.bf16 %v16109_v3  ;;  %v16110_v30 = vunpack.i.l.bf16 %v16109_v3  ;;  %14135 = vmatmul.mubr.msk.bf16.vlgmr.msra.gmra.mrb[68].mxu1 %vm1428_vm0, %v19005_v40 }
 0x29b   : > { %14124 = vmatmul.mubr.msk.bf16.gmra.mrb[84].mxu0 %vm1428_vm0, %v19027_v13  ;;  %5351 = vmatprep.subr.bf16.mxu0 %v4512_v23 }
 0x29c   : > { %v3973_v17 = vsel %vm896_vm2, %v16111_v46, %v16105_v41  ;;  %v3958_v57 = vsel %vm896_vm2, %v16110_v30, %v16100_v47  ;;  %v3974_v45 = vsel %vm896_vm2, %v16105_v41, %v16106_v37  ;;  %5464 = vmatprep.mubr.bf16.mxu1 %v22213_v61  ;;  %5255 = vmatprep.mubr.bf16.mxu0 %v22213_v61 }
 0x29d   : > { %v19179_v33 = vpop.permute.xlu0 %16113  ;;  %v19181_v34 = vpop.permute.xlu1 %16118  ;;  %v4502_v21 = vpack.c.bf16 %v3974_v45, %v3959_v2  ;;  %v4501_v43 = vpack.c.bf16 %v3973_v17, %v3958_v57 }
 0x29e   : > { %5352 = vmatpush1.bf16.msra.mxu0 %v4511_v12  ;;  %v16116_v32 = vunpack.i.h.bf16 %v19179_v33  ;;  %v16115_v25 = vunpack.i.l.bf16 %v19179_v33  ;;  %v16121_v29 = vunpack.i.h.bf16 %v19181_v34  ;;  %v16120_v49 = vunpack.i.l.bf16 %v19181_v34 }
 0x29f   : > { %5568 = vmatprep.subr.bf16.mxu1 %v4502_v21 }
 0x2a0   : > { %5569 = vmatpush1.bf16.msra.mxu1 %v4501_v43  ;;  %v3989_v19 = vsel %vm896_vm2, %v16115_v25, %v16116_v32  ;;  %v4004_v8 = vsel %vm896_vm2, %v16120_v49, %v16121_v29  ;;  %v19193_v63 = vpop.f32.mrb[36].mxu1 }
 0x2a1   : > { %v16129_v14 = vpop.permute.xlu1 %16128  ;;  %v16124_v39 = vpop.permute.xlu0 %16123  ;;  %v4518_v60 = vpack.c.bf16 %v4004_v8, %v3989_v19 }
 0x2a2   : > { %v16131_v20 = vunpack.i.h.bf16 %v16129_v14  ;;  %v16130_v42 = vunpack.i.l.bf16 %v16129_v14  ;;  %v16126_v28 = vunpack.i.h.bf16 %v16124_v39  ;;  %v16125_v58 = vunpack.i.l.bf16 %v16124_v39  ;;  %14136 = vmatmul.mubr.msk.bf16.gmra.mrb[72].mxu1 %vm1428_vm0, %v19027_v13  ;;  %v19197_v38 = vpop.f32.mrb[37].mxu1 }
 0x2a3   : > { %14125 = vmatmul.mubr.msk.bf16.gmra.mrb[88].mxu0 %vm1428_vm0, %v19043_v1  ;;  %5570 = vmatprep.subr.bf16.mxu1 %v4518_v60  ;;  %v19201_v6 = vpop.f32.mrb[38].mxu1 }
 0x2a4   : > { %v3971_v59 = vsel %vm896_vm2, %v16066_v51, %v16131_v20  ;;  %v3956_v53 = vsel %vm896_vm2, %v16061_v22, %v16130_v42  ;;  %v4003_v26 = vsel %vm896_vm2, %v16126_v28, %v16120_v49  ;;  %v3988_v48 = vsel %vm896_vm2, %v16125_v58, %v16115_v25  ;;  %5474 = vmatprep.mubr.bf16.mxu1 %v22213_v61  ;;  %v19212_v31 = vpop.f32.mrb[39].mxu1 }
 0x2a5   : > { %v16139_v44 = vpop.permute.xlu1 %16138  ;;  %v16134_v47 = vpop.permute.xlu0 %16133  ;;  %v3957_v7 = vsel %vm896_vm2, %v16130_v42, %v16110_v30  ;;  %v3972_v55 = vsel %vm896_vm2, %v16131_v20, %v16111_v46  ;;  %v4517_v50 = vpack.c.bf16 %v4003_v26, %v3988_v48  ;;  %5265 = vmatprep.mubr.bf16.mxu0 %v22213_v61  ;;  %v4499_v5 = vpack.c.bf16 %v3971_v59, %v3956_v53 }
 0x2a6   : > { %v16141_v51 = vunpack.i.h.bf16 %v16139_v44  ;;  %v16140_v22 = vunpack.i.l.bf16 %v16139_v44  ;;  %v4500_v0 = vpack.c.bf16 %v3972_v55, %v3957_v7  ;;  %v16136_v30 = vunpack.i.h.bf16 %v16134_v47 }
 0x2a7   : > { %5571 = vmatpush1.bf16.msra.mxu1 %v4517_v50 }
 0x2a8   : > { %v3963_v27 = vsel %vm896_vm2, %v16140_v22, %v19045_v62  ;;  %v3978_v52 = vsel %vm896_vm2, %v16141_v51, %v19055_v16  ;;  %v19221_v3 = vpop.f32.mrb[40].mxu1  ;;  %5495 = vmatprep.subr.bf16.mxu0 %v4500_v0  ;;  %v16135_v16 = vunpack.i.l.bf16 %v16134_v47  ;;  %v4002_v25 = vsel %vm896_vm2, %v16136_v30, %v16126_v28 }
 0x2a9   : > { %v19223_v23 = vpop.permute.xlu1 %16148  ;;  %v16144_v12 = vpop.permute.xlu0 %16143  ;;  %v4506_v41 = vpack.c.bf16 %v3978_v52, %v3963_v27  ;;  %v4001_v39 = vsel %vm896_vm2, %v16081_v36, %v16136_v30 }
 0x2aa   : > { %14137 = vmatmul.mubr.msk.bf16.gmra.mrb[76].mxu1 %vm1428_vm0, %v19043_v1  ;;  %v19227_v46 = vpop.f32.mrb[41].mxu1  ;;  %v3987_v43 = vsel %vm896_vm2, %v16135_v16, %v16125_v58  ;;  %v16146_v19 = vunpack.i.h.bf16 %v16144_v12  ;;  %v3986_v60 = vsel %vm896_vm2, %v16076_v18, %v16135_v16  ;;  %v16150_v20 = vunpack.i.l.bf16 %v19223_v23 }
 0x2ab   : > { %14126 = vmatmul.mubr.msk.bf16.gmra.mrb[92].mxu0 %vm1428_vm0, %v19079_v11  ;;  %5714 = vmatprep.subr.bf16.mxu1 %v4506_v41  ;;  %v19231_v62 = vpop.f32.mrb[42].mxu1  ;;  %v16145_v42 = vunpack.i.l.bf16 %v16144_v12  ;;  %v16151_v58 = vunpack.i.h.bf16 %v19223_v23  ;;  %v4516_v9 = vpack.c.bf16 %v4002_v25, %v3987_v43  ;;  %v4515_v44 = vpack.c.bf16 %v4001_v39, %v3986_v60 }
 0x2ac   : > { %5484 = vmatprep.mubr.bf16.mxu1 %v22213_v61  ;;  %5381 = vmatprep.mubr.bf16.mxu0 %v22213_v61  ;;  %v19235_v2 = vpop.f32.mrb[43].mxu1  ;;  %v3977_v53 = vsel %vm896_vm2, %v16146_v19, %v16141_v51  ;;  %v3993_v50 = vsel %vm896_vm2, %v16150_v20, %v19081_v24 }
 0x2ad   : > { %v19237_v17 = vpop.permute.xlu1 %16158  ;;  %v19239_v57 = vpop.permute.xlu0 %16153  ;;  %v3962_v47 = vsel %vm896_vm2, %v16145_v42, %v16140_v22  ;;  %v4008_v27 = vsel %vm896_vm2, %v16151_v58, %v19095_v15 }
 0x2ae   : > { %v16161_v45 = vunpack.i.h.bf16 %v19237_v17  ;;  %v16160_v21 = vunpack.i.l.bf16 %v19237_v17  ;;  %v16156_v7 = vunpack.i.h.bf16 %v19239_v57  ;;  %v16155_v55 = vunpack.i.l.bf16 %v19239_v57 }
 0x2af   : > { %v4505_v24 = vpack.c.bf16 %v3977_v53, %v3962_v47  ;;  %v4522_v15 = vpack.c.bf16 %v4008_v27, %v3993_v50 }
 0x2b0   : > { %v19245_v49 = vpop.f32.mrb[44].mxu1  ;;  %v3961_v56 = vsel %vm896_vm2, %v16160_v21, %v16145_v42  ;;  %v3976_v18 = vsel %vm896_vm2, %v16161_v45, %v16146_v19  ;;  %v4007_v30 = vsel %vm896_vm2, %v16156_v7, %v16151_v58  ;;  %v3992_v16 = vsel %vm896_vm2, %v16155_v55, %v16150_v20 }
 0x2b1   : > { %v19247_v8 = vpop.permute.xlu1 %16168  ;;  %v19249_v14 = vpop.permute.xlu0 %16163  ;;  %v4504_v51 = vpack.c.bf16 %v3976_v18, %v3961_v56  ;;  %v4521_v20 = vpack.c.bf16 %v4007_v30, %v3992_v16  ;;  %v3960_v30 = vsel %vm896_vm2, %v16101_v10, %v16160_v21 }
 0x2b2   : > { %14138 = vmatmul.mubr.msk.bf16.gmra.mrb[80].mxu1 %vm1428_vm0, %v19079_v11  ;;  %v19260_v28 = vpop.f32.mrb[45].mxu1  ;;  %v16171_v22 = vunpack.i.h.bf16 %v19247_v8  ;;  %v16170_v23 = vunpack.i.l.bf16 %v19247_v8  ;;  %v16166_v47 = vunpack.i.h.bf16 %v19249_v14  ;;  %v16165_v50 = vunpack.i.l.bf16 %v19249_v14 }
 0x2b3   : > { %14131 = vmatmul.mubr.msk.bf16.vlgmr.msra.gmra.mrb[32].mxu0 %vm1428_vm0, %v19005_v40  ;;  %5600 = vmatprep.mubr.bf16.mxu1 %v22213_v61  ;;  %v19266_v36 = vpop.f32.mrb[46].mxu1 }
 0x2b4   : > { %5496 = vmatpush1.bf16.msra.mxu0 %v4499_v5  ;;  %5391 = vmatprep.mubr.bf16.mxu0 %v22213_v61  ;;  %v19275_v59 = vpop.f32.mrb[47].mxu1  ;;  %v4272_v42 = vsel %vm1217_vm3, %v16170_v23, %v16171_v22  ;;  %v4005_v35 = vsel %vm896_vm2, %v16121_v29, %v16166_v47  ;;  %v3990_v10 = vsel %vm896_vm2, %v16116_v32, %v16165_v50 }
 0x2b5   : > { %5497 = vmatprep.subr.bf16.mxu0 %v4516_v9  ;;  %v19278_v26 = vpop.permute.xlu1 %16178  ;;  %v19280_v48 = vpop.permute.xlu0 %16173 }
 0x2b6   : > { %v16176_v5 = vunpack.i.h.bf16 %v19280_v48  ;;  %v16175_v0 = vunpack.i.l.bf16 %v19280_v48  ;;  %v16180_v54 = vunpack.i.l.bf16 %v19278_v26 }
 0x2b8   : > { %5498 = vmatpush1.bf16.msra.mxu0 %v4515_v44  ;;  %v19291_v52 = vpop.f32.mrb[48].mxu1  ;;  %v4287_v43 = vsel %vm1217_vm3, %v16175_v0, %v16176_v5  ;;  %v4271_v29 = vsel %vm1217_vm3, %v16180_v54, %v16170_v23 }
 0x2b9   : > { %5641 = vmatprep.subr.bf16.mxu0 %v4504_v51  ;;  %v19295_v12 = vpop.permute.xlu1 %16188  ;;  %v19297_v41 = vpop.permute.xlu0 %16183  ;;  %v5790_v58 = vpack.c.bf16 %v4287_v43, %v4272_v42  ;;  %v4006_v43 = vsel %vm896_vm2, %v16166_v47, %v16156_v7  ;;  %v4519_v47 = vpack.c.bf16 %v4005_v35, %v3990_v10 }
 0x2ba   : > { %14143 = vmatmul.mubr.msk.bf16.vlgmr.msra.gmra.mrb[84].mxu1 %vm1428_vm0, %v19005_v40  ;;  %v19303_v57 = vpop.f32.mrb[49].mxu1  ;;  %v16185_v17 = vunpack.i.l.bf16 %v19297_v41  ;;  %v16190_v7 = vunpack.i.l.bf16 %v19295_v12 }
 0x2bb   : > { %14132 = vmatmul.mubr.msk.bf16.gmra.mrb[36].mxu0 %vm1428_vm0, %v19027_v13  ;;  %5715 = vmatpush1.bf16.msra.mxu1 %v4505_v24  ;;  %v19312_v25 = vpop.f32.mrb[50].mxu1  ;;  %v3975_v24 = vsel %vm896_vm2, %v16106_v37, %v16161_v45  ;;  %v22148_v37 = vunpack.i.h.bf16 %v19297_v41 }
 0x2bc   : > { %5716 = vmatprep.subr.bf16.mxu1 %v4522_v15  ;;  %5610 = vmatprep.mubr.bf16.mxu1 %v22213_v61  ;;  %v19315_v19 = vpop.f32.mrb[51].mxu1  ;;  %v3991_v15 = vsel %vm896_vm2, %v16165_v50, %v16155_v55  ;;  %v4503_v21 = vpack.c.bf16 %v3975_v24, %v3960_v30 }
 0x2bd   : > { %v19317_v39 = vpop.permute.xlu1 %16198  ;;  %v19319_v60 = vpop.permute.xlu0 %16193  ;;  %5401 = vmatprep.mubr.bf16.mxu0 %v22213_v61  ;;  %v4520_v55 = vpack.c.bf16 %v4006_v43, %v3991_v15  ;;  %v4302_v50 = vsel %vm1217_vm3, %v16185_v17, %v22148_v37 }
 0x2be   : > { %v16201_v14 = vunpack.i.h.bf16 %v19317_v39  ;;  %v16200_v16 = vunpack.i.l.bf16 %v19317_v39  ;;  %v16196_v24 = vunpack.i.h.bf16 %v19319_v60  ;;  %v16195_v30 = vunpack.i.l.bf16 %v19319_v60 }
 0x2bf   : > { %5717 = vmatpush1.bf16.msra.mxu1 %v4521_v20  ;;  %v16181_v20 = vunpack.i.h.bf16 %v19278_v26  ;;  %v22149_v26 = vunpack.i.h.bf16 %v19295_v12 }
 0x2c0   : > { %5924 = vmatprep.subr.bf16.mxu1 %v5790_v58  ;;  %v4270_v33 = vsel %vm1217_vm3, %v16200_v16, %v16180_v54 }
 0x2c1   : > { %v19327_v9 = vpop.permute.xlu1 %4173  ;;  %v19329_v56 = vpop.permute.xlu0 %4141  ;;  %v4285_v32 = vsel %vm1217_vm3, %v16201_v14, %v16181_v20  ;;  %v4286_v42 = vsel %vm1217_vm3, %v16181_v20, %v16175_v0  ;;  %v4317_v54 = vsel %vm1217_vm3, %v16190_v7, %v22149_v26 }
 0x2c2   : > { %14144 = vmatmul.mubr.msk.bf16.gmra.mrb[88].mxu1 %vm1428_vm0, %v19027_v13  ;;  %v5788_v20 = vpack.c.bf16 %v4285_v32, %v4270_v33  ;;  %v5789_v33 = vpack.c.bf16 %v4286_v42, %v4271_v29  ;;  %v4301_v32 = vsel %vm1217_vm3, %v16195_v30, %v16185_v17  ;;  %v5806_v48 = vpack.c.bf16 %v4317_v54, %v4302_v50 }
 0x2c3   : > { %14133 = vmatmul.mubr.msk.bf16.gmra.mrb[40].mxu0 %vm1428_vm0, %v19043_v1  ;;  %5620 = vmatprep.mubr.bf16.mxu1 %v22213_v61 }
 0x2c4   : > { %5411 = vmatprep.mubr.bf16.mxu0 %v22213_v61 }
 0x2c5   : > { %v19337_v18 = vpop.permute.xlu1 %4205  ;;  %v19339_v53 = vpop.permute.xlu0 %16203 }
 0x2c9   : > { %v19341_v44 = vpop.permute.xlu1 %16208  ;;  %v19353_v27 = vpop.permute.xlu0 %4237 }
 0x2ca   : > { %14145 = vmatmul.mubr.msk.bf16.gmra.mrb[92].mxu1 %vm1428_vm0, %v19043_v1  ;;  %v16211_v10 = vunpack.i.h.bf16 %v19341_v44 }
 0x2cb   : > { %14134 = vmatmul.mubr.msk.bf16.gmra.mrb[44].mxu0 %vm1428_vm0, %v19079_v11  ;;  %5630 = vmatprep.mubr.bf16.mxu1 %v22213_v61 }
 0x2cc   : > { %5527 = vmatprep.mubr.bf16.mxu0 %v22213_v61 }
 0x2cd   : > { %v19351_v51 = vpop.permute.xlu1 %16218  ;;  %v19388_v34 = vpop.permute.xlu0 %16213 }
 0x2ce   : > { %v16216_v43 = vunpack.i.h.bf16 %v19388_v34  ;;  %v22150_v0 = vunpack.i.l.bf16 %v19388_v34  ;;  %v16221_v37 = vunpack.i.h.bf16 %v19351_v51  ;;  %v16220_v26 = vunpack.i.l.bf16 %v19351_v51 }
 0x2d1   : > { %v19373_v45 = vpop.permute.xlu1 %16228 }
 0x2d2   : > { %14146 = vmatmul.mubr.msk.bf16.gmra.mrb[96].mxu1 %vm1428_vm0, %v19079_v11 }
 0x2d3   : > { %14139 = vmatmul.mubr.msk.bf16.vlgmr.msra.gmra.mrb[48].mxu0 %vm1428_vm0, %v19005_v40  ;;  %5746 = vmatprep.mubr.bf16.mxu1 %v22213_v61 }
 0x2d4   : > { %5642 = vmatpush1.bf16.msra.mxu0 %v4503_v21  ;;  %5537 = vmatprep.mubr.bf16.mxu0 %v22213_v61  ;;  %v22151_v21 = vunpack.i.l.bf16 %v19341_v44 }
 0x2d5   : > { %5643 = vmatprep.subr.bf16.mxu0 %v4520_v55  ;;  %v19403_v58 = vpop.permute.xlu1 %16238 }
 0x2d6   : > { %v22152_v15 = vunpack.i.h.bf16 %v19403_v58  ;;  %v16240_v23 = vunpack.i.l.bf16 %v19403_v58  ;;  %v4276_v17 = vsel %vm1217_vm3, %v22151_v21, %v16211_v10 }
 0x2d8   : > { %v19422_v35 = vsel %vm1217_vm3, %v16171_v22, %v16240_v23  ;;  %v19429_v60 = vsel %vm1217_vm3, %v16176_v5, %v22152_v15  ;;  %5644 = vmatpush1.bf16.msra.mxu0 %v4519_v47  ;;  %v4316_v22 = vsel %vm1217_vm3, %v16196_v24, %v16190_v7  ;;  %v4291_v5 = vsel %vm1217_vm3, %v22150_v0, %v16216_v43  ;;  %v19453_v47 = vpop.permute.xlu0 %16223 }
 0x2d9   : > { %5851 = vmatprep.subr.bf16.mxu0 %v5788_v20  ;;  %v19433_v55 = vpop.permute.xlu1 %16248  ;;  %v5805_v7 = vpack.c.bf16 %v4316_v22, %v4301_v32  ;;  %v5794_v42 = vpack.c.bf16 %v4291_v5, %v4276_v17  ;;  %v16206_v17 = vunpack.i.h.bf16 %v19339_v53 }
 0x2da   : > { %14151 = vmatmul.mubr.msk.bf16.vlgmr.msra.gmra.mrb[100].mxu1 %vm1428_vm0, %v19005_v40 }
 0x2db   : > { %14140 = vmatmul.mubr.msk.bf16.gmra.mrb[52].mxu0 %vm1428_vm0, %v19027_v13  ;;  %5925 = vmatpush1.bf16.msra.mxu1 %v5789_v33  ;;  %v4314_v8 = vsel %vm1217_vm3, %v19353_v27, %v16206_v17 }
 0x2dc   : > { %5926 = vmatprep.subr.bf16.mxu1 %v5806_v48  ;;  %5547 = vmatprep.mubr.bf16.mxu0 %v22213_v61  ;;  %v19467_v22 = vpop.permute.xlu0 %16233 }
 0x2dd   : > { %v19447_v29 = vpop.permute.xlu1 %16258  ;;  %5756 = vmatprep.mubr.bf16.mxu1 %v22213_v61 }
 0x2df   : > { %5927 = vmatpush1.bf16.msra.mxu1 %v5805_v7  ;;  %v4284_v7 = vsel %vm1217_vm3, %v19327_v9, %v16201_v14 }
 0x2e0   : > { %6070 = vmatprep.subr.bf16.mxu1 %v5794_v42  ;;  %v16205_v42 = vunpack.i.l.bf16 %v19339_v53  ;;  %v4269_v53 = vsel %vm1217_vm3, %v19329_v56, %v16200_v16 }
 0x2e1   : > { %v19455_v50 = vpop.permute.xlu1 %16268  ;;  %v5787_v21 = vpack.c.bf16 %v4284_v7, %v4269_v53 }
 0x2e2   : > { %14152 = vmatmul.mubr.msk.bf16.gmra.mrb[104].mxu1 %vm1428_vm0, %v19027_v13  ;;  %v4299_v39 = vsel %vm1217_vm3, %v19337_v18, %v16205_v42 }
 0x2e3   : > { %14141 = vmatmul.mubr.msk.bf16.gmra.mrb[56].mxu0 %vm1428_vm0, %v19043_v1  ;;  %5766 = vmatprep.mubr.bf16.mxu1 %v22213_v61  ;;  %v5803_v51 = vpack.c.bf16 %v4314_v8, %v4299_v39  ;;  %v16235_v8 = vunpack.i.l.bf16 %v19467_v22 }
 0x2e4   : > { %5557 = vmatprep.mubr.bf16.mxu0 %v22213_v61 }
 0x2e5   : > { %v19463_v20 = vpop.permute.xlu1 %16278 }
 0x2e6   : > { %v22146_v54 = vunpack.i.h.bf16 %v19463_v20  ;;  %v22147_v33 = vunpack.i.l.bf16 %v19463_v20 }
 0x2e8   : > { %v19472_v32 = vsel %vm1217_vm3, %v16211_v10, %v22147_v33  ;;  %v19477_v48 = vsel %vm1217_vm3, %v16216_v43, %v22146_v54  ;;  %v19491_v43 = vpop.permute.xlu0 %16243  ;;  %v4300_v54 = vsel %vm1217_vm3, %v16205_v42, %v16195_v30  ;;  %v4315_v33 = vsel %vm1217_vm3, %v16206_v17, %v16196_v24 }
 0x2e9   : > { %v19479_v5 = vpop.permute.xlu1 %4203  ;;  %v5804_v14 = vpack.c.bf16 %v4315_v33, %v4300_v54  ;;  %v16230_v24 = vunpack.i.l.bf16 %v19373_v45  ;;  %v22154_v30 = vunpack.i.h.bf16 %v19453_v47  ;;  %v16225_v17 = vunpack.i.l.bf16 %v19453_v47 }
 0x2ea   : > { %14153 = vmatmul.mubr.msk.bf16.gmra.mrb[108].mxu1 %vm1428_vm0, %v19043_v1  ;;  %v4274_v54 = vsel %vm1217_vm3, %v16240_v23, %v16220_v26  ;;  %v22255_v33 = vunpack.i.h.bf16 %v19403_v58  ;;  %v22256_v42 = vunpack.i.l.bf16 %v19341_v44  ;;  %v16251_v58 = vunpack.i.h.bf16 %v19433_v55 }
 0x2eb   : > { %14142 = vmatmul.mubr.msk.bf16.gmra.mrb[60].mxu0 %vm1428_vm0, %v19079_v11  ;;  %5776 = vmatprep.mubr.bf16.mxu1 %v22213_v61 }
 0x2ec   : > { %5673 = vmatprep.mubr.bf16.mxu0 %v22213_v61  ;;  %v19519_v15 = vpop.permute.xlu0 %16253  ;;  %v4289_v7 = vsel %vm1217_vm3, %v22255_v33, %v16221_v37  ;;  %v4275_v53 = vsel %vm1217_vm3, %v16220_v26, %v22256_v42  ;;  %v19548_v26 = vld [vmem:[%s22100_s3 + $0x40] sm:$0xff]  }
 0x2ed   : > { %v19493_v10 = vpop.permute.xlu1 %16288  ;;  %v16256_v39 = vunpack.i.h.bf16 %v19519_v15 }
 0x2f1   : > { %v19509_v0 = vpop.permute.xlu1 %4267 }
 0x2f2   : > { %14154 = vmatmul.mubr.msk.bf16.gmra.mrb[112].mxu1 %vm1428_vm0, %v19079_v11 }
 0x2f3   : > { %14147 = vmatmul.mubr.msk.bf16.vlgmr.msra.gmra.mrb[64].mxu0 %vm1428_vm0, %v19005_v40  ;;  %5956 = vmatprep.mubr.bf16.mxu1 %v22213_v61  ;;  %v22257_v40 = vunpack.i.l.bf16 %v19388_v34  ;;  %v5792_v34 = vpack.c.bf16 %v4289_v7, %v4274_v54 }
 0x2f4   : > { %5852 = vmatpush1.bf16.msra.mxu0 %v5787_v21  ;;  %5683 = vmatprep.mubr.bf16.mxu0 %v22213_v61  ;;  %v16236_v21 = vunpack.i.h.bf16 %v19467_v22  ;;  %v4306_v22 = vsel %vm1217_vm3, %v16225_v17, %v22154_v30  ;;  %v4305_v30 = vsel %vm1217_vm3, %v16235_v8, %v16225_v17  ;;  %v19583_v17 = vld [vmem:[%s22100_s3 + $0x48] sm:$0xff]  }
 0x2f5   : > { %v4290_v16 = vsel %vm1217_vm3, %v16221_v37, %v22257_v40  ;;  %5853 = vmatprep.subr.bf16.mxu0 %v5804_v14  ;;  %v19539_v23 = vpop.permute.xlu1 %16298  ;;  %v16255_v37 = vunpack.i.l.bf16 %v19519_v15  ;;  %v22258_v14 = vunpack.i.h.bf16 %v19373_v45  ;;  %v16250_v15 = vunpack.i.l.bf16 %v19433_v55 }
 0x2f6   : > { %v16301_v33 = vunpack.i.h.bf16 %v19539_v23  ;;  %v22155_v44 = vunpack.i.l.bf16 %v19539_v23  ;;  %v5793_v54 = vpack.c.bf16 %v4290_v16, %v4275_v53  ;;  %v16245_v53 = vunpack.i.l.bf16 %v19491_v43 }
 0x2f7   : > { %v4321_v42 = vsel %vm1217_vm3, %v16230_v24, %v22258_v14  ;;  %v4320_v14 = vsel %vm1217_vm3, %v16236_v21, %v16230_v24  ;;  %v4280_v16 = vsel %vm1217_vm3, %v16250_v15, %v16251_v58 }
 0x2f8   : > { %v19560_v40 = vsel %vm1217_vm3, %v16251_v58, %v22155_v44  ;;  %v19565_v4 = vsel %vm1217_vm3, %v16256_v39, %v16301_v33  ;;  %5854 = vmatpush1.bf16.msra.mxu0 %v5803_v51  ;;  %v5810_v44 = vpack.c.bf16 %v4321_v42, %v4306_v22  ;;  %v4295_v51 = vsel %vm1217_vm3, %v16255_v37, %v16256_v39  ;;  %v19611_v39 = vld [vmem:[%s22100_s3 + $0x58] sm:$0xff]  }
 0x2f9   : > { %5997 = vmatprep.subr.bf16.mxu0 %v5792_v34  ;;  %v5799_v7 = vpack.c.bf16 %v19565_v4, %v19560_v40  ;;  %v5809_v55 = vpack.c.bf16 %v4320_v14, %v4305_v30  ;;  %v5798_v24 = vpack.c.bf16 %v4295_v51, %v4280_v16  ;;  %v19596_v30 = vpop.permute.xlu0 %16263  ;;  %v22260_v42 = vunpack.i.h.bf16 %v19297_v41 }
 0x2fa   : > { %14163 = vmatmul.mubr.msk.bf16.vlgmr.msra.gmra.mrb[52].mxu1 %vm1428_vm0, %v19548_v26  ;;  %v16260_v14 = vunpack.i.l.bf16 %v19447_v29  ;;  %v16271_v51 = vunpack.i.h.bf16 %v19455_v50  ;;  %v22262_v16 = vunpack.i.l.bf16 %v19463_v20 }
 0x2fb   : > { %14148 = vmatmul.mubr.msk.bf16.gmra.mrb[68].mxu0 %vm1428_vm0, %v19027_v13  ;;  %6071 = vmatpush1.bf16.msra.mxu1 %v5793_v54  ;;  %v19594_v13 = vld [vmem:[%s22100_s3 + $0x50] sm:$0xff]   ;;  %v16261_v54 = vunpack.i.h.bf16 %v19447_v29  ;;  %v22261_v29 = vpack.c.bf16 %v19429_v60, %v19422_v35 }
 0x2fc   : > { %6072 = vmatprep.subr.bf16.mxu1 %v5810_v44  ;;  %5693 = vmatprep.mubr.bf16.mxu0 %v22213_v61  ;;  %v4304_v44 = vsel %vm1217_vm3, %v16245_v53, %v16235_v8  ;;  %v16266_v8 = vunpack.i.h.bf16 %v19596_v30 }
 0x2fd   : > { %5966 = vmatprep.mubr.bf16.mxu1 %v22213_v61  ;;  %v19606_v58 = vpop.permute.xlu0 %16273 }
 0x2fe   : > { %v16275_v35 = vunpack.i.l.bf16 %v19606_v58 }
 0x2ff   : > { %6073 = vmatpush1.bf16.msra.mxu1 %v5809_v55  ;;  %v16270_v55 = vunpack.i.l.bf16 %v19455_v50 }
 0x300   : > { %6216 = vmatprep.subr.bf16.mxu1 %v5798_v24  ;;  %v4278_v24 = vsel %vm1217_vm3, %v22262_v16, %v16260_v14 }
 0x301   : > { %v19632_v41 = vpop.permute.xlu0 %4171 }
 0x302   : > { %14164 = vmatmul.mubr.msk.bf16.gmra.mrb[56].mxu1 %vm1428_vm0, %v19583_v17 }
 0x303   : > { %14149 = vmatmul.mubr.msk.bf16.gmra.mrb[72].mxu0 %vm1428_vm0, %v19043_v1  ;;  %5976 = vmatprep.mubr.bf16.mxu1 %v22213_v61  ;;  %v16246_v1 = vunpack.i.h.bf16 %v19491_v43  ;;  %v4303_v43 = vsel %vm1217_vm3, %v22260_v42, %v16245_v53  ;;  %v16276_v42 = vunpack.i.h.bf16 %v19606_v58 }
 0x304   : > { %5703 = vmatprep.mubr.bf16.mxu0 %v22213_v61 }
 0x305   : > { %v4319_v34 = vsel %vm1217_vm3, %v16246_v1, %v16236_v21  ;;  %v16265_v21 = vunpack.i.l.bf16 %v19596_v30 }
 0x306   : > { %v19789_v4 = vpop.permute.xlu1 %6573 }
 0x307   : > { %v4310_v60 = vsel %vm1217_vm3, %v16265_v21, %v16266_v8 }
 0x30a   : > { %14165 = vmatmul.mubr.msk.bf16.gmra.mrb[60].mxu1 %vm1428_vm0, %v19594_v13 }
 0x30b   : > { %14150 = vmatmul.mubr.msk.bf16.gmra.mrb[76].mxu0 %vm1428_vm0, %v19079_v11  ;;  %5986 = vmatprep.mubr.bf16.mxu1 %v22213_v61  ;;  %v22259_v11 = vunpack.i.h.bf16 %v19295_v12  ;;  %v5808_v12 = vpack.c.bf16 %v4319_v34, %v4304_v44  ;;  %v4279_v44 = vsel %vm1217_vm3, %v16260_v14, %v16250_v15  ;;  %v4294_v34 = vsel %vm1217_vm3, %v16261_v54, %v16255_v37 }
 0x30c   : > { %5883 = vmatprep.mubr.bf16.mxu0 %v22213_v61  ;;  %v4398_v15 = vsel %vm1217_vm3, %v19479_v5, %v19327_v9  ;;  %v4397_v37 = vsel %vm1217_vm3, %v19632_v41, %v19329_v56  ;;  %v5797_v58 = vpack.c.bf16 %v4294_v34, %v4279_v44  ;;  %v4309_v14 = vsel %vm1217_vm3, %v16275_v35, %v16265_v21 }
 0x30d   : > { %v4318_v22 = vsel %vm1217_vm3, %v22259_v11, %v16246_v1  ;;  %v22263_v1 = vunpack.i.h.bf16 %v19463_v20  ;;  %v4325_v20 = vsel %vm1217_vm3, %v16270_v55, %v16271_v51  ;;  %v16291_v34 = vunpack.i.h.bf16 %v19493_v10 }
 0x30e   : > { %v5807_v11 = vpack.c.bf16 %v4318_v22, %v4303_v43  ;;  %v5814_v43 = vpack.c.bf16 %v4325_v20, %v4310_v60  ;;  %v22265_v60 = vunpack.i.h.bf16 %v19373_v45 }
 0x30f   : > { %v4293_v53 = vsel %vm1217_vm3, %v22263_v1, %v16261_v54  ;;  %v4324_v54 = vsel %vm1217_vm3, %v16276_v42, %v16270_v55  ;;  %v16284_v55 = vpop.permute.xlu0 %16283 }
 0x310   : > { %v5796_v22 = vpack.c.bf16 %v4293_v53, %v4278_v24  ;;  %v5813_v9 = vpack.c.bf16 %v4324_v54, %v4309_v14  ;;  %v16286_v21 = vunpack.i.h.bf16 %v16284_v55  ;;  %v16285_v24 = vunpack.i.l.bf16 %v16284_v55 }
 0x312   : > { %14166 = vmatmul.mubr.msk.bf16.gmra.mrb[64].mxu1 %vm1428_vm0, %v19611_v39  ;;  %v4308_v53 = vsel %vm1217_vm3, %v16285_v24, %v16275_v35  ;;  %v4323_v44 = vsel %vm1217_vm3, %v16286_v21, %v16276_v42  ;;  %v4322_v20 = vsel %vm1217_vm3, %v22265_v60, %v16286_v21  ;;  %v4400_v35 = vsel %vm1217_vm3, %v19509_v0, %v19353_v27 }
 0x313   : > { %14159 = vmatmul.mubr.msk.bf16.vlgmr.msra.gmra.mrb[80].mxu0 %vm1428_vm0, %v19548_v26  ;;  %6102 = vmatprep.mubr.bf16.mxu1 %v22213_v61  ;;  %v4236_v1 = vpop.permute.xlu0 %4235  ;;  %v5812_v45 = vpack.c.bf16 %v4323_v44, %v4308_v53  ;;  %v4297_v27 = vsel %vm1217_vm3, %v16301_v33, %v16291_v34 }
 0x314   : > { %5998 = vmatpush1.bf16.msra.mxu0 %v22261_v29  ;;  %5893 = vmatprep.mubr.bf16.mxu0 %v22213_v61  ;;  %v4399_v42 = vsel %vm1217_vm3, %v4236_v1, %v19337_v18  ;;  %v4298_v18 = vsel %vm1217_vm3, %v16291_v34, %v19479_v5 }
 0x315   : > { %5999 = vmatprep.subr.bf16.mxu0 %v5808_v12  ;;  %v22264_v12 = vld [vmem:[#allocation6_spill] sm:$0xff] }
 0x316   : > { %v4432_v29 = vmul.f32 %v22264_v12, %v4398_v15  ;;  %v4416_v16 = vmul.f32 %v22264_v12, %v4397_v37  ;;  %v22266_v15 = vunpack.i.h.bf16 %v19453_v47  ;;  %v22267_v47 = vpack.c.bf16 %v19477_v48, %v19472_v32 }
 0x317   : > { %v4464_v32 = vmul.f32 %v22264_v12, %v4400_v35  ;;  %v4448_v48 = vmul.f32 %v22264_v12, %v4399_v42 }
 0x318   : > { %6000 = vmatpush1.bf16.msra.mxu0 %v5807_v11  ;;  %v5802_v56 = vpack.c.bf16 %v4432_v29, %v4416_v16  ;;  %v16290_v11 = vunpack.i.l.bf16 %v19493_v10  ;;  %v4307_v37 = vsel %vm1217_vm3, %v22266_v15, %v16285_v24  ;;  %v22268_v10 = vunpack.i.l.bf16 %v19539_v23 }
 0x319   : > { %6143 = vmatprep.subr.bf16.mxu0 %v5796_v22  ;;  %v16294_v22 = vpop.permute.xlu0 %16293  ;;  %v5811_v54 = vpack.c.bf16 %v4322_v20, %v4307_v37  ;;  %v19797_v37 = vpop.permute.xlu1 %6583 }
 0x31a   : > { %14171 = vmatmul.mubr.msk.bf16.vlgmr.msra.gmra.mrb[68].mxu1 %vm1428_vm0, %v19548_v26  ;;  %v16296_v14 = vunpack.i.h.bf16 %v16294_v22  ;;  %v16295_v29 = vunpack.i.l.bf16 %v16294_v22 }
 0x31b   : > { %14160 = vmatmul.mubr.msk.bf16.gmra.mrb[84].mxu0 %vm1428_vm0, %v19583_v17  ;;  %6217 = vmatpush1.bf16.msra.mxu1 %v5797_v58  ;;  %v4282_v58 = vsel %vm1217_vm3, %v22268_v10, %v16290_v11 }
 0x31c   : > { %6218 = vmatprep.subr.bf16.mxu1 %v5814_v43  ;;  %5903 = vmatprep.mubr.bf16.mxu0 %v22213_v61  ;;  %v4283_v43 = vsel %vm1217_vm3, %v16290_v11, %v19632_v41  ;;  %v5800_v16 = vpack.c.bf16 %v4297_v27, %v4282_v58  ;;  %v4328_v33 = vsel %vm1217_vm3, %v16296_v14, %v19509_v0 }
 0x31d   : > { %6112 = vmatprep.mubr.bf16.mxu1 %v22213_v61  ;;  %v5801_v23 = vpack.c.bf16 %v4298_v18, %v4283_v43  ;;  %v4313_v5 = vsel %vm1217_vm3, %v16295_v29, %v4236_v1  ;;  %v5818_v41 = vpack.c.bf16 %v4464_v32, %v4448_v48  ;;  %v16304_v0 = vpop.permute.xlu0 %16303 }
 0x31e   : > { %v16305_v55 = vunpack.i.l.bf16 %v16304_v0 }
 0x31f   : > { %6219 = vmatpush1.bf16.msra.mxu1 %v5813_v9  ;;  %v5817_v9 = vpack.c.bf16 %v4328_v33, %v4313_v5 }
 0x320   : > { %6362 = vmatprep.subr.bf16.mxu1 %v5802_v56  ;;  %v16306_v56 = vunpack.i.h.bf16 %v16304_v0  ;;  %v4312_v21 = vsel %vm1217_vm3, %v16305_v55, %v16295_v29  ;;  %v4311_v53 = vsel %vm1217_vm3, %v16266_v8, %v16305_v55 }
 0x321   : > { %v19792_v30 = vpop.permute.xlu0 %6578 }
 0x322   : > { %14172 = vmatmul.mubr.msk.bf16.gmra.mrb[72].mxu1 %vm1428_vm0, %v19583_v17  ;;  %v4327_v24 = vsel %vm1217_vm3, %v16306_v56, %v16296_v14  ;;  %v4326_v1 = vsel %vm1217_vm3, %v16271_v51, %v16306_v56 }
 0x323   : > { %14161 = vmatmul.mubr.msk.bf16.gmra.mrb[88].mxu0 %vm1428_vm0, %v19594_v13  ;;  %6122 = vmatprep.mubr.bf16.mxu1 %v22213_v61  ;;  %v5816_v44 = vpack.c.bf16 %v4327_v24, %v4312_v21  ;;  %v5815_v50 = vpack.c.bf16 %v4326_v1, %v4311_v53 }
 0x324   : > { %5913 = vmatprep.mubr.bf16.mxu0 %v22213_v61 }
 0x32a   : > { %14173 = vmatmul.mubr.msk.bf16.gmra.mrb[76].mxu1 %vm1428_vm0, %v19594_v13 }
 0x32b   : > { %14162 = vmatmul.mubr.msk.bf16.gmra.mrb[92].mxu0 %vm1428_vm0, %v19611_v39  ;;  %6132 = vmatprep.mubr.bf16.mxu1 %v22213_v61 }
 0x32c   : > { %6029 = vmatprep.mubr.bf16.mxu0 %v22213_v61 }
 0x332   : > { %14174 = vmatmul.mubr.msk.bf16.gmra.mrb[80].mxu1 %vm1428_vm0, %v19611_v39 }
 0x333   : > { %14167 = vmatmul.mubr.msk.bf16.vlgmr.msra.gmra.mrb[32].mxu0 %vm1428_vm0, %v19548_v26  ;;  %6248 = vmatprep.mubr.bf16.mxu1 %v22213_v61 }
 0x334   : > { %6144 = vmatpush1.bf16.msra.mxu0 %v22267_v47  ;;  %6039 = vmatprep.mubr.bf16.mxu0 %v22213_v61  ;;  %v19800_v47 = vpop.permute.xlu0 %6588 }
 0x335   : > { %6145 = vmatprep.subr.bf16.mxu0 %v5812_v45 }
 0x338   : > { %6146 = vmatpush1.bf16.msra.mxu0 %v5811_v54 }
 0x339   : > { %6289 = vmatprep.subr.bf16.mxu0 %v5800_v16  ;;  %v19805_v16 = vpop.permute.xlu1 %6593 }
 0x33a   : > { %14179 = vmatmul.mubr.msk.bf16.vlgmr.msra.gmra.mrb[84].mxu1 %vm1428_vm0, %v19548_v26 }
 0x33b   : > { %14168 = vmatmul.mubr.msk.bf16.gmra.mrb[36].mxu0 %vm1428_vm0, %v19583_v17  ;;  %6363 = vmatpush1.bf16.msra.mxu1 %v5801_v23 }
 0x33c   : > { %6364 = vmatprep.subr.bf16.mxu1 %v5818_v41  ;;  %6049 = vmatprep.mubr.bf16.mxu0 %v22213_v61 }
 0x33d   : > { %6258 = vmatprep.mubr.bf16.mxu1 %v22213_v61 }
 0x33f   : > { %6365 = vmatpush1.bf16.msra.mxu1 %v5817_v9  ;;  %v19808_v9 = vpop.permute.xlu0 %6598 }
 0x342   : > { %14180 = vmatmul.mubr.msk.bf16.gmra.mrb[88].mxu1 %vm1428_vm0, %v19583_v17 }
 0x343   : > { %14169 = vmatmul.mubr.msk.bf16.gmra.mrb[40].mxu0 %vm1428_vm0, %v19594_v13  ;;  %6268 = vmatprep.mubr.bf16.mxu1 %v22213_v61 }
 0x344   : > { %6059 = vmatprep.mubr.bf16.mxu0 %v22213_v61 }
 0x34a   : > { %14181 = vmatmul.mubr.msk.bf16.gmra.mrb[92].mxu1 %vm1428_vm0, %v19594_v13 }
 0x34b   : > { %14170 = vmatmul.mubr.msk.bf16.gmra.mrb[44].mxu0 %vm1428_vm0, %v19611_v39  ;;  %6278 = vmatprep.mubr.bf16.mxu1 %v22213_v61 }
 0x34c   : > { %6175 = vmatprep.mubr.bf16.mxu0 %v22213_v61 }
 0x352   : > { %14182 = vmatmul.mubr.msk.bf16.gmra.mrb[96].mxu1 %vm1428_vm0, %v19611_v39 }
 0x353   : > { %14175 = vmatmul.mubr.msk.bf16.vlgmr.msra.gmra.mrb[48].mxu0 %vm1428_vm0, %v19548_v26  ;;  %6394 = vmatprep.mubr.bf16.mxu1 %v22213_v61 }
 0x354   : > { %6290 = vmatpush1.bf16.msra.mxu0 %v5799_v7  ;;  %6185 = vmatprep.mubr.bf16.mxu0 %v22213_v61 }
 0x355   : > { %6291 = vmatprep.subr.bf16.mxu0 %v5816_v44 }
 0x358   : > { %6292 = vmatpush1.bf16.msra.mxu0 %v5815_v50 }
 0x35a   : > { %14187 = vmatmul.mubr.msk.bf16.vlgmr.msra.gmra.mrb[100].mxu1 %vm1428_vm0, %v19548_v26 }
 0x35b   : > { %14176 = vmatmul.mubr.msk.bf16.gmra.mrb[52].mxu0 %vm1428_vm0, %v19583_v17  ;;  %6404 = vmatprep.mubr.bf16.mxu1 %v22213_v61 }
 0x35c   : > { %6195 = vmatprep.mubr.bf16.mxu0 %v22213_v61 }
 0x362   : > { %14188 = vmatmul.mubr.msk.bf16.gmra.mrb[104].mxu1 %vm1428_vm0, %v19583_v17 }
 0x363   : > { %14177 = vmatmul.mubr.msk.bf16.gmra.mrb[56].mxu0 %vm1428_vm0, %v19594_v13  ;;  %6414 = vmatprep.mubr.bf16.mxu1 %v22213_v61 }
 0x364   : > { %6205 = vmatprep.mubr.bf16.mxu0 %v22213_v61 }
 0x36a   : > { %14189 = vmatmul.mubr.msk.bf16.gmra.mrb[108].mxu1 %vm1428_vm0, %v19594_v13 }
 0x36b   : > { %14178 = vmatmul.mubr.msk.bf16.gmra.mrb[60].mxu0 %vm1428_vm0, %v19611_v39  ;;  %6424 = vmatprep.mubr.bf16.mxu1 %v22213_v61 }
 0x36c   : > { %6321 = vmatprep.mubr.bf16.mxu0 %v22213_v61 }
 0x372   : > { %14190 = vmatmul.mubr.msk.bf16.gmra.mrb[112].mxu1 %vm1428_vm0, %v19611_v39 }
 0x373   : > { %14183 = vmatmul.mubr.msk.bf16.vlgmr.msra.gmra.mrb[64].mxu0 %vm1428_vm0, %v19548_v26  ;;  %7009 = vmatprep.mubr.bf16.mxu1 %v22213_v61 }
 0x374   : > { %6331 = vmatprep.mubr.bf16.mxu0 %v22213_v61 }
 0x37b   : > { %14184 = vmatmul.mubr.msk.bf16.gmra.mrb[68].mxu0 %vm1428_vm0, %v19583_v17 }
 0x37c   : > { %6341 = vmatprep.mubr.bf16.mxu0 %v22213_v61 }
 0x383   : > { %14185 = vmatmul.mubr.msk.bf16.gmra.mrb[72].mxu0 %vm1428_vm0, %v19594_v13 }
 0x384   : > { %6351 = vmatprep.mubr.bf16.mxu0 %v22213_v61 }
 0x38b   : > { %14186 = vmatmul.mubr.msk.bf16.gmra.mrb[76].mxu0 %vm1428_vm0, %v19611_v39 }
 0x38c   : > { %6968 = vmatprep.mubr.bf16.mxu0 %v22213_v61 }
 0x3cd   : > { %v5958_v26 = vpop.f32.mrb[52].mxu1 }
 0x3ce   : > { %v6613_v40 = vadd.f32 %v19789_v4, %v5958_v26  ;;  %v5960_v7 = vpop.f32.mrb[53].mxu1  ;;  %v19813_v26 = vpop.permute.xlu1 %6603 }
 0x3cf   : > { %v6614_v17 = vadd.f32 %v19789_v4, %v5960_v7  ;;  %v5962_v51 = vpop.f32.mrb[54].mxu1  ;;  %v19815_v7 = vpop.permute.xlu0 %6608 }
 0x3d0   : > { %v6629_v13 = vadd.f32 %v19792_v30, %v5962_v51  ;;  %v5964_v8 = vpop.f32.mrb[55].mxu1  ;;  %v6741_v11 = vmax.f32 %v6613_v40, 0.0 }
 0x3d1   : > { %v6630_v34 = vadd.f32 %v19792_v30, %v5964_v8  ;;  %v6742_v60 = vmax.f32 %v6614_v17, 0.0 }
 0x3d2   : > { %v6757_v39 = vmax.f32 %v6629_v13, 0.0 }
 0x3d3   : > { %v6758_v20 = vmax.f32 %v6630_v34, 0.0 }
 0x3d4   : > { %v6870_v15 = vpack.c.bf16 %v6757_v39, %v6741_v11 }
 0x3d5   : > { %v6871_v35 = vpack.c.bf16 %v6758_v20, %v6742_v60  ;;  %v5968_v42 = vpop.f32.mrb[56].mxu1 }
 0x3d6   : > { %v6645_v22 = vadd.f32 %v19797_v37, %v5968_v42  ;;  %v5970_v45 = vpop.f32.mrb[57].mxu1 }
 0x3d7   : > { %v6646_v10 = vadd.f32 %v19797_v37, %v5970_v45  ;;  %v5972_v58 = vpop.f32.mrb[58].mxu1  ;;  %6977 = vmatprep.subr.bf16.mxu1 %v6871_v35 }
 0x3d8   : > { %v6661_v27 = vadd.f32 %v19800_v47, %v5972_v58  ;;  %v5974_v18 = vpop.f32.mrb[59].mxu1  ;;  %6978 = vmatpush1.bf16.msra.mxu1 %v6870_v15  ;;  %v6773_v54 = vmax.f32 %v6645_v22, 0.0 }
 0x3d9   : > { %v6662_v43 = vadd.f32 %v19800_v47, %v5974_v18  ;;  %v6774_v48 = vmax.f32 %v6646_v10, 0.0 }
 0x3da   : > { %v6789_v32 = vmax.f32 %v6661_v27, 0.0 }
 0x3db   : > { %v6790_v14 = vmax.f32 %v6662_v43, 0.0 }
 0x3dc   : > { %v6886_v29 = vpack.c.bf16 %v6789_v32, %v6773_v54 }
 0x3dd   : > { %v6887_v23 = vpack.c.bf16 %v6790_v14, %v6774_v48  ;;  %v5978_v33 = vpop.f32.mrb[60].mxu1 }
 0x3de   : > { %v6677_v5 = vadd.f32 %v19805_v16, %v5978_v33  ;;  %v5980_v41 = vpop.f32.mrb[61].mxu1 }
 0x3df   : > { %v6678_v0 = vadd.f32 %v19805_v16, %v5980_v41  ;;  %v5982_v56 = vpop.f32.mrb[62].mxu1  ;;  %6979 = vmatprep.subr.bf16.mxu1 %v6887_v23 }
 0x3e0   : > { %v6693_v55 = vadd.f32 %v19808_v9, %v5982_v56  ;;  %v5984_v21 = vpop.f32.mrb[63].mxu1  ;;  %6980 = vmatpush1.bf16.msra.mxu1 %v6886_v29  ;;  %v6805_v1 = vmax.f32 %v6677_v5, 0.0 }
 0x3e1   : > { %v6694_v24 = vadd.f32 %v19808_v9, %v5984_v21  ;;  %v6806_v44 = vmax.f32 %v6678_v0, 0.0 }
 0x3e2   : > { %v6821_v53 = vmax.f32 %v6693_v55, 0.0 }
 0x3e3   : > { %v6822_v50 = vmax.f32 %v6694_v24, 0.0 }
 0x3e4   : > { %v6902_v40 = vpack.c.bf16 %v6821_v53, %v6805_v1 }
 0x3e5   : > { %v6903_v17 = vpack.c.bf16 %v6822_v50, %v6806_v44  ;;  %v5988_v51 = vpop.f32.mrb[64].mxu1 }
 0x3e6   : > { %v5885_v13 = vpop.f32.mrb[80].mxu0  ;;  %v6709_v8 = vadd.f32 %v19813_v26, %v5988_v51  ;;  %v5990_v34 = vpop.f32.mrb[65].mxu1 }
 0x3e7   : > { %v15149_v11 = vadd.f32 %v5885_v13, %v19193_v63  ;;  %v5887_v39 = vpop.f32.mrb[81].mxu0  ;;  %v6710_v60 = vadd.f32 %v19813_v26, %v5990_v34  ;;  %v5992_v20 = vpop.f32.mrb[66].mxu1  ;;  %6981 = vmatprep.subr.bf16.mxu1 %v6903_v17 }
 0x3e8   : > { %v15150_v15 = vadd.f32 %v5887_v39, %v19197_v38  ;;  %v5889_v35 = vpop.f32.mrb[82].mxu0  ;;  %v6725_v42 = vadd.f32 %v19815_v7, %v5992_v20  ;;  %v5994_v22 = vpop.f32.mrb[67].mxu1  ;;  %6982 = vmatpush1.bf16.msra.mxu1 %v6902_v40  ;;  %v6837_v63 = vmax.f32 %v6709_v8, 0.0  ;;  %v19837_v8 = vld [vmem:[%s22102_s5] sm:$0xf] }
 0x3e9   : > { %v6611_v45 = vadd.f32 %v15149_v11, %v19789_v4  ;;  %v15151_v10 = vadd.f32 %v5889_v35, %v19201_v6  ;;  %v5891_v58 = vpop.f32.mrb[83].mxu0  ;;  %v6726_v27 = vadd.f32 %v19815_v7, %v5994_v22  ;;  %v6838_v32 = vmax.f32 %v6710_v60, 0.0 }
 0x3ea   : > { %v6612_v18 = vadd.f32 %v15150_v15, %v19789_v4  ;;  %v6853_v43 = vmax.f32 %v6725_v42, 0.0  ;;  %v15152_v54 = vadd.f32 %v5891_v58, %v19212_v31 }
 0x3eb   : > { %v6627_v38 = vadd.f32 %v15151_v10, %v19792_v30  ;;  %v6854_v48 = vmax.f32 %v6726_v27, 0.0  ;;  %v6739_v23 = vmax.f32 %v6611_v45, 0.0 }
 0x3ec   : > { %v6918_v14 = vpack.c.bf16 %v6853_v43, %v6837_v63  ;;  %v6628_v29 = vadd.f32 %v15152_v54, %v19792_v30  ;;  %v6740_v41 = vmax.f32 %v6612_v18, 0.0 }
 0x3ed   : > { %v6755_v33 = vmax.f32 %v6627_v38, 0.0  ;;  %v6919_v5 = vpack.c.bf16 %v6854_v48, %v6838_v32  ;;  %v6104_v6 = vpop.f32.mrb[68].mxu1 }
 0x3ee   : > { %v6756_v0 = vmax.f32 %v6628_v29, 0.0  ;;  %v5895_v56 = vpop.f32.mrb[84].mxu0  ;;  %v6617_v55 = vadd.f32 %v19789_v4, %v6104_v6  ;;  %v6106_v21 = vpop.f32.mrb[69].mxu1 }
 0x3ef   : > { %v6868_v24 = vpack.c.bf16 %v6755_v33, %v6739_v23  ;;  %v15153_v31 = vadd.f32 %v5895_v56, %v19221_v3  ;;  %v5897_v1 = vpop.f32.mrb[85].mxu0  ;;  %v6618_v53 = vadd.f32 %v19789_v4, %v6106_v21  ;;  %v6108_v44 = vpop.f32.mrb[70].mxu1  ;;  %6983 = vmatprep.subr.bf16.mxu1 %v6919_v5 }
 0x3f0   : > { %v15154_v50 = vadd.f32 %v5897_v1, %v19227_v46  ;;  %v5899_v40 = vpop.f32.mrb[86].mxu0  ;;  %v6633_v17 = vadd.f32 %v19792_v30, %v6108_v44  ;;  %v6110_v51 = vpop.f32.mrb[71].mxu1  ;;  %6984 = vmatpush1.bf16.msra.mxu1 %v6918_v14  ;;  %v6869_v13 = vpack.c.bf16 %v6756_v0, %v6740_v41  ;;  %v6745_v46 = vmax.f32 %v6617_v55, 0.0 }
 0x3f1   : > { %v6643_v3 = vadd.f32 %v15153_v31, %v19797_v37  ;;  %v15155_v34 = vadd.f32 %v5899_v40, %v19231_v62  ;;  %v5901_v11 = vpop.f32.mrb[87].mxu0  ;;  %v6634_v39 = vadd.f32 %v19792_v30, %v6110_v51  ;;  %v6746_v35 = vmax.f32 %v6618_v53, 0.0 }
 0x3f2   : > { %v6644_v60 = vadd.f32 %v15154_v50, %v19797_v37  ;;  %v6761_v20 = vmax.f32 %v6633_v17, 0.0  ;;  %v15156_v15 = vadd.f32 %v5901_v11, %v19235_v2  ;;  %6936 = vmatprep.subr.bf16.mxu0 %v6869_v13 }
 0x3f3   : > { %v6659_v42 = vadd.f32 %v15155_v34, %v19800_v47  ;;  %v6762_v22 = vmax.f32 %v6634_v39, 0.0  ;;  %6937 = vmatpush1.bf16.msra.mxu0 %v6868_v24  ;;  %14192 = vmatmul.mubr.msk.bf16.vlgmr.msra.gmra.mrb[116].mxu1 %vm6932_vm5, %v19837_v8  ;;  %v6771_v10 = vmax.f32 %v6643_v3, 0.0 }
 0x3f4   : > { %v6874_v45 = vpack.c.bf16 %v6761_v20, %v6745_v46  ;;  %v6660_v62 = vadd.f32 %v15156_v15, %v19800_v47  ;;  %7091 = vmatprep.mubr.bf16.mxu1 %v22213_v61  ;;  %v6772_v18 = vmax.f32 %v6644_v60, 0.0 }
 0x3f5   : > { %v6787_v58 = vmax.f32 %v6659_v42, 0.0  ;;  %v6875_v27 = vpack.c.bf16 %v6762_v22, %v6746_v35  ;;  %v6114_v63 = vpop.f32.mrb[72].mxu1 }
 0x3f6   : > { %v6788_v2 = vmax.f32 %v6660_v62, 0.0  ;;  %v5905_v43 = vpop.f32.mrb[88].mxu0  ;;  %v6649_v54 = vadd.f32 %v19797_v37, %v6114_v63  ;;  %v6116_v32 = vpop.f32.mrb[73].mxu1 }
 0x3f7   : > { %v6884_v38 = vpack.c.bf16 %v6787_v58, %v6771_v10  ;;  %v15157_v48 = vadd.f32 %v5905_v43, %v19245_v49  ;;  %v5907_v14 = vpop.f32.mrb[89].mxu0  ;;  %v6650_v29 = vadd.f32 %v19797_v37, %v6116_v32  ;;  %v6118_v23 = vpop.f32.mrb[74].mxu1  ;;  %7059 = vmatprep.subr.bf16.mxu1 %v6875_v27 }
 0x3f8   : > { %v15158_v33 = vadd.f32 %v5907_v14, %v19260_v28  ;;  %v5909_v5 = vpop.f32.mrb[90].mxu0  ;;  %v6665_v6 = vadd.f32 %v19800_v47, %v6118_v23  ;;  %v6120_v41 = vpop.f32.mrb[75].mxu1  ;;  %7060 = vmatpush1.bf16.msra.mxu1 %v6874_v45  ;;  %v6885_v0 = vpack.c.bf16 %v6788_v2, %v6772_v18  ;;  %v6777_v24 = vmax.f32 %v6649_v54, 0.0 }
 0x3f9   : > { %v6675_v56 = vadd.f32 %v15157_v48, %v19805_v16  ;;  %v15159_v55 = vadd.f32 %v5909_v5, %v19266_v36  ;;  %v5911_v21 = vpop.f32.mrb[91].mxu0  ;;  %v6666_v49 = vadd.f32 %v19800_v47, %v6120_v41  ;;  %v6778_v28 = vmax.f32 %v6650_v29, 0.0 }
 0x3fa   : > { %v6676_v31 = vadd.f32 %v15158_v33, %v19805_v16  ;;  %v6793_v1 = vmax.f32 %v6665_v6, 0.0  ;;  %v15160_v53 = vadd.f32 %v5911_v21, %v19275_v59  ;;  %6938 = vmatprep.subr.bf16.mxu0 %v6885_v0 }
 0x3fb   : > { %v6691_v44 = vadd.f32 %v15159_v55, %v19808_v9  ;;  %v6794_v50 = vmax.f32 %v6666_v49, 0.0  ;;  %6939 = vmatpush1.bf16.msra.mxu0 %v6884_v38  ;;  %v6803_v51 = vmax.f32 %v6675_v56, 0.0 }
 0x3fc   : > { %v6890_v40 = vpack.c.bf16 %v6793_v1, %v6777_v24  ;;  %v6692_v17 = vadd.f32 %v15160_v53, %v19808_v9  ;;  %v6804_v34 = vmax.f32 %v6676_v31, 0.0 }
 0x3fd   : > { %v6819_v36 = vmax.f32 %v6691_v44, 0.0  ;;  %v6891_v13 = vpack.c.bf16 %v6794_v50, %v6778_v28  ;;  %v6124_v3 = vpop.f32.mrb[76].mxu1 }
 0x3fe   : > { %v6820_v11 = vmax.f32 %v6692_v17, 0.0  ;;  %v5915_v39 = vpop.f32.mrb[92].mxu0  ;;  %v6681_v46 = vadd.f32 %v19805_v16, %v6124_v3  ;;  %v6126_v60 = vpop.f32.mrb[77].mxu1 }
 0x3ff   : > { %v6900_v59 = vpack.c.bf16 %v6819_v36, %v6803_v51  ;;  %v15161_v20 = vadd.f32 %v5915_v39, %v19291_v52  ;;  %v5917_v15 = vpop.f32.mrb[93].mxu0  ;;  %v6682_v35 = vadd.f32 %v19805_v16, %v6126_v60  ;;  %v6128_v42 = vpop.f32.mrb[78].mxu1  ;;  %7061 = vmatprep.subr.bf16.mxu1 %v6891_v13 }
 0x400   : > { %v15162_v22 = vadd.f32 %v5917_v15, %v19303_v57  ;;  %v5919_v45 = vpop.f32.mrb[94].mxu0  ;;  %v6697_v62 = vadd.f32 %v19808_v9, %v6128_v42  ;;  %v6130_v10 = vpop.f32.mrb[79].mxu1  ;;  %7062 = vmatpush1.bf16.msra.mxu1 %v6890_v40  ;;  %v6901_v58 = vpack.c.bf16 %v6820_v11, %v6804_v34  ;;  %v6809_v2 = vmax.f32 %v6681_v46, 0.0 }
 0x401   : > { %v6707_v27 = vadd.f32 %v15161_v20, %v19813_v26  ;;  %v15163_v63 = vadd.f32 %v5919_v45, %v19312_v25  ;;  %v5921_v18 = vpop.f32.mrb[95].mxu0  ;;  %v6698_v52 = vadd.f32 %v19808_v9, %v6130_v10  ;;  %v6810_v57 = vmax.f32 %v6682_v35, 0.0 }
 0x402   : > { %v6708_v43 = vadd.f32 %v15162_v22, %v19813_v26  ;;  %v6825_v54 = vmax.f32 %v6697_v62, 0.0  ;;  %v15164_v32 = vadd.f32 %v5921_v18, %v19315_v19  ;;  %6940 = vmatprep.subr.bf16.mxu0 %v6901_v58 }
 0x403   : > { %v6723_v38 = vadd.f32 %v15163_v63, %v19815_v7  ;;  %v6826_v48 = vmax.f32 %v6698_v52, 0.0  ;;  %6941 = vmatpush1.bf16.msra.mxu0 %v6900_v59  ;;  %v6835_v23 = vmax.f32 %v6707_v27, 0.0 }
 0x404   : > { %v6906_v14 = vpack.c.bf16 %v6825_v54, %v6809_v2  ;;  %v6724_v29 = vadd.f32 %v15164_v32, %v19815_v7  ;;  %v6836_v6 = vmax.f32 %v6708_v43, 0.0 }
 0x405   : > { %v6851_v25 = vmax.f32 %v6723_v38, 0.0  ;;  %v6907_v33 = vpack.c.bf16 %v6826_v48, %v6810_v57  ;;  %v6134_v5 = vpop.f32.mrb[80].mxu1 }
 0x406   : > { %v6852_v41 = vmax.f32 %v6724_v29, 0.0  ;;  %v6031_v0 = vpop.f32.mrb[32].mxu0  ;;  %v6713_v56 = vadd.f32 %v19813_v26, %v6134_v5  ;;  %v6136_v55 = vpop.f32.mrb[81].mxu1 }
 0x407   : > { %v6916_v19 = vpack.c.bf16 %v6851_v25, %v6835_v23  ;;  %v6615_v21 = vadd.f32 %v19789_v4, %v6031_v0  ;;  %v6033_v49 = vpop.f32.mrb[33].mxu0  ;;  %v6714_v24 = vadd.f32 %v19813_v26, %v6136_v55  ;;  %v6138_v31 = vpop.f32.mrb[82].mxu1  ;;  %7063 = vmatprep.subr.bf16.mxu1 %v6907_v33 }
 0x408   : > { %v6616_v1 = vadd.f32 %v19789_v4, %v6033_v49  ;;  %v6035_v53 = vpop.f32.mrb[34].mxu0  ;;  %v6729_v28 = vadd.f32 %v19815_v7, %v6138_v31  ;;  %v6140_v44 = vpop.f32.mrb[83].mxu1  ;;  %7064 = vmatpush1.bf16.msra.mxu1 %v6906_v14  ;;  %v6917_v50 = vpack.c.bf16 %v6852_v41, %v6836_v6  ;;  %v6841_v36 = vmax.f32 %v6713_v56, 0.0 }
 0x409   : > { %v6631_v40 = vadd.f32 %v19792_v30, %v6035_v53  ;;  %v6037_v17 = vpop.f32.mrb[35].mxu0  ;;  %v6730_v51 = vadd.f32 %v19815_v7, %v6140_v44  ;;  %v6743_v34 = vmax.f32 %v6615_v21, 0.0  ;;  %v6842_v11 = vmax.f32 %v6714_v24, 0.0 }
 0x40a   : > { %v6857_v13 = vmax.f32 %v6729_v28, 0.0  ;;  %v6632_v3 = vadd.f32 %v19792_v30, %v6037_v17  ;;  %6942 = vmatprep.subr.bf16.mxu0 %v6917_v50  ;;  %v6744_v60 = vmax.f32 %v6616_v1, 0.0 }
 0x40b   : > { %v6759_v39 = vmax.f32 %v6631_v40, 0.0  ;;  %v6858_v46 = vmax.f32 %v6730_v51, 0.0  ;;  %6943 = vmatpush1.bf16.msra.mxu0 %v6916_v19 }
 0x40c   : > { %v6922_v59 = vpack.c.bf16 %v6857_v13, %v6841_v36  ;;  %v6760_v20 = vmax.f32 %v6632_v3, 0.0 }
 0x40d   : > { %v6872_v15 = vpack.c.bf16 %v6759_v39, %v6743_v34  ;;  %v6923_v35 = vpack.c.bf16 %v6858_v46, %v6842_v11  ;;  %v6250_v42 = vpop.f32.mrb[84].mxu1 }
 0x40e   : > { %v6873_v22 = vpack.c.bf16 %v6760_v20, %v6744_v60  ;;  %v6041_v45 = vpop.f32.mrb[36].mxu0  ;;  %v6621_v62 = vadd.f32 %v19789_v4, %v6250_v42  ;;  %v6252_v10 = vpop.f32.mrb[85].mxu1  ;;  %14191 = vmatmul.mubr.msk.bf16.vlgmr.msra.gmra.mrb[96].mxu0 %vm6932_vm5, %v19837_v8 }
 0x40f   : > { %v6647_v58 = vadd.f32 %v19797_v37, %v6041_v45  ;;  %v6043_v27 = vpop.f32.mrb[37].mxu0  ;;  %v6622_v63 = vadd.f32 %v19789_v4, %v6252_v10  ;;  %v6254_v18 = vpop.f32.mrb[86].mxu1  ;;  %7065 = vmatprep.subr.bf16.mxu1 %v6923_v35  ;;  %7050 = vmatprep.mubr.bf16.mxu0 %v22213_v61 }
 0x410   : > { %v6648_v52 = vadd.f32 %v19797_v37, %v6043_v27  ;;  %v6045_v2 = vpop.f32.mrb[38].mxu0  ;;  %v6637_v43 = vadd.f32 %v19792_v30, %v6254_v18  ;;  %7018 = vmatprep.subr.bf16.mxu0 %v6873_v22  ;;  %v6256_v54 = vpop.f32.mrb[87].mxu1  ;;  %7066 = vmatpush1.bf16.msra.mxu1 %v6922_v59  ;;  %v6749_v48 = vmax.f32 %v6621_v62, 0.0 }
 0x411   : > { %v6663_v32 = vadd.f32 %v19800_v47, %v6045_v2  ;;  %v6047_v57 = vpop.f32.mrb[39].mxu0  ;;  %v6638_v38 = vadd.f32 %v19792_v30, %v6256_v54  ;;  %7019 = vmatpush1.bf16.msra.mxu0 %v6872_v15  ;;  %v6775_v23 = vmax.f32 %v6647_v58, 0.0  ;;  %v6750_v25 = vmax.f32 %v6622_v63, 0.0 }
 0x412   : > { %v6765_v14 = vmax.f32 %v6637_v43, 0.0  ;;  %v6664_v29 = vadd.f32 %v19800_v47, %v6047_v57  ;;  %v6776_v6 = vmax.f32 %v6648_v52, 0.0 }
 0x413   : > { %v6791_v33 = vmax.f32 %v6663_v32, 0.0  ;;  %v6766_v5 = vmax.f32 %v6638_v38, 0.0  ;;  %14194 = vmatmul.mubr.msk.bf16.vlgmr.msra.gmra.mrb[120].mxu1 %vm6932_vm5, %v19837_v8 }
 0x414   : > { %v6878_v41 = vpack.c.bf16 %v6765_v14, %v6749_v48  ;;  %v6792_v0 = vmax.f32 %v6664_v29, 0.0  ;;  %7173 = vmatprep.mubr.bf16.mxu1 %v22213_v61 }
 0x415   : > { %v6888_v56 = vpack.c.bf16 %v6791_v33, %v6775_v23  ;;  %v6879_v55 = vpack.c.bf16 %v6766_v5, %v6750_v25  ;;  %v6260_v19 = vpop.f32.mrb[88].mxu1 }
 0x416   : > { %v6889_v21 = vpack.c.bf16 %v6792_v0, %v6776_v6  ;;  %v6051_v49 = vpop.f32.mrb[40].mxu0  ;;  %v6653_v24 = vadd.f32 %v19797_v37, %v6260_v19  ;;  %v6262_v31 = vpop.f32.mrb[89].mxu1 }
 0x417   : > { %v6679_v1 = vadd.f32 %v19805_v16, %v6051_v49  ;;  %v6053_v53 = vpop.f32.mrb[41].mxu0  ;;  %v6654_v28 = vadd.f32 %v19797_v37, %v6262_v31  ;;  %v6264_v44 = vpop.f32.mrb[90].mxu1  ;;  %7141 = vmatprep.subr.bf16.mxu1 %v6879_v55 }
 0x418   : > { %v6680_v50 = vadd.f32 %v19805_v16, %v6053_v53  ;;  %v6055_v40 = vpop.f32.mrb[42].mxu0  ;;  %v6669_v17 = vadd.f32 %v19800_v47, %v6264_v44  ;;  %7020 = vmatprep.subr.bf16.mxu0 %v6889_v21  ;;  %v6266_v51 = vpop.f32.mrb[91].mxu1  ;;  %7142 = vmatpush1.bf16.msra.mxu1 %v6878_v41  ;;  %v6781_v34 = vmax.f32 %v6653_v24, 0.0 }
 0x419   : > { %v6695_v36 = vadd.f32 %v19808_v9, %v6055_v40  ;;  %v6057_v13 = vpop.f32.mrb[43].mxu0  ;;  %v6670_v3 = vadd.f32 %v19800_v47, %v6266_v51  ;;  %7021 = vmatpush1.bf16.msra.mxu0 %v6888_v56  ;;  %v6807_v46 = vmax.f32 %v6679_v1, 0.0  ;;  %v6782_v60 = vmax.f32 %v6654_v28, 0.0 }
 0x41a   : > { %v6797_v11 = vmax.f32 %v6669_v17, 0.0  ;;  %v6696_v39 = vadd.f32 %v19808_v9, %v6057_v13  ;;  %v6808_v15 = vmax.f32 %v6680_v50, 0.0 }
 0x41b   : > { %v6823_v59 = vmax.f32 %v6695_v36, 0.0  ;;  %v6798_v20 = vmax.f32 %v6670_v3, 0.0 }
 0x41c   : > { %v6894_v35 = vpack.c.bf16 %v6797_v11, %v6781_v34  ;;  %v6824_v42 = vmax.f32 %v6696_v39, 0.0 }
 0x41d   : > { %v6904_v22 = vpack.c.bf16 %v6823_v59, %v6807_v46  ;;  %v6895_v45 = vpack.c.bf16 %v6798_v20, %v6782_v60  ;;  %v6270_v62 = vpop.f32.mrb[92].mxu1 }
 0x41e   : > { %v6905_v10 = vpack.c.bf16 %v6824_v42, %v6808_v15  ;;  %v6061_v58 = vpop.f32.mrb[44].mxu0  ;;  %v6685_v27 = vadd.f32 %v19805_v16, %v6270_v62  ;;  %v6272_v63 = vpop.f32.mrb[93].mxu1 }
 0x41f   : > { %v6711_v18 = vadd.f32 %v19813_v26, %v6061_v58  ;;  %v6063_v52 = vpop.f32.mrb[45].mxu0  ;;  %v6686_v2 = vadd.f32 %v19805_v16, %v6272_v63  ;;  %v6274_v43 = vpop.f32.mrb[94].mxu1  ;;  %7143 = vmatprep.subr.bf16.mxu1 %v6895_v45 }
 0x420   : > { %v6712_v54 = vadd.f32 %v19813_v26, %v6063_v52  ;;  %v6065_v32 = vpop.f32.mrb[46].mxu0  ;;  %v6701_v57 = vadd.f32 %v19808_v9, %v6274_v43  ;;  %7022 = vmatprep.subr.bf16.mxu0 %v6905_v10  ;;  %v6276_v38 = vpop.f32.mrb[95].mxu1  ;;  %7144 = vmatpush1.bf16.msra.mxu1 %v6894_v35  ;;  %v6813_v23 = vmax.f32 %v6685_v27, 0.0 }
 0x421   : > { %v6727_v48 = vadd.f32 %v19815_v7, %v6065_v32  ;;  %v6067_v14 = vpop.f32.mrb[47].mxu0  ;;  %v6702_v29 = vadd.f32 %v19808_v9, %v6276_v38  ;;  %7023 = vmatpush1.bf16.msra.mxu0 %v6904_v22  ;;  %v6839_v5 = vmax.f32 %v6711_v18, 0.0  ;;  %v6814_v6 = vmax.f32 %v6686_v2, 0.0 }
 0x422   : > { %v6829_v25 = vmax.f32 %v6701_v57, 0.0  ;;  %v6728_v33 = vadd.f32 %v19815_v7, %v6067_v14  ;;  %v6840_v56 = vmax.f32 %v6712_v54, 0.0 }
 0x423   : > { %v6855_v41 = vmax.f32 %v6727_v48, 0.0  ;;  %v6830_v0 = vmax.f32 %v6702_v29, 0.0 }
 0x424   : > { %v6910_v55 = vpack.c.bf16 %v6829_v25, %v6813_v23  ;;  %v6856_v19 = vmax.f32 %v6728_v33, 0.0 }
 0x425   : > { %v6920_v21 = vpack.c.bf16 %v6855_v41, %v6839_v5  ;;  %v6911_v49 = vpack.c.bf16 %v6830_v0, %v6814_v6  ;;  %v6280_v24 = vpop.f32.mrb[96].mxu1 }
 0x426   : > { %v6921_v31 = vpack.c.bf16 %v6856_v19, %v6840_v56  ;;  %v6177_v1 = vpop.f32.mrb[48].mxu0  ;;  %v6717_v53 = vadd.f32 %v19813_v26, %v6280_v24  ;;  %v6282_v28 = vpop.f32.mrb[97].mxu1 }
 0x427   : > { %v6619_v44 = vadd.f32 %v19789_v4, %v6177_v1  ;;  %v6179_v50 = vpop.f32.mrb[49].mxu0  ;;  %v6718_v40 = vadd.f32 %v19813_v26, %v6282_v28  ;;  %v6284_v17 = vpop.f32.mrb[98].mxu1  ;;  %7145 = vmatprep.subr.bf16.mxu1 %v6911_v49 }
 0x428   : > { %v6620_v51 = vadd.f32 %v19789_v4, %v6179_v50  ;;  %v6181_v36 = vpop.f32.mrb[50].mxu0  ;;  %v6733_v13 = vadd.f32 %v19815_v7, %v6284_v17  ;;  %7024 = vmatprep.subr.bf16.mxu0 %v6921_v31  ;;  %v6286_v3 = vpop.f32.mrb[99].mxu1  ;;  %7146 = vmatpush1.bf16.msra.mxu1 %v6910_v55  ;;  %v6845_v46 = vmax.f32 %v6717_v53, 0.0 }
 0x429   : > { %v6635_v34 = vadd.f32 %v19792_v30, %v6181_v36  ;;  %v6183_v11 = vpop.f32.mrb[51].mxu0  ;;  %v6734_v39 = vadd.f32 %v19815_v7, %v6286_v3  ;;  %7025 = vmatpush1.bf16.msra.mxu0 %v6920_v21  ;;  %v6747_v20 = vmax.f32 %v6619_v44, 0.0  ;;  %v6846_v15 = vmax.f32 %v6718_v40, 0.0 }
 0x42a   : > { %v6861_v60 = vmax.f32 %v6733_v13, 0.0  ;;  %v6636_v59 = vadd.f32 %v19792_v30, %v6183_v11  ;;  %v6748_v22 = vmax.f32 %v6620_v51, 0.0 }
 0x42b   : > { %v6763_v35 = vmax.f32 %v6635_v34, 0.0  ;;  %v6862_v42 = vmax.f32 %v6734_v39, 0.0 }
 0x42c   : > { %v6926_v45 = vpack.c.bf16 %v6861_v60, %v6845_v46  ;;  %v6764_v62 = vmax.f32 %v6636_v59, 0.0  ;;  %14193 = vmatmul.mubr.msk.bf16.vlgmr.msra.gmra.mrb[100].mxu0 %vm6932_vm5, %v19837_v8 }
 0x42d   : > { %v6876_v10 = vpack.c.bf16 %v6763_v35, %v6747_v20  ;;  %v6927_v58 = vpack.c.bf16 %v6862_v42, %v6846_v15  ;;  %v6396_v27 = vpop.f32.mrb[100].mxu1  ;;  %7132 = vmatprep.mubr.bf16.mxu0 %v22213_v61 }
 0x42e   : > { %v6877_v63 = vpack.c.bf16 %v6764_v62, %v6748_v22  ;;  %v6187_v18 = vpop.f32.mrb[52].mxu0  ;;  %v6625_v52 = vadd.f32 %v19789_v4, %v6396_v27  ;;  %v6398_v2 = vpop.f32.mrb[101].mxu1 }
 0x42f   : > { %v6651_v43 = vadd.f32 %v19797_v37, %v6187_v18  ;;  %v6189_v54 = vpop.f32.mrb[53].mxu0  ;;  %v6626_v32 = vadd.f32 %v19789_v4, %v6398_v2  ;;  %v6400_v57 = vpop.f32.mrb[102].mxu1  ;;  %7147 = vmatprep.subr.bf16.mxu1 %v6927_v58 }
 0x430   : > { %v6652_v38 = vadd.f32 %v19797_v37, %v6189_v54  ;;  %v6191_v48 = vpop.f32.mrb[54].mxu0  ;;  %v6641_v14 = vadd.f32 %v19792_v30, %v6400_v57  ;;  %7100 = vmatprep.subr.bf16.mxu0 %v6877_v63  ;;  %v6402_v29 = vpop.f32.mrb[103].mxu1  ;;  %7148 = vmatpush1.bf16.msra.mxu1 %v6926_v45  ;;  %v6753_v5 = vmax.f32 %v6625_v52, 0.0 }
 0x431   : > { %v6667_v23 = vadd.f32 %v19800_v47, %v6191_v48  ;;  %v6193_v25 = vpop.f32.mrb[55].mxu0  ;;  %v6642_v33 = vadd.f32 %v19792_v30, %v6402_v29  ;;  %7101 = vmatpush1.bf16.msra.mxu0 %v6876_v10  ;;  %v6779_v0 = vmax.f32 %v6651_v43, 0.0  ;;  %v6754_v56 = vmax.f32 %v6626_v32, 0.0 }
 0x432   : > { %v6769_v6 = vmax.f32 %v6641_v14, 0.0  ;;  %v6668_v41 = vadd.f32 %v19800_v47, %v6193_v25  ;;  %v6780_v21 = vmax.f32 %v6652_v38, 0.0 }
 0x433   : > { %v6795_v55 = vmax.f32 %v6667_v23, 0.0  ;;  %v6770_v19 = vmax.f32 %v6642_v33, 0.0  ;;  %14196 = vmatmul.mubr.msk.bf16.vlgmr.msra.gmra.mrb[124].mxu1 %vm6932_vm5, %v19837_v8 }
 0x434   : > { %v6882_v49 = vpack.c.bf16 %v6769_v6, %v6753_v5  ;;  %v6796_v24 = vmax.f32 %v6668_v41, 0.0  ;;  %7255 = vmatprep.mubr.bf16.mxu1 %v22213_v61 }
 0x435   : > { %v6892_v31 = vpack.c.bf16 %v6795_v55, %v6779_v0  ;;  %v6883_v1 = vpack.c.bf16 %v6770_v19, %v6754_v56  ;;  %v6406_v53 = vpop.f32.mrb[104].mxu1 }
 0x436   : > { %v6893_v28 = vpack.c.bf16 %v6796_v24, %v6780_v21  ;;  %v6197_v44 = vpop.f32.mrb[56].mxu0  ;;  %v6657_v50 = vadd.f32 %v19797_v37, %v6406_v53  ;;  %v6408_v40 = vpop.f32.mrb[105].mxu1 }
 0x437   : > { %v6683_v17 = vadd.f32 %v19805_v16, %v6197_v44  ;;  %v6199_v51 = vpop.f32.mrb[57].mxu0  ;;  %v6658_v36 = vadd.f32 %v19797_v37, %v6408_v40  ;;  %v6410_v13 = vpop.f32.mrb[106].mxu1  ;;  %7223 = vmatprep.subr.bf16.mxu1 %v6883_v1 }
 0x438   : > { %v6684_v3 = vadd.f32 %v19805_v16, %v6199_v51  ;;  %v6201_v34 = vpop.f32.mrb[58].mxu0  ;;  %v6673_v11 = vadd.f32 %v19800_v47, %v6410_v13  ;;  %7102 = vmatprep.subr.bf16.mxu0 %v6893_v28  ;;  %v6412_v39 = vpop.f32.mrb[107].mxu1  ;;  %7224 = vmatpush1.bf16.msra.mxu1 %v6882_v49  ;;  %v6785_v20 = vmax.f32 %v6657_v50, 0.0 }
 0x439   : > { %v6699_v46 = vadd.f32 %v19808_v9, %v6201_v34  ;;  %v6203_v60 = vpop.f32.mrb[59].mxu0  ;;  %v6674_v59 = vadd.f32 %v19800_v47, %v6412_v39  ;;  %7103 = vmatpush1.bf16.msra.mxu0 %v6892_v31  ;;  %v6811_v42 = vmax.f32 %v6683_v17, 0.0  ;;  %v6786_v22 = vmax.f32 %v6658_v36, 0.0 }
 0x43a   : > { %v6801_v15 = vmax.f32 %v6673_v11, 0.0  ;;  %v6700_v35 = vadd.f32 %v19808_v9, %v6203_v60  ;;  %v6812_v10 = vmax.f32 %v6684_v3, 0.0 }
 0x43b   : > { %v6827_v45 = vmax.f32 %v6699_v46, 0.0  ;;  %v6802_v62 = vmax.f32 %v6674_v59, 0.0 }
 0x43c   : > { %v6898_v58 = vpack.c.bf16 %v6801_v15, %v6785_v20  ;;  %v6828_v27 = vmax.f32 %v6700_v35, 0.0 }
 0x43d   : > { %v6908_v63 = vpack.c.bf16 %v6827_v45, %v6811_v42  ;;  %v6899_v18 = vpack.c.bf16 %v6802_v62, %v6786_v22  ;;  %v6416_v52 = vpop.f32.mrb[108].mxu1 }
 0x43e   : > { %v6909_v2 = vpack.c.bf16 %v6828_v27, %v6812_v10  ;;  %v6207_v43 = vpop.f32.mrb[60].mxu0  ;;  %v6689_v54 = vadd.f32 %v19805_v16, %v6416_v52  ;;  %v6418_v32 = vpop.f32.mrb[109].mxu1 }
 0x43f   : > { %v6715_v57 = vadd.f32 %v19813_v26, %v6207_v43  ;;  %v6209_v38 = vpop.f32.mrb[61].mxu0  ;;  %v6690_v48 = vadd.f32 %v19805_v16, %v6418_v32  ;;  %v6420_v14 = vpop.f32.mrb[110].mxu1  ;;  %7225 = vmatprep.subr.bf16.mxu1 %v6899_v18 }
 0x440   : > { %v6716_v29 = vadd.f32 %v19813_v26, %v6209_v38  ;;  %v6211_v23 = vpop.f32.mrb[62].mxu0  ;;  %v6705_v25 = vadd.f32 %v19808_v9, %v6420_v14  ;;  %7104 = vmatprep.subr.bf16.mxu0 %v6909_v2  ;;  %v6422_v33 = vpop.f32.mrb[111].mxu1  ;;  %7226 = vmatpush1.bf16.msra.mxu1 %v6898_v58  ;;  %v6817_v0 = vmax.f32 %v6689_v54, 0.0 }
 0x441   : > { %v6731_v5 = vadd.f32 %v19815_v7, %v6211_v23  ;;  %v6213_v6 = vpop.f32.mrb[63].mxu0  ;;  %v6706_v41 = vadd.f32 %v19808_v9, %v6422_v33  ;;  %7105 = vmatpush1.bf16.msra.mxu0 %v6908_v63  ;;  %v6843_v19 = vmax.f32 %v6715_v57, 0.0  ;;  %v6818_v21 = vmax.f32 %v6690_v48, 0.0 }
 0x442   : > { %v6833_v56 = vmax.f32 %v6705_v25, 0.0  ;;  %v6732_v55 = vadd.f32 %v19815_v7, %v6213_v6  ;;  %v6844_v31 = vmax.f32 %v6716_v29, 0.0 }
 0x443   : > { %v6859_v49 = vmax.f32 %v6731_v5, 0.0  ;;  %v6834_v24 = vmax.f32 %v6706_v41, 0.0 }
 0x444   : > { %v6914_v1 = vpack.c.bf16 %v6833_v56, %v6817_v0  ;;  %v6860_v53 = vmax.f32 %v6732_v55, 0.0 }
 0x445   : > { %v6924_v28 = vpack.c.bf16 %v6859_v49, %v6843_v19  ;;  %v6915_v44 = vpack.c.bf16 %v6834_v24, %v6818_v21  ;;  %v6426_v50 = vpop.f32.mrb[112].mxu1 }
 0x446   : > { %v6925_v40 = vpack.c.bf16 %v6860_v53, %v6844_v31  ;;  %v6323_v17 = vpop.f32.mrb[64].mxu0  ;;  %v6721_v51 = vadd.f32 %v19813_v26, %v6426_v50  ;;  %v6428_v36 = vpop.f32.mrb[113].mxu1 }
 0x447   : > { %v6623_v13 = vadd.f32 %v19789_v4, %v6323_v17  ;;  %v6325_v3 = vpop.f32.mrb[65].mxu0  ;;  %v6722_v34 = vadd.f32 %v19813_v26, %v6428_v36  ;;  %v6430_v11 = vpop.f32.mrb[114].mxu1  ;;  %7227 = vmatprep.subr.bf16.mxu1 %v6915_v44 }
 0x448   : > { %v6624_v39 = vadd.f32 %v19789_v4, %v6325_v3  ;;  %v6327_v46 = vpop.f32.mrb[66].mxu0  ;;  %v6737_v60 = vadd.f32 %v19815_v7, %v6430_v11  ;;  %7106 = vmatprep.subr.bf16.mxu0 %v6925_v40  ;;  %v6432_v59 = vpop.f32.mrb[115].mxu1  ;;  %7228 = vmatpush1.bf16.msra.mxu1 %v6914_v1  ;;  %v6849_v42 = vmax.f32 %v6721_v51, 0.0 }
 0x449   : > { %v6639_v20 = vadd.f32 %v19792_v30, %v6327_v46  ;;  %v6329_v15 = vpop.f32.mrb[67].mxu0  ;;  %v6738_v35 = vadd.f32 %v19815_v7, %v6432_v59  ;;  %7107 = vmatpush1.bf16.msra.mxu0 %v6924_v28  ;;  %v6751_v62 = vmax.f32 %v6623_v13, 0.0  ;;  %v6850_v10 = vmax.f32 %v6722_v34, 0.0 }
 0x44a   : > { %v6865_v22 = vmax.f32 %v6737_v60, 0.0  ;;  %v6640_v45 = vadd.f32 %v19792_v30, %v6329_v15  ;;  %v6752_v27 = vmax.f32 %v6624_v39, 0.0 }
 0x44b   : > { %v6767_v58 = vmax.f32 %v6639_v20, 0.0  ;;  %v6866_v4 = vmax.f32 %v6738_v35, 0.0 }
 0x44c   : > { %v6930_v63 = vpack.c.bf16 %v6865_v22, %v6849_v42  ;;  %v6768_v18 = vmax.f32 %v6640_v45, 0.0  ;;  %14195 = vmatmul.mubr.msk.bf16.vlgmr.msra.gmra.mrb[104].mxu0 %vm6932_vm5, %v19837_v8 }
 0x44d   : > { %v6880_v52 = vpack.c.bf16 %v6767_v58, %v6751_v62  ;;  %v6931_v2 = vpack.c.bf16 %v6866_v4, %v6850_v10  ;;  %7214 = vmatprep.mubr.bf16.mxu0 %v22213_v61 }
 0x44e   : > { %v6881_v43 = vpack.c.bf16 %v6768_v18, %v6752_v27  ;;  %v6333_v54 = vpop.f32.mrb[68].mxu0 }
 0x44f   : > { %v6655_v32 = vadd.f32 %v19797_v37, %v6333_v54  ;;  %v6335_v57 = vpop.f32.mrb[69].mxu0  ;;  %7229 = vmatprep.subr.bf16.mxu1 %v6931_v2 }
 0x450   : > { %v6656_v30 = vadd.f32 %v19797_v37, %v6335_v57  ;;  %v6337_v38 = vpop.f32.mrb[70].mxu0  ;;  %7182 = vmatprep.subr.bf16.mxu0 %v6881_v43  ;;  %7230 = vmatpush1.bf16.msra.mxu1 %v6930_v63 }
 0x451   : > { %v6671_v48 = vadd.f32 %v19800_v47, %v6337_v38  ;;  %v6339_v14 = vpop.f32.mrb[71].mxu0  ;;  %7183 = vmatpush1.bf16.msra.mxu0 %v6880_v52  ;;  %v6783_v23 = vmax.f32 %v6655_v32, 0.0 }
 0x452   : > { %v6672_v29 = vadd.f32 %v19800_v47, %v6339_v14  ;;  %v6784_v33 = vmax.f32 %v6656_v30, 0.0 }
 0x453   : > { %v6799_v25 = vmax.f32 %v6671_v48, 0.0  ;;  %14198 = vmatmul.mubr.msk.bf16.vlgmr.msra.gmra.mrb[128].mxu1 %vm6932_vm5, %v19837_v8 }
 0x454   : > { %v6800_v5 = vmax.f32 %v6672_v29, 0.0  ;;  %7615 = vmatprep.mubr.bf16.mxu1 %v22213_v61 }
 0x455   : > { %v6896_v6 = vpack.c.bf16 %v6799_v25, %v6783_v23 }
 0x456   : > { %v6897_v37 = vpack.c.bf16 %v6800_v5, %v6784_v33  ;;  %v6343_v41 = vpop.f32.mrb[72].mxu0 }
 0x457   : > { %v6687_v0 = vadd.f32 %v19805_v16, %v6343_v41  ;;  %v6345_v56 = vpop.f32.mrb[73].mxu0 }
 0x458   : > { %v6688_v55 = vadd.f32 %v19805_v16, %v6345_v56  ;;  %v6347_v19 = vpop.f32.mrb[74].mxu0  ;;  %7184 = vmatprep.subr.bf16.mxu0 %v6897_v37 }
 0x459   : > { %v6703_v47 = vadd.f32 %v19808_v9, %v6347_v19  ;;  %v6349_v21 = vpop.f32.mrb[75].mxu0  ;;  %7185 = vmatpush1.bf16.msra.mxu0 %v6896_v6  ;;  %v6815_v24 = vmax.f32 %v6687_v0, 0.0 }
 0x45a   : > { %v6704_v49 = vadd.f32 %v19808_v9, %v6349_v21  ;;  %v6816_v1 = vmax.f32 %v6688_v55, 0.0 }
 0x45b   : > { %v6831_v31 = vmax.f32 %v6703_v47, 0.0 }
 0x45c   : > { %v6832_v53 = vmax.f32 %v6704_v49, 0.0 }
 0x45d   : > { %v6912_v28 = vpack.c.bf16 %v6831_v31, %v6815_v24 }
 0x45e   : > { %v6913_v44 = vpack.c.bf16 %v6832_v53, %v6816_v1  ;;  %v6353_v50 = vpop.f32.mrb[76].mxu0 }
 0x45f   : > { %v6719_v40 = vadd.f32 %v19813_v26, %v6353_v50  ;;  %v6355_v17 = vpop.f32.mrb[77].mxu0 }
 0x460   : > { %v6720_v16 = vadd.f32 %v19813_v26, %v6355_v17  ;;  %v6357_v51 = vpop.f32.mrb[78].mxu0  ;;  %7186 = vmatprep.subr.bf16.mxu0 %v6913_v44 }
 0x461   : > { %v6735_v36 = vadd.f32 %v19815_v7, %v6357_v51  ;;  %v6359_v13 = vpop.f32.mrb[79].mxu0  ;;  %7187 = vmatpush1.bf16.msra.mxu0 %v6912_v28  ;;  %v6847_v3 = vmax.f32 %v6719_v40, 0.0 }
 0x462   : > { %v6736_v9 = vadd.f32 %v19815_v7, %v6359_v13  ;;  %v6848_v11 = vmax.f32 %v6720_v16, 0.0 }
 0x463   : > { %v6863_v34 = vmax.f32 %v6735_v36, 0.0 }
 0x464   : > { %v6864_v39 = vmax.f32 %v6736_v9, 0.0 }
 0x465   : > { %v6928_v46 = vpack.c.bf16 %v6863_v34, %v6847_v3 }
 0x466   : > { %v6929_v60 = vpack.c.bf16 %v6864_v39, %v6848_v11 }
 0x468   : > { %7188 = vmatprep.subr.bf16.mxu0 %v6929_v60 }
 0x469   : > { %7189 = vmatpush1.bf16.msra.mxu0 %v6928_v46 }
 0x46c   : > { %14197 = vmatmul.mubr.msk.bf16.vlgmr.msra.gmra.mrb[108].mxu0 %vm6932_vm5, %v19837_v8  ;;  %v19987_v8 = vld [vmem:[%s22103_s6 + $0x8] sm:$0xff]  }
 0x46d   : > { %7572 = vmatprep.mubr.bf16.mxu0 %v22213_v61 }
 0x4c6   : > { %v19978_v26 = vpop.f32.mrb[116].mxu1 }
 0x4c7   : > { %v7468_v59 = vpack.c.bf16 %v19978_v26, %v19978_v26  ;;  %v7013_v7 = vpop.f32.mrb[117].mxu1 }
 0x4c8   : > { %v7469_v20 = vpack.c.bf16 %v7013_v7, %v7013_v7  ;;  %v7015_v15 = vpop.f32.mrb[118].mxu1 }
 0x4c9   : > { %v7016_v35 = vpop.f32.mrb[119].mxu1  ;;  %v7499_v42 = vsel %vm7491_vm6, %v7468_v59, 0 }
 0x4ca   : > { %14206 = vmatprep.subr.msk.bf16.mxu1 %vm7491_vm6, %v7469_v20  ;;  %v8733_v20 = vld [vmem:[%s22104_s7 + $0x8] sm:$0xff] }
 0x4cb   : > { %7584 = vmatpush1.bf16.msra.mxu1 %v7499_v42 }
 0x4ce   : > { %14207 = vmatmul.mubr.msk.bf16.vlgmr.msra.gmra.mrb[132].mxu1 %vm7487_vm7, %v19987_v8 }
 0x4cf   : > { %7701 = vmatprep.mubr.bf16.mxu1 %v22213_v61 }
 0x4e1   : > { %v19992_v22 = vpop.f32.mrb[96].mxu0 }
 0x4e2   : > { %v7466_v45 = vpack.c.bf16 %v19992_v22, %v19992_v22  ;;  %v19996_v62 = vpop.f32.mrb[97].mxu0  ;;  %7283 = vrot.lane.b32.xlu0 %v19992_v22, %s16855_s28 }
 0x4e3   : > { %v7467_v10 = vpack.c.bf16 %v19996_v62, %v19996_v62  ;;  %v16322_v58 = vpack.i.bf16 %v19978_v26, %v19996_v62  ;;  %v6974_v4 = vpop.f32.mrb[98].mxu0 }
 0x4e4   : > { %v6975_v27 = vpop.f32.mrb[99].mxu0  ;;  %v7493_v63 = vsel %vm7491_vm6, %v7466_v45, 0 }
 0x4e5   : > { %14204 = vmatprep.subr.msk.bf16.mxu0 %vm7491_vm6, %v7467_v10 }
 0x4e6   : > { %v20006_v18 = vpop.f32.mrb[120].mxu1  ;;  %7541 = vmatpush1.bf16.msra.mxu0 %v7493_v63 }
 0x4e7   : > { %v7472_v52 = vpack.c.bf16 %v20006_v18, %v20006_v18  ;;  %v20010_v2 = vpop.f32.mrb[121].mxu1 }
 0x4e8   : > { %v7473_v43 = vpack.c.bf16 %v20010_v2, %v20010_v2  ;;  %v7097_v54 = vpop.f32.mrb[122].mxu1 }
 0x4e9   : > { %v7098_v32 = vpop.f32.mrb[123].mxu1  ;;  %v7511_v57 = vsel %vm7491_vm6, %v7472_v52, 0  ;;  %14205 = vmatmul.mubr.msk.bf16.vlgmr.msra.gmra.mrb[112].mxu0 %vm7487_vm7, %v19987_v8  ;;  %v20127_v54 = vld [vmem:[%s22103_s6] sm:$0xff]  }
 0x4ea   : > { %14210 = vmatprep.subr.msk.bf16.mxu1 %vm7491_vm6, %v7473_v43  ;;  %7658 = vmatprep.mubr.bf16.mxu0 %v22213_v61 }
 0x4eb   : > { %7670 = vmatpush1.bf16.msra.mxu1 %v7511_v57 }
 0x4ee   : > { %14211 = vmatmul.mubr.msk.bf16.vlgmr.msra.gmra.mrb[136].mxu1 %vm7487_vm7, %v19987_v8 }
 0x4ef   : > { %7787 = vmatprep.mubr.bf16.mxu1 %v22213_v61 }
 0x4ff   : > { %v7052_v30 = vpop.f32.mrb[100].mxu0 }
 0x500   : > { %v20022_v38 = vpack.i.bf16 %v7052_v30, %v7013_v7  ;;  %v7470_v48 = vpack.c.bf16 %v7052_v30, %v7052_v30  ;;  %v20024_v14 = vpop.f32.mrb[101].mxu0 }
 0x501   : > { %v16332_v29 = vpack.i.bf16 %v20006_v18, %v20024_v14  ;;  %v7471_v23 = vpack.c.bf16 %v20024_v14, %v20024_v14  ;;  %v7056_v25 = vpop.f32.mrb[102].mxu0 }
 0x502   : > { %16308 = vrot.lane.b32.xlu0 %v20022_v38, %s16855_s28  ;;  %v7057_v33 = vpop.f32.mrb[103].mxu0  ;;  %v7505_v5 = vsel %vm7491_vm6, %v7470_v48, 0 }
 0x503   : > { %14208 = vmatprep.subr.msk.bf16.mxu0 %vm7491_vm6, %v7471_v23 }
 0x504   : > { %7627 = vmatpush1.bf16.msra.mxu0 %v7505_v5 }
 0x506   : > { %v20034_v6 = vpop.f32.mrb[124].mxu1 }
 0x507   : > { %v7476_v37 = vpack.c.bf16 %v20034_v6, %v20034_v6  ;;  %v20038_v41 = vpop.f32.mrb[125].mxu1  ;;  %14209 = vmatmul.mubr.msk.bf16.vlgmr.msra.gmra.mrb[116].mxu0 %vm7487_vm7, %v19987_v8 }
 0x508   : > { %v7477_v0 = vpack.c.bf16 %v20038_v41, %v20038_v41  ;;  %v7179_v56 = vpop.f32.mrb[126].mxu1  ;;  %7744 = vmatprep.mubr.bf16.mxu0 %v22213_v61 }
 0x509   : > { %v7180_v55 = vpop.f32.mrb[127].mxu1  ;;  %v7523_v19 = vsel %vm7491_vm6, %v7476_v37, 0 }
 0x50a   : > { %14214 = vmatprep.subr.msk.bf16.mxu1 %vm7491_vm6, %v7477_v0 }
 0x50b   : > { %7756 = vmatpush1.bf16.msra.mxu1 %v7523_v19 }
 0x50e   : > { %14215 = vmatmul.mubr.msk.bf16.vlgmr.msra.gmra.mrb[140].mxu1 %vm7487_vm7, %v19987_v8 }
 0x50f   : > { %7873 = vmatprep.mubr.bf16.mxu1 %v22213_v61 }
 0x51f   : > { %v7134_v47 = vpop.f32.mrb[104].mxu0 }
 0x520   : > { %v16312_v21 = vpack.i.bf16 %v7134_v47, %v20010_v2  ;;  %v7474_v49 = vpack.c.bf16 %v7134_v47, %v7134_v47  ;;  %v7136_v24 = vpop.f32.mrb[105].mxu0 }
 0x521   : > { %v16337_v31 = vpack.i.bf16 %v7136_v24, %v7134_v47  ;;  %v7475_v1 = vpack.c.bf16 %v7136_v24, %v7136_v24  ;;  %v7138_v53 = vpop.f32.mrb[106].mxu0 }
 0x522   : > { %16313 = vrot.lane.b32.xlu0 %v16312_v21, %s16855_s28  ;;  %v7139_v28 = vpop.f32.mrb[107].mxu0  ;;  %v7517_v44 = vsel %vm7491_vm6, %v7474_v49, 0 }
 0x523   : > { %14212 = vmatprep.subr.msk.bf16.mxu0 %vm7491_vm6, %v7475_v1 }
 0x524   : > { %7713 = vmatpush1.bf16.msra.mxu0 %v7517_v44 }
 0x526   : > { %v7257_v50 = vpop.f32.mrb[128].mxu1 }
 0x527   : > { %v7480_v40 = vpack.c.bf16 %v7257_v50, %v7257_v50  ;;  %v7259_v17 = vpop.f32.mrb[129].mxu1  ;;  %14213 = vmatmul.mubr.msk.bf16.vlgmr.msra.gmra.mrb[120].mxu0 %vm7487_vm7, %v19987_v8 }
 0x528   : > { %v7481_v16 = vpack.c.bf16 %v7259_v17, %v7259_v17  ;;  %7265 = vrot.lane.b32.xlu1 %v7259_v17, %s16855_s28  ;;  %v7261_v51 = vpop.f32.mrb[130].mxu1  ;;  %7830 = vmatprep.mubr.bf16.mxu0 %v22213_v61 }
 0x529   : > { %v7262_v36 = vpop.f32.mrb[131].mxu1  ;;  %v7535_v13 = vsel %vm7491_vm6, %v7480_v40, 0 }
 0x52a   : > { %14218 = vmatprep.subr.msk.bf16.mxu1 %vm7491_vm6, %v7481_v16 }
 0x52b   : > { %7842 = vmatpush1.bf16.msra.mxu1 %v7535_v13 }
 0x52c   : > { %7285 = vrot.lane.b32.xlu1 %v19996_v62, %s16855_s28  ;;  %v22269_v62 = vld [vmem:[#allocation3_spill] sm:$0xff] }
 0x52e   : > { %14219 = vmatmul.mubr.msk.bf16.vlgmr.msra.gmra.mrb[144].mxu1 %vm7487_vm7, %v19987_v8 }
 0x52f   : > { %8015 = vmatprep.mubr.bf16.mxu1 %v22213_v61 }
 0x530   : > { %7293 = vrot.lane.b32.xlu1 %v20024_v14, %s16855_s28 }
 0x534   : > { %7301 = vrot.lane.b32.xlu1 %v7136_v24, %s16855_s28 }
 0x53f   : > { %v7216_v9 = vpop.f32.mrb[108].mxu0 }
 0x540   : > { %v16317_v3 = vpack.i.bf16 %v7216_v9, %v20038_v41  ;;  %v7478_v34 = vpack.c.bf16 %v7216_v9, %v7216_v9  ;;  %v7218_v11 = vpop.f32.mrb[109].mxu0 }
 0x541   : > { %v16342_v39 = vpack.i.bf16 %v7218_v11, %v7216_v9  ;;  %v7479_v46 = vpack.c.bf16 %v7218_v11, %v7218_v11  ;;  %7309 = vrot.lane.b32.xlu1 %v7218_v11, %s16855_s28  ;;  %v7220_v60 = vpop.f32.mrb[110].mxu0 }
 0x542   : > { %16318 = vrot.lane.b32.xlu0 %v16317_v3, %s16855_s28  ;;  %v7221_v59 = vpop.f32.mrb[111].mxu0  ;;  %v7529_v7 = vsel %vm7491_vm6, %v7478_v34, 0 }
 0x543   : > { %14216 = vmatprep.subr.msk.bf16.mxu0 %vm7491_vm6, %v7479_v46 }
 0x544   : > { %7799 = vmatpush1.bf16.msra.mxu0 %v7529_v7 }
 0x545   : > { %16323 = vrot.lane.b32.xlu1 %v16322_v58, %s16856_s24 }
 0x546   : > { %7361 = vrot.lane.b32.xlu0 %v19992_v22, %s16856_s24 }
 0x547   : > { %14217 = vmatmul.mubr.msk.bf16.vlgmr.msra.gmra.mrb[124].mxu0 %vm7487_vm7, %v19987_v8 }
 0x548   : > { %7972 = vmatprep.mubr.bf16.mxu0 %v22213_v61 }
 0x549   : > { %7295 = vrot.lane.b32.xlu1 %v20006_v18, %s16855_s28 }
 0x54a   : > { %7287 = vrot.lane.b32.xlu0 %v19978_v26, %s16855_s28  ;;  %v8732_v26 = vld [vmem:[%s22104_s7] sm:$0xff] }
 0x54d   : > { %7311 = vrot.lane.b32.xlu1 %v7257_v50, %s16855_s28 }
 0x54e   : > { %7303 = vrot.lane.b32.xlu0 %v20034_v6, %s16855_s28 }
 0x551   : > { %16333 = vrot.lane.b32.xlu1 %v16332_v29, %s16856_s24 }
 0x552   : > { %16328 = vrot.lane.b32.xlu0 %v20022_v38, %s16856_s24 }
 0x554   : > { %v7284_v15 = vpop.permute.xlu0 %7283 }
 0x555   : > { %7381 = vrot.lane.b32.xlu1 %v20034_v6, %s16856_s24 }
 0x556   : > { %16338 = vrot.lane.b32.xlu0 %v16337_v31, %s16856_s24 }
 0x559   : > { %7389 = vrot.lane.b32.xlu1 %v7257_v50, %s16856_s24 }
 0x55a   : > { %16343 = vrot.lane.b32.xlu0 %v16342_v39, %s16856_s24 }
 0x55d   : > { %8736 = vperm.xlu1 %16026, %v8732_v26  }
 0x55e   : > { %7375 = vrot.lane.b32.xlu0 %v20010_v2, %s16856_s24 }
 0x561   : > { %7383 = vrot.lane.b32.xlu1 %v20038_v41, %s16856_s24 }
 0x562   : > { %8741 = vperm.xlu0 %16025, %v8733_v20   ;;  %v20182_v20 = vld [vmem:[%s22103_s6 + $0x10] sm:$0xff]  }
 0x566   : > { %7391 = vrot.lane.b32.xlu0 %v7259_v17, %s16856_s24 }
 0x574   : > { %v20111_v35 = vpop.permute.xlu0 %16308 }
 0x575   : > { %v16311_v8 = vunpack.i.h.bf16 %v20111_v35  ;;  %v16310_v22 = vunpack.i.l.bf16 %v20111_v35 }
 0x577   : > { %v7316_v63 = vsel %vm896_vm2, %v16310_v22, %v16311_v8 }
 0x578   : > { %v7454_v32 = vpack.c.bf16 %v7316_v63, %v7316_v63 }
 0x57a   : > { %v7905_v29 = vsel %vm7491_vm6, %v7454_v32, 0 }
 0x594   : > { %v16314_v18 = vpop.permute.xlu0 %16313 }
 0x595   : > { %v16316_v57 = vunpack.i.h.bf16 %v16314_v18  ;;  %v16315_v30 = vunpack.i.l.bf16 %v16314_v18 }
 0x597   : > { %v7320_v25 = vsel %vm896_vm2, %v16315_v30, %v16316_v57 }
 0x598   : > { %v7458_v5 = vpack.c.bf16 %v7320_v25, %v7320_v25 }
 0x59a   : > { %v20113_v42 = vpop.permute.xlu1 %7265  ;;  %v7917_v6 = vsel %vm7491_vm6, %v7458_v5, 0 }
 0x59b   : > { %v7344_v45 = vsel %vm896_vm2, %v20113_v42, %v7284_v15 }
 0x59c   : > { %v7345_v10 = vmul.f32 %v22269_v62, %v7344_v45 }
 0x59e   : > { %v7450_v58 = vpack.c.bf16 %v7345_v10, %v7345_v10  ;;  %v7286_v4 = vpop.permute.xlu1 %7285 }
 0x59f   : > { %v7313_v27 = vsel %vm896_vm2, %v7284_v15, %v7286_v4 }
 0x5a0   : > { %v7451_v52 = vpack.c.bf16 %v7313_v27, %v7313_v27  ;;  %v7893_v43 = vsel %vm7491_vm6, %v7450_v58, 0 }
 0x5a2   : > { %v7294_v2 = vpop.permute.xlu1 %7293  ;;  %14221 = vmatprep.subr.msk.bf16.mxu0 %vm7491_vm6, %v7451_v52 }
 0x5a3   : > { %v7317_v38 = vsel %vm896_vm2, %v16311_v8, %v7294_v2  ;;  %7941 = vmatpush1.bf16.msra.mxu0 %v7893_v43 }
 0x5a4   : > { %v7455_v48 = vpack.c.bf16 %v7317_v38, %v7317_v38 }
 0x5a6   : > { %v20130_v14 = vpop.permute.xlu1 %7301  ;;  %14222 = vmatmul.mubr.msk.bf16.vlgmr.msra.gmra.mrb[112].mxu0 %vm7487_vm7, %v20127_v54  ;;  %14225 = vmatprep.subr.msk.bf16.mxu0 %vm7491_vm6, %v7455_v48 }
 0x5a7   : > { %v7321_v23 = vsel %vm896_vm2, %v16316_v57, %v20130_v14  ;;  %8027 = vmatpush1.bf16.msra.mxu0 %v7905_v29  ;;  %8058 = vmatprep.mubr.bf16.mxu0 %v22213_v61 }
 0x5a8   : > { %v7459_v33 = vpack.c.bf16 %v7321_v23, %v7321_v23 }
 0x5aa   : > { %14229 = vmatprep.subr.msk.bf16.mxu0 %vm7491_vm6, %v7459_v33 }
 0x5ae   : > { %14226 = vmatmul.mubr.msk.bf16.vlgmr.msra.gmra.mrb[116].mxu0 %vm7487_vm7, %v20127_v54 }
 0x5af   : > { %8113 = vmatpush1.bf16.msra.mxu0 %v7917_v6  ;;  %8144 = vmatprep.mubr.bf16.mxu0 %v22213_v61 }
 0x5b3   : > { %v20145_v37 = vpop.permute.xlu1 %7309 }
 0x5b4   : > { %v16319_v41 = vpop.permute.xlu0 %16318 }
 0x5b5   : > { %v16321_v0 = vunpack.i.h.bf16 %v16319_v41  ;;  %v16320_v56 = vunpack.i.l.bf16 %v16319_v41 }
 0x5b6   : > { %14230 = vmatmul.mubr.msk.bf16.vlgmr.msra.gmra.mrb[120].mxu0 %vm7487_vm7, %v20127_v54 }
 0x5b7   : > { %v20149_v55 = vpop.permute.xlu1 %16323  ;;  %v7325_v19 = vsel %vm896_vm2, %v16321_v0, %v20145_v37  ;;  %v7324_v47 = vsel %vm896_vm2, %v16320_v56, %v16321_v0  ;;  %8230 = vmatprep.mubr.bf16.mxu0 %v22213_v61 }
 0x5b8   : > { %v16326_v21 = vunpack.i.h.bf16 %v20149_v55  ;;  %v16325_v49 = vunpack.i.l.bf16 %v20149_v55  ;;  %v20157_v24 = vpop.permute.xlu0 %7361  ;;  %v7463_v31 = vpack.c.bf16 %v7325_v19, %v7325_v19  ;;  %v7462_v1 = vpack.c.bf16 %v7324_v47, %v7324_v47 }
 0x5ba   : > { %v7393_v53 = vsel %vm1217_vm3, %v20157_v24, %v16325_v49  ;;  %14233 = vmatprep.subr.msk.bf16.mxu0 %vm7491_vm6, %v7463_v31  ;;  %v7929_v28 = vsel %vm7491_vm6, %v7462_v1, 0  ;;  %v7394_v44 = vsel %vm1217_vm3, %v16325_v49, %v16326_v21 }
 0x5bb   : > { %v8284_v50 = vpack.c.bf16 %v7393_v53, %v7393_v53  ;;  %v7296_v40 = vpop.permute.xlu1 %7295  ;;  %8199 = vmatpush1.bf16.msra.mxu0 %v7929_v28  ;;  %v8285_v17 = vpack.c.bf16 %v7394_v44, %v7394_v44 }
 0x5bc   : > { %v7288_v16 = vpop.permute.xlu0 %7287  ;;  %v7318_v51 = vsel %vm896_vm2, %v7294_v2, %v7296_v40  ;;  %v7319_v36 = vsel %vm896_vm2, %v7296_v40, %v16315_v30 }
 0x5bd   : > { %v7314_v13 = vsel %vm896_vm2, %v7286_v4, %v7288_v16  ;;  %v7315_v9 = vsel %vm896_vm2, %v7288_v16, %v16310_v22  ;;  %14238 = vmatprep.subr.msk.bf16.mxu0 %vm7491_vm6, %v8285_v17  ;;  %v8309_v11 = vsel %vm7491_vm6, %v8284_v50, 0  ;;  %v7456_v46 = vpack.c.bf16 %v7318_v51, %v7318_v51  ;;  %v16364_v17 = vld [vmem:[%s22105_s8 + $0x4] ss:$8 sps:$4 sm:$0xff]  }
 0x5be   : > { %v7452_v3 = vpack.c.bf16 %v7314_v13, %v7314_v13  ;;  %v7453_v34 = vpack.c.bf16 %v7315_v9, %v7315_v9  ;;  %14234 = vmatmul.mubr.msk.bf16.vlgmr.msra.gmra.mrb[124].mxu0 %vm7487_vm7, %v20127_v54  ;;  %v7457_v60 = vpack.c.bf16 %v7319_v36, %v7319_v36 }
 0x5bf   : > { %v7312_v39 = vpop.permute.xlu1 %7311  ;;  %8357 = vmatpush1.bf16.msra.mxu0 %v8309_v11  ;;  %8388 = vmatprep.mubr.bf16.mxu0 %v22213_v61  ;;  %v7911_v10 = vsel %vm7491_vm6, %v7456_v46, 0  ;;  %v16367_v11 = vld [vmem:[%s22105_s8 + $0x14] ss:$8 sps:$4 sm:$0xff]   ;;  %v16365_v46 = vld [vmem:[%s22105_s8 + $0x10] ss:$8 sps:$4 sm:$0xff]  }
 0x5c0   : > { %14223 = vmatprep.subr.msk.bf16.mxu1 %vm7491_vm6, %v7453_v34  ;;  %v7304_v59 = vpop.permute.xlu0 %7303  ;;  %v7899_v7 = vsel %vm7491_vm6, %v7452_v3, 0  ;;  %v7327_v57 = vsel %vm896_vm2, %v7312_v39, %v20113_v42  ;;  %v7326_v6 = vsel %vm896_vm2, %v20145_v37, %v7312_v39  ;;  %v16362_v3 = vld [vmem:[%s22105_s8] ss:$8 sps:$4 sm:$0xff]  }
 0x5c1   : > { %v7323_v26 = vsel %vm896_vm2, %v7304_v59, %v16320_v56  ;;  %7984 = vmatpush1.bf16.msra.mxu1 %v7899_v7  ;;  %v7322_v58 = vsel %vm896_vm2, %v20130_v14, %v7304_v59  ;;  %v7465_v23 = vpack.c.bf16 %v7327_v57, %v7327_v57  ;;  %v7464_v49 = vpack.c.bf16 %v7326_v6, %v7326_v6  ;;  %v16382_v57 = vld [vmem:[%s22105_s8 + $0x64] ss:$8 sps:$4 sm:$0xff]   ;;  %v16395_v6 = vld [vmem:[%s22105_s8 + $0xb0] ss:$8 sps:$4 sm:$0xff]  }
 0x5c2   : > { %14227 = vmatprep.subr.msk.bf16.mxu1 %vm7491_vm6, %v7457_v60  ;;  %v7461_v35 = vpack.c.bf16 %v7323_v26, %v7323_v26  ;;  %v7460_v52 = vpack.c.bf16 %v7322_v58, %v7322_v58  ;;  %v16370_v26 = vld [vmem:[%s22105_s8 + $0x24] ss:$8 sps:$4 sm:$0xff]  }
 0x5c3   : > { %v20184_v15 = vpop.permute.xlu1 %16333  ;;  %v7935_v44 = vsel %vm7491_vm6, %v7464_v49, 0  ;;  %v16409_v49 = vld [vmem:[%s22105_s8 + $0xf4] ss:$8 sps:$4 sm:$0xff]  }
 0x5c4   : > { %v16336_v8 = vunpack.i.h.bf16 %v20184_v15  ;;  %v16335_v22 = vunpack.i.l.bf16 %v20184_v15  ;;  %14224 = vmatmul.mubr.msk.bf16.vlgmr.msra.gmra.mrb[132].mxu1 %vm7487_vm7, %v20127_v54  ;;  %v16329_v45 = vpop.permute.xlu0 %16328  ;;  %v7923_v33 = vsel %vm7491_vm6, %v7460_v52, 0 }
 0x5c5   : > { %v16331_v4 = vunpack.i.h.bf16 %v16329_v45  ;;  %8070 = vmatpush1.bf16.msra.mxu1 %v7911_v10  ;;  %8101 = vmatprep.mubr.bf16.mxu1 %v22213_v61  ;;  %v16330_v41 = vunpack.i.l.bf16 %v16329_v45  ;;  %v16373_v45 = vld [vmem:[%s22105_s8 + $0x34] ss:$8 sps:$4 sm:$0xff]  }
 0x5c6   : > { %14231 = vmatprep.subr.msk.bf16.mxu1 %vm7491_vm6, %v7461_v35  ;;  %14239 = vmatmul.mubr.msk.bf16.vlgmr.msra.gmra.mrb[112].mxu0 %vm7487_vm7, %v20182_v20  ;;  %v7398_v27 = vsel %vm1217_vm3, %v16335_v22, %v16336_v8  ;;  %v16368_v35 = vld [vmem:[%s22105_s8 + $0x20] ss:$8 sps:$4 sm:$0xff]  }
 0x5c7   : > { %v8289_v63 = vpack.c.bf16 %v7398_v27, %v7398_v27  ;;  %v7397_v18 = vsel %vm1217_vm3, %v16331_v4, %v16335_v22  ;;  %8474 = vmatprep.mubr.bf16.mxu0 %v22213_v61  ;;  %v20202_v2 = vpop.permute.xlu1 %7381  ;;  %v7396_v53 = vsel %vm1217_vm3, %v16330_v41, %v16331_v4  ;;  %v7395_v40 = vsel %vm1217_vm3, %v16326_v21, %v16330_v41  ;;  %v16371_v27 = vld [vmem:[%s22105_s8 + $0x30] ss:$8 sps:$4 sm:$0xff]   ;;  %v16400_v41 = vld [vmem:[%s22105_s8 + $0xc4] ss:$8 sps:$4 sm:$0xff]  }
 0x5c8   : > { %v16339_v43 = vpop.permute.xlu0 %16338  ;;  %v8288_v32 = vpack.c.bf16 %v7397_v18, %v7397_v18  ;;  %v8287_v50 = vpack.c.bf16 %v7396_v53, %v7396_v53  ;;  %v8286_v36 = vpack.c.bf16 %v7395_v40, %v7395_v40 }
 0x5c9   : > { %v16341_v30 = vunpack.i.h.bf16 %v16339_v43  ;;  %v16340_v38 = vunpack.i.l.bf16 %v16339_v43  ;;  %14242 = vmatprep.subr.msk.bf16.mxu0 %vm7491_vm6, %v8289_v63  ;;  %v16376_v63 = vld [vmem:[%s22105_s8 + $0x44] ss:$8 sps:$4 sm:$0xff]  }
 0x5ca   : > { %v8321_v48 = vsel %vm7491_vm6, %v8288_v32, 0  ;;  %v8315_v9 = vsel %vm7491_vm6, %v8286_v36, 0  ;;  %v16377_v32 = vld [vmem:[%s22105_s8 + $0x50] ss:$8 sps:$4 sm:$0xff]  }
 0x5cb   : > { %8443 = vmatpush1.bf16.msra.mxu0 %v8321_v48  ;;  %v7402_v14 = vsel %vm1217_vm3, %v16341_v30, %v20202_v2  ;;  %v7401_v29 = vsel %vm1217_vm3, %v16340_v38, %v16341_v30  ;;  %v20217_v19 = vpop.permute.xlu1 %7389  ;;  %v16385_v48 = vld [vmem:[%s22105_s8 + $0x74] ss:$8 sps:$4 sm:$0xff]  }
 0x5cc   : > { %v16344_v25 = vpop.permute.xlu0 %16343  ;;  %14228 = vmatmul.mubr.msk.bf16.vlgmr.msra.gmra.mrb[136].mxu1 %vm7487_vm7, %v20127_v54  ;;  %v8293_v42 = vpack.c.bf16 %v7402_v14, %v7402_v14  ;;  %v8292_v5 = vpack.c.bf16 %v7401_v29, %v7401_v29  ;;  %v16383_v14 = vld [vmem:[%s22105_s8 + $0x70] ss:$8 sps:$4 sm:$0xff]   ;;  %v16388_v29 = vld [vmem:[%s22105_s8 + $0x84] ss:$8 sps:$4 sm:$0xff]  }
 0x5cd   : > { %v16346_v0 = vunpack.i.h.bf16 %v16344_v25  ;;  %v16345_v56 = vunpack.i.l.bf16 %v16344_v25  ;;  %8156 = vmatpush1.bf16.msra.mxu1 %v7923_v33  ;;  %8187 = vmatprep.mubr.bf16.mxu1 %v22213_v61  ;;  %v16391_v25 = vld [vmem:[%s22105_s8 + $0x94] ss:$8 sps:$4 sm:$0xff]   ;;  %v16389_v33 = vld [vmem:[%s22105_s8 + $0x90] ss:$8 sps:$4 sm:$0xff]  }
 0x5ce   : > { %14235 = vmatprep.subr.msk.bf16.mxu1 %vm7491_vm6, %v7465_v23  ;;  %14246 = vmatprep.subr.msk.bf16.mxu0 %vm7491_vm6, %v8293_v42  ;;  %v8333_v47 = vsel %vm7491_vm6, %v8292_v5, 0  ;;  %v16386_v23 = vld [vmem:[%s22105_s8 + $0x80] ss:$8 sps:$4 sm:$0xff]   ;;  %v16397_v5 = vld [vmem:[%s22105_s8 + $0xb4] ss:$8 sps:$4 sm:$0xff]  }
 0x5cf   : > { %14243 = vmatmul.mubr.msk.bf16.vlgmr.msra.gmra.mrb[116].mxu0 %vm7487_vm7, %v20182_v20  ;;  %v7406_v37 = vsel %vm1217_vm3, %v16346_v0, %v20217_v19  ;;  %v7405_v1 = vsel %vm1217_vm3, %v16345_v56, %v16346_v0  ;;  %v16392_v42 = vld [vmem:[%s22105_s8 + $0xa0] ss:$8 sps:$4 sm:$0xff]  }
 0x5d0   : > { %8529 = vmatpush1.bf16.msra.mxu0 %v8333_v47  ;;  %v8297_v31 = vpack.c.bf16 %v7406_v37, %v7406_v37  ;;  %8560 = vmatprep.mubr.bf16.mxu0 %v22213_v61  ;;  %v8296_v28 = vpack.c.bf16 %v7405_v1, %v7405_v1  ;;  %v7376_v16 = vpop.permute.xlu0 %7375  ;;  %v16398_v0 = vld [vmem:[%s22105_s8 + $0xc0] ss:$8 sps:$4 sm:$0xff]   ;;  %v16406_v47 = vld [vmem:[%s22105_s8 + $0xe4] ss:$8 sps:$4 sm:$0xff]  }
 0x5d1   : > { %v7400_v55 = vsel %vm1217_vm3, %v7376_v16, %v16340_v38  ;;  %v7399_v34 = vsel %vm1217_vm3, %v16336_v8, %v7376_v16  ;;  %v16380_v38 = vld [vmem:[%s22105_s8 + $0x60] ss:$8 sps:$4 sm:$0xff]   ;;  %v16412_v1 = vld [vmem:[%s22105_s8 + $0x104] ss:$8 sps:$4 sm:$0xff]  }
 0x5d2   : > { %14250 = vmatprep.subr.msk.bf16.mxu0 %vm7491_vm6, %v8297_v31  ;;  %v8345_v51 = vsel %vm7491_vm6, %v8296_v28, 0  ;;  %v8291_v21 = vpack.c.bf16 %v7400_v55, %v7400_v55  ;;  %v16404_v37 = vld [vmem:[%s22105_s8 + $0xe0] ss:$8 sps:$4 sm:$0xff]   ;;  %v16407_v31 = vld [vmem:[%s22105_s8 + $0xf0] ss:$8 sps:$4 sm:$0xff]  }
 0x5d4   : > { %14232 = vmatmul.mubr.msk.bf16.vlgmr.msra.gmra.mrb[140].mxu1 %vm7487_vm7, %v20127_v54 }
 0x5d5   : > { %8242 = vmatpush1.bf16.msra.mxu1 %v7935_v44  ;;  %8273 = vmatprep.mubr.bf16.mxu1 %v22213_v61 }
 0x5d6   : > { %14240 = vmatprep.subr.msk.bf16.mxu1 %vm7491_vm6, %v8287_v50 }
 0x5d7   : > { %14247 = vmatmul.mubr.msk.bf16.vlgmr.msra.gmra.mrb[120].mxu0 %vm7487_vm7, %v20182_v20 }
 0x5d8   : > { %8615 = vmatpush1.bf16.msra.mxu0 %v8345_v51  ;;  %8646 = vmatprep.mubr.bf16.mxu0 %v22213_v61 }
 0x5d9   : > { %10360 = vmatprep.subr.bf16.mxu0 %v16364_v17 }
 0x5dc   : > { %14236 = vmatmul.mubr.msk.bf16.vlgmr.msra.gmra.mrb[144].mxu1 %vm7487_vm7, %v20127_v54  ;;  %v20248_v13 = vpop.permute.xlu1 %8736  ;;  %v8290_v54 = vpack.c.bf16 %v7399_v34, %v7399_v34 }
 0x5dd   : > { %8400 = vmatpush1.bf16.msra.mxu1 %v8315_v9  ;;  %8431 = vmatprep.mubr.bf16.mxu1 %v22213_v61 }
 0x5de   : > { %14244 = vmatprep.subr.msk.bf16.mxu1 %vm7491_vm6, %v8291_v21  ;;  %v8327_v15 = vsel %vm7491_vm6, %v8290_v54, 0 }
 0x5df   : > { %14251 = vmatmul.mubr.msk.bf16.vlgmr.msra.gmra.mrb[124].mxu0 %vm7487_vm7, %v20182_v20 }
 0x5e0   : > { %v7384_v39 = vpop.permute.xlu1 %7383  ;;  %10361 = vmatpush1.bf16.msra.mxu0 %v16362_v3 }
 0x5e1   : > { %v7404_v60 = vsel %vm1217_vm3, %v7384_v39, %v16345_v56  ;;  %v20268_v59 = vpop.permute.xlu0 %8741  ;;  %10362 = vmatprep.subr.bf16.mxu0 %v16367_v11  ;;  %v7403_v8 = vsel %vm1217_vm3, %v20202_v2, %v7384_v39  ;;  %v16379_v2 = vld [vmem:[%s22105_s8 + $0x54] ss:$8 sps:$4 sm:$0xff]   ;;  %v16410_v11 = vld [vmem:[%s22105_s8 + $0x100] ss:$8 sps:$4 sm:$0xff]  }
 0x5e2   : > { %v8295_v7 = vpack.c.bf16 %v7404_v60, %v7404_v60  ;;  %v8294_v58 = vpack.c.bf16 %v7403_v8, %v7403_v8  ;;  %v16403_v56 = vld [vmem:[%s22105_s8 + $0xd4] ss:$8 sps:$4 sm:$0xff]   ;;  %v16413_v8 = vld [vmem:[%s22105_s8 + $0x110] ss:$8 sps:$4 sm:$0xff]  }
 0x5e3   : > { %v16415_v39 = vld [vmem:[%s22105_s8 + $0x114] ss:$8 sps:$4 sm:$0xff]  }
 0x5e4   : > { %14241 = vmatmul.mubr.msk.bf16.vlgmr.msra.gmra.mrb[132].mxu1 %vm7487_vm7, %v20182_v20  ;;  %10363 = vmatpush1.bf16.msra.mxu0 %v16365_v46 }
 0x5e5   : > { %8486 = vmatpush1.bf16.msra.mxu1 %v8327_v15  ;;  %v7392_v22 = vpop.permute.xlu0 %7391  ;;  %8517 = vmatprep.mubr.bf16.mxu1 %v22213_v61 }
 0x5e6   : > { %v7425_v10 = vsel %vm1217_vm3, %v7392_v22, %v20157_v24  ;;  %14248 = vmatprep.subr.msk.bf16.mxu1 %vm7491_vm6, %v8295_v7  ;;  %10364 = vmatprep.subr.bf16.mxu0 %v16370_v26  ;;  %v8339_v24 = vsel %vm7491_vm6, %v8294_v58, 0  ;;  %v7407_v52 = vsel %vm1217_vm3, %v20217_v19, %v7392_v22  ;;  %v16401_v19 = vld [vmem:[%s22105_s8 + $0xd0] ss:$8 sps:$4 sm:$0xff]  }
 0x5e7   : > { %v7441_v4 = vmul.f32 %v22264_v12, %v7425_v10  ;;  %v16374_v12 = vld [vmem:[%s22105_s8 + $0x40] ss:$8 sps:$4 sm:$0xff]   ;;  %v8298_v43 = vpack.c.bf16 %v7407_v52, %v7407_v52  ;;  %v16421_v52 = vld [vmem:[%s22105_s8 + $0x134] ss:$8 sps:$4 sm:$0xff]  }
 0x5e8   : > { %10365 = vmatpush1.bf16.msra.mxu0 %v16368_v35 }
 0x5e9   : > { %10366 = vmatprep.subr.bf16.mxu0 %v16373_v45  ;;  %v8299_v18 = vpack.c.bf16 %v7441_v4, %v7441_v4  ;;  %v8351_v30 = vsel %vm7491_vm6, %v8298_v43, 0  ;;  %v16418_v45 = vld [vmem:[%s22105_s8 + $0x124] ss:$8 sps:$4 sm:$0xff]  }
 0x5ec   : > { %14245 = vmatmul.mubr.msk.bf16.vlgmr.msra.gmra.mrb[136].mxu1 %vm7487_vm7, %v20182_v20  ;;  %10367 = vmatpush1.bf16.msra.mxu0 %v16371_v27 }
 0x5ed   : > { %8572 = vmatpush1.bf16.msra.mxu1 %v8339_v24  ;;  %8603 = vmatprep.mubr.bf16.mxu1 %v22213_v61 }
 0x5ee   : > { %14252 = vmatprep.subr.msk.bf16.mxu1 %vm7491_vm6, %v8299_v18  ;;  %10368 = vmatprep.subr.bf16.mxu0 %v16376_v63  ;;  %v16416_v18 = vld [vmem:[%s22105_s8 + $0x120] ss:$8 sps:$4 sm:$0xff]  }
 0x5f0   : > { %10369 = vmatpush1.bf16.msra.mxu0 %v16374_v12 }
 0x5f1   : > { %10370 = vmatprep.subr.bf16.mxu0 %v16379_v2 }
 0x5f4   : > { %14249 = vmatmul.mubr.msk.bf16.vlgmr.msra.gmra.mrb[140].mxu1 %vm7487_vm7, %v20182_v20  ;;  %10371 = vmatpush1.bf16.msra.mxu0 %v16377_v32 }
 0x5f5   : > { %8658 = vmatpush1.bf16.msra.mxu1 %v8351_v30  ;;  %8689 = vmatprep.mubr.bf16.mxu1 %v22213_v61 }
 0x5f6   : > { %10372 = vmatprep.subr.bf16.mxu0 %v16382_v57 }
 0x5f8   : > { %10373 = vmatpush1.bf16.msra.mxu0 %v16380_v38 }
 0x5f9   : > { %10374 = vmatprep.subr.bf16.mxu0 %v16385_v48  ;;  %v16419_v48 = vld [vmem:[%s22105_s8 + $0x130] ss:$8 sps:$4 sm:$0xff]  }
 0x5fc   : > { %14253 = vmatmul.mubr.msk.bf16.vlgmr.msra.gmra.mrb[144].mxu1 %vm7487_vm7, %v20182_v20  ;;  %10375 = vmatpush1.bf16.msra.mxu0 %v16383_v14  ;;  %v16394_v20 = vld [vmem:[%s22105_s8 + $0xa4] ss:$8 sps:$4 sm:$0xff]  }
 0x5fd   : > { %10376 = vmatprep.subr.bf16.mxu0 %v16388_v29  ;;  %10825 = vmatprep.mubr.bf16.mxu1 %v22213_v61  ;;  %v16424_v29 = vld [vmem:[%s22105_s8 + $0x144] ss:$8 sps:$4 sm:$0xff]  }
 0x600   : > { %10377 = vmatpush1.bf16.msra.mxu0 %v16386_v23 }
 0x601   : > { %10378 = vmatprep.subr.bf16.mxu0 %v16391_v25 }
 0x604   : > { %10379 = vmatpush1.bf16.msra.mxu0 %v16389_v33 }
 0x605   : > { %10380 = vmatprep.subr.bf16.mxu0 %v16394_v20 }
 0x608   : > { %10381 = vmatpush1.bf16.msra.mxu0 %v16392_v42 }
 0x609   : > { %10382 = vmatprep.subr.bf16.mxu0 %v16397_v5  ;;  %v16422_v5 = vld [vmem:[%s22105_s8 + $0x140] ss:$8 sps:$4 sm:$0xff]  }
 0x60c   : > { %10383 = vmatpush1.bf16.msra.mxu0 %v16395_v6 }
 0x60d   : > { %10384 = vmatprep.subr.bf16.mxu0 %v16400_v41 }
 0x610   : > { %10385 = vmatpush1.bf16.msra.mxu0 %v16398_v0  ;;  %v16427_v0 = vld [vmem:[%s22105_s8 + $0x154] ss:$8 sps:$4 sm:$0xff]  }
 0x611   : > { %10386 = vmatprep.subr.bf16.mxu0 %v16403_v56 }
 0x614   : > { %10387 = vmatpush1.bf16.msra.mxu0 %v16401_v19 }
 0x615   : > { %10388 = vmatprep.subr.bf16.mxu0 %v16406_v47 }
 0x618   : > { %10389 = vmatpush1.bf16.msra.mxu0 %v16404_v37 }
 0x619   : > { %10390 = vmatprep.subr.bf16.mxu0 %v16409_v49 }
 0x61c   : > { %10391 = vmatpush1.bf16.msra.mxu0 %v16407_v31 }
 0x61d   : > { %10403 = vmatprep.subr.bf16.mxu0 %v16412_v1  ;;  %v16425_v1 = vld [vmem:[%s22105_s8 + $0x150] ss:$8 sps:$4 sm:$0xff]  }
 0x699   : > { %v8390_v53 = vpop.f32.mrb[112].mxu0 }
 0x69a   : > { %v8744_v28 = vadd.f32 %v20248_v13, %v8390_v53  ;;  %v8392_v44 = vpop.f32.mrb[113].mxu0 }
 0x69b   : > { %v8745_v50 = vadd.f32 %v20248_v13, %v8392_v44  ;;  %v8394_v40 = vpop.f32.mrb[114].mxu0 }
 0x69c   : > { %v8760_v17 = vadd.f32 %v20268_v59, %v8394_v40  ;;  %v8396_v16 = vpop.f32.mrb[115].mxu0  ;;  %v8776_v36 = vmax.f32 %v8744_v28, 0.0  ;;  %v16430_v28 = vld [vmem:[%s22105_s8 + $0x164] ss:$8 sps:$4 sm:$0xff]  }
 0x69d   : > { %v8761_v51 = vadd.f32 %v20268_v59, %v8396_v16  ;;  %v8777_v21 = vmax.f32 %v8745_v50, 0.0 }
 0x69e   : > { %v8792_v55 = vmax.f32 %v8760_v17, 0.0 }
 0x69f   : > { %v8793_v9 = vmax.f32 %v8761_v51, 0.0 }
 0x6a0   : > { %v8808_v3 = vpack.c.bf16 %v8792_v55, %v8776_v36 }
 0x6a1   : > { %v8809_v34 = vpack.c.bf16 %v8793_v9, %v8777_v21 }
 0x6a2   : > { %v8476_v54 = vpop.f32.mrb[116].mxu0 }
 0x6a3   : > { %v8748_v46 = vadd.f32 %v20248_v13, %v8476_v54  ;;  %v8478_v60 = vpop.f32.mrb[117].mxu0  ;;  %10392 = vmatprep.mubr.bf16.mxu0 %v8809_v34 }
 0x6a4   : > { %v8749_v7 = vadd.f32 %v20248_v13, %v8478_v60  ;;  %v8480_v26 = vpop.f32.mrb[118].mxu0  ;;  %10393 = vmatmul.mubr.bf16.vlgmr.msra.gmra.mrb[128].mxu0 %v8808_v3  ;;  %v16428_v3 = vld [vmem:[%s22105_s8 + $0x160] ss:$8 sps:$4 sm:$0xff]  }
 0x6a5   : > { %v8764_v15 = vadd.f32 %v20268_v59, %v8480_v26  ;;  %v8482_v35 = vpop.f32.mrb[119].mxu0  ;;  %10404 = vmatpush1.bf16.msra.mxu0 %v16410_v11  ;;  %v8780_v10 = vmax.f32 %v8748_v46, 0.0 }
 0x6a6   : > { %v8765_v22 = vadd.f32 %v20268_v59, %v8482_v35  ;;  %10405 = vmatprep.subr.bf16.mxu0 %v16415_v39  ;;  %v8781_v4 = vmax.f32 %v8749_v7, 0.0  ;;  %v16433_v39 = vld [vmem:[%s22105_s8 + $0x174] ss:$8 sps:$4 sm:$0xff]   ;;  %v16431_v35 = vld [vmem:[%s22105_s8 + $0x170] ss:$8 sps:$4 sm:$0xff]  }
 0x6a7   : > { %v8796_v58 = vmax.f32 %v8764_v15, 0.0 }
 0x6a8   : > { %v8797_v27 = vmax.f32 %v8765_v22, 0.0  ;;  %v16436_v22 = vld [vmem:[%s22105_s8 + $0x184] ss:$8 sps:$4 sm:$0xff]  }
 0x6a9   : > { %v20401_v63 = vpack.c.bf16 %v8796_v58, %v8780_v10  ;;  %10406 = vmatpush1.bf16.msra.mxu0 %v16413_v8 }
 0x6aa   : > { %v20406_v24 = vpack.c.bf16 %v8797_v27, %v8781_v4  ;;  %v8562_v12 = vpop.f32.mrb[120].mxu0  ;;  %10407 = vmatprep.subr.bf16.mxu0 %v16418_v45 }
 0x6ab   : > { %v8752_v2 = vadd.f32 %v20248_v13, %v8562_v12  ;;  %v8564_v43 = vpop.f32.mrb[121].mxu0  ;;  %v16434_v12 = vld [vmem:[%s22105_s8 + $0x180] ss:$8 sps:$4 sm:$0xff]  }
 0x6ac   : > { %v8753_v32 = vadd.f32 %v20248_v13, %v8564_v43  ;;  %v8566_v57 = vpop.f32.mrb[122].mxu0  ;;  %v16439_v43 = vld [vmem:[%s22105_s8 + $0x194] ss:$8 sps:$4 sm:$0xff]  }
 0x6ad   : > { %v8768_v30 = vadd.f32 %v20268_v59, %v8566_v57  ;;  %v8568_v38 = vpop.f32.mrb[123].mxu0  ;;  %10408 = vmatpush1.bf16.msra.mxu0 %v16416_v18  ;;  %v8784_v23 = vmax.f32 %v8752_v2, 0.0 }
 0x6ae   : > { %v8769_v14 = vadd.f32 %v20268_v59, %v8568_v38  ;;  %10409 = vmatprep.subr.bf16.mxu0 %v16421_v52  ;;  %v8785_v33 = vmax.f32 %v8753_v32, 0.0 }
 0x6af   : > { %v8800_v25 = vmax.f32 %v8768_v30, 0.0 }
 0x6b0   : > { %v8801_v20 = vmax.f32 %v8769_v14, 0.0  ;;  %v16437_v14 = vld [vmem:[%s22105_s8 + $0x190] ss:$8 sps:$4 sm:$0xff]  }
 0x6b1   : > { %v20421_v42 = vpack.c.bf16 %v8800_v25, %v8784_v23  ;;  %10410 = vmatpush1.bf16.msra.mxu0 %v16419_v48  ;;  %v16442_v23 = vld [vmem:[%s22105_s8 + $0x1a4] ss:$8 sps:$4 sm:$0xff]  }
 0x6b2   : > { %v20426_v6 = vpack.c.bf16 %v8801_v20, %v8785_v33  ;;  %v8648_v41 = vpop.f32.mrb[124].mxu0  ;;  %10411 = vmatprep.subr.bf16.mxu0 %v16424_v29 }
 0x6b3   : > { %v8756_v56 = vadd.f32 %v20248_v13, %v8648_v41  ;;  %v8650_v19 = vpop.f32.mrb[125].mxu0 }
 0x6b4   : > { %v8757_v47 = vadd.f32 %v20248_v13, %v8650_v19  ;;  %v8652_v37 = vpop.f32.mrb[126].mxu0 }
 0x6b5   : > { %v8772_v49 = vadd.f32 %v20268_v59, %v8652_v37  ;;  %v8654_v31 = vpop.f32.mrb[127].mxu0  ;;  %10412 = vmatpush1.bf16.msra.mxu0 %v16422_v5  ;;  %v8788_v44 = vmax.f32 %v8756_v56, 0.0  ;;  %v16440_v56 = vld [vmem:[%s22105_s8 + $0x1a0] ss:$8 sps:$4 sm:$0xff]   ;;  %v16445_v37 = vld [vmem:[%s22105_s8 + $0x1b4] ss:$8 sps:$4 sm:$0xff]  }
 0x6b6   : > { %v8773_v53 = vadd.f32 %v20268_v59, %v8654_v31  ;;  %10413 = vmatprep.subr.bf16.mxu0 %v16427_v0  ;;  %v8789_v17 = vmax.f32 %v8757_v47, 0.0 }
 0x6b7   : > { %v8804_v50 = vmax.f32 %v8772_v49, 0.0  ;;  %v8433_v40 = vpop.f32.mrb[132].mxu1 }
 0x6b8   : > { %v8805_v16 = vmax.f32 %v8773_v53, 0.0  ;;  %v8746_v51 = vadd.f32 %v20248_v13, %v8433_v40  ;;  %v8435_v36 = vpop.f32.mrb[133].mxu1  ;;  %v16448_v40 = vld [vmem:[%s22105_s8 + $0x1c4] ss:$8 sps:$4 sm:$0xff]  }
 0x6b9   : > { %v20442_v55 = vpack.c.bf16 %v8804_v50, %v8788_v44  ;;  %v8747_v21 = vadd.f32 %v20248_v13, %v8435_v36  ;;  %v8437_v9 = vpop.f32.mrb[134].mxu1  ;;  %10414 = vmatpush1.bf16.msra.mxu0 %v16425_v1  ;;  %v16443_v44 = vld [vmem:[%s22105_s8 + $0x1b0] ss:$8 sps:$4 sm:$0xff]  }
 0x6ba   : > { %v20448_v34 = vpack.c.bf16 %v8805_v16, %v8789_v17  ;;  %v8762_v11 = vadd.f32 %v20268_v59, %v8437_v9  ;;  %v8439_v54 = vpop.f32.mrb[135].mxu1  ;;  %10415 = vmatprep.subr.bf16.mxu0 %v16430_v28  ;;  %v8778_v60 = vmax.f32 %v8746_v51, 0.0 }
 0x6bb   : > { %v8763_v46 = vadd.f32 %v20268_v59, %v8439_v54  ;;  %v8779_v26 = vmax.f32 %v8747_v21, 0.0 }
 0x6bc   : > { %v8794_v7 = vmax.f32 %v8762_v11, 0.0 }
 0x6bd   : > { %v8795_v15 = vmax.f32 %v8763_v46, 0.0  ;;  %10416 = vmatpush1.bf16.msra.mxu0 %v16428_v3  ;;  %v16446_v3 = vld [vmem:[%s22105_s8 + $0x1c0] ss:$8 sps:$4 sm:$0xff]  }
 0x6be   : > { %v20458_v8 = vpack.c.bf16 %v8794_v7, %v8778_v60  ;;  %10417 = vmatprep.subr.bf16.mxu0 %v16433_v39  ;;  %v16451_v39 = vld [vmem:[%s22105_s8 + $0x1d4] ss:$8 sps:$4 sm:$0xff]  }
 0x6bf   : > { %v8811_v45 = vpack.c.bf16 %v8795_v15, %v8779_v26  ;;  %v8519_v10 = vpop.f32.mrb[136].mxu1  ;;  %v16449_v15 = vld [vmem:[%s22105_s8 + $0x1d0] ss:$8 sps:$4 sm:$0xff]  }
 0x6c0   : > { %v8750_v58 = vadd.f32 %v20248_v13, %v8519_v10  ;;  %v8521_v4 = vpop.f32.mrb[137].mxu1  ;;  %v16457_v10 = vld [vmem:[%s22105_s8 + $0x1f4] ss:$8 sps:$4 sm:$0xff]  }
 0x6c1   : > { %v8751_v27 = vadd.f32 %v20248_v13, %v8521_v4  ;;  %v8523_v18 = vpop.f32.mrb[138].mxu1  ;;  %10418 = vmatpush1.bf16.msra.mxu0 %v16431_v35  ;;  %10435 = vmatprep.mubr.bf16.mxu0 %v8811_v45  ;;  %v16460_v4 = vld [vmem:[%s22105_s8 + $0x204] ss:$8 sps:$4 sm:$0xff]  }
 0x6c2   : > { %v8766_v52 = vadd.f32 %v20268_v59, %v8523_v18  ;;  %v8525_v2 = vpop.f32.mrb[139].mxu1  ;;  %10419 = vmatprep.subr.bf16.mxu0 %v16436_v22  ;;  %v8782_v57 = vmax.f32 %v8750_v58, 0.0  ;;  %v16454_v22 = vld [vmem:[%s22105_s8 + $0x1e4] ss:$8 sps:$4 sm:$0xff]   ;;  %v16455_v58 = vld [vmem:[%s22105_s8 + $0x1f0] ss:$8 sps:$4 sm:$0xff]  }
 0x6c3   : > { %v8767_v32 = vadd.f32 %v20268_v59, %v8525_v2  ;;  %v8783_v38 = vmax.f32 %v8751_v27, 0.0  ;;  %v16458_v27 = vld [vmem:[%s22105_s8 + $0x200] ss:$8 sps:$4 sm:$0xff]   ;;  %v16463_v18 = vld [vmem:[%s22105_s8 + $0x214] ss:$8 sps:$4 sm:$0xff]  }
 0x6c4   : > { %v8798_v30 = vmax.f32 %v8766_v52, 0.0  ;;  %v16466_v52 = vld [vmem:[%s22105_s8 + $0x224] ss:$8 sps:$4 sm:$0xff]   ;;  %v16464_v2 = vld [vmem:[%s22105_s8 + $0x220] ss:$8 sps:$4 sm:$0xff]  }
 0x6c5   : > { %v8799_v48 = vmax.f32 %v8767_v32, 0.0  ;;  %10420 = vmatpush1.bf16.msra.mxu0 %v16434_v12  ;;  %v16461_v12 = vld [vmem:[%s22105_s8 + $0x210] ss:$8 sps:$4 sm:$0xff]   ;;  %v16470_v32 = vld [vmem:[%s22105_s8 + $0x240] ss:$8 sps:$4 sm:$0xff]  }
 0x6c6   : > { %v20476_v29 = vpack.c.bf16 %v8798_v30, %v8782_v57  ;;  %10421 = vmatprep.subr.bf16.mxu0 %v16439_v43  ;;  %v16472_v43 = vld [vmem:[%s22105_s8 + $0x244] ss:$8 sps:$4 sm:$0xff]   ;;  %v16475_v57 = vld [vmem:[%s22105_s8 + $0x254] ss:$8 sps:$4 sm:$0xff]   ;;  %v16473_v30 = vld [vmem:[%s22105_s8 + $0x250] ss:$8 sps:$4 sm:$0xff]  }
 0x6c7   : > { %v20481_v25 = vpack.c.bf16 %v8799_v48, %v8783_v38  ;;  %v8605_v33 = vpop.f32.mrb[140].mxu1  ;;  %v16478_v38 = vld [vmem:[%s22105_s8 + $0x264] ss:$8 sps:$4 sm:$0xff]   ;;  %v16476_v48 = vld [vmem:[%s22105_s8 + $0x260] ss:$8 sps:$4 sm:$0xff]  }
 0x6c8   : > { %v8754_v20 = vadd.f32 %v20248_v13, %v8605_v33  ;;  %v8607_v5 = vpop.f32.mrb[141].mxu1  ;;  %v16484_v33 = vld [vmem:[%s22105_s8 + $0x284] ss:$8 sps:$4 sm:$0xff]  }
 0x6c9   : > { %v8755_v41 = vadd.f32 %v20248_v13, %v8607_v5  ;;  %v8609_v0 = vpop.f32.mrb[142].mxu1  ;;  %10422 = vmatpush1.bf16.msra.mxu0 %v16437_v14  ;;  %v16481_v14 = vld [vmem:[%s22105_s8 + $0x274] ss:$8 sps:$4 sm:$0xff]  }
 0x6ca   : > { %v8770_v19 = vadd.f32 %v20268_v59, %v8609_v0  ;;  %v8611_v47 = vpop.f32.mrb[143].mxu1  ;;  %10423 = vmatprep.subr.bf16.mxu0 %v16442_v23  ;;  %v8786_v31 = vmax.f32 %v8754_v20, 0.0  ;;  %v16479_v23 = vld [vmem:[%s22105_s8 + $0x270] ss:$8 sps:$4 sm:$0xff]   ;;  %v16482_v20 = vld [vmem:[%s22105_s8 + $0x280] ss:$8 sps:$4 sm:$0xff]  }
 0x6cb   : > { %v8771_v49 = vadd.f32 %v20268_v59, %v8611_v47  ;;  %v8787_v53 = vmax.f32 %v8755_v41, 0.0  ;;  %v16487_v5 = vld [vmem:[%s22105_s8 + $0x294] ss:$8 sps:$4 sm:$0xff]   ;;  %v16485_v41 = vld [vmem:[%s22105_s8 + $0x290] ss:$8 sps:$4 sm:$0xff]  }
 0x6cc   : > { %v8802_v1 = vmax.f32 %v8770_v19, 0.0  ;;  %v16490_v0 = vld [vmem:[%s22105_s8 + $0x2a4] ss:$8 sps:$4 sm:$0xff]   ;;  %v16493_v19 = vld [vmem:[%s22105_s8 + $0x2b4] ss:$8 sps:$4 sm:$0xff]  }
 0x6cd   : > { %v8803_v28 = vmax.f32 %v8771_v49, 0.0  ;;  %10424 = vmatpush1.bf16.msra.mxu0 %v16440_v56  ;;  %v16488_v56 = vld [vmem:[%s22105_s8 + $0x2a0] ss:$8 sps:$4 sm:$0xff]   ;;  %v16491_v47 = vld [vmem:[%s22105_s8 + $0x2b0] ss:$8 sps:$4 sm:$0xff]  }
 0x6ce   : > { %v20496_v50 = vpack.c.bf16 %v8802_v1, %v8786_v31  ;;  %10425 = vmatprep.subr.bf16.mxu0 %v16445_v37  ;;  %v16496_v37 = vld [vmem:[%s22105_s8 + $0x2c4] ss:$8 sps:$4 sm:$0xff]   ;;  %v16494_v49 = vld [vmem:[%s22105_s8 + $0x2c0] ss:$8 sps:$4 sm:$0xff]   ;;  %v16499_v31 = vld [vmem:[%s22105_s8 + $0x2d4] ss:$8 sps:$4 sm:$0xff]  }
 0x6cf   : > { %v20501_v17 = vpack.c.bf16 %v8803_v28, %v8787_v53  ;;  %v8691_v16 = vpop.f32.mrb[144].mxu1  ;;  %v16497_v1 = vld [vmem:[%s22105_s8 + $0x2d0] ss:$8 sps:$4 sm:$0xff]   ;;  %v16502_v53 = vld [vmem:[%s22105_s8 + $0x2e4] ss:$8 sps:$4 sm:$0xff]  }
 0x6d0   : > { %v8758_v51 = vadd.f32 %v20248_v13, %v8691_v16  ;;  %v8693_v36 = vpop.f32.mrb[145].mxu1  ;;  %v16500_v28 = vld [vmem:[%s22105_s8 + $0x2e0] ss:$8 sps:$4 sm:$0xff]   ;;  %v16508_v16 = vld [vmem:[%s22105_s8 + $0x304] ss:$8 sps:$4 sm:$0xff]  }
 0x6d1   : > { %v8759_v21 = vadd.f32 %v20248_v13, %v8693_v36  ;;  %v8695_v9 = vpop.f32.mrb[146].mxu1  ;;  %10426 = vmatpush1.bf16.msra.mxu0 %v16443_v44  ;;  %v16505_v44 = vld [vmem:[%s22105_s8 + $0x2f4] ss:$8 sps:$4 sm:$0xff]  }
 0x6d2   : > { %v8774_v11 = vadd.f32 %v20268_v59, %v8695_v9  ;;  %v8697_v54 = vpop.f32.mrb[147].mxu1  ;;  %10427 = vmatprep.subr.bf16.mxu0 %v16448_v40  ;;  %v8790_v60 = vmax.f32 %v8758_v51, 0.0  ;;  %v16503_v40 = vld [vmem:[%s22105_s8 + $0x2f0] ss:$8 sps:$4 sm:$0xff]   ;;  %v16506_v51 = vld [vmem:[%s22105_s8 + $0x300] ss:$8 sps:$4 sm:$0xff]  }
 0x6d3   : > { %v8775_v46 = vadd.f32 %v20268_v59, %v8697_v54  ;;  %v8791_v26 = vmax.f32 %v8759_v21, 0.0  ;;  %v16452_v59 = vld [vmem:[%s22105_s8 + $0x1e0] ss:$8 sps:$4 sm:$0xff]   ;;  %v16511_v36 = vld [vmem:[%s22105_s8 + $0x314] ss:$8 sps:$4 sm:$0xff]  }
 0x6d4   : > { %v8806_v7 = vmax.f32 %v8774_v11, 0.0  ;;  %v16509_v21 = vld [vmem:[%s22105_s8 + $0x310] ss:$8 sps:$4 sm:$0xff]   ;;  %v16514_v9 = vld [vmem:[%s22105_s8 + $0x324] ss:$8 sps:$4 sm:$0xff]  }
 0x6d5   : > { %v8807_v13 = vmax.f32 %v8775_v46, 0.0  ;;  %10428 = vmatpush1.bf16.msra.mxu0 %v16446_v3  ;;  %v16512_v3 = vld [vmem:[%s22105_s8 + $0x320] ss:$8 sps:$4 sm:$0xff]   ;;  %v16520_v11 = vld [vmem:[%s22105_s8 + $0x344] ss:$8 sps:$4 sm:$0xff]  }
 0x6d6   : > { %v20516_v35 = vpack.c.bf16 %v8806_v7, %v8790_v60  ;;  %10429 = vmatprep.subr.bf16.mxu0 %v16451_v39  ;;  %v16518_v54 = vld [vmem:[%s22105_s8 + $0x340] ss:$8 sps:$4 sm:$0xff]   ;;  %v16523_v39 = vld [vmem:[%s22105_s8 + $0x354] ss:$8 sps:$4 sm:$0xff]   ;;  %v16521_v46 = vld [vmem:[%s22105_s8 + $0x350] ss:$8 sps:$4 sm:$0xff]  }
 0x6d7   : > { %v20521_v45 = vpack.c.bf16 %v8807_v13, %v8791_v26  ;;  %v16526_v60 = vld [vmem:[%s22105_s8 + $0x364] ss:$8 sps:$4 sm:$0xff]   ;;  %v16524_v7 = vld [vmem:[%s22105_s8 + $0x360] ss:$8 sps:$4 sm:$0xff]   ;;  %v16529_v26 = vld [vmem:[%s22105_s8 + $0x374] ss:$8 sps:$4 sm:$0xff]  }
 0x6d8   : > { %v16527_v13 = vld [vmem:[%s22105_s8 + $0x370] ss:$8 sps:$4 sm:$0xff]  }
 0x6d9   : > { %10430 = vmatpush1.bf16.msra.mxu0 %v16449_v15  ;;  %v16532_v15 = vld [vmem:[%s22105_s8 + $0x384] ss:$8 sps:$4 sm:$0xff]  }
 0x6da   : > { %10431 = vmatprep.subr.bf16.mxu0 %v16454_v22  ;;  %v16530_v22 = vld [vmem:[%s22105_s8 + $0x380] ss:$8 sps:$4 sm:$0xff]  }
 0x6dd   : > { %10432 = vmatpush1.bf16.msra.mxu0 %v16452_v59  ;;  %v16535_v59 = vld [vmem:[%s22105_s8 + $0x394] ss:$8 sps:$4 sm:$0xff]  }
 0x6de   : > { %10433 = vmatprep.subr.bf16.mxu0 %v16457_v10  ;;  %v16533_v10 = vld [vmem:[%s22105_s8 + $0x390] ss:$8 sps:$4 sm:$0xff]  }
 0x6e1   : > { %10434 = vmatpush1.bf16.msra.mxu0 %v16455_v58  ;;  %v16538_v58 = vld [vmem:[%s22105_s8 + $0x3a4] ss:$8 sps:$4 sm:$0xff]  }
 0x6e2   : > { %10446 = vmatprep.subr.bf16.mxu0 %v16460_v4  ;;  %v16536_v4 = vld [vmem:[%s22105_s8 + $0x3a0] ss:$8 sps:$4 sm:$0xff]  }
 0x6e4   : > { %10436 = vmatmul.mubr.bf16.vlgmr.msra.gmra.mrb[128].mxu0 %v20458_v8  ;;  %v16469_v8 = vld [vmem:[%s22105_s8 + $0x234] ss:$8 sps:$4 sm:$0xff]  }
 0x6e5   : > { %10447 = vmatpush1.bf16.msra.mxu0 %v16458_v27  ;;  %10478 = vmatprep.mubr.bf16.mxu0 %v20406_v24  ;;  %v16467_v24 = vld [vmem:[%s22105_s8 + $0x230] ss:$8 sps:$4 sm:$0xff]   ;;  %v16541_v27 = vld [vmem:[%s22105_s8 + $0x3b4] ss:$8 sps:$4 sm:$0xff]  }
 0x6e6   : > { %10448 = vmatprep.subr.bf16.mxu0 %v16463_v18  ;;  %v16539_v18 = vld [vmem:[%s22105_s8 + $0x3b0] ss:$8 sps:$4 sm:$0xff]  }
 0x6e9   : > { %10449 = vmatpush1.bf16.msra.mxu0 %v16461_v12  ;;  %v16544_v12 = vld [vmem:[%s22105_s8 + $0x3c4] ss:$8 sps:$4 sm:$0xff]  }
 0x6ea   : > { %10450 = vmatprep.subr.bf16.mxu0 %v16466_v52  ;;  %v16542_v52 = vld [vmem:[%s22105_s8 + $0x3c0] ss:$8 sps:$4 sm:$0xff]  }
 0x6ed   : > { %10451 = vmatpush1.bf16.msra.mxu0 %v16464_v2  ;;  %v16547_v2 = vld [vmem:[%s22105_s8 + $0x3d4] ss:$8 sps:$4 sm:$0xff]  }
 0x6ee   : > { %10452 = vmatprep.subr.bf16.mxu0 %v16469_v8  ;;  %v16545_v8 = vld [vmem:[%s22105_s8 + $0x3d0] ss:$8 sps:$4 sm:$0xff]  }
 0x6f1   : > { %10453 = vmatpush1.bf16.msra.mxu0 %v16467_v24  ;;  %v16550_v24 = vld [vmem:[%s22105_s8 + $0x3e4] ss:$8 sps:$4 sm:$0xff]  }
 0x6f2   : > { %10454 = vmatprep.subr.bf16.mxu0 %v16472_v43  ;;  %v16548_v43 = vld [vmem:[%s22105_s8 + $0x3e0] ss:$8 sps:$4 sm:$0xff]  }
 0x6f5   : > { %10455 = vmatpush1.bf16.msra.mxu0 %v16470_v32  ;;  %v16553_v32 = vld [vmem:[%s22105_s8 + $0x3f4] ss:$8 sps:$4 sm:$0xff]  }
 0x6f6   : > { %10456 = vmatprep.subr.bf16.mxu0 %v16475_v57  ;;  %v16551_v57 = vld [vmem:[%s22105_s8 + $0x3f0] ss:$8 sps:$4 sm:$0xff]  }
 0x6f9   : > { %10457 = vmatpush1.bf16.msra.mxu0 %v16473_v30  ;;  %v16556_v30 = vld [vmem:[%s22105_s8 + $0x404] ss:$8 sps:$4 sm:$0xff]  }
 0x6fa   : > { %10458 = vmatprep.subr.bf16.mxu0 %v16478_v38  ;;  %v16554_v38 = vld [vmem:[%s22105_s8 + $0x400] ss:$8 sps:$4 sm:$0xff]  }
 0x6fd   : > { %10459 = vmatpush1.bf16.msra.mxu0 %v16476_v48  ;;  %v16559_v48 = vld [vmem:[%s22105_s8 + $0x414] ss:$8 sps:$4 sm:$0xff]  }
 0x6fe   : > { %10460 = vmatprep.subr.bf16.mxu0 %v16481_v14  ;;  %v16557_v14 = vld [vmem:[%s22105_s8 + $0x410] ss:$8 sps:$4 sm:$0xff]  }
 0x701   : > { %10461 = vmatpush1.bf16.msra.mxu0 %v16479_v23  ;;  %v16562_v23 = vld [vmem:[%s22105_s8 + $0x424] ss:$8 sps:$4 sm:$0xff]  }
 0x702   : > { %10462 = vmatprep.subr.bf16.mxu0 %v16484_v33  ;;  %v16560_v33 = vld [vmem:[%s22105_s8 + $0x420] ss:$8 sps:$4 sm:$0xff]  }
 0x705   : > { %10463 = vmatpush1.bf16.msra.mxu0 %v16482_v20  ;;  %v16568_v20 = vld [vmem:[%s22105_s8 + $0x444] ss:$8 sps:$4 sm:$0xff]  }
 0x706   : > { %10464 = vmatprep.subr.bf16.mxu0 %v16487_v5  ;;  %v16566_v5 = vld [vmem:[%s22105_s8 + $0x440] ss:$8 sps:$4 sm:$0xff]  }
 0x709   : > { %10465 = vmatpush1.bf16.msra.mxu0 %v16485_v41  ;;  %v16571_v41 = vld [vmem:[%s22105_s8 + $0x454] ss:$8 sps:$4 sm:$0xff]  }
 0x70a   : > { %10466 = vmatprep.subr.bf16.mxu0 %v16490_v0  ;;  %v16569_v0 = vld [vmem:[%s22105_s8 + $0x450] ss:$8 sps:$4 sm:$0xff]  }
 0x70d   : > { %10467 = vmatpush1.bf16.msra.mxu0 %v16488_v56  ;;  %v16574_v56 = vld [vmem:[%s22105_s8 + $0x464] ss:$8 sps:$4 sm:$0xff]  }
 0x70e   : > { %10468 = vmatprep.subr.bf16.mxu0 %v16493_v19  ;;  %v16572_v19 = vld [vmem:[%s22105_s8 + $0x460] ss:$8 sps:$4 sm:$0xff]  }
 0x711   : > { %10469 = vmatpush1.bf16.msra.mxu0 %v16491_v47  ;;  %v16577_v47 = vld [vmem:[%s22105_s8 + $0x474] ss:$8 sps:$4 sm:$0xff]  }
 0x712   : > { %10470 = vmatprep.subr.bf16.mxu0 %v16496_v37  ;;  %v16575_v37 = vld [vmem:[%s22105_s8 + $0x470] ss:$8 sps:$4 sm:$0xff]  }
 0x715   : > { %10471 = vmatpush1.bf16.msra.mxu0 %v16494_v49  ;;  %v16580_v49 = vld [vmem:[%s22105_s8 + $0x484] ss:$8 sps:$4 sm:$0xff]  }
 0x716   : > { %10472 = vmatprep.subr.bf16.mxu0 %v16499_v31  ;;  %v16578_v31 = vld [vmem:[%s22105_s8 + $0x480] ss:$8 sps:$4 sm:$0xff]  }
 0x719   : > { %10473 = vmatpush1.bf16.msra.mxu0 %v16497_v1  ;;  %v16583_v1 = vld [vmem:[%s22105_s8 + $0x494] ss:$8 sps:$4 sm:$0xff]  }
 0x71a   : > { %10474 = vmatprep.subr.bf16.mxu0 %v16502_v53  ;;  %v16581_v53 = vld [vmem:[%s22105_s8 + $0x490] ss:$8 sps:$4 sm:$0xff]  }
 0x71d   : > { %10475 = vmatpush1.bf16.msra.mxu0 %v16500_v28  ;;  %v16586_v28 = vld [vmem:[%s22105_s8 + $0x4a4] ss:$8 sps:$4 sm:$0xff]  }
 0x71e   : > { %10476 = vmatprep.subr.bf16.mxu0 %v16505_v44  ;;  %v16584_v44 = vld [vmem:[%s22105_s8 + $0x4a0] ss:$8 sps:$4 sm:$0xff]  }
 0x721   : > { %10477 = vmatpush1.bf16.msra.mxu0 %v16503_v40  ;;  %v16589_v40 = vld [vmem:[%s22105_s8 + $0x4b4] ss:$8 sps:$4 sm:$0xff]  }
 0x722   : > { %10489 = vmatprep.subr.bf16.mxu0 %v16508_v16  ;;  %v16587_v16 = vld [vmem:[%s22105_s8 + $0x4b0] ss:$8 sps:$4 sm:$0xff]  }
 0x724   : > { %10479 = vmatmul.mubr.bf16.vlgmr.msra.gmra.mrb[128].mxu0 %v20401_v63  ;;  %v16517_v63 = vld [vmem:[%s22105_s8 + $0x334] ss:$8 sps:$4 sm:$0xff]  }
 0x725   : > { %10490 = vmatpush1.bf16.msra.mxu0 %v16506_v51  ;;  %10521 = vmatprep.mubr.bf16.mxu0 %v20481_v25  ;;  %v16515_v25 = vld [vmem:[%s22105_s8 + $0x330] ss:$8 sps:$4 sm:$0xff]   ;;  %v16592_v51 = vld [vmem:[%s22105_s8 + $0x4c4] ss:$8 sps:$4 sm:$0xff]  }
 0x726   : > { %10491 = vmatprep.subr.bf16.mxu0 %v16511_v36  ;;  %v16590_v36 = vld [vmem:[%s22105_s8 + $0x4c0] ss:$8 sps:$4 sm:$0xff]  }
 0x729   : > { %10492 = vmatpush1.bf16.msra.mxu0 %v16509_v21  ;;  %v16595_v21 = vld [vmem:[%s22105_s8 + $0x4d4] ss:$8 sps:$4 sm:$0xff]  }
 0x72a   : > { %10493 = vmatprep.subr.bf16.mxu0 %v16514_v9  ;;  %v16593_v9 = vld [vmem:[%s22105_s8 + $0x4d0] ss:$8 sps:$4 sm:$0xff]  }
 0x72d   : > { %10494 = vmatpush1.bf16.msra.mxu0 %v16512_v3  ;;  %v16598_v3 = vld [vmem:[%s22105_s8 + $0x4e4] ss:$8 sps:$4 sm:$0xff]  }
 0x72e   : > { %10495 = vmatprep.subr.bf16.mxu0 %v16517_v63  ;;  %v16596_v63 = vld [vmem:[%s22105_s8 + $0x4e0] ss:$8 sps:$4 sm:$0xff]  }
 0x731   : > { %10496 = vmatpush1.bf16.msra.mxu0 %v16515_v25  ;;  %v16601_v25 = vld [vmem:[%s22105_s8 + $0x4f4] ss:$8 sps:$4 sm:$0xff]  }
 0x732   : > { %10497 = vmatprep.subr.bf16.mxu0 %v16520_v11  ;;  %v16599_v11 = vld [vmem:[%s22105_s8 + $0x4f0] ss:$8 sps:$4 sm:$0xff]  }
 0x735   : > { %10498 = vmatpush1.bf16.msra.mxu0 %v16518_v54  ;;  %v16604_v54 = vld [vmem:[%s22105_s8 + $0x504] ss:$8 sps:$4 sm:$0xff]  }
 0x736   : > { %10499 = vmatprep.subr.bf16.mxu0 %v16523_v39  ;;  %v16602_v39 = vld [vmem:[%s22105_s8 + $0x500] ss:$8 sps:$4 sm:$0xff]  }
 0x739   : > { %10500 = vmatpush1.bf16.msra.mxu0 %v16521_v46  ;;  %v16607_v46 = vld [vmem:[%s22105_s8 + $0x514] ss:$8 sps:$4 sm:$0xff]  }
 0x73a   : > { %10501 = vmatprep.subr.bf16.mxu0 %v16526_v60  ;;  %v16605_v60 = vld [vmem:[%s22105_s8 + $0x510] ss:$8 sps:$4 sm:$0xff]  }
 0x73d   : > { %10502 = vmatpush1.bf16.msra.mxu0 %v16524_v7  ;;  %v16610_v7 = vld [vmem:[%s22105_s8 + $0x524] ss:$8 sps:$4 sm:$0xff]  }
 0x73e   : > { %10503 = vmatprep.subr.bf16.mxu0 %v16529_v26  ;;  %v16608_v26 = vld [vmem:[%s22105_s8 + $0x520] ss:$8 sps:$4 sm:$0xff]  }
 0x741   : > { %10504 = vmatpush1.bf16.msra.mxu0 %v16527_v13  ;;  %v16616_v13 = vld [vmem:[%s22105_s8 + $0x544] ss:$8 sps:$4 sm:$0xff]  }
 0x742   : > { %10505 = vmatprep.subr.bf16.mxu0 %v16532_v15  ;;  %v16614_v15 = vld [vmem:[%s22105_s8 + $0x540] ss:$8 sps:$4 sm:$0xff]  }
 0x745   : > { %10506 = vmatpush1.bf16.msra.mxu0 %v16530_v22  ;;  %v16619_v22 = vld [vmem:[%s22105_s8 + $0x554] ss:$8 sps:$4 sm:$0xff]  }
 0x746   : > { %10507 = vmatprep.subr.bf16.mxu0 %v16535_v59  ;;  %v16617_v59 = vld [vmem:[%s22105_s8 + $0x550] ss:$8 sps:$4 sm:$0xff]  }
 0x749   : > { %10508 = vmatpush1.bf16.msra.mxu0 %v16533_v10  ;;  %v16622_v10 = vld [vmem:[%s22105_s8 + $0x564] ss:$8 sps:$4 sm:$0xff]  }
 0x74a   : > { %10509 = vmatprep.subr.bf16.mxu0 %v16538_v58  ;;  %v16620_v58 = vld [vmem:[%s22105_s8 + $0x560] ss:$8 sps:$4 sm:$0xff]  }
 0x74d   : > { %10510 = vmatpush1.bf16.msra.mxu0 %v16536_v4  ;;  %v16625_v4 = vld [vmem:[%s22105_s8 + $0x574] ss:$8 sps:$4 sm:$0xff]  }
 0x74e   : > { %10511 = vmatprep.subr.bf16.mxu0 %v16541_v27  ;;  %v16623_v27 = vld [vmem:[%s22105_s8 + $0x570] ss:$8 sps:$4 sm:$0xff]  }
 0x751   : > { %10512 = vmatpush1.bf16.msra.mxu0 %v16539_v18  ;;  %v16628_v18 = vld [vmem:[%s22105_s8 + $0x584] ss:$8 sps:$4 sm:$0xff]  }
 0x752   : > { %10513 = vmatprep.subr.bf16.mxu0 %v16544_v12  ;;  %v16626_v12 = vld [vmem:[%s22105_s8 + $0x580] ss:$8 sps:$4 sm:$0xff]  }
 0x755   : > { %10514 = vmatpush1.bf16.msra.mxu0 %v16542_v52  ;;  %v16631_v52 = vld [vmem:[%s22105_s8 + $0x594] ss:$8 sps:$4 sm:$0xff]  }
 0x756   : > { %10515 = vmatprep.subr.bf16.mxu0 %v16547_v2  ;;  %v16629_v2 = vld [vmem:[%s22105_s8 + $0x590] ss:$8 sps:$4 sm:$0xff]  }
 0x759   : > { %10516 = vmatpush1.bf16.msra.mxu0 %v16545_v8  ;;  %v16634_v8 = vld [vmem:[%s22105_s8 + $0x5a4] ss:$8 sps:$4 sm:$0xff]  }
 0x75a   : > { %10517 = vmatprep.subr.bf16.mxu0 %v16550_v24  ;;  %v16632_v24 = vld [vmem:[%s22105_s8 + $0x5a0] ss:$8 sps:$4 sm:$0xff]  }
 0x75d   : > { %10518 = vmatpush1.bf16.msra.mxu0 %v16548_v43  ;;  %v16637_v43 = vld [vmem:[%s22105_s8 + $0x5b4] ss:$8 sps:$4 sm:$0xff]  }
 0x75e   : > { %10519 = vmatprep.subr.bf16.mxu0 %v16553_v32  ;;  %v16635_v32 = vld [vmem:[%s22105_s8 + $0x5b0] ss:$8 sps:$4 sm:$0xff]  }
 0x761   : > { %10520 = vmatpush1.bf16.msra.mxu0 %v16551_v57  ;;  %v16640_v57 = vld [vmem:[%s22105_s8 + $0x5c4] ss:$8 sps:$4 sm:$0xff]  }
 0x762   : > { %10532 = vmatprep.subr.bf16.mxu0 %v16556_v30  ;;  %v16638_v30 = vld [vmem:[%s22105_s8 + $0x5c0] ss:$8 sps:$4 sm:$0xff]  }
 0x764   : > { %10522 = vmatmul.mubr.bf16.vlgmr.msra.gmra.mrb[128].mxu0 %v20476_v29  ;;  %v16565_v29 = vld [vmem:[%s22105_s8 + $0x434] ss:$8 sps:$4 sm:$0xff]  }
 0x765   : > { %10533 = vmatpush1.bf16.msra.mxu0 %v16554_v38  ;;  %10564 = vmatprep.mubr.bf16.mxu0 %v20426_v6  ;;  %v16563_v6 = vld [vmem:[%s22105_s8 + $0x430] ss:$8 sps:$4 sm:$0xff]   ;;  %v16643_v38 = vld [vmem:[%s22105_s8 + $0x5d4] ss:$8 sps:$4 sm:$0xff]  }
 0x766   : > { %10534 = vmatprep.subr.bf16.mxu0 %v16559_v48  ;;  %v16641_v48 = vld [vmem:[%s22105_s8 + $0x5d0] ss:$8 sps:$4 sm:$0xff]  }
 0x769   : > { %10535 = vmatpush1.bf16.msra.mxu0 %v16557_v14  ;;  %v16646_v14 = vld [vmem:[%s22105_s8 + $0x5e4] ss:$8 sps:$4 sm:$0xff]  }
 0x76a   : > { %10536 = vmatprep.subr.bf16.mxu0 %v16562_v23  ;;  %v16644_v23 = vld [vmem:[%s22105_s8 + $0x5e0] ss:$8 sps:$4 sm:$0xff]  }
 0x76d   : > { %10537 = vmatpush1.bf16.msra.mxu0 %v16560_v33  ;;  %v16649_v33 = vld [vmem:[%s22105_s8 + $0x5f4] ss:$8 sps:$4 sm:$0xff]  }
 0x76e   : > { %10538 = vmatprep.subr.bf16.mxu0 %v16565_v29  ;;  %v16647_v29 = vld [vmem:[%s22105_s8 + $0x5f0] ss:$8 sps:$4 sm:$0xff]  }
 0x771   : > { %10539 = vmatpush1.bf16.msra.mxu0 %v16563_v6  ;;  %v16652_v6 = vld [vmem:[%s22105_s8 + $0x604] ss:$8 sps:$4 sm:$0xff]  }
 0x772   : > { %10540 = vmatprep.subr.bf16.mxu0 %v16568_v20  ;;  %v16650_v20 = vld [vmem:[%s22105_s8 + $0x600] ss:$8 sps:$4 sm:$0xff]  }
 0x775   : > { %10541 = vmatpush1.bf16.msra.mxu0 %v16566_v5  ;;  %v16655_v5 = vld [vmem:[%s22105_s8 + $0x614] ss:$8 sps:$4 sm:$0xff]  }
 0x776   : > { %10542 = vmatprep.subr.bf16.mxu0 %v16571_v41  ;;  %v16653_v41 = vld [vmem:[%s22105_s8 + $0x610] ss:$8 sps:$4 sm:$0xff]  }
 0x779   : > { %10543 = vmatpush1.bf16.msra.mxu0 %v16569_v0  ;;  %v16658_v0 = vld [vmem:[%s22105_s8 + $0x624] ss:$8 sps:$4 sm:$0xff]  }
 0x77a   : > { %10544 = vmatprep.subr.bf16.mxu0 %v16574_v56  ;;  %v16656_v56 = vld [vmem:[%s22105_s8 + $0x620] ss:$8 sps:$4 sm:$0xff]  }
 0x77d   : > { %10545 = vmatpush1.bf16.msra.mxu0 %v16572_v19  ;;  %v16664_v19 = vld [vmem:[%s22105_s8 + $0x644] ss:$8 sps:$4 sm:$0xff]  }
 0x77e   : > { %10546 = vmatprep.subr.bf16.mxu0 %v16577_v47  ;;  %v16662_v47 = vld [vmem:[%s22105_s8 + $0x640] ss:$8 sps:$4 sm:$0xff]  }
 0x781   : > { %10547 = vmatpush1.bf16.msra.mxu0 %v16575_v37  ;;  %v16667_v37 = vld [vmem:[%s22105_s8 + $0x654] ss:$8 sps:$4 sm:$0xff]  }
 0x782   : > { %10548 = vmatprep.subr.bf16.mxu0 %v16580_v49  ;;  %v16665_v49 = vld [vmem:[%s22105_s8 + $0x650] ss:$8 sps:$4 sm:$0xff]  }
 0x785   : > { %10549 = vmatpush1.bf16.msra.mxu0 %v16578_v31  ;;  %v16670_v31 = vld [vmem:[%s22105_s8 + $0x664] ss:$8 sps:$4 sm:$0xff]  }
 0x786   : > { %10550 = vmatprep.subr.bf16.mxu0 %v16583_v1  ;;  %v16668_v1 = vld [vmem:[%s22105_s8 + $0x660] ss:$8 sps:$4 sm:$0xff]  }
 0x789   : > { %10551 = vmatpush1.bf16.msra.mxu0 %v16581_v53  ;;  %v16673_v53 = vld [vmem:[%s22105_s8 + $0x674] ss:$8 sps:$4 sm:$0xff]  }
 0x78a   : > { %10552 = vmatprep.subr.bf16.mxu0 %v16586_v28  ;;  %v16671_v28 = vld [vmem:[%s22105_s8 + $0x670] ss:$8 sps:$4 sm:$0xff]  }
 0x78d   : > { %10553 = vmatpush1.bf16.msra.mxu0 %v16584_v44  ;;  %v16676_v44 = vld [vmem:[%s22105_s8 + $0x684] ss:$8 sps:$4 sm:$0xff]  }
 0x78e   : > { %10554 = vmatprep.subr.bf16.mxu0 %v16589_v40  ;;  %v16674_v40 = vld [vmem:[%s22105_s8 + $0x680] ss:$8 sps:$4 sm:$0xff]  }
 0x791   : > { %10555 = vmatpush1.bf16.msra.mxu0 %v16587_v16  ;;  %v16679_v16 = vld [vmem:[%s22105_s8 + $0x694] ss:$8 sps:$4 sm:$0xff]  }
 0x792   : > { %10556 = vmatprep.subr.bf16.mxu0 %v16592_v51  ;;  %v16677_v51 = vld [vmem:[%s22105_s8 + $0x690] ss:$8 sps:$4 sm:$0xff]  }
 0x795   : > { %10557 = vmatpush1.bf16.msra.mxu0 %v16590_v36  ;;  %v16682_v36 = vld [vmem:[%s22105_s8 + $0x6a4] ss:$8 sps:$4 sm:$0xff]  }
 0x796   : > { %10558 = vmatprep.subr.bf16.mxu0 %v16595_v21  ;;  %v16680_v21 = vld [vmem:[%s22105_s8 + $0x6a0] ss:$8 sps:$4 sm:$0xff]  }
 0x799   : > { %10559 = vmatpush1.bf16.msra.mxu0 %v16593_v9  ;;  %v16685_v9 = vld [vmem:[%s22105_s8 + $0x6b4] ss:$8 sps:$4 sm:$0xff]  }
 0x79a   : > { %10560 = vmatprep.subr.bf16.mxu0 %v16598_v3  ;;  %v16683_v3 = vld [vmem:[%s22105_s8 + $0x6b0] ss:$8 sps:$4 sm:$0xff]  }
 0x79d   : > { %10561 = vmatpush1.bf16.msra.mxu0 %v16596_v63  ;;  %v16688_v63 = vld [vmem:[%s22105_s8 + $0x6c4] ss:$8 sps:$4 sm:$0xff]  }
 0x79e   : > { %10562 = vmatprep.subr.bf16.mxu0 %v16601_v25  ;;  %v16686_v25 = vld [vmem:[%s22105_s8 + $0x6c0] ss:$8 sps:$4 sm:$0xff]  }
 0x7a1   : > { %10563 = vmatpush1.bf16.msra.mxu0 %v16599_v11  ;;  %v16691_v11 = vld [vmem:[%s22105_s8 + $0x6d4] ss:$8 sps:$4 sm:$0xff]  }
 0x7a2   : > { %10575 = vmatprep.subr.bf16.mxu0 %v16604_v54  ;;  %v16689_v54 = vld [vmem:[%s22105_s8 + $0x6d0] ss:$8 sps:$4 sm:$0xff]  }
 0x7a4   : > { %10565 = vmatmul.mubr.bf16.vlgmr.msra.gmra.mrb[128].mxu0 %v20421_v42  ;;  %v16613_v42 = vld [vmem:[%s22105_s8 + $0x534] ss:$8 sps:$4 sm:$0xff]  }
 0x7a5   : > { %10576 = vmatpush1.bf16.msra.mxu0 %v16602_v39  ;;  %10607 = vmatprep.mubr.bf16.mxu0 %v20501_v17  ;;  %v16611_v17 = vld [vmem:[%s22105_s8 + $0x530] ss:$8 sps:$4 sm:$0xff]   ;;  %v16694_v39 = vld [vmem:[%s22105_s8 + $0x6e4] ss:$8 sps:$4 sm:$0xff]  }
 0x7a6   : > { %10577 = vmatprep.subr.bf16.mxu0 %v16607_v46  ;;  %v16692_v46 = vld [vmem:[%s22105_s8 + $0x6e0] ss:$8 sps:$4 sm:$0xff]  }
 0x7a9   : > { %10578 = vmatpush1.bf16.msra.mxu0 %v16605_v60  ;;  %v16697_v60 = vld [vmem:[%s22105_s8 + $0x6f4] ss:$8 sps:$4 sm:$0xff]  }
 0x7aa   : > { %10579 = vmatprep.subr.bf16.mxu0 %v16610_v7  ;;  %v16695_v7 = vld [vmem:[%s22105_s8 + $0x6f0] ss:$8 sps:$4 sm:$0xff]  }
 0x7ad   : > { %10580 = vmatpush1.bf16.msra.mxu0 %v16608_v26  ;;  %v16700_v26 = vld [vmem:[%s22105_s8 + $0x704] ss:$8 sps:$4 sm:$0xff]  }
 0x7ae   : > { %10581 = vmatprep.subr.bf16.mxu0 %v16613_v42  ;;  %v16698_v42 = vld [vmem:[%s22105_s8 + $0x700] ss:$8 sps:$4 sm:$0xff]  }
 0x7b1   : > { %10582 = vmatpush1.bf16.msra.mxu0 %v16611_v17  ;;  %v16703_v17 = vld [vmem:[%s22105_s8 + $0x714] ss:$8 sps:$4 sm:$0xff]  }
 0x7b2   : > { %10583 = vmatprep.subr.bf16.mxu0 %v16616_v13  ;;  %v16701_v13 = vld [vmem:[%s22105_s8 + $0x710] ss:$8 sps:$4 sm:$0xff]  }
 0x7b5   : > { %10584 = vmatpush1.bf16.msra.mxu0 %v16614_v15  ;;  %v16706_v15 = vld [vmem:[%s22105_s8 + $0x724] ss:$8 sps:$4 sm:$0xff]  }
 0x7b6   : > { %10585 = vmatprep.subr.bf16.mxu0 %v16619_v22  ;;  %v16704_v22 = vld [vmem:[%s22105_s8 + $0x720] ss:$8 sps:$4 sm:$0xff]  }
 0x7b9   : > { %10586 = vmatpush1.bf16.msra.mxu0 %v16617_v59  ;;  %v16712_v59 = vld [vmem:[%s22105_s8 + $0x744] ss:$8 sps:$4 sm:$0xff]  }
 0x7ba   : > { %10587 = vmatprep.subr.bf16.mxu0 %v16622_v10  ;;  %v16710_v10 = vld [vmem:[%s22105_s8 + $0x740] ss:$8 sps:$4 sm:$0xff]  }
 0x7bd   : > { %10588 = vmatpush1.bf16.msra.mxu0 %v16620_v58  ;;  %v16715_v58 = vld [vmem:[%s22105_s8 + $0x754] ss:$8 sps:$4 sm:$0xff]  }
 0x7be   : > { %10589 = vmatprep.subr.bf16.mxu0 %v16625_v4  ;;  %v16713_v4 = vld [vmem:[%s22105_s8 + $0x750] ss:$8 sps:$4 sm:$0xff]  }
 0x7c1   : > { %10590 = vmatpush1.bf16.msra.mxu0 %v16623_v27  ;;  %v16718_v27 = vld [vmem:[%s22105_s8 + $0x764] ss:$8 sps:$4 sm:$0xff]  }
 0x7c2   : > { %10591 = vmatprep.subr.bf16.mxu0 %v16628_v18  ;;  %v16716_v18 = vld [vmem:[%s22105_s8 + $0x760] ss:$8 sps:$4 sm:$0xff]  }
 0x7c5   : > { %10592 = vmatpush1.bf16.msra.mxu0 %v16626_v12  ;;  %v16721_v12 = vld [vmem:[%s22105_s8 + $0x774] ss:$8 sps:$4 sm:$0xff]  }
 0x7c6   : > { %10593 = vmatprep.subr.bf16.mxu0 %v16631_v52  ;;  %v16719_v52 = vld [vmem:[%s22105_s8 + $0x770] ss:$8 sps:$4 sm:$0xff]  }
 0x7c9   : > { %10594 = vmatpush1.bf16.msra.mxu0 %v16629_v2  ;;  %v16724_v2 = vld [vmem:[%s22105_s8 + $0x784] ss:$8 sps:$4 sm:$0xff]  }
 0x7ca   : > { %10595 = vmatprep.subr.bf16.mxu0 %v16634_v8  ;;  %v16722_v8 = vld [vmem:[%s22105_s8 + $0x780] ss:$8 sps:$4 sm:$0xff]  }
 0x7cd   : > { %10596 = vmatpush1.bf16.msra.mxu0 %v16632_v24  ;;  %v16727_v24 = vld [vmem:[%s22105_s8 + $0x794] ss:$8 sps:$4 sm:$0xff]  }
 0x7ce   : > { %10597 = vmatprep.subr.bf16.mxu0 %v16637_v43  ;;  %v16725_v43 = vld [vmem:[%s22105_s8 + $0x790] ss:$8 sps:$4 sm:$0xff]  }
 0x7d1   : > { %10598 = vmatpush1.bf16.msra.mxu0 %v16635_v32  ;;  %v16730_v32 = vld [vmem:[%s22105_s8 + $0x7a4] ss:$8 sps:$4 sm:$0xff]  }
 0x7d2   : > { %10599 = vmatprep.subr.bf16.mxu0 %v16640_v57  ;;  %v16728_v57 = vld [vmem:[%s22105_s8 + $0x7a0] ss:$8 sps:$4 sm:$0xff]  }
 0x7d5   : > { %10600 = vmatpush1.bf16.msra.mxu0 %v16638_v30  ;;  %v16733_v30 = vld [vmem:[%s22105_s8 + $0x7b4] ss:$8 sps:$4 sm:$0xff]  }
 0x7d6   : > { %10601 = vmatprep.subr.bf16.mxu0 %v16643_v38  ;;  %v16731_v38 = vld [vmem:[%s22105_s8 + $0x7b0] ss:$8 sps:$4 sm:$0xff]  }
 0x7d9   : > { %10602 = vmatpush1.bf16.msra.mxu0 %v16641_v48  ;;  %v16736_v48 = vld [vmem:[%s22105_s8 + $0x7c4] ss:$8 sps:$4 sm:$0xff]  }
 0x7da   : > { %10603 = vmatprep.subr.bf16.mxu0 %v16646_v14  ;;  %v16734_v14 = vld [vmem:[%s22105_s8 + $0x7c0] ss:$8 sps:$4 sm:$0xff]  }
 0x7dd   : > { %10604 = vmatpush1.bf16.msra.mxu0 %v16644_v23  ;;  %v16739_v23 = vld [vmem:[%s22105_s8 + $0x7d4] ss:$8 sps:$4 sm:$0xff]  }
 0x7de   : > { %10605 = vmatprep.subr.bf16.mxu0 %v16649_v33  ;;  %v16737_v33 = vld [vmem:[%s22105_s8 + $0x7d0] ss:$8 sps:$4 sm:$0xff]  }
 0x7e1   : > { %10606 = vmatpush1.bf16.msra.mxu0 %v16647_v29  ;;  %v16742_v29 = vld [vmem:[%s22105_s8 + $0x7e4] ss:$8 sps:$4 sm:$0xff]  }
 0x7e2   : > { %10618 = vmatprep.subr.bf16.mxu0 %v16652_v6  ;;  %v16740_v6 = vld [vmem:[%s22105_s8 + $0x7e0] ss:$8 sps:$4 sm:$0xff]  }
 0x7e4   : > { %10608 = vmatmul.mubr.bf16.vlgmr.msra.gmra.mrb[128].mxu0 %v20496_v50  ;;  %v16661_v50 = vld [vmem:[%s22105_s8 + $0x634] ss:$8 sps:$4 sm:$0xff]  }
 0x7e5   : > { %10619 = vmatpush1.bf16.msra.mxu0 %v16650_v20  ;;  %10650 = vmatprep.mubr.bf16.mxu0 %v20448_v34  ;;  %v16659_v34 = vld [vmem:[%s22105_s8 + $0x630] ss:$8 sps:$4 sm:$0xff]   ;;  %v16745_v20 = vld [vmem:[%s22105_s8 + $0x7f4] ss:$8 sps:$4 sm:$0xff]  }
 0x7e6   : > { %10620 = vmatprep.subr.bf16.mxu0 %v16655_v5  ;;  %v16743_v5 = vld [vmem:[%s22105_s8 + $0x7f0] ss:$8 sps:$4 sm:$0xff]  }
 0x7e9   : > { %10621 = vmatpush1.bf16.msra.mxu0 %v16653_v41 }
 0x7ea   : > { %10622 = vmatprep.subr.bf16.mxu0 %v16658_v0 }
 0x7ed   : > { %10623 = vmatpush1.bf16.msra.mxu0 %v16656_v56 }
 0x7ee   : > { %10624 = vmatprep.subr.bf16.mxu0 %v16661_v50 }
 0x7f1   : > { %10625 = vmatpush1.bf16.msra.mxu0 %v16659_v34 }
 0x7f2   : > { %10626 = vmatprep.subr.bf16.mxu0 %v16664_v19 }
 0x7f5   : > { %10627 = vmatpush1.bf16.msra.mxu0 %v16662_v47  ;;  %v16746_v47 = vld [vmem:[%s22106_s9 + $0x10] sm:$0xff]  }
 0x7f6   : > { %10628 = vmatprep.subr.bf16.mxu0 %v16667_v37  ;;  %v10994_v37 = vld [vmem:[%s22107_s10] sm:$0xff] }
 0x7f9   : > { %10629 = vmatpush1.bf16.msra.mxu0 %v16665_v49  ;;  %v10995_v49 = vld [vmem:[%s22107_s10 + $0x8] sm:$0xff] }
 0x7fa   : > { %10630 = vmatprep.subr.bf16.mxu0 %v16670_v31  ;;  %v10996_v31 = vld [vmem:[%s22107_s10 + $0x10] sm:$0xff] }
 0x7fd   : > { %10631 = vmatpush1.bf16.msra.mxu0 %v16668_v1  ;;  %v10997_v1 = vld [vmem:[%s22107_s10 + $0x18] sm:$0xff] }
 0x7fe   : > { %10632 = vmatprep.subr.bf16.mxu0 %v16673_v53 }
 0x801   : > { %10633 = vmatpush1.bf16.msra.mxu0 %v16671_v28 }
 0x802   : > { %10634 = vmatprep.subr.bf16.mxu0 %v16676_v44 }
 0x805   : > { %10635 = vmatpush1.bf16.msra.mxu0 %v16674_v40 }
 0x806   : > { %10636 = vmatprep.subr.bf16.mxu0 %v16679_v16 }
 0x809   : > { %10637 = vmatpush1.bf16.msra.mxu0 %v16677_v51  ;;  %v22270_v51 = vld [vmem:[#allocation2_spill] sm:$0xff] }
 0x80a   : > { %10638 = vmatprep.subr.bf16.mxu0 %v16682_v36  ;;  %v589_v36 = vadd.s32 128, %v22270_v51  ;;  %v11143_v51 = vld [vmem:[%s22109_s12 + $0x8] sm:$0xff] }
 0x80c   : > { %vm10705_vm9 = vcmp.ne.s32.totalorder %v589_v36, 255  ;;  %v11144_v36 = vld [vmem:[%s22109_s12 + $0x10] sm:$0xff] }
 0x80d   : > { %10639 = vmatpush1.bf16.msra.mxu0 %v16680_v21 }
 0x80e   : > { %10640 = vmatprep.subr.bf16.mxu0 %v16685_v9 }
 0x811   : > { %10641 = vmatpush1.bf16.msra.mxu0 %v16683_v3 }
 0x812   : > { %10642 = vmatprep.subr.bf16.mxu0 %v16688_v63 }
 0x815   : > { %10643 = vmatpush1.bf16.msra.mxu0 %v16686_v25 }
 0x816   : > { %10644 = vmatprep.subr.bf16.mxu0 %v16691_v11 }
 0x819   : > { %10645 = vmatpush1.bf16.msra.mxu0 %v16689_v54 }
 0x81a   : > { %10646 = vmatprep.subr.bf16.mxu0 %v16694_v39 }
 0x81d   : > { %10647 = vmatpush1.bf16.msra.mxu0 %v16692_v46 }
 0x81e   : > { %10648 = vmatprep.subr.bf16.mxu0 %v16697_v60  ;;  %v16748_v60 = vld [vmem:[%s22106_s9] sm:$0xff]  }
 0x821   : > { %10649 = vmatpush1.bf16.msra.mxu0 %v16695_v7  ;;  %v22271_v7 = vmov 0.0  }
 0x822   : > { %10661 = vmatprep.subr.bf16.mxu0 %v16700_v26  ;;  %v21162_v26 = vsel %vm10705_vm9, 1.0, %v22271_v7 }
 0x824   : > { %10651 = vmatmul.mubr.bf16.vlgmr.msra.gmra.mrb[128].mxu0 %v20442_v55  ;;  %v16709_v55 = vld [vmem:[%s22105_s8 + $0x734] ss:$8 sps:$4 sm:$0xff]  }
 0x825   : > { %10662 = vmatpush1.bf16.msra.mxu0 %v16698_v42  ;;  %10693 = vmatprep.mubr.bf16.mxu0 %v20521_v45  ;;  %v16707_v45 = vld [vmem:[%s22105_s8 + $0x730] ss:$8 sps:$4 sm:$0xff]  }
 0x826   : > { %10663 = vmatprep.subr.bf16.mxu0 %v16703_v17 }
 0x829   : > { %10664 = vmatpush1.bf16.msra.mxu0 %v16701_v13 }
 0x82a   : > { %10665 = vmatprep.subr.bf16.mxu0 %v16706_v15 }
 0x82d   : > { %10666 = vmatpush1.bf16.msra.mxu0 %v16704_v22 }
 0x82e   : > { %10667 = vmatprep.subr.bf16.mxu0 %v16709_v55 }
 0x831   : > { %10668 = vmatpush1.bf16.msra.mxu0 %v16707_v45 }
 0x832   : > { %10669 = vmatprep.subr.bf16.mxu0 %v16712_v59 }
 0x835   : > { %10670 = vmatpush1.bf16.msra.mxu0 %v16710_v10 }
 0x836   : > { %10671 = vmatprep.subr.bf16.mxu0 %v16715_v58 }
 0x839   : > { %10672 = vmatpush1.bf16.msra.mxu0 %v16713_v4  ;;  %v16749_v4 = vld [vmem:[%s22106_s9 + $0x8] sm:$0xff]  }
 0x83a   : > { %10673 = vmatprep.subr.bf16.mxu0 %v16718_v27  ;;  %v16750_v27 = vld [vmem:[%s22106_s9 + $0x20] sm:$0xff]  }
 0x83d   : > { %10674 = vmatpush1.bf16.msra.mxu0 %v16716_v18  ;;  %v16751_v18 = vld [vmem:[%s22106_s9 + $0x28] sm:$0xff]  }
 0x83e   : > { %10675 = vmatprep.subr.bf16.mxu0 %v16721_v12 }
 0x841   : > { %10676 = vmatpush1.bf16.msra.mxu0 %v16719_v52 }
 0x842   : > { %10677 = vmatprep.subr.bf16.mxu0 %v16724_v2 }
 0x845   : > { %10678 = vmatpush1.bf16.msra.mxu0 %v16722_v8 }
 0x846   : > { %10679 = vmatprep.subr.bf16.mxu0 %v16727_v24 }
 0x849   : > { %10680 = vmatpush1.bf16.msra.mxu0 %v16725_v43 }
 0x84a   : > { %10681 = vmatprep.subr.bf16.mxu0 %v16730_v32 }
 0x84d   : > { %10682 = vmatpush1.bf16.msra.mxu0 %v16728_v57 }
 0x84e   : > { %10683 = vmatprep.subr.bf16.mxu0 %v16733_v30 }
 0x851   : > { %10684 = vmatpush1.bf16.msra.mxu0 %v16731_v38 }
 0x852   : > { %10685 = vmatprep.subr.bf16.mxu0 %v16736_v48 }
 0x855   : > { %10686 = vmatpush1.bf16.msra.mxu0 %v16734_v14 }
 0x856   : > { %10687 = vmatprep.subr.bf16.mxu0 %v16739_v23 }
 0x859   : > { %10688 = vmatpush1.bf16.msra.mxu0 %v16737_v33 }
 0x85a   : > { %10689 = vmatprep.subr.bf16.mxu0 %v16742_v29 }
 0x85d   : > { %10690 = vmatpush1.bf16.msra.mxu0 %v16740_v6 }
 0x85e   : > { %10691 = vmatprep.subr.bf16.mxu0 %v16745_v20 }
 0x861   : > { %10692 = vmatpush1.bf16.msra.mxu0 %v16743_v5 }
 0x864   : > { %10694 = vmatmul.mubr.bf16.vlgmr.msra.gmra.mrb[128].mxu0 %v20516_v35  ;;  %v16747_v35 = vld [vmem:[%s22106_s9 + $0x18] sm:$0xff]  }
 0x937   : > { %v10695_v41 = vpop.f32.mrb[128].mxu0 }
 0x938   : > { %v10697_v0 = vpop.f32.mrb[129].mxu0 }
 0x939   : > { %10712 = vrot.lane.b32.xlu1 %v10697_v0, %s16855_s28  ;;  %v10699_v56 = vpop.f32.mrb[130].mxu0 }
 0x93a   : > { %v10774_v50 = vpack.c.bf16 %v10699_v56, %v10695_v41  ;;  %v10701_v34 = vpop.f32.mrb[131].mxu0 }
 0x93b   : > { %v10775_v19 = vpack.c.bf16 %v10701_v34, %v10697_v0  ;;  %10714 = vrot.lane.b32.xlu0 %v10701_v34, %s16855_s28 }
 0x93d   : > { %10720 = vrot.lane.b32.xlu1 %v10695_v41, %s16855_s28  ;;  %10793 = vmatprep.subr.bf16.mxu1 %v10775_v19 }
 0x93e   : > { %10794 = vmatpush1.bf16.msra.mxu1 %v10774_v50 }
 0x93f   : > { %10722 = vrot.lane.b32.xlu0 %v10699_v56, %s16855_s28 }
 0x941   : > { %10736 = vrot.lane.b32.xlu1 %v10695_v41, %s16856_s24  ;;  %14521 = vmatmul.mubr.msk.bf16.vlgmr.msra.gmra.mrb[148].mxu1 %vm10786_vm8, %v16746_v47 }
 0x942   : > { %10835 = vmatprep.mubr.bf16.mxu1 %v22213_v61 }
 0x943   : > { %10738 = vrot.lane.b32.xlu0 %v10697_v0, %s16856_s24 }
 0x945   : > { %10740 = vrot.lane.b32.xlu1 %v10699_v56, %s16856_s24 }
 0x947   : > { %10742 = vrot.lane.b32.xlu0 %v10701_v34, %s16856_s24 }
 0x949   : > { %11000 = vperm.xlu1 %16026, %v10994_v37   ;;  %14522 = vmatmul.mubr.msk.bf16.gmra.mrb[152].mxu1 %vm10786_vm8, %v16747_v35 }
 0x94a   : > { %10894 = vmatprep.mubr.bf16.mxu1 %v22213_v61 }
 0x94b   : > { %11005 = vperm.xlu0 %16025, %v10995_v49  }
 0x94d   : > { %11010 = vperm.xlu1 %16026, %v10996_v31  }
 0x94f   : > { %11015 = vperm.xlu0 %16025, %v10997_v1  }
 0x9ab   : > { %v10713_v53 = vpop.permute.xlu1 %10712 }
 0x9ad   : > { %v10715_v28 = vpop.permute.xlu0 %10714 }
 0x9af   : > { %v10721_v44 = vpop.permute.xlu1 %10720 }
 0x9b0   : > { %v10730_v40 = vsel %vm896_vm2, %v10713_v53, %v10721_v44  ;;  %v10724_v21 = vsel %vm896_vm2, %v10721_v44, %v10713_v53  ;;  %v16752_v44 = vld [vmem:[%s22108_s11 + $0x10] sm:$0xff]  }
 0x9b1   : > { %v10723_v16 = vpop.permute.xlu0 %10722  ;;  %v10732_v63 = vmul.f32 %v22269_v62, %v10730_v40  ;;  %v16753_v40 = vld [vmem:[%s22108_s11 + $0x18] sm:$0xff]  }
 0x9b2   : > { %v10725_v9 = vsel %vm896_vm2, %v10723_v16, %v10715_v28  ;;  %v10731_v3 = vsel %vm896_vm2, %v10715_v28, %v10723_v16  ;;  %v11142_v16 = vld [vmem:[%s22109_s12] sm:$0xff] }
 0x9b3   : > { %v10734_v25 = vmul.f32 %v22269_v62, %v10731_v3  ;;  %v10737_v11 = vpop.permute.xlu1 %10736  ;;  %v10773_v54 = vpack.c.bf16 %v10725_v9, %v10724_v21  ;;  %v11145_v21 = vld [vmem:[%s22109_s12 + $0x18] sm:$0xff] }
 0x9b5   : > { %v10772_v39 = vpack.c.bf16 %v10734_v25, %v10732_v63  ;;  %v10739_v46 = vpop.permute.xlu0 %10738  ;;  %10862 = vmatprep.subr.bf16.mxu1 %v10773_v54 }
 0x9b6   : > { %v10752_v42 = vsel %vm1217_vm3, %v10739_v46, %v10737_v11  ;;  %v10744_v59 = vsel %vm1217_vm3, %v10737_v11, %v10739_v46 }
 0x9b7   : > { %10863 = vmatpush1.bf16.msra.mxu1 %v10772_v39  ;;  %v10741_v17 = vpop.permute.xlu1 %10740  ;;  %v10755_v22 = vmul.f32 %v21162_v26, %v10752_v42 }
 0x9b9   : > { %v10743_v13 = vpop.permute.xlu0 %10742 }
 0x9ba   : > { %v10753_v15 = vsel %vm1217_vm3, %v10743_v13, %v10741_v17  ;;  %14525 = vmatmul.mubr.msk.bf16.vlgmr.msra.gmra.mrb[148].mxu1 %vm10786_vm8, %v16748_v60  ;;  %v10745_v55 = vsel %vm1217_vm3, %v10741_v17, %v10743_v13 }
 0x9bb   : > { %v10757_v45 = vmul.f32 %v21162_v26, %v10753_v15  ;;  %10904 = vmatprep.mubr.bf16.mxu1 %v22213_v61  ;;  %v10915_v58 = vpack.c.bf16 %v10745_v55, %v10744_v59 }
 0x9bd   : > { %v10916_v10 = vpack.c.bf16 %v10757_v45, %v10755_v22 }
 0x9bf   : > { %10933 = vmatprep.subr.bf16.mxu1 %v10916_v10 }
 0x9c0   : > { %10934 = vmatpush1.bf16.msra.mxu1 %v10915_v58 }
 0x9c2   : > { %14526 = vmatmul.mubr.msk.bf16.gmra.mrb[152].mxu1 %vm10786_vm8, %v16749_v4 }
 0x9c3   : > { %10965 = vmatprep.mubr.bf16.mxu1 %v22213_v61 }
 0x9c8   : > { %v11001_v12 = vpop.permute.xlu1 %11000 }
 0x9ca   : > { %14529 = vmatmul.mubr.msk.bf16.vlgmr.msra.gmra.mrb[148].mxu1 %vm10786_vm8, %v16750_v27  ;;  %v11006_v24 = vpop.permute.xlu0 %11005 }
 0x9cb   : > { %10975 = vmatprep.mubr.bf16.mxu1 %v22213_v61 }
 0x9cc   : > { %v11011_v29 = vpop.permute.xlu1 %11010 }
 0x9ce   : > { %v11016_v56 = vpop.permute.xlu0 %11015 }
 0x9d2   : > { %14530 = vmatmul.mubr.msk.bf16.gmra.mrb[152].mxu1 %vm10786_vm8, %v16751_v18 }
 0x9d3   : > { %11202 = vmatprep.mubr.bf16.mxu1 %v22213_v61 }
 0xa9d   : > { %v10967_v52 = vpop.f32.mrb[148].mxu1 }
 0xa9e   : > { %v11018_v2 = vadd.f32 %v11001_v12, %v10967_v52  ;;  %v10969_v8 = vpop.f32.mrb[149].mxu1 }
 0xa9f   : > { %v11019_v43 = vadd.f32 %v11001_v12, %v10969_v8  ;;  %v10971_v32 = vpop.f32.mrb[150].mxu1  ;;  %v16754_v8 = vld [vmem:[%s22108_s11] sm:$0xff]  }
 0xaa0   : > { %v21187_v57 = vmax.f32 %v11018_v2, 0.0  ;;  %v11020_v30 = vadd.f32 %v11006_v24, %v10971_v32  ;;  %v10973_v38 = vpop.f32.mrb[151].mxu1 }
 0xaa1   : > { %v11021_v48 = vadd.f32 %v11006_v24, %v10973_v38  ;;  %v21193_v23 = vmax.f32 %v11019_v43, 0.0 }
 0xaa2   : > { %v21189_v14 = vmax.f32 %v11020_v30, 0.0  ;;  %11054 = vrot.lane.b32.xlu1 %v21187_v57, %s16855_s28 }
 0xaa3   : > { %v21195_v33 = vmax.f32 %v11021_v48, 0.0 }
 0xaa4   : > { %11056 = vrot.lane.b32.xlu0 %v21189_v14, %s16855_s28  ;;  %v11150_v0 = vpack.c.bf16 %v21189_v14, %v21187_v57 }
 0xaa5   : > { %v10977_v6 = vpop.f32.mrb[152].mxu1  ;;  %v11151_v20 = vpack.c.bf16 %v21195_v33, %v21193_v23 }
 0xaa6   : > { %v11022_v5 = vadd.f32 %v11011_v29, %v10977_v6  ;;  %11038 = vrot.lane.b32.xlu1 %v21193_v23, %s16855_s28  ;;  %v10979_v41 = vpop.f32.mrb[153].mxu1 }
 0xaa7   : > { %v11023_v50 = vadd.f32 %v11011_v29, %v10979_v41  ;;  %v10981_v34 = vpop.f32.mrb[154].mxu1  ;;  %11170 = vmatprep.subr.bf16.mxu1 %v11151_v20 }
 0xaa8   : > { %v21205_v19 = vmax.f32 %v11022_v5, 0.0  ;;  %v11024_v47 = vadd.f32 %v11016_v56, %v10981_v34  ;;  %11040 = vrot.lane.b32.xlu0 %v21195_v33, %s16855_s28  ;;  %v10983_v35 = vpop.f32.mrb[155].mxu1  ;;  %11171 = vmatpush1.bf16.msra.mxu1 %v11150_v0 }
 0xaa9   : > { %v11025_v37 = vadd.f32 %v11016_v56, %v10983_v35  ;;  %v21213_v31 = vmax.f32 %v11023_v50, 0.0  ;;  %v16755_v56 = vld [vmem:[%s22108_s11 + $0x8] sm:$0xff]  }
 0xaaa   : > { %v21209_v49 = vmax.f32 %v11024_v47, 0.0  ;;  %11058 = vrot.lane.b32.xlu1 %v21205_v19, %s16855_s28 }
 0xaab   : > { %v21215_v1 = vmax.f32 %v11025_v37, 0.0 }
 0xaac   : > { %11060 = vrot.lane.b32.xlu0 %v21209_v49, %s16855_s28  ;;  %v11152_v28 = vpack.c.bf16 %v21209_v49, %v21205_v19 }
 0xaad   : > { %v11153_v53 = vpack.c.bf16 %v21215_v1, %v21213_v31 }
 0xaae   : > { %11042 = vrot.lane.b32.xlu1 %v21213_v31, %s16855_s28 }
 0xaaf   : > { %11172 = vmatprep.subr.bf16.mxu1 %v11153_v53 }
 0xab0   : > { %11044 = vrot.lane.b32.xlu0 %v21215_v1, %s16855_s28  ;;  %11173 = vmatpush1.bf16.msra.mxu1 %v11152_v28 }
 0xab2   : > { %11086 = vrot.lane.b32.xlu1 %v21187_v57, %s16856_s24 }
 0xab3   : > { %14533 = vmatmul.mubr.msk.bf16.vlgmr.msra.gmra.mrb[156].mxu1 %vm1428_vm0, %v16752_v44 }
 0xab4   : > { %11088 = vrot.lane.b32.xlu0 %v21193_v23, %s16856_s24  ;;  %11212 = vmatprep.mubr.bf16.mxu1 %v22213_v61 }
 0xab6   : > { %11090 = vrot.lane.b32.xlu1 %v21189_v14, %s16856_s24 }
 0xab8   : > { %11092 = vrot.lane.b32.xlu0 %v21195_v33, %s16856_s24 }
 0xaba   : > { %11094 = vrot.lane.b32.xlu1 %v21205_v19, %s16856_s24 }
 0xabb   : > { %14534 = vmatmul.mubr.msk.bf16.gmra.mrb[160].mxu1 %vm1428_vm0, %v16753_v40 }
 0xabc   : > { %11096 = vrot.lane.b32.xlu0 %v21213_v31, %s16856_s24  ;;  %11271 = vmatprep.mubr.bf16.mxu1 %v22213_v61 }
 0xabe   : > { %11098 = vrot.lane.b32.xlu1 %v21209_v49, %s16856_s24 }
 0xac0   : > { %11100 = vrot.lane.b32.xlu0 %v21215_v1, %s16856_s24 }
 0xac2   : > { %11375 = vperm.xlu1 %16026, %v11142_v16  }
 0xac4   : > { %11380 = vperm.xlu0 %16025, %v11143_v51   ;;  %v16756_v51 = vld [vmem:[%s22108_s11 + $0x20] sm:$0xff]  }
 0xac6   : > { %11385 = vperm.xlu1 %16026, %v11144_v36   ;;  %v16757_v36 = vld [vmem:[%s22108_s11 + $0x28] sm:$0xff]  }
 0xac8   : > { %11390 = vperm.xlu0 %16025, %v11145_v21  }
 0xb14   : > { %v11055_v9 = vpop.permute.xlu1 %11054 }
 0xb16   : > { %v11057_v3 = vpop.permute.xlu0 %11056 }
 0xb18   : > { %v11039_v63 = vpop.permute.xlu1 %11038 }
 0xb19   : > { %v11074_v25 = vsel %vm896_vm2, %v11039_v63, %v11055_v9  ;;  %v11062_v54 = vsel %vm896_vm2, %v11055_v9, %v11039_v63 }
 0xb1a   : > { %v11041_v11 = vpop.permute.xlu0 %11040  ;;  %v11078_v60 = vmul.f32 %v22269_v62, %v11074_v25 }
 0xb1b   : > { %v11063_v39 = vsel %vm896_vm2, %v11057_v3, %v11041_v11  ;;  %v11075_v46 = vsel %vm896_vm2, %v11041_v11, %v11057_v3 }
 0xb1c   : > { %v11080_v7 = vmul.f32 %v22269_v62, %v11075_v46  ;;  %v11059_v42 = vpop.permute.xlu1 %11058  ;;  %v11147_v17 = vpack.c.bf16 %v11063_v39, %v11062_v54 }
 0xb1e   : > { %v11146_v13 = vpack.c.bf16 %v11080_v7, %v11078_v60  ;;  %v11061_v15 = vpop.permute.xlu0 %11060  ;;  %11239 = vmatprep.subr.bf16.mxu1 %v11147_v17 }
 0xb20   : > { %v11043_v22 = vpop.permute.xlu1 %11042  ;;  %11240 = vmatpush1.bf16.msra.mxu1 %v11146_v13 }
 0xb21   : > { %v11076_v55 = vsel %vm896_vm2, %v11043_v22, %v11059_v42  ;;  %v11064_v59 = vsel %vm896_vm2, %v11059_v42, %v11043_v22 }
 0xb22   : > { %v11045_v45 = vpop.permute.xlu0 %11044  ;;  %v11082_v4 = vmul.f32 %v22269_v62, %v11076_v55 }
 0xb23   : > { %v11065_v10 = vsel %vm896_vm2, %v11061_v15, %v11045_v45  ;;  %v11077_v58 = vsel %vm896_vm2, %v11045_v45, %v11061_v15 }
 0xb24   : > { %v11084_v27 = vmul.f32 %v22269_v62, %v11077_v58  ;;  %v11087_v18 = vpop.permute.xlu1 %11086  ;;  %v11149_v12 = vpack.c.bf16 %v11065_v10, %v11064_v59 }
 0xb26   : > { %v11148_v52 = vpack.c.bf16 %v11084_v27, %v11082_v4  ;;  %v11089_v2 = vpop.permute.xlu0 %11088  ;;  %11241 = vmatprep.subr.bf16.mxu1 %v11149_v12 }
 0xb27   : > { %v11118_v43 = vsel %vm1217_vm3, %v11089_v2, %v11087_v18  ;;  %v11102_v20 = vsel %vm1217_vm3, %v11087_v18, %v11089_v2 }
 0xb28   : > { %v11091_v24 = vpop.permute.xlu1 %11090  ;;  %11242 = vmatpush1.bf16.msra.mxu1 %v11148_v52  ;;  %v11123_v38 = vmul.f32 %v21162_v26, %v11118_v43 }
 0xb2a   : > { %v11093_v32 = vpop.permute.xlu0 %11092 }
 0xb2b   : > { %v11119_v30 = vsel %vm1217_vm3, %v11093_v32, %v11091_v24  ;;  %14537 = vmatmul.mubr.msk.bf16.vlgmr.msra.gmra.mrb[156].mxu1 %vm1428_vm0, %v16754_v8  ;;  %v11103_v48 = vsel %vm1217_vm3, %v11091_v24, %v11093_v32 }
 0xb2c   : > { %v11125_v29 = vmul.f32 %v21162_v26, %v11119_v30  ;;  %v11095_v6 = vpop.permute.xlu1 %11094  ;;  %11281 = vmatprep.mubr.bf16.mxu1 %v22213_v61  ;;  %v11292_v0 = vpack.c.bf16 %v11103_v48, %v11102_v20  ;;  %v14557_v20 = vld [vmem:[%s22109_s12 + $0x30] sm:$0xff] }
 0xb2e   : > { %v11097_v5 = vpop.permute.xlu0 %11096  ;;  %v11293_v41 = vpack.c.bf16 %v11125_v29, %v11123_v38  ;;  %v14555_v29 = vld [vmem:[%s22109_s12 + $0x20] sm:$0xff] }
 0xb2f   : > { %v11120_v50 = vsel %vm1217_vm3, %v11097_v5, %v11095_v6  ;;  %v11104_v44 = vsel %vm1217_vm3, %v11095_v6, %v11097_v5  ;;  %v14556_v6 = vld [vmem:[%s22109_s12 + $0x28] sm:$0xff]  ;;  %v14558_v5 = vld [vmem:[%s22109_s12 + $0x38] sm:$0xff] }
 0xb30   : > { %11312 = vmatprep.subr.bf16.mxu1 %v11293_v41  ;;  %v11099_v34 = vpop.permute.xlu1 %11098  ;;  %v11127_v37 = vmul.f32 %v21162_v26, %v11120_v50 }
 0xb31   : > { %11313 = vmatpush1.bf16.msra.mxu1 %v11292_v0 }
 0xb32   : > { %v11101_v47 = vpop.permute.xlu0 %11100 }
 0xb33   : > { %v11121_v35 = vsel %vm1217_vm3, %v11101_v47, %v11099_v34  ;;  %14538 = vmatmul.mubr.msk.bf16.gmra.mrb[160].mxu1 %vm1428_vm0, %v16755_v56  ;;  %v11105_v53 = vsel %vm1217_vm3, %v11099_v34, %v11101_v47 }
 0xb34   : > { %v11129_v28 = vmul.f32 %v21162_v26, %v11121_v35  ;;  %11344 = vmatprep.mubr.bf16.mxu1 %v22213_v61  ;;  %v11294_v16 = vpack.c.bf16 %v11105_v53, %v11104_v44 }
 0xb36   : > { %v11295_v40 = vpack.c.bf16 %v11129_v28, %v11127_v37 }
 0xb38   : > { %11314 = vmatprep.subr.bf16.mxu1 %v11295_v40 }
 0xb39   : > { %11315 = vmatpush1.bf16.msra.mxu1 %v11294_v16 }
 0xb3c   : > { %14541 = vmatmul.mubr.msk.bf16.vlgmr.msra.gmra.mrb[156].mxu1 %vm1428_vm0, %v16756_v51 }
 0xb3d   : > { %11354 = vmatprep.mubr.bf16.mxu1 %v22213_v61 }
 0xb41   : > { %v11376_v21 = vpop.permute.xlu1 %11375 }
 0xb43   : > { %v11381_v25 = vpop.permute.xlu0 %11380 }
 0xb44   : > { %14542 = vmatmul.mubr.msk.bf16.gmra.mrb[160].mxu1 %vm1428_vm0, %v16757_v36 }
 0xb45   : > { %11587 = vmatprep.mubr.bf16.mxu1 %v22213_v61  ;;  %v11386_v55 = vpop.permute.xlu1 %11385 }
 0xb47   : > { %v11391_v4 = vpop.permute.xlu0 %11390 }
 0xc0f   : > { %v11346_v9 = vpop.f32.mrb[156].mxu1 }
 0xc10   : > { %v11393_v3 = vadd.f32 %v11376_v21, %v11346_v9  ;;  %v11348_v63 = vpop.f32.mrb[157].mxu1 }
 0xc11   : > { %v11394_v11 = vadd.f32 %v11376_v21, %v11348_v63  ;;  %v11350_v54 = vpop.f32.mrb[158].mxu1 }
 0xc12   : > { %v11401_v39 = vmax.f32 %v11393_v3, 0.0  ;;  %v11395_v46 = vadd.f32 %v11381_v25, %v11350_v54  ;;  %v11352_v60 = vpop.f32.mrb[159].mxu1 }
 0xc13   : > { %v11402_v7 = vmax.f32 %v11394_v11, 0.0  ;;  %v11396_v42 = vadd.f32 %v11381_v25, %v11352_v60 }
 0xc14   : > { %v21310_v17 = vadd.f32 %v11401_v39, %v21187_v57  ;;  %v11403_v13 = vmax.f32 %v11395_v46, 0.0 }
 0xc15   : > { %v11404_v15 = vmax.f32 %v11396_v42, 0.0  ;;  %v21318_v45 = vadd.f32 %v11402_v7, %v21193_v23  ;;  %v16760_v42 = vld [vmem:[%s22108_s11 + $0x30] sm:$0xff]  }
 0xc16   : > { %v21313_v22 = vadd.f32 %v11403_v13, %v21189_v14  ;;  %11437 = vrot.lane.b32.xlu1 %v21310_v17, %s16855_s28 }
 0xc17   : > { %v21321_v59 = vadd.f32 %v11404_v15, %v21195_v33  ;;  %v11356_v10 = vpop.f32.mrb[160].mxu1 }
 0xc18   : > { %v11397_v58 = vadd.f32 %v11386_v55, %v11356_v10  ;;  %11439 = vrot.lane.b32.xlu0 %v21313_v22, %s16855_s28  ;;  %v11358_v57 = vpop.f32.mrb[161].mxu1  ;;  %v11535_v33 = vpack.c.bf16 %v21313_v22, %v21310_v17 }
 0xc19   : > { %v11398_v27 = vadd.f32 %v11386_v55, %v11358_v57  ;;  %v11360_v14 = vpop.f32.mrb[162].mxu1  ;;  %v11536_v18 = vpack.c.bf16 %v21321_v59, %v21318_v45 }
 0xc1a   : > { %v11405_v12 = vmax.f32 %v11397_v58, 0.0  ;;  %v11399_v52 = vadd.f32 %v11391_v4, %v11360_v14  ;;  %11421 = vrot.lane.b32.xlu1 %v21318_v45, %s16855_s28  ;;  %v11362_v23 = vpop.f32.mrb[163].mxu1 }
 0xc1b   : > { %v11406_v2 = vmax.f32 %v11398_v27, 0.0  ;;  %v11400_v8 = vadd.f32 %v11391_v4, %v11362_v23  ;;  %11555 = vmatprep.subr.bf16.mxu1 %v11536_v18  ;;  %v16761_v23 = vld [vmem:[%s22108_s11 + $0x38] sm:$0xff]  }
 0xc1c   : > { %v21332_v24 = vadd.f32 %v11405_v12, %v21205_v19  ;;  %v11407_v43 = vmax.f32 %v11399_v52, 0.0  ;;  %11423 = vrot.lane.b32.xlu0 %v21321_v59, %s16855_s28  ;;  %11556 = vmatpush1.bf16.msra.mxu1 %v11535_v33 }
 0xc1d   : > { %v11408_v32 = vmax.f32 %v11400_v8, 0.0  ;;  %v21342_v38 = vadd.f32 %v11406_v2, %v21213_v31  ;;  %v16758_v31 = vld [vmem:[%s22108_s11 + $0x40] sm:$0xff]  }
 0xc1e   : > { %v21337_v30 = vadd.f32 %v11407_v43, %v21209_v49  ;;  %11441 = vrot.lane.b32.xlu1 %v21332_v24, %s16855_s28 }
 0xc1f   : > { %v21345_v48 = vadd.f32 %v11408_v32, %v21215_v1  ;;  %v16759_v1 = vld [vmem:[%s22108_s11 + $0x48] sm:$0xff]  }
 0xc20   : > { %11443 = vrot.lane.b32.xlu0 %v21337_v30, %s16855_s28  ;;  %v11537_v49 = vpack.c.bf16 %v21337_v30, %v21332_v24 }
 0xc21   : > { %v11538_v19 = vpack.c.bf16 %v21345_v48, %v21342_v38 }
 0xc22   : > { %11425 = vrot.lane.b32.xlu1 %v21342_v38, %s16855_s28 }
 0xc23   : > { %11557 = vmatprep.subr.bf16.mxu1 %v11538_v19 }
 0xc24   : > { %11427 = vrot.lane.b32.xlu0 %v21345_v48, %s16855_s28  ;;  %11558 = vmatpush1.bf16.msra.mxu1 %v11537_v49 }
 0xc26   : > { %11469 = vrot.lane.b32.xlu1 %v21310_v17, %s16856_s24 }
 0xc27   : > { %14561 = vmatmul.mubr.msk.bf16.vlgmr.msra.gmra.mrb[164].mxu1 %vm1428_vm0, %v16758_v31 }
 0xc28   : > { %11471 = vrot.lane.b32.xlu0 %v21318_v45, %s16856_s24  ;;  %11597 = vmatprep.mubr.bf16.mxu1 %v22213_v61 }
 0xc2a   : > { %11473 = vrot.lane.b32.xlu1 %v21313_v22, %s16856_s24 }
 0xc2c   : > { %11475 = vrot.lane.b32.xlu0 %v21321_v59, %s16856_s24 }
 0xc2e   : > { %11477 = vrot.lane.b32.xlu1 %v21332_v24, %s16856_s24 }
 0xc2f   : > { %14562 = vmatmul.mubr.msk.bf16.gmra.mrb[168].mxu1 %vm1428_vm0, %v16759_v1 }
 0xc30   : > { %11479 = vrot.lane.b32.xlu0 %v21342_v38, %s16856_s24  ;;  %11656 = vmatprep.mubr.bf16.mxu1 %v22213_v61 }
 0xc32   : > { %11481 = vrot.lane.b32.xlu1 %v21337_v30, %s16856_s24 }
 0xc34   : > { %11483 = vrot.lane.b32.xlu0 %v21345_v48, %s16856_s24 }
 0xc36   : > { %11760 = vperm.xlu1 %16026, %v14555_v29  }
 0xc38   : > { %11765 = vperm.xlu0 %16025, %v14556_v6   ;;  %v16762_v6 = vld [vmem:[%s22108_s11 + $0x50] sm:$0xff]  }
 0xc3a   : > { %11770 = vperm.xlu1 %16026, %v14557_v20   ;;  %v16763_v20 = vld [vmem:[%s22108_s11 + $0x58] sm:$0xff]  }
 0xc3c   : > { %11775 = vperm.xlu0 %16025, %v14558_v5  }
 0xc88   : > { %v11438_v41 = vpop.permute.xlu1 %11437 }
 0xc8a   : > { %v11440_v0 = vpop.permute.xlu0 %11439 }
 0xc8c   : > { %v11422_v56 = vpop.permute.xlu1 %11421 }
 0xc8d   : > { %v11457_v50 = vsel %vm896_vm2, %v11422_v56, %v11438_v41  ;;  %v11445_v47 = vsel %vm896_vm2, %v11438_v41, %v11422_v56 }
 0xc8e   : > { %v11424_v34 = vpop.permute.xlu0 %11423  ;;  %v11461_v53 = vmul.f32 %v22269_v62, %v11457_v50 }
 0xc8f   : > { %v11446_v35 = vsel %vm896_vm2, %v11440_v0, %v11424_v34  ;;  %v11458_v37 = vsel %vm896_vm2, %v11424_v34, %v11440_v0 }
 0xc90   : > { %v11463_v28 = vmul.f32 %v22269_v62, %v11458_v37  ;;  %v11532_v44 = vpack.c.bf16 %v11446_v35, %v11445_v47  ;;  %v11442_v40 = vpop.permute.xlu1 %11441 }
 0xc92   : > { %v11531_v16 = vpack.c.bf16 %v11463_v28, %v11461_v53  ;;  %v11444_v51 = vpop.permute.xlu0 %11443  ;;  %11624 = vmatprep.subr.bf16.mxu1 %v11532_v44 }
 0xc94   : > { %v11426_v36 = vpop.permute.xlu1 %11425  ;;  %11625 = vmatpush1.bf16.msra.mxu1 %v11531_v16 }
 0xc95   : > { %v11459_v21 = vsel %vm896_vm2, %v11426_v36, %v11442_v40  ;;  %v11447_v3 = vsel %vm896_vm2, %v11442_v40, %v11426_v36 }
 0xc96   : > { %v11428_v9 = vpop.permute.xlu0 %11427  ;;  %v11465_v11 = vmul.f32 %v22269_v62, %v11459_v21 }
 0xc97   : > { %v11448_v63 = vsel %vm896_vm2, %v11444_v51, %v11428_v9  ;;  %v11460_v25 = vsel %vm896_vm2, %v11428_v9, %v11444_v51 }
 0xc98   : > { %v11467_v54 = vmul.f32 %v22269_v62, %v11460_v25  ;;  %v11534_v39 = vpack.c.bf16 %v11448_v63, %v11447_v3  ;;  %v11470_v46 = vpop.permute.xlu1 %11469 }
 0xc9a   : > { %v11533_v60 = vpack.c.bf16 %v11467_v54, %v11465_v11  ;;  %v11472_v7 = vpop.permute.xlu0 %11471  ;;  %11626 = vmatprep.subr.bf16.mxu1 %v11534_v39 }
 0xc9b   : > { %v11501_v15 = vsel %vm1217_vm3, %v11472_v7, %v11470_v46  ;;  %v11485_v14 = vsel %vm1217_vm3, %v11470_v46, %v11472_v7 }
 0xc9c   : > { %v11474_v13 = vpop.permute.xlu1 %11473  ;;  %11627 = vmatpush1.bf16.msra.mxu1 %v11533_v60  ;;  %v11506_v58 = vmul.f32 %v21162_v26, %v11501_v15 }
 0xc9e   : > { %v11476_v55 = vpop.permute.xlu0 %11475 }
 0xc9f   : > { %v11502_v10 = vsel %vm1217_vm3, %v11476_v55, %v11474_v13  ;;  %14565 = vmatmul.mubr.msk.bf16.vlgmr.msra.gmra.mrb[164].mxu1 %vm1428_vm0, %v16760_v42  ;;  %v11486_v57 = vsel %vm1217_vm3, %v11474_v13, %v11476_v55 }
 0xca0   : > { %v11508_v4 = vmul.f32 %v21162_v26, %v11502_v10  ;;  %v11478_v27 = vpop.permute.xlu1 %11477  ;;  %11666 = vmatprep.mubr.bf16.mxu1 %v22213_v61  ;;  %v11677_v52 = vpack.c.bf16 %v11486_v57, %v11485_v14  ;;  %v14585_v14 = vld [vmem:[%s22109_s12 + $0x50] sm:$0xff] }
 0xca2   : > { %v11480_v18 = vpop.permute.xlu0 %11479  ;;  %v11678_v12 = vpack.c.bf16 %v11508_v4, %v11506_v58  ;;  %v14583_v4 = vld [vmem:[%s22109_s12 + $0x40] sm:$0xff] }
 0xca3   : > { %v11503_v33 = vsel %vm1217_vm3, %v11480_v18, %v11478_v27  ;;  %v11487_v31 = vsel %vm1217_vm3, %v11478_v27, %v11480_v18  ;;  %v14584_v27 = vld [vmem:[%s22109_s12 + $0x48] sm:$0xff]  ;;  %v14586_v18 = vld [vmem:[%s22109_s12 + $0x58] sm:$0xff] }
 0xca4   : > { %11697 = vmatprep.subr.bf16.mxu1 %v11678_v12  ;;  %v11482_v2 = vpop.permute.xlu1 %11481  ;;  %v11510_v32 = vmul.f32 %v21162_v26, %v11503_v33 }
 0xca5   : > { %11698 = vmatpush1.bf16.msra.mxu1 %v11677_v52 }
 0xca6   : > { %v11484_v8 = vpop.permute.xlu0 %11483 }
 0xca7   : > { %v11504_v43 = vsel %vm1217_vm3, %v11484_v8, %v11482_v2  ;;  %14566 = vmatmul.mubr.msk.bf16.gmra.mrb[168].mxu1 %vm1428_vm0, %v16761_v23  ;;  %v11488_v19 = vsel %vm1217_vm3, %v11482_v2, %v11484_v8 }
 0xca8   : > { %v11512_v49 = vmul.f32 %v21162_v26, %v11504_v43  ;;  %11729 = vmatprep.mubr.bf16.mxu1 %v22213_v61  ;;  %v11679_v29 = vpack.c.bf16 %v11488_v19, %v11487_v31 }
 0xcaa   : > { %v11680_v1 = vpack.c.bf16 %v11512_v49, %v11510_v32 }
 0xcac   : > { %11699 = vmatprep.subr.bf16.mxu1 %v11680_v1 }
 0xcad   : > { %11700 = vmatpush1.bf16.msra.mxu1 %v11679_v29 }
 0xcb0   : > { %14569 = vmatmul.mubr.msk.bf16.vlgmr.msra.gmra.mrb[164].mxu1 %vm1428_vm0, %v16762_v6 }
 0xcb1   : > { %11739 = vmatprep.mubr.bf16.mxu1 %v22213_v61 }
 0xcb5   : > { %v11761_v5 = vpop.permute.xlu1 %11760 }
 0xcb7   : > { %v11766_v50 = vpop.permute.xlu0 %11765 }
 0xcb8   : > { %14570 = vmatmul.mubr.msk.bf16.gmra.mrb[168].mxu1 %vm1428_vm0, %v16763_v20 }
 0xcb9   : > { %11972 = vmatprep.mubr.bf16.mxu1 %v22213_v61  ;;  %v11771_v21 = vpop.permute.xlu1 %11770 }
 0xcbb   : > { %v11776_v11 = vpop.permute.xlu0 %11775 }
 0xd83   : > { %v11731_v41 = vpop.f32.mrb[164].mxu1 }
 0xd84   : > { %v11778_v0 = vadd.f32 %v11761_v5, %v11731_v41  ;;  %v11733_v56 = vpop.f32.mrb[165].mxu1 }
 0xd85   : > { %v11779_v34 = vadd.f32 %v11761_v5, %v11733_v56  ;;  %v11735_v47 = vpop.f32.mrb[166].mxu1 }
 0xd86   : > { %v11786_v35 = vmax.f32 %v11778_v0, 0.0  ;;  %v11780_v37 = vadd.f32 %v11766_v50, %v11735_v47  ;;  %v11737_v53 = vpop.f32.mrb[167].mxu1 }
 0xd87   : > { %v11787_v28 = vmax.f32 %v11779_v34, 0.0  ;;  %v11781_v44 = vadd.f32 %v11766_v50, %v11737_v53 }
 0xd88   : > { %v21440_v40 = vadd.f32 %v11786_v35, %v21310_v17  ;;  %v11788_v16 = vmax.f32 %v11780_v37, 0.0 }
 0xd89   : > { %v11789_v51 = vmax.f32 %v11781_v44, 0.0  ;;  %v21448_v9 = vadd.f32 %v11787_v28, %v21318_v45  ;;  %v16766_v44 = vld [vmem:[%s22108_s11 + $0x60] sm:$0xff]  }
 0xd8a   : > { %v21443_v36 = vadd.f32 %v11788_v16, %v21313_v22  ;;  %11822 = vrot.lane.b32.xlu1 %v21440_v40, %s16855_s28 }
 0xd8b   : > { %v21451_v3 = vadd.f32 %v11789_v51, %v21321_v59  ;;  %v11741_v63 = vpop.f32.mrb[168].mxu1 }
 0xd8c   : > { %v11782_v25 = vadd.f32 %v11771_v21, %v11741_v63  ;;  %11824 = vrot.lane.b32.xlu0 %v21443_v36, %s16855_s28  ;;  %v11743_v17 = vpop.f32.mrb[169].mxu1  ;;  %v11920_v59 = vpack.c.bf16 %v21443_v36, %v21440_v40 }
 0xd8d   : > { %v11783_v54 = vadd.f32 %v11771_v21, %v11743_v17  ;;  %v11745_v22 = vpop.f32.mrb[170].mxu1  ;;  %v11921_v39 = vpack.c.bf16 %v21451_v3, %v21448_v9 }
 0xd8e   : > { %v11790_v46 = vmax.f32 %v11782_v25, 0.0  ;;  %v11784_v60 = vadd.f32 %v11776_v11, %v11745_v22  ;;  %11806 = vrot.lane.b32.xlu1 %v21448_v9, %s16855_s28  ;;  %v11747_v45 = vpop.f32.mrb[171].mxu1 }
 0xd8f   : > { %v11791_v7 = vmax.f32 %v11783_v54, 0.0  ;;  %v11785_v42 = vadd.f32 %v11776_v11, %v11747_v45  ;;  %11940 = vmatprep.subr.bf16.mxu1 %v11921_v39  ;;  %v16767_v45 = vld [vmem:[%s22108_s11 + $0x68] sm:$0xff]  }
 0xd90   : > { %v21462_v13 = vadd.f32 %v11790_v46, %v21332_v24  ;;  %v11792_v15 = vmax.f32 %v11784_v60, 0.0  ;;  %11808 = vrot.lane.b32.xlu0 %v21451_v3, %s16855_s28  ;;  %11941 = vmatpush1.bf16.msra.mxu1 %v11920_v59 }
 0xd91   : > { %v11793_v55 = vmax.f32 %v11785_v42, 0.0  ;;  %v21472_v58 = vadd.f32 %v11791_v7, %v21342_v38  ;;  %v16764_v38 = vld [vmem:[%s22108_s11 + $0x70] sm:$0xff]  }
 0xd92   : > { %v21467_v10 = vadd.f32 %v11792_v15, %v21337_v30  ;;  %11826 = vrot.lane.b32.xlu1 %v21462_v13, %s16855_s28 }
 0xd93   : > { %v21475_v57 = vadd.f32 %v11793_v55, %v21345_v48  ;;  %v16765_v48 = vld [vmem:[%s22108_s11 + $0x78] sm:$0xff]  }
 0xd94   : > { %11828 = vrot.lane.b32.xlu0 %v21467_v10, %s16855_s28  ;;  %v11922_v30 = vpack.c.bf16 %v21467_v10, %v21462_v13 }
 0xd95   : > { %v11923_v24 = vpack.c.bf16 %v21475_v57, %v21472_v58 }
 0xd96   : > { %11810 = vrot.lane.b32.xlu1 %v21472_v58, %s16855_s28 }
 0xd97   : > { %11942 = vmatprep.subr.bf16.mxu1 %v11923_v24 }
 0xd98   : > { %11812 = vrot.lane.b32.xlu0 %v21475_v57, %s16855_s28  ;;  %11943 = vmatpush1.bf16.msra.mxu1 %v11922_v30 }
 0xd9a   : > { %11854 = vrot.lane.b32.xlu1 %v21440_v40, %s16856_s24 }
 0xd9b   : > { %14589 = vmatmul.mubr.msk.bf16.vlgmr.msra.gmra.mrb[172].mxu1 %vm1428_vm0, %v16764_v38 }
 0xd9c   : > { %11856 = vrot.lane.b32.xlu0 %v21448_v9, %s16856_s24  ;;  %11982 = vmatprep.mubr.bf16.mxu1 %v22213_v61 }
 0xd9e   : > { %11858 = vrot.lane.b32.xlu1 %v21443_v36, %s16856_s24 }
 0xda0   : > { %11860 = vrot.lane.b32.xlu0 %v21451_v3, %s16856_s24 }
 0xda2   : > { %11862 = vrot.lane.b32.xlu1 %v21462_v13, %s16856_s24 }
 0xda3   : > { %14590 = vmatmul.mubr.msk.bf16.gmra.mrb[176].mxu1 %vm1428_vm0, %v16765_v48 }
 0xda4   : > { %11864 = vrot.lane.b32.xlu0 %v21472_v58, %s16856_s24  ;;  %12041 = vmatprep.mubr.bf16.mxu1 %v22213_v61 }
 0xda6   : > { %11866 = vrot.lane.b32.xlu1 %v21467_v10, %s16856_s24 }
 0xda8   : > { %11868 = vrot.lane.b32.xlu0 %v21475_v57, %s16856_s24 }
 0xdaa   : > { %12145 = vperm.xlu1 %16026, %v14583_v4  }
 0xdac   : > { %12150 = vperm.xlu0 %16025, %v14584_v27   ;;  %v16768_v27 = vld [vmem:[%s22108_s11 + $0x80] sm:$0xff]  }
 0xdae   : > { %12155 = vperm.xlu1 %16026, %v14585_v14   ;;  %v16769_v14 = vld [vmem:[%s22108_s11 + $0x88] sm:$0xff]  }
 0xdb0   : > { %12160 = vperm.xlu0 %16025, %v14586_v18  }
 0xdfc   : > { %v11823_v12 = vpop.permute.xlu1 %11822 }
 0xdfe   : > { %v11825_v52 = vpop.permute.xlu0 %11824 }
 0xe00   : > { %v11807_v23 = vpop.permute.xlu1 %11806 }
 0xe01   : > { %v11842_v33 = vsel %vm896_vm2, %v11807_v23, %v11823_v12  ;;  %v11830_v8 = vsel %vm896_vm2, %v11823_v12, %v11807_v23 }
 0xe02   : > { %v11809_v2 = vpop.permute.xlu0 %11808  ;;  %v11846_v19 = vmul.f32 %v22269_v62, %v11842_v33 }
 0xe03   : > { %v11831_v43 = vsel %vm896_vm2, %v11825_v52, %v11809_v2  ;;  %v11843_v32 = vsel %vm896_vm2, %v11809_v2, %v11825_v52 }
 0xe04   : > { %v11848_v49 = vmul.f32 %v22269_v62, %v11843_v32  ;;  %v11917_v31 = vpack.c.bf16 %v11831_v43, %v11830_v8  ;;  %v11827_v1 = vpop.permute.xlu1 %11826 }
 0xe06   : > { %v11916_v29 = vpack.c.bf16 %v11848_v49, %v11846_v19  ;;  %v11829_v6 = vpop.permute.xlu0 %11828  ;;  %12009 = vmatprep.subr.bf16.mxu1 %v11917_v31 }
 0xe08   : > { %v11811_v20 = vpop.permute.xlu1 %11810  ;;  %12010 = vmatpush1.bf16.msra.mxu1 %v11916_v29 }
 0xe09   : > { %v11844_v5 = vsel %vm896_vm2, %v11811_v20, %v11827_v1  ;;  %v11832_v0 = vsel %vm896_vm2, %v11827_v1, %v11811_v20 }
 0xe0a   : > { %v11813_v41 = vpop.permute.xlu0 %11812  ;;  %v11850_v34 = vmul.f32 %v22269_v62, %v11844_v5 }
 0xe0b   : > { %v11833_v56 = vsel %vm896_vm2, %v11829_v6, %v11813_v41  ;;  %v11845_v50 = vsel %vm896_vm2, %v11813_v41, %v11829_v6 }
 0xe0c   : > { %v11852_v47 = vmul.f32 %v22269_v62, %v11845_v50  ;;  %v11919_v35 = vpack.c.bf16 %v11833_v56, %v11832_v0  ;;  %v11855_v37 = vpop.permute.xlu1 %11854 }
 0xe0e   : > { %v11918_v53 = vpack.c.bf16 %v11852_v47, %v11850_v34  ;;  %v11857_v28 = vpop.permute.xlu0 %11856  ;;  %12011 = vmatprep.subr.bf16.mxu1 %v11919_v35 }
 0xe0f   : > { %v11886_v51 = vsel %vm1217_vm3, %v11857_v28, %v11855_v37  ;;  %v11870_v22 = vsel %vm1217_vm3, %v11855_v37, %v11857_v28 }
 0xe10   : > { %v11859_v16 = vpop.permute.xlu1 %11858  ;;  %12012 = vmatpush1.bf16.msra.mxu1 %v11918_v53  ;;  %v11891_v25 = vmul.f32 %v21162_v26, %v11886_v51 }
 0xe12   : > { %v11861_v21 = vpop.permute.xlu0 %11860 }
 0xe13   : > { %v11887_v63 = vsel %vm1217_vm3, %v11861_v21, %v11859_v16  ;;  %14593 = vmatmul.mubr.msk.bf16.vlgmr.msra.gmra.mrb[172].mxu1 %vm1428_vm0, %v16766_v44  ;;  %v11871_v17 = vsel %vm1217_vm3, %v11859_v16, %v11861_v21 }
 0xe14   : > { %v11893_v11 = vmul.f32 %v21162_v26, %v11887_v63  ;;  %v11863_v54 = vpop.permute.xlu1 %11862  ;;  %12051 = vmatprep.mubr.bf16.mxu1 %v22213_v61  ;;  %v12062_v60 = vpack.c.bf16 %v11871_v17, %v11870_v22  ;;  %v14613_v22 = vld [vmem:[%s22109_s12 + $0x70] sm:$0xff] }
 0xe16   : > { %v11865_v39 = vpop.permute.xlu0 %11864  ;;  %v12063_v46 = vpack.c.bf16 %v11893_v11, %v11891_v25  ;;  %v14611_v11 = vld [vmem:[%s22109_s12 + $0x60] sm:$0xff] }
 0xe17   : > { %v11888_v59 = vsel %vm1217_vm3, %v11865_v39, %v11863_v54  ;;  %v11872_v38 = vsel %vm1217_vm3, %v11863_v54, %v11865_v39  ;;  %v14612_v54 = vld [vmem:[%s22109_s12 + $0x68] sm:$0xff]  ;;  %v14614_v39 = vld [vmem:[%s22109_s12 + $0x78] sm:$0xff] }
 0xe18   : > { %12082 = vmatprep.subr.bf16.mxu1 %v12063_v46  ;;  %v11867_v7 = vpop.permute.xlu1 %11866  ;;  %v11895_v55 = vmul.f32 %v21162_v26, %v11888_v59 }
 0xe19   : > { %12083 = vmatpush1.bf16.msra.mxu1 %v12062_v60 }
 0xe1a   : > { %v11869_v42 = vpop.permute.xlu0 %11868 }
 0xe1b   : > { %v11889_v15 = vsel %vm1217_vm3, %v11869_v42, %v11867_v7  ;;  %14594 = vmatmul.mubr.msk.bf16.gmra.mrb[176].mxu1 %vm1428_vm0, %v16767_v45  ;;  %v11873_v24 = vsel %vm1217_vm3, %v11867_v7, %v11869_v42 }
 0xe1c   : > { %v11897_v30 = vmul.f32 %v21162_v26, %v11889_v15  ;;  %12114 = vmatprep.mubr.bf16.mxu1 %v22213_v61  ;;  %v12064_v4 = vpack.c.bf16 %v11873_v24, %v11872_v38 }
 0xe1e   : > { %v12065_v48 = vpack.c.bf16 %v11897_v30, %v11895_v55 }
 0xe20   : > { %12084 = vmatprep.subr.bf16.mxu1 %v12065_v48 }
 0xe21   : > { %12085 = vmatpush1.bf16.msra.mxu1 %v12064_v4 }
 0xe24   : > { %14597 = vmatmul.mubr.msk.bf16.vlgmr.msra.gmra.mrb[172].mxu1 %vm1428_vm0, %v16768_v27 }
 0xe25   : > { %12124 = vmatprep.mubr.bf16.mxu1 %v22213_v61 }
 0xe29   : > { %v12146_v18 = vpop.permute.xlu1 %12145 }
 0xe2b   : > { %v12151_v33 = vpop.permute.xlu0 %12150 }
 0xe2c   : > { %14598 = vmatmul.mubr.msk.bf16.gmra.mrb[176].mxu1 %vm1428_vm0, %v16769_v14 }
 0xe2d   : > { %12357 = vmatprep.mubr.bf16.mxu1 %v22213_v61  ;;  %v12156_v5 = vpop.permute.xlu1 %12155 }
 0xe2f   : > { %v12161_v34 = vpop.permute.xlu0 %12160 }
 0xef7   : > { %v12116_v12 = vpop.f32.mrb[172].mxu1 }
 0xef8   : > { %v12163_v52 = vadd.f32 %v12146_v18, %v12116_v12  ;;  %v12118_v23 = vpop.f32.mrb[173].mxu1 }
 0xef9   : > { %v12164_v2 = vadd.f32 %v12146_v18, %v12118_v23  ;;  %v12120_v8 = vpop.f32.mrb[174].mxu1 }
 0xefa   : > { %v12171_v43 = vmax.f32 %v12163_v52, 0.0  ;;  %v12165_v32 = vadd.f32 %v12151_v33, %v12120_v8  ;;  %v12122_v19 = vpop.f32.mrb[175].mxu1 }
 0xefb   : > { %v12172_v49 = vmax.f32 %v12164_v2, 0.0  ;;  %v12166_v31 = vadd.f32 %v12151_v33, %v12122_v19 }
 0xefc   : > { %v21570_v1 = vadd.f32 %v12171_v43, %v21440_v40  ;;  %v12173_v29 = vmax.f32 %v12165_v32, 0.0 }
 0xefd   : > { %v12174_v6 = vmax.f32 %v12166_v31, 0.0  ;;  %v21578_v41 = vadd.f32 %v12172_v49, %v21448_v9  ;;  %v16772_v31 = vld [vmem:[%s22108_s11 + $0x90] sm:$0xff]  }
 0xefe   : > { %v21573_v20 = vadd.f32 %v12173_v29, %v21443_v36  ;;  %12207 = vrot.lane.b32.xlu1 %v21570_v1, %s16855_s28 }
 0xeff   : > { %v21581_v0 = vadd.f32 %v12174_v6, %v21451_v3  ;;  %v12126_v56 = vpop.f32.mrb[176].mxu1 }
 0xf00   : > { %v12167_v50 = vadd.f32 %v12156_v5, %v12126_v56  ;;  %12209 = vrot.lane.b32.xlu0 %v21573_v20, %s16855_s28  ;;  %v12128_v40 = vpop.f32.mrb[177].mxu1  ;;  %v12305_v3 = vpack.c.bf16 %v21573_v20, %v21570_v1 }
 0xf01   : > { %v12168_v47 = vadd.f32 %v12156_v5, %v12128_v40  ;;  %v12130_v36 = vpop.f32.mrb[178].mxu1  ;;  %v12306_v35 = vpack.c.bf16 %v21581_v0, %v21578_v41 }
 0xf02   : > { %v12175_v37 = vmax.f32 %v12167_v50, 0.0  ;;  %v12169_v53 = vadd.f32 %v12161_v34, %v12130_v36  ;;  %12191 = vrot.lane.b32.xlu1 %v21578_v41, %s16855_s28  ;;  %v12132_v9 = vpop.f32.mrb[179].mxu1 }
 0xf03   : > { %v12176_v28 = vmax.f32 %v12168_v47, 0.0  ;;  %v12170_v44 = vadd.f32 %v12161_v34, %v12132_v9  ;;  %12325 = vmatprep.subr.bf16.mxu1 %v12306_v35  ;;  %v16773_v9 = vld [vmem:[%s22108_s11 + $0x98] sm:$0xff]  }
 0xf04   : > { %v21592_v16 = vadd.f32 %v12175_v37, %v21462_v13  ;;  %v12177_v51 = vmax.f32 %v12169_v53, 0.0  ;;  %12193 = vrot.lane.b32.xlu0 %v21581_v0, %s16855_s28  ;;  %12326 = vmatpush1.bf16.msra.mxu1 %v12305_v3 }
 0xf05   : > { %v12178_v21 = vmax.f32 %v12170_v44, 0.0  ;;  %v21602_v25 = vadd.f32 %v12176_v28, %v21472_v58  ;;  %v16770_v58 = vld [vmem:[%s22108_s11 + $0xa0] sm:$0xff]  }
 0xf06   : > { %v21597_v63 = vadd.f32 %v12177_v51, %v21467_v10  ;;  %12211 = vrot.lane.b32.xlu1 %v21592_v16, %s16855_s28 }
 0xf07   : > { %v21605_v17 = vadd.f32 %v12178_v21, %v21475_v57  ;;  %v16771_v57 = vld [vmem:[%s22108_s11 + $0xa8] sm:$0xff]  }
 0xf08   : > { %12213 = vrot.lane.b32.xlu0 %v21597_v63, %s16855_s28  ;;  %v12307_v10 = vpack.c.bf16 %v21597_v63, %v21592_v16 }
 0xf09   : > { %v12308_v13 = vpack.c.bf16 %v21605_v17, %v21602_v25 }
 0xf0a   : > { %12195 = vrot.lane.b32.xlu1 %v21602_v25, %s16855_s28 }
 0xf0b   : > { %12327 = vmatprep.subr.bf16.mxu1 %v12308_v13 }
 0xf0c   : > { %12197 = vrot.lane.b32.xlu0 %v21605_v17, %s16855_s28  ;;  %12328 = vmatpush1.bf16.msra.mxu1 %v12307_v10 }
 0xf0e   : > { %12239 = vrot.lane.b32.xlu1 %v21570_v1, %s16856_s24 }
 0xf0f   : > { %14617 = vmatmul.mubr.msk.bf16.vlgmr.msra.gmra.mrb[180].mxu1 %vm1428_vm0, %v16770_v58 }
 0xf10   : > { %12241 = vrot.lane.b32.xlu0 %v21578_v41, %s16856_s24  ;;  %12367 = vmatprep.mubr.bf16.mxu1 %v22213_v61 }
 0xf12   : > { %12243 = vrot.lane.b32.xlu1 %v21573_v20, %s16856_s24 }
 0xf14   : > { %12245 = vrot.lane.b32.xlu0 %v21581_v0, %s16856_s24 }
 0xf16   : > { %12247 = vrot.lane.b32.xlu1 %v21592_v16, %s16856_s24 }
 0xf17   : > { %14618 = vmatmul.mubr.msk.bf16.gmra.mrb[184].mxu1 %vm1428_vm0, %v16771_v57 }
 0xf18   : > { %12249 = vrot.lane.b32.xlu0 %v21602_v25, %s16856_s24  ;;  %12426 = vmatprep.mubr.bf16.mxu1 %v22213_v61 }
 0xf1a   : > { %12251 = vrot.lane.b32.xlu1 %v21597_v63, %s16856_s24 }
 0xf1c   : > { %12253 = vrot.lane.b32.xlu0 %v21605_v17, %s16856_s24 }
 0xf1e   : > { %12530 = vperm.xlu1 %16026, %v14611_v11  }
 0xf20   : > { %12535 = vperm.xlu0 %16025, %v14612_v54   ;;  %v16774_v54 = vld [vmem:[%s22108_s11 + $0xb0] sm:$0xff]  }
 0xf22   : > { %12540 = vperm.xlu1 %16026, %v14613_v22   ;;  %v16775_v22 = vld [vmem:[%s22108_s11 + $0xb8] sm:$0xff]  }
 0xf24   : > { %12545 = vperm.xlu0 %16025, %v14614_v39  }
 0xf70   : > { %v12208_v46 = vpop.permute.xlu1 %12207 }
 0xf72   : > { %v12210_v60 = vpop.permute.xlu0 %12209 }
 0xf74   : > { %v12192_v45 = vpop.permute.xlu1 %12191 }
 0xf75   : > { %v12227_v59 = vsel %vm896_vm2, %v12192_v45, %v12208_v46  ;;  %v12215_v42 = vsel %vm896_vm2, %v12208_v46, %v12192_v45 }
 0xf76   : > { %v12194_v7 = vpop.permute.xlu0 %12193  ;;  %v12231_v24 = vmul.f32 %v22269_v62, %v12227_v59 }
 0xf77   : > { %v12216_v15 = vsel %vm896_vm2, %v12210_v60, %v12194_v7  ;;  %v12228_v55 = vsel %vm896_vm2, %v12194_v7, %v12210_v60 }
 0xf78   : > { %v12233_v30 = vmul.f32 %v22269_v62, %v12228_v55  ;;  %v12302_v38 = vpack.c.bf16 %v12216_v15, %v12215_v42  ;;  %v12212_v48 = vpop.permute.xlu1 %12211 }
 0xf7a   : > { %v12301_v4 = vpack.c.bf16 %v12233_v30, %v12231_v24  ;;  %v12214_v27 = vpop.permute.xlu0 %12213  ;;  %12394 = vmatprep.subr.bf16.mxu1 %v12302_v38 }
 0xf7c   : > { %v12196_v14 = vpop.permute.xlu1 %12195  ;;  %12395 = vmatpush1.bf16.msra.mxu1 %v12301_v4 }
 0xf7d   : > { %v12229_v18 = vsel %vm896_vm2, %v12196_v14, %v12212_v48  ;;  %v12217_v52 = vsel %vm896_vm2, %v12212_v48, %v12196_v14 }
 0xf7e   : > { %v12198_v12 = vpop.permute.xlu0 %12197  ;;  %v12235_v2 = vmul.f32 %v22269_v62, %v12229_v18 }
 0xf7f   : > { %v12218_v23 = vsel %vm896_vm2, %v12214_v27, %v12198_v12  ;;  %v12230_v33 = vsel %vm896_vm2, %v12198_v12, %v12214_v27 }
 0xf80   : > { %v12237_v8 = vmul.f32 %v22269_v62, %v12230_v33  ;;  %v12304_v43 = vpack.c.bf16 %v12218_v23, %v12217_v52  ;;  %v12240_v32 = vpop.permute.xlu1 %12239 }
 0xf82   : > { %v12303_v19 = vpack.c.bf16 %v12237_v8, %v12235_v2  ;;  %v12242_v49 = vpop.permute.xlu0 %12241  ;;  %12396 = vmatprep.subr.bf16.mxu1 %v12304_v43 }
 0xf83   : > { %v12271_v6 = vsel %vm1217_vm3, %v12242_v49, %v12240_v32  ;;  %v12255_v36 = vsel %vm1217_vm3, %v12240_v32, %v12242_v49 }
 0xf84   : > { %v12244_v29 = vpop.permute.xlu1 %12243  ;;  %12397 = vmatpush1.bf16.msra.mxu1 %v12303_v19  ;;  %v12276_v50 = vmul.f32 %v21162_v26, %v12271_v6 }
 0xf86   : > { %v12246_v5 = vpop.permute.xlu0 %12245 }
 0xf87   : > { %v12272_v56 = vsel %vm1217_vm3, %v12246_v5, %v12244_v29  ;;  %14621 = vmatmul.mubr.msk.bf16.vlgmr.msra.gmra.mrb[180].mxu1 %vm1428_vm0, %v16772_v31  ;;  %v12256_v40 = vsel %vm1217_vm3, %v12244_v29, %v12246_v5 }
 0xf88   : > { %v12278_v34 = vmul.f32 %v21162_v26, %v12272_v56  ;;  %v12248_v47 = vpop.permute.xlu1 %12247  ;;  %12436 = vmatprep.mubr.bf16.mxu1 %v22213_v61  ;;  %v12447_v53 = vpack.c.bf16 %v12256_v40, %v12255_v36  ;;  %v14641_v36 = vld [vmem:[%s22109_s12 + $0x90] sm:$0xff] }
 0xf8a   : > { %v12250_v35 = vpop.permute.xlu0 %12249  ;;  %v12448_v37 = vpack.c.bf16 %v12278_v34, %v12276_v50  ;;  %v14639_v34 = vld [vmem:[%s22109_s12 + $0x80] sm:$0xff] }
 0xf8b   : > { %v12273_v3 = vsel %vm1217_vm3, %v12250_v35, %v12248_v47  ;;  %v12257_v58 = vsel %vm1217_vm3, %v12248_v47, %v12250_v35  ;;  %v14640_v47 = vld [vmem:[%s22109_s12 + $0x88] sm:$0xff]  ;;  %v14642_v35 = vld [vmem:[%s22109_s12 + $0x98] sm:$0xff] }
 0xf8c   : > { %12467 = vmatprep.subr.bf16.mxu1 %v12448_v37  ;;  %v12252_v28 = vpop.permute.xlu1 %12251  ;;  %v12280_v21 = vmul.f32 %v21162_v26, %v12273_v3  ;;  %v13825_v37 = vld [vmem:[%s22112_s15] sm:$0xff]  ;;  %v13828_v3 = vld [vmem:[%s22112_s15 + $0x18] sm:$0xff] }
 0xf8d   : > { %12468 = vmatpush1.bf16.msra.mxu1 %v12447_v53  ;;  %v13826_v53 = vld [vmem:[%s22112_s15 + $0x8] sm:$0xff] }
 0xf8e   : > { %v12254_v44 = vpop.permute.xlu0 %12253 }
 0xf8f   : > { %v12274_v51 = vsel %vm1217_vm3, %v12254_v44, %v12252_v28  ;;  %14622 = vmatmul.mubr.msk.bf16.gmra.mrb[184].mxu1 %vm1428_vm0, %v16773_v9  ;;  %v12258_v13 = vsel %vm1217_vm3, %v12252_v28, %v12254_v44  ;;  %v13827_v9 = vld [vmem:[%s22112_s15 + $0x10] sm:$0xff]  ;;  %v13829_v28 = vld [vmem:[%s22112_s15 + $0x20] sm:$0xff]  ;;  %v13830_v44 = vld [vmem:[%s22112_s15 + $0x28] sm:$0xff] }
 0xf90   : > { %v12282_v10 = vmul.f32 %v21162_v26, %v12274_v51  ;;  %12499 = vmatprep.mubr.bf16.mxu1 %v22213_v61  ;;  %v12449_v11 = vpack.c.bf16 %v12258_v13, %v12257_v58  ;;  %v13831_v51 = vld [vmem:[%s22112_s15 + $0x30] sm:$0xff] }
 0xf92   : > { %v12450_v57 = vpack.c.bf16 %v12282_v10, %v12280_v21  ;;  %v13832_v21 = vld [vmem:[%s22112_s15 + $0x38] sm:$0xff] }
 0xf94   : > { %12469 = vmatprep.subr.bf16.mxu1 %v12450_v57 }
 0xf95   : > { %12470 = vmatpush1.bf16.msra.mxu1 %v12449_v11 }
 0xf98   : > { %14625 = vmatmul.mubr.msk.bf16.vlgmr.msra.gmra.mrb[180].mxu1 %vm1428_vm0, %v16774_v54 }
 0xf99   : > { %12509 = vmatprep.mubr.bf16.mxu1 %v22213_v61 }
 0xf9d   : > { %v12531_v39 = vpop.permute.xlu1 %12530 }
 0xf9f   : > { %v12536_v59 = vpop.permute.xlu0 %12535 }
 0xfa0   : > { %14626 = vmatmul.mubr.msk.bf16.gmra.mrb[184].mxu1 %vm1428_vm0, %v16775_v22 }
 0xfa1   : > { %12742 = vmatprep.mubr.bf16.mxu1 %v22213_v61  ;;  %v12541_v18 = vpop.permute.xlu1 %12540 }
 0xfa3   : > { %v12546_v2 = vpop.permute.xlu0 %12545 }
0x106b   : > { %v12501_v46 = vpop.f32.mrb[180].mxu1 }
0x106c   : > { %v12548_v60 = vadd.f32 %v12531_v39, %v12501_v46  ;;  %v12503_v45 = vpop.f32.mrb[181].mxu1 }
0x106d   : > { %v12549_v7 = vadd.f32 %v12531_v39, %v12503_v45  ;;  %v12505_v42 = vpop.f32.mrb[182].mxu1 }
0x106e   : > { %v12556_v15 = vmax.f32 %v12548_v60, 0.0  ;;  %v12550_v55 = vadd.f32 %v12536_v59, %v12505_v42  ;;  %v12507_v24 = vpop.f32.mrb[183].mxu1 }
0x106f   : > { %v12557_v30 = vmax.f32 %v12549_v7, 0.0  ;;  %v12551_v38 = vadd.f32 %v12536_v59, %v12507_v24 }
0x1070   : > { %v21700_v48 = vadd.f32 %v12556_v15, %v21570_v1  ;;  %v12558_v4 = vmax.f32 %v12550_v55, 0.0 }
0x1071   : > { %v12559_v27 = vmax.f32 %v12551_v38, 0.0  ;;  %v21708_v12 = vadd.f32 %v12557_v30, %v21578_v41 }
0x1072   : > { %v21703_v14 = vadd.f32 %v12558_v4, %v21573_v20  ;;  %12592 = vrot.lane.b32.xlu1 %v21700_v48, %s16855_s28 }
0x1073   : > { %v21711_v52 = vadd.f32 %v12559_v27, %v21581_v0  ;;  %v12511_v23 = vpop.f32.mrb[184].mxu1 }
0x1074   : > { %v12552_v33 = vadd.f32 %v12541_v18, %v12511_v23  ;;  %12594 = vrot.lane.b32.xlu0 %v21703_v14, %s16855_s28  ;;  %v12513_v1 = vpop.f32.mrb[185].mxu1  ;;  %v12690_v0 = vpack.c.bf16 %v21703_v14, %v21700_v48 }
0x1075   : > { %v12553_v8 = vadd.f32 %v12541_v18, %v12513_v1  ;;  %v12515_v20 = vpop.f32.mrb[186].mxu1  ;;  %v12691_v43 = vpack.c.bf16 %v21711_v52, %v21708_v12 }
0x1076   : > { %v12560_v32 = vmax.f32 %v12552_v33, 0.0  ;;  %v12554_v19 = vadd.f32 %v12546_v2, %v12515_v20  ;;  %12576 = vrot.lane.b32.xlu1 %v21708_v12, %s16855_s28  ;;  %v12517_v41 = vpop.f32.mrb[187].mxu1 }
0x1077   : > { %v12561_v49 = vmax.f32 %v12553_v8, 0.0  ;;  %v12555_v31 = vadd.f32 %v12546_v2, %v12517_v41  ;;  %12710 = vmatprep.subr.bf16.mxu1 %v12691_v43  ;;  %v16778_v8 = vld [vmem:[%s22108_s11 + $0xc0] sm:$0xff]  }
0x1078   : > { %v21722_v29 = vadd.f32 %v12560_v32, %v21592_v16  ;;  %v12562_v6 = vmax.f32 %v12554_v19, 0.0  ;;  %12578 = vrot.lane.b32.xlu0 %v21711_v52, %s16855_s28  ;;  %12711 = vmatpush1.bf16.msra.mxu1 %v12690_v0 }
0x1079   : > { %v12563_v5 = vmax.f32 %v12555_v31, 0.0  ;;  %v21732_v50 = vadd.f32 %v12561_v49, %v21602_v25  ;;  %v16776_v25 = vld [vmem:[%s22108_s11 + $0xd0] sm:$0xff]  }
0x107a   : > { %v21727_v56 = vadd.f32 %v12562_v6, %v21597_v63  ;;  %12596 = vrot.lane.b32.xlu1 %v21722_v29, %s16855_s28 }
0x107b   : > { %v21735_v40 = vadd.f32 %v12563_v5, %v21605_v17  ;;  %v16777_v17 = vld [vmem:[%s22108_s11 + $0xd8] sm:$0xff]  }
0x107c   : > { %12598 = vrot.lane.b32.xlu0 %v21727_v56, %s16855_s28  ;;  %v12692_v63 = vpack.c.bf16 %v21727_v56, %v21722_v29 }
0x107d   : > { %v12693_v16 = vpack.c.bf16 %v21735_v40, %v21732_v50 }
0x107e   : > { %12580 = vrot.lane.b32.xlu1 %v21732_v50, %s16855_s28 }
0x107f   : > { %12712 = vmatprep.subr.bf16.mxu1 %v12693_v16 }
0x1080   : > { %12582 = vrot.lane.b32.xlu0 %v21735_v40, %s16855_s28  ;;  %12713 = vmatpush1.bf16.msra.mxu1 %v12692_v63  ;;  %v16779_v63 = vld [vmem:[%s22108_s11 + $0xc8] sm:$0xff]  }
0x1082   : > { %12624 = vrot.lane.b32.xlu1 %v21700_v48, %s16856_s24 }
0x1083   : > { %14645 = vmatmul.mubr.msk.bf16.vlgmr.msra.gmra.mrb[188].mxu1 %vm1428_vm0, %v16776_v25 }
0x1084   : > { %12626 = vrot.lane.b32.xlu0 %v21708_v12, %s16856_s24  ;;  %12752 = vmatprep.mubr.bf16.mxu1 %v22213_v61 }
0x1086   : > { %12628 = vrot.lane.b32.xlu1 %v21703_v14, %s16856_s24 }
0x1088   : > { %12630 = vrot.lane.b32.xlu0 %v21711_v52, %s16856_s24 }
0x108a   : > { %12632 = vrot.lane.b32.xlu1 %v21722_v29, %s16856_s24 }
0x108b   : > { %14646 = vmatmul.mubr.msk.bf16.gmra.mrb[192].mxu1 %vm1428_vm0, %v16777_v17 }
0x108c   : > { %12634 = vrot.lane.b32.xlu0 %v21732_v50, %s16856_s24  ;;  %12811 = vmatprep.mubr.bf16.mxu1 %v22213_v61 }
0x108e   : > { %12636 = vrot.lane.b32.xlu1 %v21727_v56, %s16856_s24 }
0x1090   : > { %12638 = vrot.lane.b32.xlu0 %v21735_v40, %s16856_s24 }
0x1092   : > { %12915 = vperm.xlu1 %16026, %v14639_v34  }
0x1094   : > { %12920 = vperm.xlu0 %16025, %v14640_v47  }
0x1096   : > { %12925 = vperm.xlu1 %16026, %v14641_v36  }
0x1098   : > { %12930 = vperm.xlu0 %16025, %v14642_v35  }
0x109a   : > { %13835 = vperm.xlu1 %16026, %v13825_v37  }
0x109c   : > { %13840 = vperm.xlu0 %16025, %v13826_v53  }
0x109e   : > { %13845 = vperm.xlu1 %16026, %v13827_v9  }
0x10a0   : > { %13850 = vperm.xlu0 %16025, %v13828_v3   ;;  %v16782_v3 = vld [vmem:[%s22110_s13 + $0x40] sm:$0xff]  }
0x10a2   : > { %13855 = vperm.xlu1 %16026, %v13829_v28  }
0x10a4   : > { %13860 = vperm.xlu0 %16025, %v13830_v44   ;;  %v16780_v44 = vld [vmem:[%s22108_s11 + $0xe0] sm:$0xff]  }
0x10a6   : > { %13865 = vperm.xlu1 %16026, %v13831_v51   ;;  %v16784_v51 = vld [vmem:[%s22110_s13 + $0x48] sm:$0xff]  }
0x10a8   : > { %13870 = vperm.xlu0 %16025, %v13832_v21   ;;  %v16785_v21 = vld [vmem:[%s22110_s13 + $0x8] sm:$0xff]  }
0x10e4   : > { %v12593_v13 = vpop.permute.xlu1 %12592 }
0x10e6   : > { %v12595_v10 = vpop.permute.xlu0 %12594 }
0x10e8   : > { %v12577_v58 = vpop.permute.xlu1 %12576 }
0x10e9   : > { %v12612_v57 = vsel %vm896_vm2, %v12577_v58, %v12593_v13  ;;  %v12600_v54 = vsel %vm896_vm2, %v12593_v13, %v12577_v58  ;;  %v16786_v13 = vld [vmem:[%s22110_s13 + $0x50] sm:$0xff]  }
0x10ea   : > { %v12579_v11 = vpop.permute.xlu0 %12578  ;;  %v12616_v46 = vmul.f32 %v22269_v62, %v12612_v57  ;;  %v16787_v58 = vld [vmem:[%s22110_s13 + $0x10] sm:$0xff]   ;;  %v16789_v57 = vld [vmem:[%s22110_s13 + $0x18] sm:$0xff]  }
0x10eb   : > { %v12601_v22 = vsel %vm896_vm2, %v12595_v10, %v12579_v11  ;;  %v12613_v39 = vsel %vm896_vm2, %v12579_v11, %v12595_v10  ;;  %v16781_v10 = vld [vmem:[%s22108_s11 + $0xe8] sm:$0xff]   ;;  %v16790_v11 = vld [vmem:[%s22110_s13 + $0x60] sm:$0xff]  }
0x10ec   : > { %v12618_v60 = vmul.f32 %v22269_v62, %v12613_v39  ;;  %v12687_v45 = vpack.c.bf16 %v12601_v22, %v12600_v54  ;;  %v12597_v59 = vpop.permute.xlu1 %12596  ;;  %v16791_v54 = vld [vmem:[%s22110_s13 + $0x20] sm:$0xff]   ;;  %v16792_v22 = vld [vmem:[%s22110_s13 + $0x68] sm:$0xff]  }
0x10ed   : > { %v16793_v39 = vld [vmem:[%s22110_s13 + $0x28] sm:$0xff]  }
0x10ee   : > { %v12686_v7 = vpack.c.bf16 %v12618_v60, %v12616_v46  ;;  %v12599_v42 = vpop.permute.xlu0 %12598  ;;  %12779 = vmatprep.subr.bf16.mxu1 %v12687_v45  ;;  %v16794_v46 = vld [vmem:[%s22110_s13 + $0x70] sm:$0xff]   ;;  %v16796_v45 = vld [vmem:[%s22110_s13 + $0x78] sm:$0xff]  }
0x10ef   : > { %v16795_v60 = vld [vmem:[%s22110_s13 + $0x30] sm:$0xff]  }
0x10f0   : > { %v12581_v15 = vpop.permute.xlu1 %12580  ;;  %12780 = vmatpush1.bf16.msra.mxu1 %v12686_v7  ;;  %v16798_v7 = vld [vmem:[%s22110_s13 + $0xc0] sm:$0xff]  }
0x10f1   : > { %v12614_v55 = vsel %vm896_vm2, %v12581_v15, %v12597_v59  ;;  %v12602_v30 = vsel %vm896_vm2, %v12597_v59, %v12581_v15  ;;  %v16797_v59 = vld [vmem:[%s22110_s13 + $0x38] sm:$0xff]  }
0x10f2   : > { %v12583_v24 = vpop.permute.xlu0 %12582  ;;  %v12620_v27 = vmul.f32 %v22269_v62, %v12614_v55 }
0x10f3   : > { %v12603_v38 = vsel %vm896_vm2, %v12599_v42, %v12583_v24  ;;  %v12615_v4 = vsel %vm896_vm2, %v12583_v24, %v12599_v42 }
0x10f4   : > { %v12622_v18 = vmul.f32 %v22269_v62, %v12615_v4  ;;  %v12689_v23 = vpack.c.bf16 %v12603_v38, %v12602_v30  ;;  %v12625_v33 = vpop.permute.xlu1 %12624 }
0x10f6   : > { %v12688_v1 = vpack.c.bf16 %v12622_v18, %v12620_v27  ;;  %v12627_v2 = vpop.permute.xlu0 %12626  ;;  %12781 = vmatprep.subr.bf16.mxu1 %v12689_v23 }
0x10f7   : > { %v12656_v43 = vsel %vm1217_vm3, %v12627_v2, %v12625_v33  ;;  %v12640_v31 = vsel %vm1217_vm3, %v12625_v33, %v12627_v2 }
0x10f8   : > { %v12629_v20 = vpop.permute.xlu1 %12628  ;;  %12782 = vmatpush1.bf16.msra.mxu1 %v12688_v1  ;;  %v12661_v62 = vmul.f32 %v21162_v26, %v12656_v43 }
0x10fa   : > { %v12631_v32 = vpop.permute.xlu0 %12630 }
0x10fb   : > { %v12657_v19 = vsel %vm1217_vm3, %v12631_v32, %v12629_v20  ;;  %14649 = vmatmul.mubr.msk.bf16.vlgmr.msra.gmra.mrb[188].mxu1 %vm1428_vm0, %v16778_v8  ;;  %v12641_v41 = vsel %vm1217_vm3, %v12629_v20, %v12631_v32 }
0x10fc   : > { %v12663_v0 = vmul.f32 %v21162_v26, %v12657_v19  ;;  %v12633_v49 = vpop.permute.xlu1 %12632  ;;  %12821 = vmatprep.mubr.bf16.mxu1 %v22213_v61  ;;  %v12832_v16 = vpack.c.bf16 %v12641_v41, %v12640_v31 }
0x10fe   : > { %v12635_v6 = vpop.permute.xlu0 %12634  ;;  %v12833_v5 = vpack.c.bf16 %v12663_v0, %v12661_v62 }
0x10ff   : > { %v12658_v25 = vsel %vm1217_vm3, %v12635_v6, %v12633_v49  ;;  %v12642_v53 = vsel %vm1217_vm3, %v12633_v49, %v12635_v6 }
0x1100   : > { %12852 = vmatprep.subr.bf16.mxu1 %v12833_v5  ;;  %v12637_v17 = vpop.permute.xlu1 %12636  ;;  %v12665_v36 = vmul.f32 %v21162_v26, %v12658_v25 }
0x1101   : > { %12853 = vmatpush1.bf16.msra.mxu1 %v12832_v16 }
0x1102   : > { %v12639_v34 = vpop.permute.xlu0 %12638 }
0x1103   : > { %v12659_v47 = vsel %vm1217_vm3, %v12639_v34, %v12637_v17  ;;  %14650 = vmatmul.mubr.msk.bf16.gmra.mrb[192].mxu1 %vm1428_vm0, %v16779_v63  ;;  %v12643_v35 = vsel %vm1217_vm3, %v12637_v17, %v12639_v34 }
0x1104   : > { %v12667_v37 = vmul.f32 %v21162_v26, %v12659_v47  ;;  %12884 = vmatprep.mubr.bf16.mxu1 %v22213_v61  ;;  %v12834_v28 = vpack.c.bf16 %v12643_v35, %v12642_v53  ;;  %v16783_v26 = vld [vmem:[%s22110_s13] sm:$0xff]   ;;  %v16801_v35 = vld [vmem:[%s22110_s13 + $0x88] sm:$0xff]  }
0x1106   : > { %v12835_v9 = vpack.c.bf16 %v12667_v37, %v12665_v36 }
0x1108   : > { %12854 = vmatprep.subr.bf16.mxu1 %v12835_v9  ;;  %v16802_v9 = vld [vmem:[%s22110_s13 + $0xd0] sm:$0xff]  }
0x1109   : > { %12855 = vmatpush1.bf16.msra.mxu1 %v12834_v28 }
0x110a   : > { %14811 = vmatprep.subr.bf16.mxu1 %v16782_v3 }
0x110c   : > { %14653 = vmatmul.mubr.msk.bf16.vlgmr.msra.gmra.mrb[188].mxu1 %vm1428_vm0, %v16780_v44 }
0x110d   : > { %12894 = vmatprep.mubr.bf16.mxu1 %v22213_v61  ;;  %14812 = vmatpush3.bf16.msra.mxu1 %v16783_v26  ;;  %v16788_v61 = vld [vmem:[%s22110_s13 + $0x58] sm:$0xff]  }
0x110e   : > { %14813 = vmatprep.subr.bf16.mxu1 %v16784_v51  ;;  %v16807_v51 = vld [vmem:[%s22110_s13 + $0xa0] sm:$0xff]  }
0x1111   : > { %14814 = vmatpush3.bf16.msra.mxu1 %v16785_v21  ;;  %v12916_v42 = vpop.permute.xlu1 %12915  ;;  %v16808_v21 = vld [vmem:[%s22110_s13 + $0xe8] sm:$0xff]  }
0x1112   : > { %14815 = vmatprep.subr.bf16.mxu1 %v16786_v13  ;;  %v16809_v13 = vld [vmem:[%s22110_s13 + $0xa8] sm:$0xff]  }
0x1113   : > { %v12921_v30 = vpop.permute.xlu0 %12920 }
0x1114   : > { %14654 = vmatmul.mubr.msk.bf16.gmra.mrb[192].mxu1 %vm1428_vm0, %v16781_v10  ;;  %v16810_v10 = vld [vmem:[%s22110_s13 + $0xf0] sm:$0xff]  }
0x1115   : > { %14816 = vmatpush3.bf16.msra.mxu1 %v16787_v58  ;;  %v12926_v32 = vpop.permute.xlu1 %12925  ;;  %v16811_v58 = vld [vmem:[%s22110_s13 + $0xb0] sm:$0xff]  }
0x1116   : > { %14817 = vmatprep.subr.bf16.mxu1 %v16788_v61  ;;  %v16812_v61 = vld [vmem:[%s22110_s13 + $0xf8] sm:$0xff]  }
0x1117   : > { %v12931_v6 = vpop.permute.xlu0 %12930 }
0x1119   : > { %14818 = vmatpush3.bf16.msra.mxu1 %v16789_v57  ;;  %v16813_v57 = vld [vmem:[%s22110_s13 + $0xb8] sm:$0xff]  }
0x111a   : > { %14819 = vmatprep.subr.bf16.mxu1 %v16790_v11  ;;  %v16814_v11 = vld [vmem:[%s22110_s13 + $0x140] sm:$0xff]  }
0x111d   : > { %14820 = vmatpush3.bf16.msra.mxu1 %v16791_v54  ;;  %v16815_v54 = vld [vmem:[%s22110_s13 + $0x100] sm:$0xff]  }
0x111e   : > { %14821 = vmatprep.subr.bf16.mxu1 %v16792_v22  ;;  %v16816_v22 = vld [vmem:[%s22110_s13 + $0x148] sm:$0xff]  }
0x1121   : > { %14822 = vmatpush3.bf16.msra.mxu1 %v16793_v39  ;;  %v16817_v39 = vld [vmem:[%s22110_s13 + $0x108] sm:$0xff]  }
0x1122   : > { %14823 = vmatprep.subr.bf16.mxu1 %v16794_v46  ;;  %v16818_v46 = vld [vmem:[%s22110_s13 + $0x150] sm:$0xff]  }
0x1125   : > { %14824 = vmatpush3.bf16.msra.mxu1 %v16795_v60  ;;  %v16819_v60 = vld [vmem:[%s22110_s13 + $0x110] sm:$0xff]  }
0x1126   : > { %14825 = vmatprep.subr.bf16.mxu1 %v16796_v45  ;;  %v16820_v45 = vld [vmem:[%s22110_s13 + $0x158] sm:$0xff]  }
0x1129   : > { %14826 = vmatpush3.bf16.msra.mxu1 %v16797_v59  ;;  %v16821_v59 = vld [vmem:[%s22110_s13 + $0x118] sm:$0xff]  }
0x112a   : > { %14839 = vmatprep.subr.bf16.mxu1 %v16798_v7  ;;  %v16822_v7 = vld [vmem:[%s22110_s13 + $0x160] sm:$0xff]  }
0x11df   : > { %v12886_v15 = vpop.f32.mrb[188].mxu1 }
0x11e0   : > { %v12933_v55 = vadd.f32 %v12916_v42, %v12886_v15  ;;  %v12888_v24 = vpop.f32.mrb[189].mxu1  ;;  %v16824_v15 = vld [vmem:[%s22110_s13 + $0x168] sm:$0xff]  }
0x11e1   : > { %v12934_v38 = vadd.f32 %v12916_v42, %v12888_v24  ;;  %v12890_v4 = vpop.f32.mrb[190].mxu1  ;;  %v16823_v42 = vld [vmem:[%s22110_s13 + $0x120] sm:$0xff]   ;;  %v16826_v24 = vld [vmem:[%s22110_s13 + $0x170] sm:$0xff]  }
0x11e2   : > { %v12941_v27 = vmax.f32 %v12933_v55, 0.0  ;;  %v12935_v18 = vadd.f32 %v12921_v30, %v12890_v4  ;;  %v12892_v23 = vpop.f32.mrb[191].mxu1  ;;  %v16825_v55 = vld [vmem:[%s22110_s13 + $0x128] sm:$0xff]   ;;  %v16829_v4 = vld [vmem:[%s22110_s13 + $0x138] sm:$0xff]  }
0x11e3   : > { %v12942_v33 = vmax.f32 %v12934_v38, 0.0  ;;  %v12936_v1 = vadd.f32 %v12921_v30, %v12892_v23  ;;  %v16827_v30 = vld [vmem:[%s22110_s13 + $0x130] sm:$0xff]   ;;  %v16828_v38 = vld [vmem:[%s22110_s13 + $0x178] sm:$0xff]  }
0x11e4   : > { %v12943_v2 = vmax.f32 %v12935_v18, 0.0  ;;  %v12949_v20 = vadd.f32 %v12941_v27, %v21700_v48  ;;  %v16799_v48 = vld [vmem:[%s22110_s13 + $0x80] sm:$0xff]  }
0x11e5   : > { %v12944_v8 = vmax.f32 %v12936_v1, 0.0  ;;  %v12950_v19 = vadd.f32 %v12942_v33, %v21708_v12  ;;  %v16800_v12 = vld [vmem:[%s22110_s13 + $0xc8] sm:$0xff]   ;;  %v16830_v27 = vld [vmem:[%s22111_s14 + $0x20] sm:$0xff]  }
0x11e6   : > { %v12951_v43 = vadd.f32 %v12943_v2, %v21703_v14 }
0x11e7   : > { %v12952_v62 = vadd.f32 %v12944_v8, %v21711_v52  ;;  %v12896_v41 = vpop.f32.mrb[192].mxu1 }
0x11e8   : > { %v21907_v0 = vpack.c.bf16 %v12951_v43, %v12949_v20  ;;  %v12937_v49 = vadd.f32 %v12926_v32, %v12896_v41  ;;  %v12898_v31 = vpop.f32.mrb[193].mxu1 }
0x11e9   : > { %v12938_v5 = vadd.f32 %v12926_v32, %v12898_v31  ;;  %v12900_v16 = vpop.f32.mrb[194].mxu1  ;;  %v21909_v63 = vpack.c.bf16 %v12952_v62, %v12950_v19 }
0x11ea   : > { %v12945_v14 = vmax.f32 %v12937_v49, 0.0  ;;  %v12939_v25 = vadd.f32 %v12931_v6, %v12900_v16  ;;  %v12902_v17 = vpop.f32.mrb[195].mxu1 }
0x11eb   : > { %v12946_v52 = vmax.f32 %v12938_v5, 0.0  ;;  %v12940_v34 = vadd.f32 %v12931_v6, %v12902_v17  ;;  %13121 = vmatprep.mubr.bf16.mxu1 %v21909_v63 }
0x11ec   : > { %v12947_v47 = vmax.f32 %v12939_v25, 0.0  ;;  %13122 = vmatmul.mubr.bf16.vlgmr.msra.gmra.mrb[196].mxu1 %v21907_v0  ;;  %v12953_v37 = vadd.f32 %v12945_v14, %v21722_v29  ;;  %v16803_v29 = vld [vmem:[%s22110_s13 + $0x90] sm:$0xff]  }
0x11ed   : > { %v12948_v36 = vmax.f32 %v12940_v34, 0.0  ;;  %14840 = vmatpush3.bf16.msra.mxu1 %v16799_v48  ;;  %v12954_v3 = vadd.f32 %v12946_v52, %v21732_v50  ;;  %v16805_v50 = vld [vmem:[%s22110_s13 + $0x98] sm:$0xff]  }
0x11ee   : > { %v12955_v53 = vadd.f32 %v12947_v47, %v21727_v56  ;;  %14841 = vmatprep.subr.bf16.mxu1 %v16800_v12  ;;  %v16804_v56 = vld [vmem:[%s22110_s13 + $0xd8] sm:$0xff]  }
0x11ef   : > { %v12956_v28 = vadd.f32 %v12948_v36, %v21735_v40  ;;  %v16806_v40 = vld [vmem:[%s22110_s13 + $0xe0] sm:$0xff]  }
0x11f0   : > { %v21929_v44 = vpack.c.bf16 %v12955_v53, %v12953_v37  ;;  %v16832_v37 = vld [vmem:[%s22111_s14 + $0x30] sm:$0xff]   ;;  %v16833_v53 = vld [vmem:[%s22111_s14 + $0x38] sm:$0xff]  }
0x11f1   : > { %14842 = vmatpush3.bf16.msra.mxu1 %v16801_v35  ;;  %v21931_v26 = vpack.c.bf16 %v12956_v28, %v12954_v3  ;;  %v16831_v35 = vld [vmem:[%s22111_s14 + $0x28] sm:$0xff]  }
0x11f2   : > { %14843 = vmatprep.subr.bf16.mxu1 %v16802_v9  ;;  %v16834_v9 = vld [vmem:[%s22111_s14] sm:$0xff]   ;;  %v16835_v28 = vld [vmem:[%s22111_s14 + $0x8] sm:$0xff]  }
0x11f3   : > { %13129 = vmatprep.mubr.bf16.mxu1 %v21931_v26 }
0x11f4   : > { %13130 = vmatmul.mubr.bf16.gmra.mrb[200].mxu1 %v21929_v44 }
0x11f5   : > { %14844 = vmatpush3.bf16.msra.mxu1 %v16803_v29  ;;  %13299 = vmatprep.mubr.bf16.mxu1 %v21909_v63 }
0x11f6   : > { %14845 = vmatprep.subr.bf16.mxu1 %v16804_v56 }
0x11f9   : > { %14846 = vmatpush3.bf16.msra.mxu1 %v16805_v50 }
0x11fa   : > { %14847 = vmatprep.subr.bf16.mxu1 %v16806_v40 }
0x11fd   : > { %14848 = vmatpush3.bf16.msra.mxu1 %v16807_v51 }
0x11fe   : > { %14849 = vmatprep.subr.bf16.mxu1 %v16808_v21 }
0x1201   : > { %14850 = vmatpush3.bf16.msra.mxu1 %v16809_v13  ;;  %v16837_v13 = vld [vmem:[%s22111_s14 + $0x18] sm:$0xff]  }
0x1202   : > { %14851 = vmatprep.subr.bf16.mxu1 %v16810_v10 }
0x1205   : > { %14852 = vmatpush3.bf16.msra.mxu1 %v16811_v58  ;;  %v16838_v58 = vld [vmem:[%s22111_s14 + $0x40] sm:$0xff]  }
0x1206   : > { %14853 = vmatprep.subr.bf16.mxu1 %v16812_v61 }
0x1209   : > { %14854 = vmatpush3.bf16.msra.mxu1 %v16813_v57 }
0x120a   : > { %14867 = vmatprep.subr.bf16.mxu1 %v16814_v11 }
0x120c   : > { %13300 = vmatmul.mubr.bf16.vlgmr.msra.gmra.mrb[204].mxu1 %v21907_v0 }
0x120d   : > { %13307 = vmatprep.mubr.bf16.mxu1 %v21931_v26  ;;  %14868 = vmatpush3.bf16.msra.mxu1 %v16815_v54 }
0x120e   : > { %14869 = vmatprep.subr.bf16.mxu1 %v16816_v22 }
0x1211   : > { %14870 = vmatpush3.bf16.msra.mxu1 %v16817_v39  ;;  %v16839_v39 = vld [vmem:[%s22111_s14 + $0x48] sm:$0xff]  }
0x1212   : > { %14871 = vmatprep.subr.bf16.mxu1 %v16818_v46  ;;  %v16840_v46 = vld [vmem:[%s22111_s14 + $0x50] sm:$0xff]  }
0x1214   : > { %13308 = vmatmul.mubr.bf16.gmra.mrb[208].mxu1 %v21929_v44 }
0x1215   : > { %14872 = vmatpush3.bf16.msra.mxu1 %v16819_v60  ;;  %13477 = vmatprep.mubr.bf16.mxu1 %v21909_v63  ;;  %v16841_v60 = vld [vmem:[%s22111_s14 + $0x58] sm:$0xff]  }
0x1216   : > { %14873 = vmatprep.subr.bf16.mxu1 %v16820_v45  ;;  %v13836_v45 = vpop.permute.xlu1 %13835 }
0x1219   : > { %14874 = vmatpush3.bf16.msra.mxu1 %v16821_v59  ;;  %v13841_v59 = vpop.permute.xlu0 %13840 }
0x121a   : > { %14875 = vmatprep.subr.bf16.mxu1 %v16822_v7  ;;  %v13846_v7 = vpop.permute.xlu1 %13845 }
0x121d   : > { %14876 = vmatpush3.bf16.msra.mxu1 %v16823_v42  ;;  %v13851_v42 = vpop.permute.xlu0 %13850 }
0x121e   : > { %14877 = vmatprep.subr.bf16.mxu1 %v16824_v15 }
0x1221   : > { %14878 = vmatpush3.bf16.msra.mxu1 %v16825_v55 }
0x1222   : > { %14879 = vmatprep.subr.bf16.mxu1 %v16826_v24 }
0x1225   : > { %14880 = vmatpush3.bf16.msra.mxu1 %v16827_v30  ;;  %v13856_v30 = vpop.permute.xlu1 %13855 }
0x1226   : > { %14881 = vmatprep.subr.bf16.mxu1 %v16828_v38 }
0x1229   : > { %14882 = vmatpush3.bf16.msra.mxu1 %v16829_v4 }
0x122c   : > { %13478 = vmatmul.mubr.bf16.vlgmr.msra.gmra.mrb[212].mxu1 %v21907_v0 }
0x122d   : > { %13485 = vmatprep.mubr.bf16.mxu1 %v21931_v26  ;;  %v16836_v26 = vld [vmem:[%s22111_s14 + $0x10] sm:$0xff]  }
0x1234   : > { %13486 = vmatmul.mubr.bf16.gmra.mrb[216].mxu1 %v21929_v44 }
0x1235   : > { %14917 = vmatprep.mubr.msk.bf16.mxu1 %vm1428_vm0, %v16830_v27 }
0x12bf   : > { %v14827_v18 = vpop.f32.mrb[196].mxu1 }
0x12c0   : > { %v14828_v23 = vpop.f32.mrb[197].mxu1 }
0x12c1   : > { %v14829_v33 = vadd.f32 %v14828_v23, %v14827_v18  ;;  %v14830_v1 = vpop.f32.mrb[198].mxu1 }
0x12c2   : > { %v14831_v2 = vpop.f32.mrb[199].mxu1 }
0x12c3   : > { %v14832_v8 = vadd.f32 %v14831_v2, %v14830_v1 }
0x12c5   : > { %v13520_v20 = vpack.c.bf16 %v14832_v8, %v14829_v33  ;;  %v13861_v33 = vpop.permute.xlu0 %13860 }
0x12c7   : > { %v14833_v43 = vpop.f32.mrb[200].mxu1 }
0x12c8   : > { %v14834_v32 = vpop.f32.mrb[201].mxu1 }
0x12c9   : > { %v14835_v19 = vadd.f32 %v14834_v32, %v14833_v43  ;;  %v14836_v62 = vpop.f32.mrb[202].mxu1  ;;  %v13866_v43 = vpop.permute.xlu1 %13865 }
0x12ca   : > { %v14837_v41 = vpop.f32.mrb[203].mxu1 }
0x12cb   : > { %v14838_v0 = vadd.f32 %v14837_v41, %v14836_v62  ;;  %v13871_v41 = vpop.permute.xlu0 %13870 }
0x12cd   : > { %v13521_v49 = vpack.c.bf16 %v14838_v0, %v14835_v19 }
0x12df   : > { %v14855_v31 = vpop.f32.mrb[204].mxu1 }
0x12e0   : > { %v14856_v6 = vpop.f32.mrb[205].mxu1 }
0x12e1   : > { %v14857_v5 = vadd.f32 %v14856_v6, %v14855_v31  ;;  %v14858_v16 = vpop.f32.mrb[206].mxu1 }
0x12e2   : > { %v14859_v63 = vpop.f32.mrb[207].mxu1 }
0x12e3   : > { %v14860_v48 = vadd.f32 %v14859_v63, %v14858_v16 }
0x12e5   : > { %v13522_v14 = vpack.c.bf16 %v14860_v48, %v14857_v5 }
0x12e7   : > { %v14861_v25 = vpop.f32.mrb[208].mxu1  ;;  %14913 = vmatprep.subr.bf16.mxu1 %v13522_v14 }
0x12e8   : > { %v14862_v17 = vpop.f32.mrb[209].mxu1  ;;  %14914 = vmatpush3.bf16.msra.mxu1 %v13522_v14 }
0x12e9   : > { %v14863_v12 = vadd.f32 %v14862_v17, %v14861_v25  ;;  %v14864_v52 = vpop.f32.mrb[210].mxu1 }
0x12ea   : > { %v14865_v34 = vpop.f32.mrb[211].mxu1 }
0x12eb   : > { %v14866_v47 = vadd.f32 %v14865_v34, %v14864_v52 }
0x12ed   : > { %v13523_v36 = vpack.c.bf16 %v14866_v47, %v14863_v12 }
0x12ef   : > { %14915 = vmatprep.subr.bf16.mxu1 %v13523_v36 }
0x12f0   : > { %14916 = vmatpush3.bf16.msra.mxu1 %v13523_v36 }
0x12f1   : > { %14925 = vmatprep.subr.bf16.mxu1 %v13520_v20 }
0x12f3   : > { %14918 = vmatmul.mubr.msk.bf16.vlgmr.msra.gmra.mrb[220].mxu1 %vm1428_vm0, %v16831_v35 }
0x12f4   : > { %14926 = vmatpush3.bf16.msra.mxu1 %v13520_v20  ;;  %14921 = vmatprep.mubr.msk.bf16.mxu1 %vm1428_vm0, %v16832_v37 }
0x12f5   : > { %14927 = vmatprep.subr.bf16.mxu1 %v13521_v49 }
0x12f8   : > { %14928 = vmatpush3.bf16.msra.mxu1 %v13521_v49 }
0x12fb   : > { %14922 = vmatmul.mubr.msk.bf16.gmra.mrb[224].mxu1 %vm1428_vm0, %v16833_v53 }
0x12fc   : > { %14929 = vmatprep.mubr.msk.bf16.mxu1 %vm1428_vm0, %v16834_v9 }
0x12ff   : > { %v14883_v3 = vpop.f32.mrb[212].mxu1 }
0x1300   : > { %v14884_v44 = vpop.f32.mrb[213].mxu1 }
0x1301   : > { %v14885_v29 = vadd.f32 %v14884_v44, %v14883_v3  ;;  %v14886_v56 = vpop.f32.mrb[214].mxu1 }
0x1302   : > { %v14887_v50 = vpop.f32.mrb[215].mxu1 }
0x1303   : > { %v14888_v40 = vadd.f32 %v14887_v50, %v14886_v56  ;;  %14930 = vmatmul.mubr.msk.bf16.vlgmr.msra.gmra.mrb[220].mxu1 %vm1428_vm0, %v16835_v28 }
0x1304   : > { %14933 = vmatprep.mubr.msk.bf16.mxu1 %vm1428_vm0, %v16836_v26 }
0x1305   : > { %v13718_v51 = vpack.c.bf16 %v14888_v40, %v14885_v29 }
0x1307   : > { %v14889_v21 = vpop.f32.mrb[216].mxu1  ;;  %14937 = vmatprep.subr.bf16.mxu1 %v13718_v51 }
0x1308   : > { %v14890_v10 = vpop.f32.mrb[217].mxu1  ;;  %14938 = vmatpush3.bf16.msra.mxu1 %v13718_v51 }
0x1309   : > { %v14891_v61 = vadd.f32 %v14890_v10, %v14889_v21  ;;  %v14892_v57 = vpop.f32.mrb[218].mxu1 }
0x130a   : > { %v14893_v11 = vpop.f32.mrb[219].mxu1 }
0x130b   : > { %v14894_v54 = vadd.f32 %v14893_v11, %v14892_v57  ;;  %14934 = vmatmul.mubr.msk.bf16.gmra.mrb[224].mxu1 %vm1428_vm0, %v16837_v13 }
0x130c   : > { %14941 = vmatprep.mubr.msk.bf16.mxu1 %vm1428_vm0, %v16838_v58 }
0x130d   : > { %v13719_v22 = vpack.c.bf16 %v14894_v54, %v14891_v61 }
0x130f   : > { %14939 = vmatprep.subr.bf16.mxu1 %v13719_v22 }
0x1310   : > { %14940 = vmatpush3.bf16.msra.mxu1 %v13719_v22 }
0x1313   : > { %14942 = vmatmul.mubr.msk.bf16.vlgmr.msra.gmra.mrb[220].mxu1 %vm1428_vm0, %v16839_v39 }
0x1314   : > { %14945 = vmatprep.mubr.msk.bf16.mxu1 %vm1428_vm0, %v16840_v46 }
0x131b   : > { %14946 = vmatmul.mubr.msk.bf16.gmra.mrb[224].mxu1 %vm1428_vm0, %v16841_v60 }
0x13e6   : > { %v14943_v15 = vpop.f32.mrb[220].mxu1 }
0x13e7   : > { %v13875_v55 = vadd.f32 %v14943_v15, %v13846_v7  ;;  %v13786_v24 = vpop.f32.mrb[221].mxu1 }
0x13e8   : > { %v13873_v38 = vadd.f32 %v13836_v45, %v13786_v24  ;;  %v14944_v4 = vpop.f32.mrb[222].mxu1 }
0x13e9   : > { %v13883_v27 = vmax.f32 %v13875_v55, 0.0  ;;  %v13876_v18 = vadd.f32 %v14944_v4, %v13851_v42  ;;  %v13789_v23 = vpop.f32.mrb[223].mxu1 }
0x13ea   : > { %v13881_v1 = vmax.f32 %v13873_v38, 0.0  ;;  %v13874_v2 = vadd.f32 %v13841_v59, %v13789_v23 }
0x13eb   : > { %13891 = vst.msk [vmem:[%s22076_s20 + $0x10] sm:$0xff] %vm1428_vm0, %v13883_v27  ;;  %v13884_v8 = vmax.f32 %v13876_v18, 0.0 }
0x13ec   : > { %13889 = vst.msk [vmem:[%s22076_s20] sm:$0xff] %vm1428_vm0, %v13881_v1  ;;  %v13882_v20 = vmax.f32 %v13874_v2, 0.0 }
0x13ed   : > { %13892 = vst.msk [vmem:[%s22076_s20 + $0x18] sm:$0xff] %vm1428_vm0, %v13884_v8 }
0x13ee   : > { %13890 = vst.msk [vmem:[%s22076_s20 + $0x8] sm:$0xff] %vm1428_vm0, %v13882_v20  ;;  %v14947_v32 = vpop.f32.mrb[224].mxu1 }
0x13ef   : > { %v13879_v19 = vadd.f32 %v14947_v32, %v13866_v43  ;;  %v13802_v62 = vpop.f32.mrb[225].mxu1 }
0x13f0   : > { %v13877_v0 = vadd.f32 %v13856_v30, %v13802_v62  ;;  %v14948_v49 = vpop.f32.mrb[226].mxu1 }
0x13f1   : > { %v13887_v31 = vmax.f32 %v13879_v19, 0.0  ;;  %v13880_v6 = vadd.f32 %v14948_v49, %v13871_v41  ;;  %v13805_v5 = vpop.f32.mrb[227].mxu1 }
0x13f2   : > { %v13885_v16 = vmax.f32 %v13877_v0, 0.0  ;;  %v13878_v63 = vadd.f32 %v13861_v33, %v13805_v5 }
0x13f3   : > { %13895 = vst.msk [vmem:[%s22076_s20 + $0x30] sm:$0xff] %vm1428_vm0, %v13887_v31  ;;  %v13888_v48 = vmax.f32 %v13880_v6, 0.0 }
0x13f4   : > { %13893 = vst.msk [vmem:[%s22076_s20 + $0x20] sm:$0xff] %vm1428_vm0, %v13885_v16  ;;  %v13886_v14 = vmax.f32 %v13878_v63, 0.0 }
0x13f5   : > { %13896 = vst.msk [vmem:[%s22076_s20 + $0x38] sm:$0xff] %vm1428_vm0, %v13888_v48 }
0x13f6   : > { %13894 = vst.msk [vmem:[%s22076_s20 + $0x28] sm:$0xff] %vm1428_vm0, %v13886_v14 }
0x13f7 PF: > { %s26_s21 = sadd.s32 1, %s16852_s21  }
0x13f8   : > { %p23_p4 = scmp.ge.s32.totalorder %s26_s21, 4  }
0x13fa   :  { %25 = sbr.rel (!%p23_p4) target bundleno = 2 (0x2), region = 134 }

</bundles_post_ra>
